<compile_context>
chip_gen: v7x
topology: tpu7x:2x2x1
jax: 0.10.0
libtpu: 0.0.40
codegen_flags: <defaults>
</compile_context>

<pallas_src>
import jax
import jax.numpy as jnp
import numpy as np
from jax.experimental import pallas as pl
from jax.experimental.pallas import tpu as pltpu

EPS = 1e-5


def _round_up(n, m):
    return ((n + m - 1) // m) * m


def _mlp_kernel(x_ref,
                w1_ref, t1_ref,
                w2_ref, t2_ref,
                w3_ref, t3_ref,
                w4_ref, b4_ref,
                out_ref):
    # Layer 1: Linear (BN scale folded into W) -> shift -> ReLU
    h = jnp.dot(x_ref[...].astype(jnp.bfloat16), w1_ref[...],
                preferred_element_type=jnp.float32)
    h = jnp.maximum(h + t1_ref[...], 0.0)
    # Layer 2: Linear -> shift -> ReLU   (Dropout = identity in eval)
    h = jnp.dot(h.astype(jnp.bfloat16), w2_ref[...],
                preferred_element_type=jnp.float32)
    h = jnp.maximum(h + t2_ref[...], 0.0)
    # Layer 3: Linear -> shift -> ReLU   (padded to 640 lanes; padding stays exactly 0)
    h = jnp.dot(h.astype(jnp.bfloat16), w3_ref[...],
                preferred_element_type=jnp.float32)
    h = jnp.maximum(h + t3_ref[...], 0.0)
    # Output layer: plain Linear (logits padded to a 128-multiple of lanes)
    h = jnp.dot(h.astype(jnp.bfloat16), w4_ref[...],
                preferred_element_type=jnp.float32)
    out_ref[...] = (h + b4_ref[...]).astype(out_ref.dtype)


def _fold_bn_into_weight(w, bias, gamma, beta, mean, var):
    """Fold eval-mode BatchNorm1d + linear bias:  BN(x@W + b)  ==  x@(W*s) + t."""
    s = gamma / jnp.sqrt(var + EPS)                  # per-output-feature scale
    w_s = w * s.reshape(1, -1)                       # folded into weight columns (f32)
    t = s * (bias - mean) + beta                     # per-output-feature shift
    return w_s, t.reshape(1, -1)


def prepare_params(params):
    """One-time preprocessing: fold BN into weights, cast weights to bf16, zero-pad the
    514-wide hidden layer and the logits dim to 128-multiples.
    Returns (prepared_dict, num_class)."""
    w1, t1 = _fold_bn_into_weight(params["w1"], params["b1"], params["g1"],
                                  params["be1"], params["m1"], params["v1"])
    w2, t2 = _fold_bn_into_weight(params["w2"], params["b2"], params["g2"],
                                  params["be2"], params["m2"], params["v2"])
    w3, t3 = _fold_bn_into_weight(params["w3"], params["b3"], params["g3"],
                                  params["be3"], params["m3"], params["v3"])

    h3 = w3.shape[1]                                 # 514
    h3p = _round_up(h3, 128)                         # 640
    num_class = params["w4"].shape[1]
    cp = _round_up(num_class, 128)                   # >= 128

    w3p = jnp.pad(w3, ((0, 0), (0, h3p - h3)))
    t3p = jnp.pad(t3, ((0, 0), (0, h3p - h3)))
    w4p = jnp.pad(params["w4"], ((0, h3p - h3), (0, cp - num_class)))
    b4p = jnp.pad(params["b4"].reshape(1, -1), ((0, 0), (0, cp - num_class)))

    prep = dict(
        w1=w1.astype(jnp.bfloat16), t1=t1,
        w2=w2.astype(jnp.bfloat16), t2=t2,
        w3=w3p.astype(jnp.bfloat16), t3=t3p,
        w4=w4p.astype(jnp.bfloat16), b4=b4p,
    )
    return prep, num_class


def multiclass_classification_forward(x, prep, num_class):
    """x: (batch, num_feature) float32 -> logits (batch, num_class) float32."""
    batch, num_feature = x.shape
    h1 = prep["w1"].shape[1]
    h2 = prep["w2"].shape[1]
    h3p = prep["w3"].shape[1]
    cp = prep["w4"].shape[1]

    # Batch tiling: single tile for small batch, 256-row tiles otherwise.
    if batch >= 256:
        tb = 256
        b_pad = _round_up(batch, tb)
    else:
        b_pad = _round_up(batch, 8)
        tb = b_pad
    if b_pad != batch:
        x = jnp.pad(x, ((0, b_pad - batch), (0, 0)))
    grid = (b_pad // tb,)

    batched = lambda i: (i, 0)      # activations / output: blocked over batch
    resident = lambda i: (0, 0)     # weights & shifts: fetched once, VMEM-resident

    out = pl.pallas_call(
        _mlp_kernel,
        out_shape=jax.ShapeDtypeStruct((b_pad, cp), jnp.float32),
        grid=grid,
        in_specs=[
            pl.BlockSpec((tb, num_feature), batched),
            pl.BlockSpec((num_feature, h1), resident),
            pl.BlockSpec((1, h1), resident),
            pl.BlockSpec((h1, h2), resident),
            pl.BlockSpec((1, h2), resident),
            pl.BlockSpec((h2, h3p), resident),
            pl.BlockSpec((1, h3p), resident),
            pl.BlockSpec((h3p, cp), resident),
            pl.BlockSpec((1, cp), resident),
        ],
        out_specs=pl.BlockSpec((tb, cp), batched),
        compiler_params=pltpu.CompilerParams(
            dimension_semantics=("parallel",),
            vmem_limit_bytes=32 * 1024 * 1024,
        ),
    )(x,
      prep["w1"], prep["t1"],
      prep["w2"], prep["t2"],
      prep["w3"], prep["t3"],
      prep["w4"], prep["b4"])
    return out[:batch, :num_class]


def _reference_forward(x, params):
    """Pure-JAX f32 reference (eval-mode semantics), for verification."""
    def lin_bn_relu(h, w, b, g, be, m, v):
        h = h @ w + b
        h = g * (h - m) / jnp.sqrt(v + EPS) + be
        return jnp.maximum(h, 0.0)

    h = lin_bn_relu(x, params["w1"], params["b1"], params["g1"], params["be1"],
                    params["m1"], params["v1"])
    h = lin_bn_relu(h, params["w2"], params["b2"], params["g2"], params["be2"],
                    params["m2"], params["v2"])
    h = lin_bn_relu(h, params["w3"], params["b3"], params["g3"], params["be3"],
                    params["m3"], params["v3"])
    return h @ params["w4"] + params["b4"]


def _init_params(key, num_feature, num_class):
    dims = [(num_feature, 2048), (2048, 1024), (1024, 514), (514, num_class)]
    params = {}
    keys = jax.random.split(key, 4 * 2 + 3 * 4)
    ki = 0
    for i, (fin, fout) in enumerate(dims, start=1):
        bound = 1.0 / np.sqrt(fin)
        params[f"w{i}"] = jax.random.uniform(keys[ki], (fin, fout), jnp.float32,
                                             -bound, bound); ki += 1
        params[f"b{i}"] = jax.random.uniform(keys[ki], (fout,), jnp.float32,
                                             -bound, bound); ki += 1
    for i, (_, fout) in enumerate(dims[:3], start=1):
        params[f"g{i}"] = jax.random.uniform(keys[ki], (fout,), jnp.float32, 0.5, 1.5); ki += 1   # gamma
        params[f"be{i}"] = 0.1 * jax.random.normal(keys[ki], (fout,), jnp.float32); ki += 1       # beta
        params[f"m{i}"] = 0.1 * jax.random.normal(keys[ki], (fout,), jnp.float32); ki += 1        # running_mean
        params[f"v{i}"] = jax.random.uniform(keys[ki], (fout,), jnp.float32, 0.5, 1.5); ki += 1   # running_var
    return params


if __name__ == "__main__":
    num_feature, num_class, batch = 32, 10, 8
    key = jax.random.PRNGKey(0)
    k_params, k_x = jax.random.split(key)
    params = _init_params(k_params, num_feature, num_class)
    x = jax.random.normal(k_x, (batch, num_feature), jnp.float32)

    # One-time parameter preparation (BN folding, bf16 cast, lane-dense padding).
    prep, nc = prepare_params(params)
    prep = jax.tree_util.tree_map(jax.block_until_ready, prep)

    out = multiclass_classification_forward(x, prep, nc)
    out = jax.block_until_ready(out)

    ref = _reference_forward(x, params)
    # Looser tolerance than a pure-f32 version because weights/activations run
    # through bf16 on the MXU (intended perf/precision tradeoff).
    np.testing.assert_allclose(np.asarray(out), np.asarray(ref), rtol=5e-2, atol=5e-2)

    print("KERNEL_OK")
</pallas_src>

<mosaic_0001>
module attributes {stable_mosaic.version = 11 : i64} {
  func.func @_mlp_kernel(%arg0: i32, %arg1: memref<8x32xf32, #tpu.memory_space<vmem>>, %arg2: memref<32x2048xbf16, #tpu.memory_space<vmem>>, %arg3: memref<1x2048xf32, #tpu.memory_space<vmem>>, %arg4: memref<2048x1024xbf16, #tpu.memory_space<vmem>>, %arg5: memref<1x1024xf32, #tpu.memory_space<vmem>>, %arg6: memref<1024x640xbf16, #tpu.memory_space<vmem>>, %arg7: memref<1x640xf32, #tpu.memory_space<vmem>>, %arg8: memref<640x128xbf16, #tpu.memory_space<vmem>>, %arg9: memref<1x128xf32, #tpu.memory_space<vmem>>, %arg10: memref<8x128xf32, #tpu.memory_space<vmem>>) attributes {dimension_semantics = [#tpu.dimension_semantics<parallel>], iteration_bounds = array<i64: 1>, scalar_prefetch = 0 : i64, scratch_operands = 0 : i64, tpu.core_type = #tpu.core_type<tc>, window_params = [{transform_indices = @transform_0, window_bounds = array<i64: 8, 32>}, {pipeline_mode = #tpu.pipeline_mode<synchronous>, transform_indices = @transform_1, window_bounds = array<i64: 32, 2048>}, {pipeline_mode = #tpu.pipeline_mode<synchronous>, transform_indices = @transform_2, window_bounds = array<i64: 1, 2048>}, {pipeline_mode = #tpu.pipeline_mode<synchronous>, transform_indices = @transform_3, window_bounds = array<i64: 2048, 1024>}, {pipeline_mode = #tpu.pipeline_mode<synchronous>, transform_indices = @transform_4, window_bounds = array<i64: 1, 1024>}, {pipeline_mode = #tpu.pipeline_mode<synchronous>, transform_indices = @transform_5, window_bounds = array<i64: 1024, 640>}, {pipeline_mode = #tpu.pipeline_mode<synchronous>, transform_indices = @transform_6, window_bounds = array<i64: 1, 640>}, {pipeline_mode = #tpu.pipeline_mode<synchronous>, transform_indices = @transform_7, window_bounds = array<i64: 640, 128>}, {pipeline_mode = #tpu.pipeline_mode<synchronous>, transform_indices = @transform_8, window_bounds = array<i64: 1, 128>}, {transform_indices = @transform_9, window_bounds = array<i64: 8, 128>}]} {
    %c0 = arith.constant 0 : index
    %c0_0 = arith.constant 0 : index
    %0 = vector.load %arg1[%c0, %c0_0] : memref<8x32xf32, #tpu.memory_space<vmem>>, vector<8x32xf32>
    %1 = arith.truncf %0 : vector<8x32xf32> to vector<8x32xbf16>
    %c0_1 = arith.constant 0 : index
    %c0_2 = arith.constant 0 : index
    %2 = vector.load %arg2[%c0_1, %c0_2] : memref<32x2048xbf16, #tpu.memory_space<vmem>>, vector<32x2048xbf16>
    %cst = arith.constant dense<0.000000e+00> : vector<8x2048xf32>
    %3 = tpu.matmul %1, %2, %cst {dimension_numbers = #tpu.dot_dimension_numbers<[1], [0], [0], [1], [0, 0, 1, 1], [], []>} : vector<8x32xbf16>, vector<32x2048xbf16>, vector<8x2048xf32> -> vector<8x2048xf32>
    %c0_3 = arith.constant 0 : index
    %c0_4 = arith.constant 0 : index
    %4 = vector.load %arg3[%c0_3, %c0_4] : memref<1x2048xf32, #tpu.memory_space<vmem>>, vector<1x2048xf32>
    %5 = vector.broadcast %4 : vector<1x2048xf32> to vector<8x2048xf32>
    %6 = arith.addf %3, %5 : vector<8x2048xf32>
    %cst_5 = arith.constant 0.000000e+00 : f32
    %7 = vector.broadcast %cst_5 : f32 to vector<8x2048xf32>
    %8 = arith.maximumf %6, %7 : vector<8x2048xf32>
    %9 = arith.truncf %8 : vector<8x2048xf32> to vector<8x2048xbf16>
    %c0_6 = arith.constant 0 : index
    %c0_7 = arith.constant 0 : index
    %10 = vector.load %arg4[%c0_6, %c0_7] : memref<2048x1024xbf16, #tpu.memory_space<vmem>>, vector<2048x1024xbf16>
    %cst_8 = arith.constant dense<0.000000e+00> : vector<8x1024xf32>
    %11 = tpu.matmul %9, %10, %cst_8 {dimension_numbers = #tpu.dot_dimension_numbers<[1], [0], [0], [1], [0, 0, 1, 1], [], []>} : vector<8x2048xbf16>, vector<2048x1024xbf16>, vector<8x1024xf32> -> vector<8x1024xf32>
    %c0_9 = arith.constant 0 : index
    %c0_10 = arith.constant 0 : index
    %12 = vector.load %arg5[%c0_9, %c0_10] : memref<1x1024xf32, #tpu.memory_space<vmem>>, vector<1x1024xf32>
    %13 = vector.broadcast %12 : vector<1x1024xf32> to vector<8x1024xf32>
    %14 = arith.addf %11, %13 : vector<8x1024xf32>
    %cst_11 = arith.constant 0.000000e+00 : f32
    %15 = vector.broadcast %cst_11 : f32 to vector<8x1024xf32>
    %16 = arith.maximumf %14, %15 : vector<8x1024xf32>
    %17 = arith.truncf %16 : vector<8x1024xf32> to vector<8x1024xbf16>
    %c0_12 = arith.constant 0 : index
    %c0_13 = arith.constant 0 : index
    %18 = vector.load %arg6[%c0_12, %c0_13] : memref<1024x640xbf16, #tpu.memory_space<vmem>>, vector<1024x640xbf16>
    %cst_14 = arith.constant dense<0.000000e+00> : vector<8x640xf32>
    %19 = tpu.matmul %17, %18, %cst_14 {dimension_numbers = #tpu.dot_dimension_numbers<[1], [0], [0], [1], [0, 0, 1, 1], [], []>} : vector<8x1024xbf16>, vector<1024x640xbf16>, vector<8x640xf32> -> vector<8x640xf32>
    %c0_15 = arith.constant 0 : index
    %c0_16 = arith.constant 0 : index
    %20 = vector.load %arg7[%c0_15, %c0_16] : memref<1x640xf32, #tpu.memory_space<vmem>>, vector<1x640xf32>
    %21 = vector.broadcast %20 : vector<1x640xf32> to vector<8x640xf32>
    %22 = arith.addf %19, %21 : vector<8x640xf32>
    %cst_17 = arith.constant 0.000000e+00 : f32
    %23 = vector.broadcast %cst_17 : f32 to vector<8x640xf32>
    %24 = arith.maximumf %22, %23 : vector<8x640xf32>
    %25 = arith.truncf %24 : vector<8x640xf32> to vector<8x640xbf16>
    %c0_18 = arith.constant 0 : index
    %c0_19 = arith.constant 0 : index
    %26 = vector.load %arg8[%c0_18, %c0_19] : memref<640x128xbf16, #tpu.memory_space<vmem>>, vector<640x128xbf16>
    %cst_20 = arith.constant dense<0.000000e+00> : vector<8x128xf32>
    %27 = tpu.matmul %25, %26, %cst_20 {dimension_numbers = #tpu.dot_dimension_numbers<[1], [0], [0], [1], [0, 0, 1, 1], [], []>} : vector<8x640xbf16>, vector<640x128xbf16>, vector<8x128xf32> -> vector<8x128xf32>
    %c0_21 = arith.constant 0 : index
    %c0_22 = arith.constant 0 : index
    %28 = vector.load %arg9[%c0_21, %c0_22] : memref<1x128xf32, #tpu.memory_space<vmem>>, vector<1x128xf32>
    %29 = vector.broadcast %28 : vector<1x128xf32> to vector<8x128xf32>
    %30 = arith.addf %27, %29 : vector<8x128xf32>
    %c0_23 = arith.constant 0 : index
    %c0_24 = arith.constant 0 : index
    %31 = vector.load %arg10[%c0_23, %c0_24] : memref<8x128xf32, #tpu.memory_space<vmem>>, vector<8x128xf32>
    tpu.vector_store %arg10[%c0_23, %c0_24], %30 {strides = array<i32>} : memref<8x128xf32, #tpu.memory_space<vmem>>, vector<8x128xf32>,
    return
  }
  func.func @transform_0(%arg0: i32) -> (i32, i32) {
    %c0_i32 = arith.constant 0 : i32
    %c0_i32_0 = arith.constant 0 : i32
    return %arg0, %c0_i32 : i32, i32
  }
  func.func @transform_1(%arg0: i32) -> (i32, i32) {
    %c0_i32 = arith.constant 0 : i32
    %c0_i32_0 = arith.constant 0 : i32
    %c0_i32_1 = arith.constant 0 : i32
    return %c0_i32, %c0_i32_0 : i32, i32
  }
  func.func @transform_2(%arg0: i32) -> (i32, i32) {
    %c0_i32 = arith.constant 0 : i32
    %c0_i32_0 = arith.constant 0 : i32
    %c0_i32_1 = arith.constant 0 : i32
    return %c0_i32, %c0_i32_0 : i32, i32
  }
  func.func @transform_3(%arg0: i32) -> (i32, i32) {
    %c0_i32 = arith.constant 0 : i32
    %c0_i32_0 = arith.constant 0 : i32
    %c0_i32_1 = arith.constant 0 : i32
    return %c0_i32, %c0_i32_0 : i32, i32
  }
  func.func @transform_4(%arg0: i32) -> (i32, i32) {
    %c0_i32 = arith.constant 0 : i32
    %c0_i32_0 = arith.constant 0 : i32
    %c0_i32_1 = arith.constant 0 : i32
    return %c0_i32, %c0_i32_0 : i32, i32
  }
  func.func @transform_5(%arg0: i32) -> (i32, i32) {
    %c0_i32 = arith.constant 0 : i32
    %c0_i32_0 = arith.constant 0 : i32
    %c0_i32_1 = arith.constant 0 : i32
    return %c0_i32, %c0_i32_0 : i32, i32
  }
  func.func @transform_6(%arg0: i32) -> (i32, i32) {
    %c0_i32 = arith.constant 0 : i32
    %c0_i32_0 = arith.constant 0 : i32
    %c0_i32_1 = arith.constant 0 : i32
    return %c0_i32, %c0_i32_0 : i32, i32
  }
  func.func @transform_7(%arg0: i32) -> (i32, i32) {
    %c0_i32 = arith.constant 0 : i32
    %c0_i32_0 = arith.constant 0 : i32
    %c0_i32_1 = arith.constant 0 : i32
    return %c0_i32, %c0_i32_0 : i32, i32
  }
  func.func @transform_8(%arg0: i32) -> (i32, i32) {
    %c0_i32 = arith.constant 0 : i32
    %c0_i32_0 = arith.constant 0 : i32
    %c0_i32_1 = arith.constant 0 : i32
    return %c0_i32, %c0_i32_0 : i32, i32
  }
  func.func @transform_9(%arg0: i32) -> (i32, i32) {
    %c0_i32 = arith.constant 0 : i32
    %c0_i32_0 = arith.constant 0 : i32
    return %arg0, %c0_i32 : i32, i32
  }
}

</mosaic_0001>

<bundles_post_ra>
// kernel: tpu_custom_call.1
= control target key start
LH: loop header
LB: loop body
LE: loop exit
PB: predicated region body
PF: predicated region fallthrough
CT: control target
= control target key end

     0   :  { %14 = vsyncpa [#allocation3], 0  ;;  %s14329_s0 = inlined_call_operand.hbm [shape: f32[8,32], index: 0, kind: input, shape index: {}]   ;;  %s14330_s1 = inlined_call_operand.hbm [shape: bf16[32,2048], index: 1, kind: input, shape index: {}]   ;;  %s14331_s2 = inlined_call_operand.hbm [shape: f32[1,2048], index: 2, kind: input, shape index: {}]   ;;  %s14332_s3 = inlined_call_operand.hbm [shape: bf16[2048,1024], index: 3, kind: input, shape index: {}]   ;;  %s14333_s4 = inlined_call_operand.hbm [shape: f32[1,1024], index: 4, kind: input, shape index: {}]   ;;  %s14334_s5 = inlined_call_operand.hbm [shape: bf16[1024,640], index: 5, kind: input, shape index: {}]   ;;  %s14335_s6 = inlined_call_operand.hbm [shape: f32[1,640], index: 6, kind: input, shape index: {}]   ;;  %s14336_s7 = inlined_call_operand.hbm [shape: bf16[640,128], index: 7, kind: input, shape index: {}]   ;;  %s14337_s8 = inlined_call_operand.hbm [shape: f32[1,128], index: 8, kind: input, shape index: {}]   ;;  %s14338_s9 = inlined_call_operand.hbm [shape: f32[8,128], index: 9, kind: output, shape index: {}]  }
   0x1   :  { %15 = vsyncpa [#allocation6], 0 }
   0x2   :  { %16 = vsyncpa [#allocation9], 0 }
   0x3   :  { %17 = vsyncpa [#allocation12], 0 }
   0x4   :  { %18 = vsyncpa [#allocation15], 0 }
   0x5   :  { %19 = vsyncpa [#allocation4], 0  ;;  %s13819_s30 = smov [#allocation5]   ;;  %s13587_s13 = scalar_lea.hbm %s14330_s1, 4096 }
   0x6   :  { %s35_s10 = sshll.u32 %s13819_s30, 4  ;;  %p13588_p0 = scmp.ne.s32.totalorder %s14330_s1, %s13587_s13  ;;  %s36_s10 = int_to_ptr.vmem [resolvable:$true] %s35_s10 }
   0x7   :  { %p13591_p1 = scmp.lt.u32.totalorder %s13587_s13, %s14330_s1 }
   0x9   :  { %p13593_p2 = pnand %p13591_p1, %p13588_p0 }
   0xb   :  { %13596 = shalt.err (!%p13593_p2)
}
   0xc   :  { %s13597_s18 = scalar_lea.vmem %s36_s10, 4096  ;;  %p13602_p4 = scmp.lt.s32.totalorder %s36_s10, %s36_s10 }
   0xd   :  { %p13598_p3 = scmp.ne.s32.totalorder %s36_s10, %s13597_s18  ;;  %p13603_p5 = scmp.lt.s32.totalorder %s13597_s18, %s13597_s18 }
   0xf   :  { %p13604_p6 = por %p13603_p5, %p13602_p4 }
  0x11   :  { %p13605_p7 = pnand %p13604_p6, %p13598_p3 }
  0x13   :  { %13608 = shalt.err (!%p13605_p7)
}
  0x14   :  { %s13820_s19 = smov 1024   ;;  %s13821_s20 = smov 64  }
  0x15   :  { %41 = dma.hbm_to_vmem [thread:$0]  %s14330_s1, 4096, %s36_s10, [#allocation6], %s13820_s19, %s13820_s19, %s13821_s20  }
  0x16   :  { %s13822_s23 = smov [#allocation8]   ;;  %s13609_s27 = scalar_lea.hbm %s14332_s3, 131072 }
  0x17   :  { %s57_s24 = sshll.u32 %s13822_s23, 4  ;;  %p13610_p8 = scmp.ne.s32.totalorder %s14332_s3, %s13609_s27  ;;  %s58_s24 = int_to_ptr.vmem [resolvable:$true] %s57_s24 }
  0x18   :  { %p13613_p9 = scmp.lt.u32.totalorder %s13609_s27, %s14332_s3 }
  0x1a   :  { %p13615_p10 = pnand %p13613_p9, %p13610_p8 }
  0x1c   :  { %13618 = shalt.err (!%p13615_p10)
}
  0x1d   :  { %s13619_s12 = scalar_lea.vmem %s58_s24, 131072  ;;  %p13624_p12 = scmp.lt.s32.totalorder %s58_s24, %s58_s24 }
  0x1e   :  { %p13620_p11 = scmp.ne.s32.totalorder %s58_s24, %s13619_s12  ;;  %p13625_p13 = scmp.lt.s32.totalorder %s13619_s12, %s13619_s12 }
  0x20   :  { %p13626_p0 = por %p13625_p13, %p13624_p12 }
  0x22   :  { %p13627_p1 = pnand %p13626_p0, %p13620_p11 }
  0x24   :  { %13630 = shalt.err (!%p13627_p1)
}
  0x25   :  { %s13823_s1 = smov 512   ;;  %s13824_s10 = smov 32  }
  0x26   :  { %63 = dma.hbm_to_vmem [thread:$0]  %s14332_s3, 131072, %s58_s24, [#allocation9], %s13823_s1, %s13823_s1, %s13824_s10  }
  0x27   :  { %s13825_s15 = smov [#allocation11]   ;;  %s13631_s19 = scalar_lea.hbm %s14334_s5, 40960 }
  0x28   :  { %s79_s16 = sshll.u32 %s13825_s15, 4  ;;  %p13632_p2 = scmp.ne.s32.totalorder %s14334_s5, %s13631_s19  ;;  %s80_s16 = int_to_ptr.vmem [resolvable:$true] %s79_s16 }
  0x29   :  { %p13635_p3 = scmp.lt.u32.totalorder %s13631_s19, %s14334_s5 }
  0x2b   :  { %p13637_p4 = pnand %p13635_p3, %p13632_p2 }
  0x2d   :  { %13640 = shalt.err (!%p13637_p4)
}
  0x2e   :  { %s13641_s26 = scalar_lea.vmem %s80_s16, 40960  ;;  %p13646_p6 = scmp.lt.s32.totalorder %s80_s16, %s80_s16 }
  0x2f   :  { %p13642_p5 = scmp.ne.s32.totalorder %s80_s16, %s13641_s26  ;;  %p13647_p7 = scmp.lt.s32.totalorder %s13641_s26, %s13641_s26 }
  0x31   :  { %p13648_p8 = por %p13647_p7, %p13646_p6 }
  0x33   :  { %p13649_p9 = pnand %p13648_p8, %p13642_p5 }
  0x35   :  { %13652 = shalt.err (!%p13649_p9)
}
  0x36   :  { %s13826_s3 = smov 320   ;;  %s13827_s24 = smov 20  }
  0x37   :  { %85 = dma.hbm_to_vmem [thread:$0]  %s14334_s5, 40960, %s80_s16, [#allocation12], %s13826_s3, %s13826_s3, %s13827_s24  }
  0x38   :  { %s13828_s29 = smov [#allocation14]   ;;  %s13653_s1 = scalar_lea.hbm %s14336_s7, 5120 }
  0x39   :  { %s101_s30 = sshll.u32 %s13828_s29, 4  ;;  %p13654_p10 = scmp.ne.s32.totalorder %s14336_s7, %s13653_s1  ;;  %s102_s30 = int_to_ptr.vmem [resolvable:$true] %s101_s30 }
  0x3a   :  { %p13657_p11 = scmp.lt.u32.totalorder %s13653_s1, %s14336_s7 }
  0x3c   :  { %p13659_p12 = pnand %p13657_p11, %p13654_p10 }
  0x3e   :  { %13662 = shalt.err (!%p13659_p12)
}
  0x3f   :  { %s13663_s17 = scalar_lea.vmem %s102_s30, 5120  ;;  %p13668_p0 = scmp.lt.s32.totalorder %s102_s30, %s102_s30 }
  0x40   :  { %p13664_p13 = scmp.ne.s32.totalorder %s102_s30, %s13663_s17  ;;  %p13669_p1 = scmp.lt.s32.totalorder %s13663_s17, %s13663_s17 }
  0x42   :  { %p13670_p2 = por %p13669_p1, %p13668_p0 }
  0x44   :  { %p13671_p3 = pnand %p13670_p2, %p13664_p13 }
  0x46   :  { %13674 = shalt.err (!%p13671_p3)
}
  0x47   :  { %s13829_s5 = smov 4   ;;  %s13830_s19 = smov [#allocation2]  }
  0x48   :  { %107 = dma.hbm_to_vmem [thread:$0]  %s14336_s7, 5120, %s102_s30, [#allocation15], %s13821_s20, %s13821_s20, %s13829_s5  }
  0x49   :  { %s26_s21 = sshll.u32 %s13830_s19, 4  ;;  %s13831_s22 = smov [#allocation7]   ;;  %s27_s21 = int_to_ptr.vmem [resolvable:$true] %s26_s21 }
  0x4a   :  { %s48_s23 = sshll.u32 %s13831_s22, 4  ;;  %s13675_s3 = scalar_lea.hbm %s14329_s0, 128  ;;  %s49_s23 = int_to_ptr.vmem [resolvable:$true] %s48_s23 }
  0x4b   :  { %p13676_p4 = scmp.ne.s32.totalorder %s14329_s0, %s13675_s3  ;;  %p13679_p5 = scmp.lt.u32.totalorder %s13675_s3, %s14329_s0 }
  0x4d   :  { %p13681_p6 = pnand %p13679_p5, %p13676_p4 }
  0x4f   :  { %13684 = shalt.err (!%p13681_p6)
}
  0x50   :  { %s13685_s7 = scalar_lea.vmem %s27_s21, 128  ;;  %p13690_p8 = scmp.lt.s32.totalorder %s27_s21, %s27_s21 }
  0x51   :  { %p13686_p7 = scmp.ne.s32.totalorder %s27_s21, %s13685_s7  ;;  %p13691_p9 = scmp.lt.s32.totalorder %s13685_s7, %s13685_s7 }
  0x53   :  { %p13692_p10 = por %p13691_p9, %p13690_p8 }
  0x55   :  { %p13693_p11 = pnand %p13692_p10, %p13686_p7 }
  0x57   :  { %13696 = shalt.err (!%p13693_p11)
}
  0x58   :  { %29 = dma.hbm_to_vmem [thread:$0]  %s14329_s0, 128, %s27_s21, [#allocation3]  }
  0x59   :  { %s13697_s1 = scalar_lea.hbm %s14331_s2, 256 }
  0x5a   :  { %p13698_p12 = scmp.ne.s32.totalorder %s14331_s2, %s13697_s1  ;;  %p13701_p13 = scmp.lt.u32.totalorder %s13697_s1, %s14331_s2 }
  0x5c   :  { %p13703_p0 = pnand %p13701_p13, %p13698_p12 }
  0x5e   :  { %13706 = shalt.err (!%p13703_p0)
}
  0x5f   :  { %s13707_s17 = scalar_lea.vmem %s49_s23, 256  ;;  %p13712_p2 = scmp.lt.s32.totalorder %s49_s23, %s49_s23 }
  0x60   :  { %p13708_p1 = scmp.ne.s32.totalorder %s49_s23, %s13707_s17  ;;  %p13713_p3 = scmp.lt.s32.totalorder %s13707_s17, %s13707_s17 }
  0x62   :  { %p13714_p4 = por %p13713_p3, %p13712_p2 }
  0x64   :  { %p13715_p5 = pnand %p13714_p4, %p13708_p1 }
  0x66   :  { %13718 = shalt.err (!%p13715_p5)
}
  0x67   :  { %51 = dma.hbm_to_vmem [thread:$0]  %s14331_s2, 256, %s49_s23, [#allocation6]  }
  0x68   :  { %s13832_s16 = smov [#allocation10]   ;;  %s13833_s19 = smov [#allocation13]  }
  0x69   :  { %s70_s18 = sshll.u32 %s13832_s16, 4  ;;  %s92_s21 = sshll.u32 %s13833_s19, 4  ;;  %s71_s18 = int_to_ptr.vmem [resolvable:$true] %s70_s18  ;;  %s93_s21 = int_to_ptr.vmem [resolvable:$true] %s92_s21 }
  0x6a   :  { %s13719_s26 = scalar_lea.hbm %s14333_s4, 128 }
  0x6b   :  { %p13720_p6 = scmp.ne.s32.totalorder %s14333_s4, %s13719_s26  ;;  %p13723_p7 = scmp.lt.u32.totalorder %s13719_s26, %s14333_s4 }
  0x6d   :  { %p13725_p8 = pnand %p13723_p7, %p13720_p6 }
  0x6f   :  { %13728 = shalt.err (!%p13725_p8)
}
  0x70   :  { %s13729_s2 = scalar_lea.vmem %s71_s18, 128  ;;  %p13734_p10 = scmp.lt.s32.totalorder %s71_s18, %s71_s18 }
  0x71   :  { %p13730_p9 = scmp.ne.s32.totalorder %s71_s18, %s13729_s2  ;;  %p13735_p11 = scmp.lt.s32.totalorder %s13729_s2, %s13729_s2 }
  0x73   :  { %p13736_p12 = por %p13735_p11, %p13734_p10 }
  0x75   :  { %p13737_p13 = pnand %p13736_p12, %p13730_p9 }
  0x77   :  { %13740 = shalt.err (!%p13737_p13)
}
  0x78   :  { %73 = dma.hbm_to_vmem [thread:$0]  %s14333_s4, 128, %s71_s18, [#allocation9]  }
  0x79   :  { %s13741_s30 = scalar_lea.hbm %s14335_s6, 80 }
  0x7a   :  { %p13742_p0 = scmp.ne.s32.totalorder %s14335_s6, %s13741_s30  ;;  %p13745_p1 = scmp.lt.u32.totalorder %s13741_s30, %s14335_s6 }
  0x7c   :  { %p13747_p2 = pnand %p13745_p1, %p13742_p0 }
  0x7e   :  { %13750 = shalt.err (!%p13747_p2)
}
  0x7f   :  { %s13751_s13 = scalar_lea.vmem %s93_s21, 80  ;;  %s13755_s14 = scalar_lea.vmem %s93_s21, 96 }
  0x80   :  { %p13752_p3 = scmp.ne.s32.totalorder %s93_s21, %s13751_s13  ;;  %p13756_p4 = scmp.lt.s32.totalorder %s93_s21, %s93_s21 }
  0x81   :  { %p13757_p5 = scmp.lt.s32.totalorder %s13755_s14, %s13751_s13 }
  0x83   :  { %p13758_p6 = por %p13757_p5, %p13756_p4 }
  0x85   :  { %p13759_p7 = pnand %p13758_p6, %p13752_p3 }
  0x87   :  { %13762 = shalt.err (!%p13759_p7)
}
  0x88   :  { %95 = dma.hbm_to_vmem [thread:$0]  %s14335_s6, 80, %s93_s21, [#allocation12]  }
  0x89   :  { %s13834_s17 = smov [#allocation16]   ;;  %s13763_s18 = scalar_lea.hbm %s14337_s8, 16 }
  0x8a   :  { %s114_s0 = sshll.u32 %s13834_s17, 4  ;;  %p13764_p8 = scmp.ne.s32.totalorder %s14337_s8, %s13763_s18  ;;  %s115_s0 = int_to_ptr.vmem [resolvable:$true] %s114_s0 }
  0x8b   :  { %p13767_p9 = scmp.lt.u32.totalorder %s13763_s18, %s14337_s8 }
  0x8d   :  { %p13769_p10 = pnand %p13767_p9, %p13764_p8 }
  0x8f   :  { %13772 = shalt.err (!%p13769_p10)
}
  0x90   :  { %s13773_s3 = scalar_lea.vmem %s115_s0, 16  ;;  %s13777_s6 = scalar_lea.vmem %s115_s0, 32 }
  0x91   :  { %p13774_p11 = scmp.ne.s32.totalorder %s115_s0, %s13773_s3  ;;  %p13778_p12 = scmp.lt.s32.totalorder %s115_s0, %s115_s0 }
  0x92   :  { %p13779_p13 = scmp.lt.s32.totalorder %s13777_s6, %s13773_s3 }
  0x94   :  { %p13780_p0 = por %p13779_p13, %p13778_p12 }
  0x96   :  { %p13781_p1 = pnand %p13780_p0, %p13774_p11 }
  0x98   :  { %13784 = shalt.err (!%p13781_p1)
}
  0x99   :  { %117 = dma.hbm_to_vmem [thread:$0]  %s14337_s8, 16, %s115_s0, [#allocation15]  }
  0x9a   :  { %13807 = dma.done.wait [#allocation3], 128  }
  0x9b   :  { %13808 = vsyncadd [#allocation3], 4294967168 }
  0x9c   :  { %13809 = dma.done.wait [#allocation6], 4352  }
  0x9d   :  { %13810 = vsyncadd [#allocation6], 4294962944 }
  0x9e   :  { %13811 = dma.done.wait [#allocation9], 131200  }
  0x9f   :  { %13812 = vsyncadd [#allocation9], 4294836096 }
  0xa0   :  { %13813 = dma.done.wait [#allocation12], 41040  }
  0xa1   :  { %13814 = vsyncadd [#allocation12], 4294926256 }
  0xa2   :  { %13815 = dma.done.wait [#allocation15], 5136  }
  0xa3   :  { %13816 = vsyncadd [#allocation15], 4294962160  ;;  %v13835_v0 = vmov 0   ;;  %v148_v1 = vld [vmem:[#allocation5] sm:$0xff]  ;;  %v149_v8 = vld [vmem:[#allocation5 + $0x8] sm:$0xff]  ;;  %vm424_vm0 = vcmask 261120  }
  0xa4   :  { %460 = vmatprep.mubr.bf16.mxu1 %v13835_v0  ;;  %624 = vmatprep.mubr.bf16.mxu0 %v13835_v0  ;;  %v156_v2 = vld [vmem:[#allocation5 + $0x40] sm:$0xff]  ;;  %v157_v9 = vld [vmem:[#allocation5 + $0x48] sm:$0xff]  ;;  %v146_v11 = vld [vmem:[#allocation2] sm:$0xff]  ;;  %vm13837_vm1 = vmmov 0   ;;  %s13838_s8 = smov [#allocation17]  }
  0xa5   :  { %v164_v3 = vld [vmem:[#allocation5 + $0x80] sm:$0xff]  ;;  %v11343_v4 = vcombine.high %v148_v1, %v156_v2  ;;  %v11342_v5 = vcombine.low %v148_v1, %v156_v2  ;;  %v11345_v12 = vcombine.high %v149_v8, %v157_v9  ;;  %v165_v14 = vld [vmem:[#allocation5 + $0x88] sm:$0xff]  ;;  %v14002_v17 = vpack.c.bf16 %v146_v11, %v146_v11  ;;  %v154_v24 = vld [vmem:[#allocation5 + $0x30] sm:$0xff]  ;;  %s11329_s27 = sshll.u32 %s13838_s8, 4  ;;  %s11330_s27 = int_to_ptr.vmem [resolvable:$true] %s11329_s27 }
  0xa6   :  { %v172_v6 = vld [vmem:[#allocation5 + $0xc0] sm:$0xff]  ;;  %v173_v15 = vld [vmem:[#allocation5 + $0xc8] sm:$0xff]  ;;  %v11344_v22 = vcombine.low %v149_v8, %v157_v9  ;;  %v162_v25 = vld [vmem:[#allocation5 + $0x70] sm:$0xff]  ;;  %s13785_s28 = scalar_lea.vmem %s11330_s27, 128  ;;  %p13790_p3 = scmp.lt.s32.totalorder %s11330_s27, %s11330_s27 }
  0xa7   :  { %v11359_v7 = vcombine.high %v164_v3, %v172_v6  ;;  %428 = vmatprep.subr.bf16.mxu1 %v11343_v4  ;;  %v11358_v10 = vcombine.low %v164_v3, %v172_v6  ;;  %v152_v13 = vld [vmem:[#allocation5 + $0x20] sm:$0xff]  ;;  %v11361_v26 = vcombine.high %v165_v14, %v173_v15  ;;  %v150_v27 = vld [vmem:[#allocation5 + $0x10] sm:$0xff]  ;;  %v11355_v30 = vcombine.high %v154_v24, %v162_v25  ;;  %v151_v43 = vld [vmem:[#allocation5 + $0x18] sm:$0xff]  ;;  %p13786_p2 = scmp.ne.s32.totalorder %s11330_s27, %s13785_s28  ;;  %p13791_p4 = scmp.lt.s32.totalorder %s13785_s28, %s13785_s28 }
  0xa8   :  { %429 = vmatpush1.bf16.msra.mxu1 %v11342_v5  ;;  %v160_v16 = vld [vmem:[#allocation5 + $0x60] sm:$0xff]  ;;  %v158_v28 = vld [vmem:[#allocation5 + $0x50] sm:$0xff]  ;;  %v11360_v31 = vcombine.low %v165_v14, %v173_v15  ;;  %v11354_v37 = vcombine.low %v154_v24, %v162_v25  ;;  %v159_v44 = vld [vmem:[#allocation5 + $0x58] sm:$0xff] }
  0xa9   :  { %430 = vmatprep.subr.bf16.mxu1 %v11359_v7  ;;  %v11351_v18 = vcombine.high %v152_v13, %v160_v16  ;;  %v11350_v19 = vcombine.low %v152_v13, %v160_v16  ;;  %v168_v20 = vld [vmem:[#allocation5 + $0xa0] sm:$0xff]  ;;  %v170_v32 = vld [vmem:[#allocation5 + $0xb0] sm:$0xff]  ;;  %v11347_v34 = vcombine.high %v150_v27, %v158_v28  ;;  %v11346_v39 = vcombine.low %v150_v27, %v158_v28  ;;  %v167_v51 = vld [vmem:[#allocation5 + $0x98] sm:$0xff]  ;;  %p13792_p5 = por %p13791_p4, %p13790_p3 }
  0xaa   :  { %v176_v21 = vld [vmem:[#allocation5 + $0xe0] sm:$0xff]  ;;  %v178_v33 = vld [vmem:[#allocation5 + $0xf0] sm:$0xff]  ;;  %v11349_v50 = vcombine.high %v151_v43, %v159_v44  ;;  %v175_v52 = vld [vmem:[#allocation5 + $0xd8] sm:$0xff]  ;;  %v11348_v55 = vcombine.low %v151_v43, %v159_v44 }
  0xab   :  { %v11367_v23 = vcombine.high %v168_v20, %v176_v21  ;;  %592 = vmatprep.subr.bf16.mxu0 %v11351_v18  ;;  %v11366_v29 = vcombine.low %v168_v20, %v176_v21  ;;  %v166_v35 = vld [vmem:[#allocation5 + $0x90] sm:$0xff]  ;;  %v11371_v38 = vcombine.high %v170_v32, %v178_v33  ;;  %v11370_v45 = vcombine.low %v170_v32, %v178_v33  ;;  %v153_v59 = vld [vmem:[#allocation5 + $0x28] sm:$0xff]  ;;  %v155_v11 = vld [vmem:[#allocation5 + $0x38] sm:$0xff]  ;;  %p13793_p6 = pnand %p13792_p5, %p13786_p2 }
  0xac   :  { %431 = vmatpush1.bf16.msra.mxu1 %v11358_v10  ;;  %593 = vmatpush1.bf16.msra.mxu0 %v11350_v19  ;;  %v174_v36 = vld [vmem:[#allocation5 + $0xd0] sm:$0xff]  ;;  %v11365_v58 = vcombine.high %v167_v51, %v175_v52  ;;  %v161_v60 = vld [vmem:[#allocation5 + $0x68] sm:$0xff]  ;;  %v11364_v63 = vcombine.low %v167_v51, %v175_v52  ;;  %v171_v20 = vld [vmem:[#allocation5 + $0xb8] sm:$0xff] }
  0xad   :  { %469 = vmatprep.subr.bf16.mxu1 %v11345_v12  ;;  %594 = vmatprep.subr.bf16.mxu0 %v11367_v23  ;;  %v788_v40 = vld [vmem:[#allocation8] sm:$0xff]  ;;  %v11363_v42 = vcombine.high %v166_v35, %v174_v36  ;;  %v11362_v47 = vcombine.low %v166_v35, %v174_v36  ;;  %v11353_v3 = vcombine.high %v153_v59, %v161_v60  ;;  %v169_v4 = vld [vmem:[#allocation5 + $0xa8] sm:$0xff]  ;;  %v163_v12 = vld [vmem:[#allocation5 + $0x78] sm:$0xff] }
  0xae   :  { %v792_v41 = vld [vmem:[#allocation8 + $0x20] sm:$0xff]  ;;  %v177_v5 = vld [vmem:[#allocation5 + $0xe8] sm:$0xff]  ;;  %v11352_v10 = vcombine.low %v153_v59, %v161_v60  ;;  %v179_v21 = vld [vmem:[#allocation5 + $0xf8] sm:$0xff]  ;;  %v11356_v27 = vcombine.low %v155_v11, %v163_v12 }
  0xaf   :  { %11374 = vmatmul.mubr.msk.bf16.vlgmr.msra.gmra.mrb[0].mxu1 %vm424_vm0, %v14002_v17  ;;  %v11383_v46 = vcombine.high %v788_v40, %v792_v41  ;;  %v796_v48 = vld [vmem:[#allocation8 + $0x40] sm:$0xff]  ;;  %v11382_v53 = vcombine.low %v788_v40, %v792_v41  ;;  %v11369_v13 = vcombine.high %v169_v4, %v177_v5  ;;  %v11368_v19 = vcombine.low %v169_v4, %v177_v5  ;;  %v789_v28 = vld [vmem:[#allocation8 + $0x8] sm:$0xff] }
  0xb0   :  { %470 = vmatpush1.bf16.msra.mxu1 %v11344_v22  ;;  %501 = vmatprep.mubr.bf16.mxu1 %v13835_v0  ;;  %v800_v49 = vld [vmem:[#allocation8 + $0x60] sm:$0xff]  ;;  %v11357_v22 = vcombine.high %v155_v11, %v163_v12  ;;  %v11372_v35 = vcombine.low %v171_v20, %v179_v21  ;;  %v797_v36 = vld [vmem:[#allocation8 + $0x48] sm:$0xff] }
  0xb1   :  { %471 = vmatprep.subr.bf16.mxu1 %v11361_v26  ;;  %595 = vmatpush1.bf16.msra.mxu0 %v11366_v29  ;;  %v11391_v54 = vcombine.high %v796_v48, %v800_v49  ;;  %v804_v56 = vld [vmem:[#allocation8 + $0x80] sm:$0xff]  ;;  %v11390_v61 = vcombine.low %v796_v48, %v800_v49  ;;  %v793_v29 = vld [vmem:[#allocation8 + $0x28] sm:$0xff] }
  0xb2   :  { %674 = vmatprep.subr.bf16.mxu0 %v11355_v30  ;;  %v808_v57 = vld [vmem:[#allocation8 + $0xa0] sm:$0xff]  ;;  %v11373_v30 = vcombine.high %v171_v20, %v179_v21  ;;  %v11384_v43 = vcombine.low %v789_v28, %v793_v29  ;;  %v805_v44 = vld [vmem:[#allocation8 + $0x88] sm:$0xff] }
  0xb3   :  { %v11399_v62 = vcombine.high %v804_v56, %v808_v57  ;;  %v812_v1 = vld [vmem:[#allocation8 + $0xc0] sm:$0xff]  ;;  %v11398_v6 = vcombine.low %v804_v56, %v808_v57  ;;  %v813_v51 = vld [vmem:[#allocation8 + $0xc8] sm:$0xff] }
  0xb4   :  { %472 = vmatpush1.bf16.msra.mxu1 %v11360_v31  ;;  %11378 = vmatmul.mubr.msk.bf16.vlgmr.msra.gmra.mrb[0].mxu0 %vm424_vm0, %v14002_v17  ;;  %v816_v2 = vld [vmem:[#allocation8 + $0xe0] sm:$0xff]  ;;  %v817_v52 = vld [vmem:[#allocation8 + $0xe8] sm:$0xff] }
  0xb5   :  { %510 = vmatprep.subr.bf16.mxu1 %v11347_v34  ;;  %675 = vmatpush1.bf16.msra.mxu0 %v11354_v37  ;;  %v820_v7 = vld [vmem:[#allocation8 + $0x100] sm:$0xff]  ;;  %v11407_v9 = vcombine.high %v812_v1, %v816_v2  ;;  %v11406_v14 = vcombine.low %v812_v1, %v816_v2  ;;  %v801_v37 = vld [vmem:[#allocation8 + $0x68] sm:$0xff]  ;;  %v11408_v2 = vcombine.low %v813_v51, %v817_v52 }
  0xb6   :  { %706 = vmatprep.mubr.bf16.mxu0 %v13835_v0  ;;  %676 = vmatprep.subr.bf16.mxu0 %v11371_v38  ;;  %v824_v8 = vld [vmem:[#allocation8 + $0x120] sm:$0xff]  ;;  %v11385_v38 = vcombine.high %v789_v28, %v793_v29  ;;  %v821_v59 = vld [vmem:[#allocation8 + $0x108] sm:$0xff] }
  0xb7   :  { %11375 = vmatmul.mubr.msk.bf16.vlgmr.msra.gmra.mrb[4].mxu1 %vm424_vm0, %v14002_v17  ;;  %v828_v15 = vld [vmem:[#allocation8 + $0x140] sm:$0xff]  ;;  %v11415_v18 = vcombine.high %v820_v7, %v824_v8  ;;  %v11414_v23 = vcombine.low %v820_v7, %v824_v8  ;;  %v825_v60 = vld [vmem:[#allocation8 + $0x128] sm:$0xff] }
  0xb8   :  { %511 = vmatpush1.bf16.msra.mxu1 %v11346_v39  ;;  %542 = vmatprep.mubr.bf16.mxu1 %v13835_v0  ;;  %v832_v16 = vld [vmem:[#allocation8 + $0x160] sm:$0xff]  ;;  %v833_v4 = vld [vmem:[#allocation8 + $0x168] sm:$0xff]  ;;  %v11417_v5 = vcombine.high %v821_v59, %v825_v60 }
  0xb9   :  { %512 = vmatprep.subr.bf16.mxu1 %v11363_v42  ;;  %677 = vmatpush1.bf16.msra.mxu0 %v11370_v45  ;;  %v836_v24 = vld [vmem:[#allocation8 + $0x180] sm:$0xff]  ;;  %v11423_v26 = vcombine.high %v828_v15, %v832_v16  ;;  %v11422_v31 = vcombine.low %v828_v15, %v832_v16  ;;  %v809_v45 = vld [vmem:[#allocation8 + $0xa8] sm:$0xff] }
  0xba   :  { %6974 = vmatprep.subr.bf16.mxu0 %v11383_v46  ;;  %v840_v25 = vld [vmem:[#allocation8 + $0x1a0] sm:$0xff]  ;;  %v11393_v46 = vcombine.high %v797_v36, %v801_v37  ;;  %v837_v11 = vld [vmem:[#allocation8 + $0x188] sm:$0xff] }
  0xbb   :  { %v844_v32 = vld [vmem:[#allocation8 + $0x1c0] sm:$0xff]  ;;  %v11431_v34 = vcombine.high %v836_v24, %v840_v25  ;;  %v11430_v39 = vcombine.low %v836_v24, %v840_v25  ;;  %v841_v12 = vld [vmem:[#allocation8 + $0x1a8] sm:$0xff] }
  0xbc   :  { %513 = vmatpush1.bf16.msra.mxu1 %v11362_v47  ;;  %11380 = vmatmul.mubr.msk.bf16.vlgmr.msra.gmra.mrb[4].mxu0 %vm424_vm0, %v14002_v17  ;;  %v848_v33 = vld [vmem:[#allocation8 + $0x1e0] sm:$0xff]  ;;  %v845_v20 = vld [vmem:[#allocation8 + $0x1c8] sm:$0xff]  ;;  %v11432_v25 = vcombine.low %v837_v11, %v841_v12 }
  0xbd   :  { %551 = vmatprep.subr.bf16.mxu1 %v11349_v50  ;;  %6975 = vmatpush1.bf16.msra.mxu0 %v11382_v53  ;;  %v852_v40 = vld [vmem:[#allocation8 + $0x200] sm:$0xff]  ;;  %v11439_v42 = vcombine.high %v844_v32, %v848_v33  ;;  %v11438_v47 = vcombine.low %v844_v32, %v848_v33  ;;  %v11392_v50 = vcombine.low %v797_v36, %v801_v37  ;;  %v849_v21 = vld [vmem:[#allocation8 + $0x1e8] sm:$0xff] }
  0xbe   :  { %6976 = vmatprep.subr.bf16.mxu0 %v11391_v54  ;;  %v856_v41 = vld [vmem:[#allocation8 + $0x220] sm:$0xff]  ;;  %v11401_v53 = vcombine.high %v805_v44, %v809_v45  ;;  %v11441_v28 = vcombine.high %v845_v20, %v849_v21  ;;  %v865_v32 = vld [vmem:[#allocation8 + $0x268] sm:$0xff] }
  0xbf   :  { %11376 = vmatmul.mubr.msk.bf16.vlgmr.msra.gmra.mrb[8].mxu1 %vm424_vm0, %v14002_v17  ;;  %v860_v48 = vld [vmem:[#allocation8 + $0x240] sm:$0xff]  ;;  %v11447_v49 = vcombine.high %v852_v40, %v856_v41  ;;  %v11446_v54 = vcombine.low %v852_v40, %v856_v41  ;;  %v873_v36 = vld [vmem:[#allocation8 + $0x2a8] sm:$0xff] }
  0xc0   :  { %552 = vmatpush1.bf16.msra.mxu1 %v11348_v55  ;;  %583 = vmatprep.mubr.bf16.mxu1 %v13835_v0  ;;  %v868_v55 = vld [vmem:[#allocation8 + $0x280] sm:$0xff]  ;;  %v881_v40 = vld [vmem:[#allocation8 + $0x2e8] sm:$0xff] }
  0xc1   :  { %553 = vmatprep.subr.bf16.mxu1 %v11365_v58  ;;  %6977 = vmatpush1.bf16.msra.mxu0 %v11390_v61  ;;  %v872_v56 = vld [vmem:[#allocation8 + $0x2a0] sm:$0xff]  ;;  %v11400_v58 = vcombine.low %v805_v44, %v809_v45  ;;  %v889_v44 = vld [vmem:[#allocation8 + $0x328] sm:$0xff] }
  0xc2   :  { %6978 = vmatprep.subr.bf16.mxu0 %v11399_v62  ;;  %v876_v62 = vld [vmem:[#allocation8 + $0x2c0] sm:$0xff]  ;;  %v11463_v1 = vcombine.high %v868_v55, %v872_v56 }
  0xc3   :  { %v884_v7 = vld [vmem:[#allocation8 + $0x300] sm:$0xff] }
  0xc4   :  { %554 = vmatpush1.bf16.msra.mxu1 %v11364_v63  ;;  %v880_v63 = vld [vmem:[#allocation8 + $0x2e0] sm:$0xff] }
  0xc5   :  { %633 = vmatprep.subr.bf16.mxu1 %v11353_v3  ;;  %6979 = vmatpush1.bf16.msra.mxu0 %v11398_v6  ;;  %v829_v3 = vld [vmem:[#allocation8 + $0x148] sm:$0xff]  ;;  %v11462_v6 = vcombine.low %v868_v55, %v872_v56  ;;  %v888_v8 = vld [vmem:[#allocation8 + $0x320] sm:$0xff] }
  0xc6   :  { %6980 = vmatprep.subr.bf16.mxu0 %v11407_v9  ;;  %v11471_v9 = vcombine.high %v876_v62, %v880_v63  ;;  %v892_v15 = vld [vmem:[#allocation8 + $0x340] sm:$0xff]  ;;  %v901_v56 = vld [vmem:[#allocation8 + $0x388] sm:$0xff] }
  0xc7   :  { %11377 = vmatmul.mubr.msk.bf16.vlgmr.msra.gmra.mrb[12].mxu1 %vm424_vm0, %v14002_v17  ;;  %v896_v16 = vld [vmem:[#allocation8 + $0x360] sm:$0xff] }
  0xc8   :  { %634 = vmatpush1.bf16.msra.mxu1 %v11352_v10  ;;  %665 = vmatprep.mubr.bf16.mxu1 %v13835_v0  ;;  %v11416_v10 = vcombine.low %v821_v59, %v825_v60  ;;  %v11487_v24 = vcombine.high %v892_v15, %v896_v16  ;;  %v11486_v29 = vcombine.low %v892_v15, %v896_v16  ;;  %v14031_v15 = vld [vmem:[#allocation7] sm:$0xff] }
  0xc9   :  { %635 = vmatprep.subr.bf16.mxu1 %v11369_v13  ;;  %6981 = vmatpush1.bf16.msra.mxu0 %v11406_v14  ;;  %v11425_v13 = vcombine.high %v829_v3, %v833_v4  ;;  %v11470_v14 = vcombine.low %v876_v62, %v880_v63  ;;  %v917_v62 = vld [vmem:[#allocation8 + $0x408] sm:$0xff] }
  0xca   :  { %6982 = vmatprep.subr.bf16.mxu0 %v11415_v18  ;;  %v11479_v18 = vcombine.high %v884_v7, %v888_v8 }
  0xcc   :  { %636 = vmatpush1.bf16.msra.mxu1 %v11368_v19  ;;  %v11424_v19 = vcombine.low %v829_v3, %v833_v4  ;;  %v921_v4 = vld [vmem:[#allocation8 + $0x428] sm:$0xff] }
  0xcd   :  { %715 = vmatprep.subr.bf16.mxu1 %v11357_v22  ;;  %6983 = vmatpush1.bf16.msra.mxu0 %v11414_v23  ;;  %v11433_v22 = vcombine.high %v837_v11, %v841_v12  ;;  %v11478_v23 = vcombine.low %v884_v7, %v888_v8  ;;  %v11512_v7 = vcombine.low %v917_v62, %v921_v4  ;;  %v184_v12 = vlaneseq }
  0xce   :  { %6984 = vmatprep.subr.bf16.mxu0 %v11423_v26  ;;  %v853_v26 = vld [vmem:[#allocation8 + $0x208] sm:$0xff]  ;;  %v11513_v11 = vcombine.high %v917_v62, %v921_v4 }
  0xcf   :  { %11379 = vmatmul.mubr.msk.bf16.vlgmr.msra.gmra.mrb[16].mxu1 %vm424_vm0, %v14002_v17  ;;  %v949_v62 = vld [vmem:[#allocation8 + $0x508] sm:$0xff] }
  0xd0   :  { %716 = vmatpush1.bf16.msra.mxu1 %v11356_v27  ;;  %747 = vmatprep.mubr.bf16.mxu1 %v13835_v0  ;;  %v864_v0 = vld [vmem:[#allocation8 + $0x260] sm:$0xff]  ;;  %v857_v27 = vld [vmem:[#allocation8 + $0x228] sm:$0xff] }
  0xd1   :  { %717 = vmatprep.subr.bf16.mxu1 %v11373_v30  ;;  %6985 = vmatpush1.bf16.msra.mxu0 %v11422_v31  ;;  %v11455_v57 = vcombine.high %v860_v48, %v864_v0  ;;  %v11454_v61 = vcombine.low %v860_v48, %v864_v0  ;;  %v11440_v30 = vcombine.low %v845_v20, %v849_v21  ;;  %v861_v31 = vld [vmem:[#allocation8 + $0x248] sm:$0xff] }
  0xd2   :  { %6986 = vmatprep.subr.bf16.mxu0 %v11431_v34  ;;  %v11449_v33 = vcombine.high %v853_v26, %v857_v27  ;;  %v11448_v34 = vcombine.low %v853_v26, %v857_v27  ;;  %v11457_v37 = vcombine.high %v861_v31, %v865_v32  ;;  %v893_v0 = vld [vmem:[#allocation8 + $0x348] sm:$0xff] }
  0xd4   :  { %718 = vmatpush1.bf16.msra.mxu1 %v11372_v35  ;;  %v869_v35 = vld [vmem:[#allocation8 + $0x288] sm:$0xff] }
  0xd5   :  { %7302 = vmatprep.subr.bf16.mxu1 %v11385_v38  ;;  %6987 = vmatpush1.bf16.msra.mxu0 %v11430_v39  ;;  %v11456_v38 = vcombine.low %v861_v31, %v865_v32  ;;  %v877_v39 = vld [vmem:[#allocation8 + $0x2c8] sm:$0xff]  ;;  %v11465_v41 = vcombine.high %v869_v35, %v873_v36 }
  0xd6   :  { %6988 = vmatprep.subr.bf16.mxu0 %v11439_v42  ;;  %v11464_v42 = vcombine.low %v869_v35, %v873_v36  ;;  %v11473_v45 = vcombine.high %v877_v39, %v881_v40  ;;  %v11472_v48 = vcombine.low %v877_v39, %v881_v40  ;;  %v929_v32 = vld [vmem:[#allocation8 + $0x468] sm:$0xff]  ;;  %v936_v35 = vld [vmem:[#allocation8 + $0x4a0] sm:$0xff] }
  0xd7   :  { %11381 = vmatmul.mubr.msk.bf16.vlgmr.msra.gmra.mrb[20].mxu1 %vm424_vm0, %v14002_v17  ;;  %v11409_v17 = vcombine.high %v813_v51, %v817_v52  ;;  %v933_v40 = vld [vmem:[#allocation8 + $0x488] sm:$0xff] }
  0xd8   :  { %7303 = vmatpush1.bf16.msra.mxu1 %v11384_v43  ;;  %v885_v43 = vld [vmem:[#allocation8 + $0x308] sm:$0xff] }
  0xd9   :  { %7304 = vmatprep.subr.bf16.mxu1 %v11393_v46  ;;  %6989 = vmatpush1.bf16.msra.mxu0 %v11438_v47  ;;  %v900_v46 = vld [vmem:[#allocation8 + $0x380] sm:$0xff]  ;;  %v11481_v51 = vcombine.high %v885_v43, %v889_v44  ;;  %v11480_v55 = vcombine.low %v885_v43, %v889_v44 }
  0xda   :  { %6990 = vmatprep.subr.bf16.mxu0 %v11447_v49  ;;  %v904_v47 = vld [vmem:[#allocation8 + $0x3a0] sm:$0xff]  ;;  %v897_v49 = vld [vmem:[#allocation8 + $0x368] sm:$0xff] }
  0xdb   :  { %v11494_v52 = vcombine.low %v900_v46, %v904_v47  ;;  %v11489_v59 = vcombine.high %v893_v0, %v897_v49  ;;  %v11488_v63 = vcombine.low %v893_v0, %v897_v49 }
  0xdc   :  { %7305 = vmatpush1.bf16.msra.mxu1 %v11392_v50  ;;  %v11495_v50 = vcombine.high %v900_v46, %v904_v47  ;;  %v940_v46 = vld [vmem:[#allocation8 + $0x4c0] sm:$0xff] }
  0xdd   :  { %7306 = vmatprep.subr.bf16.mxu1 %v11401_v53  ;;  %6991 = vmatpush1.bf16.msra.mxu0 %v11446_v54  ;;  %v908_v53 = vld [vmem:[#allocation8 + $0x3c0] sm:$0xff] }
  0xde   :  { %6992 = vmatprep.subr.bf16.mxu0 %v11455_v57  ;;  %v912_v54 = vld [vmem:[#allocation8 + $0x3e0] sm:$0xff]  ;;  %v905_v57 = vld [vmem:[#allocation8 + $0x3a8] sm:$0xff] }
  0xdf   :  { %v11502_v60 = vcombine.low %v908_v53, %v912_v54  ;;  %v11496_v8 = vcombine.low %v901_v56, %v905_v57 }
  0xe0   :  { %7307 = vmatpush1.bf16.msra.mxu1 %v11400_v58  ;;  %v11503_v58 = vcombine.high %v908_v53, %v912_v54  ;;  %v945_v53 = vld [vmem:[#allocation8 + $0x4e8] sm:$0xff] }
  0xe1   :  { %7308 = vmatprep.subr.bf16.mxu1 %v11409_v17  ;;  %6993 = vmatpush1.bf16.msra.mxu0 %v11454_v61  ;;  %v916_v17 = vld [vmem:[#allocation8 + $0x400] sm:$0xff] }
  0xe2   :  { %6994 = vmatprep.subr.bf16.mxu0 %v11463_v1  ;;  %v920_v61 = vld [vmem:[#allocation8 + $0x420] sm:$0xff]  ;;  %v909_v1 = vld [vmem:[#allocation8 + $0x3c8] sm:$0xff] }
  0xe3   :  { %v11511_v3 = vcombine.high %v916_v17, %v920_v61 }
  0xe4   :  { %7309 = vmatpush1.bf16.msra.mxu1 %v11408_v2  ;;  %v913_v2 = vld [vmem:[#allocation8 + $0x3e8] sm:$0xff] }
  0xe5   :  { %7310 = vmatprep.subr.bf16.mxu1 %v11417_v5  ;;  %6995 = vmatpush1.bf16.msra.mxu0 %v11462_v6  ;;  %v11497_v5 = vcombine.high %v901_v56, %v905_v57  ;;  %v11510_v6 = vcombine.low %v916_v17, %v920_v61  ;;  %v952_v61 = vld [vmem:[#allocation8 + $0x520] sm:$0xff] }
  0xe6   :  { %6996 = vmatprep.subr.bf16.mxu0 %v11471_v9  ;;  %v11505_v9 = vcombine.high %v909_v1, %v913_v2 }
  0xe8   :  { %7311 = vmatpush1.bf16.msra.mxu1 %v11416_v10  ;;  %v11504_v10 = vcombine.low %v909_v1, %v913_v2 }
  0xe9   :  { %7312 = vmatprep.subr.bf16.mxu1 %v11425_v13  ;;  %6997 = vmatpush1.bf16.msra.mxu0 %v11470_v14  ;;  %v14026_v13 = vshrl.u32 %v184_v12, 7  ;;  %v960_v12 = vld [vmem:[#allocation8 + $0x560] sm:$0xff] }
  0xea   :  { %6998 = vmatprep.subr.bf16.mxu0 %v11479_v18 }
  0xeb   :  { %v14029_v14 = vsub.s32 0, %v14026_v13  ;;  %v14034_v16 = vsub.s32 1, %v14026_v13  ;;  %v14041_v26 = vsub.s32 3, %v14026_v13 }
  0xec   :  { %7313 = vmatpush1.bf16.msra.mxu1 %v11424_v19 }
  0xed   :  { %7314 = vmatprep.subr.bf16.mxu1 %v11433_v22  ;;  %6999 = vmatpush1.bf16.msra.mxu0 %v11478_v23  ;;  %v187_v18 = vrot.slane %v14031_v15, %v14029_v14  ;;  %v191_v19 = vrot.slane %v14031_v15, %v14034_v16  ;;  %v199_v36 = vrot.slane %v14031_v15, %v14041_v26 }
  0xee   :  { %7000 = vmatprep.subr.bf16.mxu0 %v11487_v24 }
  0xf0   :  { %7315 = vmatpush1.bf16.msra.mxu1 %v11432_v25  ;;  %v924_v25 = vld [vmem:[#allocation8 + $0x440] sm:$0xff] }
  0xf1   :  { %7316 = vmatprep.subr.bf16.mxu1 %v11441_v28  ;;  %7001 = vmatpush1.bf16.msra.mxu0 %v11486_v29  ;;  %v928_v29 = vld [vmem:[#allocation8 + $0x460] sm:$0xff] }
  0xf2   :  { %7002 = vmatprep.subr.bf16.mxu0 %v11495_v50  ;;  %v11518_v44 = vcombine.low %v924_v25, %v928_v29  ;;  %v944_v50 = vld [vmem:[#allocation8 + $0x4e0] sm:$0xff] }
  0xf4   :  { %7317 = vmatpush1.bf16.msra.mxu1 %v11440_v30  ;;  %v925_v30 = vld [vmem:[#allocation8 + $0x448] sm:$0xff] }
  0xf5   :  { %7318 = vmatprep.subr.bf16.mxu1 %v11449_v33  ;;  %7003 = vmatpush1.bf16.msra.mxu0 %v11494_v52  ;;  %v11521_v39 = vcombine.high %v925_v30, %v929_v32 }
  0xf6   :  { %7004 = vmatprep.subr.bf16.mxu0 %v11503_v58  ;;  %v11535_v58 = vcombine.high %v940_v46, %v944_v50 }
  0xf8   :  { %7319 = vmatpush1.bf16.msra.mxu1 %v11448_v34  ;;  %v932_v34 = vld [vmem:[#allocation8 + $0x480] sm:$0xff] }
  0xf9   :  { %7320 = vmatprep.subr.bf16.mxu1 %v11457_v37  ;;  %7005 = vmatpush1.bf16.msra.mxu0 %v11502_v60  ;;  %v11527_v0 = vcombine.high %v932_v34, %v936_v35  ;;  %v948_v60 = vld [vmem:[#allocation8 + $0x500] sm:$0xff] }
  0xfa   :  { %7015 = vmatprep.subr.bf16.mxu0 %v11511_v3  ;;  %v11534_v3 = vcombine.low %v940_v46, %v944_v50 }
  0xfc   :  { %7321 = vmatpush1.bf16.msra.mxu1 %v11456_v38  ;;  %v11519_v38 = vcombine.high %v924_v25, %v928_v29 }
  0xfd   :  { %7322 = vmatprep.subr.bf16.mxu1 %v11465_v41  ;;  %v937_v41 = vld [vmem:[#allocation8 + $0x4a8] sm:$0xff] }
  0xfe   :  { %v11529_v49 = vcombine.high %v933_v40, %v937_v41  ;;  %v11528_v56 = vcombine.low %v933_v40, %v937_v41 }
 0x100   :  { %7323 = vmatpush1.bf16.msra.mxu1 %v11464_v42 }
 0x101   :  { %7324 = vmatprep.subr.bf16.mxu1 %v11473_v45  ;;  %v11520_v45 = vcombine.low %v925_v30, %v929_v32  ;;  %v965_v32 = vld [vmem:[#allocation8 + $0x588] sm:$0xff] }
 0x104   :  { %7325 = vmatpush1.bf16.msra.mxu1 %v11472_v48 }
 0x105   :  { %7326 = vmatprep.subr.bf16.mxu1 %v11481_v51  ;;  %v941_v51 = vld [vmem:[#allocation8 + $0x4c8] sm:$0xff] }
 0x106   :  { %v11536_v4 = vcombine.low %v941_v51, %v945_v53 }
 0x108   :  { %7327 = vmatpush1.bf16.msra.mxu1 %v11480_v55  ;;  %v11526_v55 = vcombine.low %v932_v34, %v936_v35  ;;  %v969_v34 = vld [vmem:[#allocation8 + $0x5a8] sm:$0xff]  ;;  %v14075_v35 = vsub.s32 5, %v14026_v13 }
 0x109   :  { %7328 = vmatprep.subr.bf16.mxu1 %v11489_v59  ;;  %v11537_v59 = vcombine.high %v941_v51, %v945_v53 }
 0x10c   :  { %7329 = vmatpush1.bf16.msra.mxu1 %v11488_v63  ;;  %v953_v63 = vld [vmem:[#allocation8 + $0x528] sm:$0xff] }
 0x10d   :  { %7330 = vmatprep.subr.bf16.mxu1 %v11497_v5 }
 0x110   :  { %7331 = vmatpush1.bf16.msra.mxu1 %v11496_v8  ;;  %v11545_v8 = vcombine.high %v949_v62, %v953_v63 }
 0x111   :  { %7332 = vmatprep.subr.bf16.mxu1 %v11505_v9  ;;  %v956_v9 = vld [vmem:[#allocation8 + $0x540] sm:$0xff] }
 0x112   :  { %v11551_v25 = vcombine.high %v956_v9, %v960_v12 }
 0x114   :  { %7333 = vmatpush1.bf16.msra.mxu1 %v11504_v10 }
 0x115   :  { %7343 = vmatprep.subr.bf16.mxu1 %v11513_v11 }
 0x182   :  { %v462_v20 = vpop.f32.mrb[0].mxu1 }
 0x183   :  { %v463_v21 = vadd.f32 %v462_v20, %v187_v18  ;;  %v464_v22 = vpop.f32.mrb[1].mxu1  ;;  %v957_v18 = vld [vmem:[#allocation8 + $0x548] sm:$0xff] }
 0x184   :  { %v465_v23 = vadd.f32 %v464_v22, %v191_v19  ;;  %v466_v24 = vpop.f32.mrb[2].mxu1  ;;  %v961_v19 = vld [vmem:[#allocation8 + $0x568] sm:$0xff]  ;;  %v11542_v22 = vcombine.low %v948_v60, %v952_v61 }
 0x185   :  { %v756_v27 = vmax.f32 %v463_v21, 0.0  ;;  %v467_v28 = vpop.f32.mrb[3].mxu1  ;;  %v14068_v21 = vsub.s32 4, %v14026_v13  ;;  %v14070_v24 = vld [vmem:[#allocation7 + $0x8] sm:$0xff] }
 0x186   :  { %v757_v31 = vmax.f32 %v465_v23, 0.0  ;;  %v11544_v23 = vcombine.low %v949_v62, %v953_v63  ;;  %v964_v28 = vld [vmem:[#allocation8 + $0x580] sm:$0xff]  ;;  %v239_v40 = vrot.slane %v14070_v24, %v14075_v35 }
 0x187   :  { %v14047_v37 = vpack.c.bf16 %v756_v27, %v756_v27  ;;  %v14057_v17 = vpop.f32.mrb[0].mxu0  ;;  %v11553_v27 = vcombine.high %v957_v18, %v961_v19  ;;  %v235_v29 = vrot.slane %v14070_v24, %v14068_v21 }
 0x188   :  { %v14043_v33 = vpack.c.bf16 %v757_v31, %v757_v31  ;;  %v968_v31 = vld [vmem:[#allocation8 + $0x5a0] sm:$0xff] }
 0x189   :  { %v11558_v51 = vcombine.low %v964_v28, %v968_v31 }
 0x18a   :  { %7006 = vmatprep.mubr.bf16.mxu0 %v14043_v33  ;;  %7334 = vmatprep.mubr.bf16.mxu1 %v14043_v33  ;;  %v14051_v42 = vpop.f32.mrb[4].mxu1 }
 0x18b   :  { %7007 = vmatmul.mubr.bf16.vlgmr.msra.gmra.mrb[8].mxu0 %v14047_v37  ;;  %7335 = vmatmul.mubr.bf16.vlgmr.msra.gmra.mrb[24].mxu1 %v14047_v37  ;;  %v505_v43 = vpop.f32.mrb[5].mxu1 }
 0x18c   :  { %7016 = vmatpush1.bf16.msra.mxu0 %v11510_v6  ;;  %7344 = vmatpush1.bf16.msra.mxu1 %v11512_v7  ;;  %v506_v47 = vadd.f32 %v505_v43, %v199_v36  ;;  %v507_v48 = vpop.f32.mrb[6].mxu1  ;;  %v14065_v6 = vpop.f32.mrb[1].mxu0  ;;  %v11543_v7 = vcombine.high %v948_v60, %v952_v61  ;;  %v11559_v43 = vcombine.high %v964_v28, %v968_v31 }
 0x18d   :  { %7017 = vmatprep.subr.bf16.mxu0 %v11519_v38  ;;  %7345 = vmatprep.subr.bf16.mxu1 %v11521_v39  ;;  %v508_v52 = vpop.f32.mrb[7].mxu1  ;;  %v630_v11 = vpop.f32.mrb[2].mxu0  ;;  %v11550_v38 = vcombine.low %v956_v9, %v960_v12  ;;  %v11552_v39 = vcombine.low %v957_v18, %v961_v19  ;;  %v973_v48 = vld [vmem:[#allocation8 + $0x5c8] sm:$0xff]  ;;  %v996_v18 = vld [vmem:[#allocation8 + $0x680] sm:$0xff] }
 0x18e   :  { %v759_v54 = vmax.f32 %v506_v47, 0.0  ;;  %v631_v20 = vpop.f32.mrb[3].mxu0  ;;  %v976_v47 = vld [vmem:[#allocation8 + $0x5e0] sm:$0xff]  ;;  %v11560_v52 = vcombine.low %v965_v32, %v969_v34 }
 0x18f   :  { %v708_v30 = vpop.f32.mrb[4].mxu0  ;;  %v1000_v20 = vld [vmem:[#allocation8 + $0x6a0] sm:$0xff] }
 0x190   :  { %7018 = vmatpush1.bf16.msra.mxu0 %v11518_v44  ;;  %7346 = vmatpush1.bf16.msra.mxu1 %v11520_v45  ;;  %v14055_v57 = vpack.c.bf16 %v759_v54, %v759_v54  ;;  %v14077_v36 = vadd.f32 %v708_v30, %v235_v29  ;;  %v710_v41 = vpop.f32.mrb[5].mxu0  ;;  %v11561_v44 = vcombine.high %v965_v32, %v969_v34  ;;  %v972_v45 = vld [vmem:[#allocation8 + $0x5c0] sm:$0xff] }
 0x191   :  { %7019 = vmatprep.subr.bf16.mxu0 %v11527_v0  ;;  %7347 = vmatprep.subr.bf16.mxu1 %v11529_v49  ;;  %v712_v46 = vpop.f32.mrb[6].mxu0  ;;  %v977_v0 = vld [vmem:[#allocation8 + $0x5e8] sm:$0xff]  ;;  %v14081_v49 = vadd.f32 %v710_v41, %v239_v40  ;;  %v11567_v53 = vcombine.high %v972_v45, %v976_v47  ;;  %v11566_v60 = vcombine.low %v972_v45, %v976_v47  ;;  %v1004_v32 = vld [vmem:[#allocation8 + $0x6c0] sm:$0xff]  ;;  %v14088_v40 = vsub.s32 2, %v14026_v13 }
 0x192   :  { %7047 = vmatprep.mubr.bf16.mxu0 %v14055_v57  ;;  %7375 = vmatprep.mubr.bf16.mxu1 %v14055_v57  ;;  %v14061_v1 = vpop.f32.mrb[8].mxu1  ;;  %v713_v50 = vpop.f32.mrb[7].mxu0  ;;  %v11569_v54 = vcombine.high %v973_v48, %v977_v0  ;;  %v11568_v61 = vcombine.low %v973_v48, %v977_v0  ;;  %v11591_v30 = vcombine.high %v996_v18, %v1000_v20  ;;  %v1008_v34 = vld [vmem:[#allocation8 + $0x6e0] sm:$0xff] }
 0x193   :  { %v14063_v2 = vpop.f32.mrb[9].mxu1  ;;  %v11590_v41 = vcombine.low %v996_v18, %v1000_v20  ;;  %v11599_v46 = vcombine.high %v1004_v32, %v1008_v34  ;;  %v1012_v48 = vld [vmem:[#allocation8 + $0x700] sm:$0xff]  ;;  %v231_v0 = vrot.slane %v14070_v24, %v14041_v26 }
 0x194   :  { %7020 = vmatpush1.bf16.msra.mxu0 %v11526_v55  ;;  %7348 = vmatpush1.bf16.msra.mxu1 %v11528_v56  ;;  %v548_v5 = vpop.f32.mrb[10].mxu1  ;;  %v980_v55 = vld [vmem:[#allocation8 + $0x600] sm:$0xff] }
 0x195   :  { %7021 = vmatprep.subr.bf16.mxu0 %v11535_v58  ;;  %7349 = vmatprep.subr.bf16.mxu1 %v11537_v59  ;;  %v549_v10 = vpop.f32.mrb[11].mxu1  ;;  %v984_v56 = vld [vmem:[#allocation8 + $0x620] sm:$0xff]  ;;  %v981_v58 = vld [vmem:[#allocation8 + $0x608] sm:$0xff] }
 0x196   :  { %v985_v59 = vld [vmem:[#allocation8 + $0x628] sm:$0xff]  ;;  %v11575_v62 = vcombine.high %v980_v55, %v984_v56 }
 0x197   :  { %v11577_v63 = vcombine.high %v981_v58, %v985_v59  ;;  %v989_v5 = vld [vmem:[#allocation8 + $0x648] sm:$0xff]  ;;  %v11576_v9 = vcombine.low %v981_v58, %v985_v59  ;;  %v11598_v59 = vcombine.low %v1004_v32, %v1008_v34  ;;  %v195_v34 = vrot.slane %v14031_v15, %v14088_v40 }
 0x198   :  { %7022 = vmatpush1.bf16.msra.mxu0 %v11534_v3  ;;  %7350 = vmatpush1.bf16.msra.mxu1 %v11536_v4  ;;  %v988_v3 = vld [vmem:[#allocation8 + $0x640] sm:$0xff] }
 0x199   :  { %7023 = vmatprep.subr.bf16.mxu0 %v11543_v7  ;;  %7351 = vmatprep.subr.bf16.mxu1 %v11545_v8  ;;  %v992_v4 = vld [vmem:[#allocation8 + $0x660] sm:$0xff]  ;;  %v993_v7 = vld [vmem:[#allocation8 + $0x668] sm:$0xff]  ;;  %v11574_v8 = vcombine.low %v980_v55, %v984_v56 }
 0x19a   :  { %v14083_v10 = vpop.f32.mrb[12].mxu1  ;;  %v11583_v11 = vcombine.high %v988_v3, %v992_v4  ;;  %v11585_v12 = vcombine.high %v989_v5, %v993_v7  ;;  %v11582_v28 = vcombine.low %v988_v3, %v992_v4  ;;  %v11584_v29 = vcombine.low %v989_v5, %v993_v7  ;;  %v1024_v3 = vld [vmem:[#allocation8 + $0x760] sm:$0xff]  ;;  %v1021_v4 = vld [vmem:[#allocation8 + $0x748] sm:$0xff] }
 0x19b   :  { %v14085_v19 = vpop.f32.mrb[13].mxu1  ;;  %v1025_v5 = vld [vmem:[#allocation8 + $0x768] sm:$0xff]  ;;  %v14099_v7 = vsub.s32 6, %v14026_v13 }
 0x19c   :  { %7024 = vmatpush1.bf16.msra.mxu0 %v11542_v22  ;;  %7352 = vmatpush1.bf16.msra.mxu1 %v11544_v23  ;;  %v997_v22 = vld [vmem:[#allocation8 + $0x688] sm:$0xff] }
 0x19d   :  { %7025 = vmatprep.subr.bf16.mxu0 %v11551_v25  ;;  %7353 = vmatprep.subr.bf16.mxu1 %v11553_v27  ;;  %v1001_v23 = vld [vmem:[#allocation8 + $0x6a8] sm:$0xff]  ;;  %v589_v25 = vpop.f32.mrb[14].mxu1 }
 0x19e   :  { %v590_v27 = vpop.f32.mrb[15].mxu1  ;;  %v11593_v31 = vcombine.high %v997_v22, %v1001_v23  ;;  %v1028_v25 = vld [vmem:[#allocation8 + $0x780] sm:$0xff] }
 0x1a0   :  { %7026 = vmatpush1.bf16.msra.mxu0 %v11550_v38  ;;  %7354 = vmatpush1.bf16.msra.mxu1 %v11552_v39  ;;  %v1005_v38 = vld [vmem:[#allocation8 + $0x6c8] sm:$0xff] }
 0x1a1   :  { %7027 = vmatprep.subr.bf16.mxu0 %v11559_v43  ;;  %7355 = vmatprep.subr.bf16.mxu1 %v11561_v44  ;;  %v1009_v39 = vld [vmem:[#allocation8 + $0x6e8] sm:$0xff]  ;;  %v11592_v43 = vcombine.low %v997_v22, %v1001_v23  ;;  %v227_v44 = vrot.slane %v14070_v24, %v14088_v40  ;;  %v11617_v23 = vcombine.high %v1021_v4, %v1025_v5 }
 0x1a2   :  { %v667_v45 = vpop.f32.mrb[16].mxu1  ;;  %v11601_v47 = vcombine.high %v1005_v38, %v1009_v39 }
 0x1a3   :  { %v669_v50 = vpop.f32.mrb[17].mxu1 }
 0x1a4   :  { %7028 = vmatpush1.bf16.msra.mxu0 %v11558_v51  ;;  %7356 = vmatpush1.bf16.msra.mxu1 %v11560_v52  ;;  %v1016_v51 = vld [vmem:[#allocation8 + $0x720] sm:$0xff]  ;;  %v1013_v52 = vld [vmem:[#allocation8 + $0x708] sm:$0xff]  ;;  %v671_v55 = vpop.f32.mrb[18].mxu1  ;;  %v14096_v56 = vadd.f32 %v669_v50, %v231_v0  ;;  %v504_v0 = vadd.f32 %v14051_v42, %v195_v34 }
 0x1a5   :  { %7029 = vmatprep.subr.bf16.mxu0 %v11567_v53  ;;  %7357 = vmatprep.subr.bf16.mxu1 %v11569_v54  ;;  %v1017_v53 = vld [vmem:[#allocation8 + $0x728] sm:$0xff]  ;;  %v14094_v54 = vadd.f32 %v667_v45, %v227_v44  ;;  %v672_v58 = vpop.f32.mrb[19].mxu1  ;;  %v1036_v44 = vld [vmem:[#allocation8 + $0x7c0] sm:$0xff] }
 0x1a6   :  { %v1040_v45 = vld [vmem:[#allocation8 + $0x7e0] sm:$0xff] }
 0x1a7   :  { %v1044_v55 = vld [vmem:[#allocation8 + $0x800] sm:$0xff] }
 0x1a8   :  { %7030 = vmatpush1.bf16.msra.mxu0 %v11566_v60  ;;  %7358 = vmatpush1.bf16.msra.mxu1 %v11568_v61  ;;  %v11600_v60 = vcombine.low %v1005_v38, %v1009_v39  ;;  %v11607_v61 = vcombine.high %v1012_v48, %v1016_v51  ;;  %v11616_v39 = vcombine.low %v1021_v4, %v1025_v5  ;;  %v1048_v58 = vld [vmem:[#allocation8 + $0x820] sm:$0xff] }
 0x1a9   :  { %7031 = vmatprep.subr.bf16.mxu0 %v11575_v62  ;;  %7359 = vmatprep.subr.bf16.mxu1 %v11577_v63  ;;  %v11609_v62 = vcombine.high %v1013_v52, %v1017_v53  ;;  %v1020_v63 = vld [vmem:[#allocation8 + $0x740] sm:$0xff]  ;;  %v11639_v42 = vcombine.high %v1044_v55, %v1048_v58 }
 0x1aa   :  { %v749_v18 = vpop.f32.mrb[20].mxu1  ;;  %v11615_v22 = vcombine.high %v1020_v63, %v1024_v3  ;;  %v1052_v5 = vld [vmem:[#allocation8 + $0x840] sm:$0xff] }
 0x1ab   :  { %v751_v27 = vpop.f32.mrb[21].mxu1 }
 0x1ac   :  { %7032 = vmatpush1.bf16.msra.mxu0 %v11574_v8  ;;  %7360 = vmatpush1.bf16.msra.mxu1 %v11576_v9  ;;  %v14102_v8 = vsub.s32 7, %v14026_v13  ;;  %v11606_v9 = vcombine.low %v1012_v48, %v1016_v51  ;;  %v1029_v13 = vld [vmem:[#allocation8 + $0x788] sm:$0xff]  ;;  %v753_v32 = vpop.f32.mrb[22].mxu1  ;;  %v207_v48 = vrot.slane %v14031_v15, %v14075_v35 }
 0x1ad   :  { %7033 = vmatprep.subr.bf16.mxu0 %v11583_v11  ;;  %7361 = vmatprep.subr.bf16.mxu1 %v11585_v12  ;;  %v11608_v11 = vcombine.low %v1013_v52, %v1017_v53  ;;  %v243_v12 = vrot.slane %v14070_v24, %v14099_v7  ;;  %v754_v38 = vpop.f32.mrb[23].mxu1  ;;  %v11631_v52 = vcombine.high %v1036_v44, %v1040_v45 }
 0x1ae   :  { %v247_v20 = vrot.slane %v14070_v24, %v14102_v8  ;;  %v11614_v24 = vcombine.low %v1020_v63, %v1024_v3  ;;  %v11630_v63 = vcombine.low %v1036_v44, %v1040_v45  ;;  %v1069_v44 = vld [vmem:[#allocation8 + $0x8c8] sm:$0xff] }
 0x1af   :  { %v1073_v45 = vld [vmem:[#allocation8 + $0x8e8] sm:$0xff] }
 0x1b0   :  { %7034 = vmatpush1.bf16.msra.mxu0 %v11582_v28  ;;  %7362 = vmatpush1.bf16.msra.mxu1 %v11584_v29  ;;  %v1032_v28 = vld [vmem:[#allocation8 + $0x7a0] sm:$0xff]  ;;  %v1033_v29 = vld [vmem:[#allocation8 + $0x7a8] sm:$0xff] }
 0x1b1   :  { %7035 = vmatprep.subr.bf16.mxu0 %v11591_v30  ;;  %7363 = vmatprep.subr.bf16.mxu1 %v11593_v31  ;;  %v14108_v30 = vadd.f32 %v749_v18, %v243_v12  ;;  %v14110_v31 = vadd.f32 %v751_v27, %v247_v20  ;;  %v11622_v50 = vcombine.low %v1028_v25, %v1032_v28  ;;  %v1057_v12 = vld [vmem:[#allocation8 + $0x868] sm:$0xff]  ;;  %v1060_v27 = vld [vmem:[#allocation8 + $0x880] sm:$0xff] }
 0x1b2   :  { %v11624_v51 = vcombine.low %v1029_v13, %v1033_v29 }
 0x1b4   :  { %7036 = vmatpush1.bf16.msra.mxu0 %v11590_v41  ;;  %7364 = vmatpush1.bf16.msra.mxu1 %v11592_v43  ;;  %v11623_v41 = vcombine.high %v1028_v25, %v1032_v28  ;;  %v11625_v43 = vcombine.high %v1029_v13, %v1033_v29  ;;  %v1064_v28 = vld [vmem:[#allocation8 + $0x8a0] sm:$0xff]  ;;  %v1061_v13 = vld [vmem:[#allocation8 + $0x888] sm:$0xff] }
 0x1b5   :  { %7037 = vmatprep.subr.bf16.mxu0 %v11599_v46  ;;  %7365 = vmatprep.subr.bf16.mxu1 %v11601_v47  ;;  %v1037_v46 = vld [vmem:[#allocation8 + $0x7c8] sm:$0xff] }
 0x1b6   :  { %v1041_v47 = vld [vmem:[#allocation8 + $0x7e8] sm:$0xff] }
 0x1b7   :  { %v11633_v53 = vcombine.high %v1037_v46, %v1041_v47  ;;  %v11632_v3 = vcombine.low %v1037_v46, %v1041_v47  ;;  %v1065_v29 = vld [vmem:[#allocation8 + $0x8a8] sm:$0xff]  ;;  %v11654_v46 = vcombine.low %v1060_v27, %v1064_v28 }
 0x1b8   :  { %7038 = vmatpush1.bf16.msra.mxu0 %v11598_v59  ;;  %7366 = vmatpush1.bf16.msra.mxu1 %v11600_v60  ;;  %v1045_v59 = vld [vmem:[#allocation8 + $0x808] sm:$0xff]  ;;  %v11656_v47 = vcombine.low %v1061_v13, %v1065_v29 }
 0x1b9   :  { %7039 = vmatprep.subr.bf16.mxu0 %v11607_v61  ;;  %7367 = vmatprep.subr.bf16.mxu1 %v11609_v62  ;;  %v1049_v60 = vld [vmem:[#allocation8 + $0x828] sm:$0xff]  ;;  %v547_v61 = vadd.f32 %v14063_v2, %v207_v48  ;;  %v758_v62 = vmax.f32 %v504_v0, 0.0  ;;  %v11665_v0 = vcombine.high %v1069_v44, %v1073_v45 }
 0x1ba   :  { %v11641_v4 = vcombine.high %v1045_v59, %v1049_v60  ;;  %v11640_v2 = vcombine.low %v1045_v59, %v1049_v60 }
 0x1bb   :  { %v761_v18 = vmax.f32 %v547_v61, 0.0  ;;  %v14118_v20 = vpack.c.bf16 %v758_v62, %v758_v62  ;;  %v1084_v61 = vld [vmem:[#allocation8 + $0x940] sm:$0xff] }
 0x1bc   :  { %7040 = vmatpush1.bf16.msra.mxu0 %v11606_v9  ;;  %7368 = vmatpush1.bf16.msra.mxu1 %v11608_v11  ;;  %v1056_v9 = vld [vmem:[#allocation8 + $0x860] sm:$0xff]  ;;  %v1053_v11 = vld [vmem:[#allocation8 + $0x848] sm:$0xff] }
 0x1bd   :  { %7041 = vmatprep.subr.bf16.mxu0 %v11615_v22  ;;  %7369 = vmatprep.subr.bf16.mxu1 %v11617_v23  ;;  %v11638_v22 = vcombine.low %v1044_v55, %v1048_v58  ;;  %v11647_v23 = vcombine.high %v1052_v5, %v1056_v9  ;;  %v11649_v25 = vcombine.high %v1053_v11, %v1057_v12  ;;  %v1088_v62 = vld [vmem:[#allocation8 + $0x960] sm:$0xff] }
 0x1be   :  { %v14120_v32 = vpack.c.bf16 %v761_v18, %v761_v18  ;;  %v11646_v34 = vcombine.low %v1052_v5, %v1056_v9  ;;  %v11648_v38 = vcombine.low %v1053_v11, %v1057_v12  ;;  %v11664_v58 = vcombine.low %v1069_v44, %v1073_v45  ;;  %v1092_v11 = vld [vmem:[#allocation8 + $0x980] sm:$0xff]  ;;  %v1093_v18 = vld [vmem:[#allocation8 + $0x988] sm:$0xff] }
 0x1bf   :  { %v11679_v5 = vcombine.high %v1084_v61, %v1088_v62  ;;  %v1096_v12 = vld [vmem:[#allocation8 + $0x9a0] sm:$0xff]  ;;  %v1109_v45 = vld [vmem:[#allocation8 + $0xa08] sm:$0xff] }
 0x1c0   :  { %7042 = vmatpush1.bf16.msra.mxu0 %v11614_v24  ;;  %7370 = vmatpush1.bf16.msra.mxu1 %v11616_v39  ;;  %v11655_v24 = vcombine.high %v1060_v27, %v1064_v28  ;;  %v11657_v39 = vcombine.high %v1061_v13, %v1065_v29  ;;  %v1100_v28 = vld [vmem:[#allocation8 + $0x9c0] sm:$0xff]  ;;  %v1101_v29 = vld [vmem:[#allocation8 + $0x9c8] sm:$0xff] }
 0x1c1   :  { %7043 = vmatprep.subr.bf16.mxu0 %v11623_v41  ;;  %7371 = vmatprep.subr.bf16.mxu1 %v11625_v43  ;;  %v1068_v41 = vld [vmem:[#allocation8 + $0x8c0] sm:$0xff] }
 0x1c2   :  { %v1072_v43 = vld [vmem:[#allocation8 + $0x8e0] sm:$0xff] }
 0x1c3   :  { %v11663_v48 = vcombine.high %v1068_v41, %v1072_v43  ;;  %v11662_v55 = vcombine.low %v1068_v41, %v1072_v43  ;;  %v1104_v13 = vld [vmem:[#allocation8 + $0x9e0] sm:$0xff] }
 0x1c4   :  { %7044 = vmatpush1.bf16.msra.mxu0 %v11622_v50  ;;  %7372 = vmatpush1.bf16.msra.mxu1 %v11624_v51  ;;  %v1076_v50 = vld [vmem:[#allocation8 + $0x900] sm:$0xff] }
 0x1c5   :  { %7045 = vmatprep.subr.bf16.mxu0 %v11631_v52  ;;  %7373 = vmatprep.subr.bf16.mxu1 %v11633_v53  ;;  %v1080_v51 = vld [vmem:[#allocation8 + $0x920] sm:$0xff]  ;;  %v1077_v52 = vld [vmem:[#allocation8 + $0x908] sm:$0xff] }
 0x1c6   :  { %v1081_v53 = vld [vmem:[#allocation8 + $0x928] sm:$0xff]  ;;  %v11671_v59 = vcombine.high %v1076_v50, %v1080_v51  ;;  %v1108_v43 = vld [vmem:[#allocation8 + $0xa00] sm:$0xff] }
 0x1c7   :  { %v11673_v60 = vcombine.high %v1077_v52, %v1081_v53  ;;  %v1112_v44 = vld [vmem:[#allocation8 + $0xa20] sm:$0xff] }
 0x1c8   :  { %7046 = vmatpush1.bf16.msra.mxu0 %v11630_v63  ;;  %7374 = vmatpush1.bf16.msra.mxu1 %v11632_v3  ;;  %v1085_v63 = vld [vmem:[#allocation8 + $0x948] sm:$0xff] }
 0x1c9   :  { %7056 = vmatprep.subr.bf16.mxu0 %v11639_v42  ;;  %7384 = vmatprep.subr.bf16.mxu1 %v11641_v4  ;;  %v1089_v3 = vld [vmem:[#allocation8 + $0x968] sm:$0xff]  ;;  %v11670_v42 = vcombine.low %v1076_v50, %v1080_v51  ;;  %v11672_v4 = vcombine.low %v1077_v52, %v1081_v53  ;;  %v1116_v51 = vld [vmem:[#allocation8 + $0xa40] sm:$0xff] }
 0x1ca   :  { %v11681_v9 = vcombine.high %v1085_v63, %v1089_v3  ;;  %v1120_v52 = vld [vmem:[#allocation8 + $0xa60] sm:$0xff]  ;;  %v1117_v53 = vld [vmem:[#allocation8 + $0xa48] sm:$0xff] }
 0x1cb   :  { %7048 = vmatmul.mubr.bf16.vlgmr.msra.gmra.mrb[8].mxu0 %v14118_v20  ;;  %7376 = vmatmul.mubr.bf16.vlgmr.msra.gmra.mrb[24].mxu1 %v14118_v20 }
 0x1cc   :  { %7057 = vmatpush1.bf16.msra.mxu0 %v11638_v22  ;;  %7385 = vmatpush1.bf16.msra.mxu1 %v11640_v2  ;;  %v1097_v22 = vld [vmem:[#allocation8 + $0x9a8] sm:$0xff]  ;;  %v11678_v2 = vcombine.low %v1084_v61, %v1088_v62  ;;  %v1124_v62 = vld [vmem:[#allocation8 + $0xa80] sm:$0xff] }
 0x1cd   :  { %7058 = vmatprep.subr.bf16.mxu0 %v11647_v23  ;;  %7386 = vmatprep.subr.bf16.mxu1 %v11649_v25  ;;  %v11680_v23 = vcombine.low %v1085_v63, %v1089_v3  ;;  %v11687_v25 = vcombine.high %v1092_v11, %v1096_v12  ;;  %v11689_v27 = vcombine.high %v1093_v18, %v1097_v22  ;;  %v1128_v63 = vld [vmem:[#allocation8 + $0xaa0] sm:$0xff]  ;;  %v1125_v3 = vld [vmem:[#allocation8 + $0xa88] sm:$0xff] }
 0x1ce   :  { %7088 = vmatprep.mubr.bf16.mxu0 %v14120_v32  ;;  %7416 = vmatprep.mubr.bf16.mxu1 %v14120_v32 }
 0x1d0   :  { %7059 = vmatpush1.bf16.msra.mxu0 %v11646_v34  ;;  %7387 = vmatpush1.bf16.msra.mxu1 %v11648_v38  ;;  %v1105_v34 = vld [vmem:[#allocation8 + $0x9e8] sm:$0xff]  ;;  %v11686_v38 = vcombine.low %v1092_v11, %v1096_v12  ;;  %v1132_v12 = vld [vmem:[#allocation8 + $0xac0] sm:$0xff] }
 0x1d1   :  { %7060 = vmatprep.subr.bf16.mxu0 %v11655_v24  ;;  %7388 = vmatprep.subr.bf16.mxu1 %v11657_v39  ;;  %v11688_v24 = vcombine.low %v1093_v18, %v1097_v22  ;;  %v11695_v39 = vcombine.high %v1100_v28, %v1104_v13  ;;  %v11697_v41 = vcombine.high %v1101_v29, %v1105_v34  ;;  %v1136_v18 = vld [vmem:[#allocation8 + $0xae0] sm:$0xff]  ;;  %v1133_v22 = vld [vmem:[#allocation8 + $0xac8] sm:$0xff] }
 0x1d4   :  { %7061 = vmatpush1.bf16.msra.mxu0 %v11654_v46  ;;  %7389 = vmatpush1.bf16.msra.mxu1 %v11656_v47  ;;  %v1113_v46 = vld [vmem:[#allocation8 + $0xa28] sm:$0xff]  ;;  %v11694_v47 = vcombine.low %v1100_v28, %v1104_v13  ;;  %v1140_v13 = vld [vmem:[#allocation8 + $0xb00] sm:$0xff] }
 0x1d5   :  { %7062 = vmatprep.subr.bf16.mxu0 %v11663_v48  ;;  %7390 = vmatprep.subr.bf16.mxu1 %v11665_v0  ;;  %v11696_v48 = vcombine.low %v1101_v29, %v1105_v34  ;;  %v11703_v0 = vcombine.high %v1108_v43, %v1112_v44  ;;  %v11705_v50 = vcombine.high %v1109_v45, %v1113_v46  ;;  %v1144_v29 = vld [vmem:[#allocation8 + $0xb20] sm:$0xff]  ;;  %v1141_v34 = vld [vmem:[#allocation8 + $0xb08] sm:$0xff] }
 0x1d8   :  { %7063 = vmatpush1.bf16.msra.mxu0 %v11662_v55  ;;  %7391 = vmatpush1.bf16.msra.mxu1 %v11664_v58  ;;  %v1121_v55 = vld [vmem:[#allocation8 + $0xa68] sm:$0xff]  ;;  %v11702_v58 = vcombine.low %v1108_v43, %v1112_v44  ;;  %v1148_v44 = vld [vmem:[#allocation8 + $0xb40] sm:$0xff] }
 0x1d9   :  { %7064 = vmatprep.subr.bf16.mxu0 %v11671_v59  ;;  %7392 = vmatprep.subr.bf16.mxu1 %v11673_v60  ;;  %v11704_v59 = vcombine.low %v1109_v45, %v1113_v46  ;;  %v11711_v60 = vcombine.high %v1116_v51, %v1120_v52  ;;  %v11713_v61 = vcombine.high %v1117_v53, %v1121_v55  ;;  %v1152_v45 = vld [vmem:[#allocation8 + $0xb60] sm:$0xff]  ;;  %v1149_v46 = vld [vmem:[#allocation8 + $0xb48] sm:$0xff] }
 0x1dc   :  { %7065 = vmatpush1.bf16.msra.mxu0 %v11670_v42  ;;  %7393 = vmatpush1.bf16.msra.mxu1 %v11672_v4  ;;  %v1129_v42 = vld [vmem:[#allocation8 + $0xaa8] sm:$0xff]  ;;  %v11710_v4 = vcombine.low %v1116_v51, %v1120_v52  ;;  %v1156_v52 = vld [vmem:[#allocation8 + $0xb80] sm:$0xff] }
 0x1dd   :  { %7066 = vmatprep.subr.bf16.mxu0 %v11679_v5  ;;  %7394 = vmatprep.subr.bf16.mxu1 %v11681_v9  ;;  %v11712_v5 = vcombine.low %v1117_v53, %v1121_v55  ;;  %v11719_v9 = vcombine.high %v1124_v62, %v1128_v63  ;;  %v11721_v11 = vcombine.high %v1125_v3, %v1129_v42  ;;  %v1160_v53 = vld [vmem:[#allocation8 + $0xba0] sm:$0xff]  ;;  %v1157_v55 = vld [vmem:[#allocation8 + $0xb88] sm:$0xff] }
 0x1e0   :  { %7067 = vmatpush1.bf16.msra.mxu0 %v11678_v2  ;;  %7395 = vmatpush1.bf16.msra.mxu1 %v11680_v23  ;;  %v1137_v2 = vld [vmem:[#allocation8 + $0xae8] sm:$0xff]  ;;  %v11718_v23 = vcombine.low %v1124_v62, %v1128_v63  ;;  %v11751_v62 = vcombine.high %v1156_v52, %v1160_v53 }
 0x1e1   :  { %7068 = vmatprep.subr.bf16.mxu0 %v11687_v25  ;;  %7396 = vmatprep.subr.bf16.mxu1 %v11689_v27  ;;  %v11720_v25 = vcombine.low %v1125_v3, %v1129_v42  ;;  %v11727_v27 = vcombine.high %v1132_v12, %v1136_v18  ;;  %v11729_v28 = vcombine.high %v1133_v22, %v1137_v2  ;;  %v1164_v3 = vld [vmem:[#allocation8 + $0xbc0] sm:$0xff] }
 0x1e2   :  { %v1168_v42 = vld [vmem:[#allocation8 + $0xbe0] sm:$0xff] }
 0x1e4   :  { %7069 = vmatpush1.bf16.msra.mxu0 %v11686_v38  ;;  %7397 = vmatpush1.bf16.msra.mxu1 %v11688_v24  ;;  %v1145_v38 = vld [vmem:[#allocation8 + $0xb28] sm:$0xff]  ;;  %v11726_v24 = vcombine.low %v1132_v12, %v1136_v18  ;;  %v11750_v12 = vcombine.low %v1156_v52, %v1160_v53 }
 0x1e5   :  { %7070 = vmatprep.subr.bf16.mxu0 %v11695_v39  ;;  %7398 = vmatprep.subr.bf16.mxu1 %v11697_v41  ;;  %v11728_v39 = vcombine.low %v1133_v22, %v1137_v2  ;;  %v11735_v41 = vcombine.high %v1140_v13, %v1144_v29  ;;  %v11737_v43 = vcombine.high %v1141_v34, %v1145_v38  ;;  %v1193_v52 = vld [vmem:[#allocation8 + $0xca8] sm:$0xff] }
 0x1e6   :  { %v11759_v22 = vcombine.high %v1164_v3, %v1168_v42 }
 0x1e8   :  { %7071 = vmatpush1.bf16.msra.mxu0 %v11694_v47  ;;  %7399 = vmatpush1.bf16.msra.mxu1 %v11696_v48  ;;  %v1153_v47 = vld [vmem:[#allocation8 + $0xb68] sm:$0xff]  ;;  %v11734_v48 = vcombine.low %v1140_v13, %v1144_v29 }
 0x1e9   :  { %7072 = vmatprep.subr.bf16.mxu0 %v11703_v0  ;;  %7400 = vmatprep.subr.bf16.mxu1 %v11705_v50  ;;  %v11736_v0 = vcombine.low %v1141_v34, %v1145_v38  ;;  %v11743_v50 = vcombine.high %v1148_v44, %v1152_v45  ;;  %v11745_v51 = vcombine.high %v1149_v46, %v1153_v47 }
 0x1ec   :  { %7073 = vmatpush1.bf16.msra.mxu0 %v11702_v58  ;;  %7401 = vmatpush1.bf16.msra.mxu1 %v11704_v59  ;;  %v1161_v58 = vld [vmem:[#allocation8 + $0xba8] sm:$0xff]  ;;  %v203_v59 = vrot.slane %v14031_v15, %v14068_v21 }
 0x1ed   :  { %7074 = vmatprep.subr.bf16.mxu0 %v11711_v60  ;;  %7402 = vmatprep.subr.bf16.mxu1 %v11713_v61  ;;  %v11742_v60 = vcombine.low %v1148_v44, %v1152_v45  ;;  %v11744_v61 = vcombine.low %v1149_v46, %v1153_v47  ;;  %v11753_v63 = vcombine.high %v1157_v55, %v1161_v58 }
 0x1ee   :  { %v11752_v18 = vcombine.low %v1157_v55, %v1161_v58 }
 0x1f0   :  { %7075 = vmatpush1.bf16.msra.mxu0 %v11710_v4  ;;  %7403 = vmatpush1.bf16.msra.mxu1 %v11712_v5  ;;  %v1165_v4 = vld [vmem:[#allocation8 + $0xbc8] sm:$0xff] }
 0x1f1   :  { %7076 = vmatprep.subr.bf16.mxu0 %v11719_v9  ;;  %7404 = vmatprep.subr.bf16.mxu1 %v11721_v11  ;;  %v1169_v5 = vld [vmem:[#allocation8 + $0xbe8] sm:$0xff]  ;;  %v215_v9 = vrot.slane %v14031_v15, %v14102_v8  ;;  %v545_v11 = vadd.f32 %v14061_v1, %v203_v59  ;;  %v11758_v15 = vcombine.low %v1164_v3, %v1168_v42 }
 0x1f2   :  { %v11761_v2 = vcombine.high %v1165_v4, %v1169_v5  ;;  %v11760_v34 = vcombine.low %v1165_v4, %v1169_v5  ;;  %v1201_v3 = vld [vmem:[#allocation8 + $0xce8] sm:$0xff] }
 0x1f3   :  { %v588_v13 = vadd.f32 %v14085_v19, %v215_v9  ;;  %v760_v29 = vmax.f32 %v545_v11, 0.0  ;;  %v1204_v11 = vld [vmem:[#allocation8 + $0xd00] sm:$0xff] }
 0x1f4   :  { %7077 = vmatpush1.bf16.msra.mxu0 %v11718_v23  ;;  %7405 = vmatpush1.bf16.msra.mxu1 %v11720_v25  ;;  %v1172_v23 = vld [vmem:[#allocation8 + $0xc00] sm:$0xff] }
 0x1f5   :  { %7078 = vmatprep.subr.bf16.mxu0 %v11727_v27  ;;  %7406 = vmatprep.subr.bf16.mxu1 %v11729_v28  ;;  %v1176_v25 = vld [vmem:[#allocation8 + $0xc20] sm:$0xff]  ;;  %v1173_v27 = vld [vmem:[#allocation8 + $0xc08] sm:$0xff]  ;;  %v763_v44 = vmax.f32 %v588_v13, 0.0  ;;  %v14132_v45 = vpack.c.bf16 %v760_v29, %v760_v29 }
 0x1f6   :  { %v1177_v28 = vld [vmem:[#allocation8 + $0xc28] sm:$0xff]  ;;  %v11767_v1 = vcombine.high %v1172_v23, %v1176_v25  ;;  %v11766_v46 = vcombine.low %v1172_v23, %v1176_v25  ;;  %v1216_v13 = vld [vmem:[#allocation8 + $0xd60] sm:$0xff] }
 0x1f7   :  { %v11769_v38 = vcombine.high %v1173_v27, %v1177_v28  ;;  %v11768_v19 = vcombine.low %v1173_v27, %v1177_v28  ;;  %v14134_v53 = vpack.c.bf16 %v763_v44, %v763_v44  ;;  %v1212_v28 = vld [vmem:[#allocation8 + $0xd40] sm:$0xff]  ;;  %v1213_v29 = vld [vmem:[#allocation8 + $0xd48] sm:$0xff] }
 0x1f8   :  { %7079 = vmatpush1.bf16.msra.mxu0 %v11726_v24  ;;  %7407 = vmatpush1.bf16.msra.mxu1 %v11728_v39  ;;  %v1180_v24 = vld [vmem:[#allocation8 + $0xc40] sm:$0xff]  ;;  %v1225_v44 = vld [vmem:[#allocation8 + $0xda8] sm:$0xff] }
 0x1f9   :  { %7080 = vmatprep.subr.bf16.mxu0 %v11735_v41  ;;  %7408 = vmatprep.subr.bf16.mxu1 %v11737_v43  ;;  %v1184_v39 = vld [vmem:[#allocation8 + $0xc60] sm:$0xff]  ;;  %v1181_v41 = vld [vmem:[#allocation8 + $0xc48] sm:$0xff] }
 0x1fa   :  { %v1185_v43 = vld [vmem:[#allocation8 + $0xc68] sm:$0xff]  ;;  %v11775_v47 = vcombine.high %v1180_v24, %v1184_v39  ;;  %v11774_v55 = vcombine.low %v1180_v24, %v1184_v39  ;;  %v1220_v39 = vld [vmem:[#allocation8 + $0xd80] sm:$0xff] }
 0x1fb   :  { %v11776_v58 = vcombine.low %v1181_v41, %v1185_v43 }
 0x1fc   :  { %7081 = vmatpush1.bf16.msra.mxu0 %v11734_v48  ;;  %7409 = vmatpush1.bf16.msra.mxu1 %v11736_v0  ;;  %v11777_v48 = vcombine.high %v1181_v41, %v1185_v43  ;;  %v1188_v0 = vld [vmem:[#allocation8 + $0xc80] sm:$0xff]  ;;  %v1221_v43 = vld [vmem:[#allocation8 + $0xd88] sm:$0xff] }
 0x1fd   :  { %7082 = vmatprep.subr.bf16.mxu0 %v11743_v50  ;;  %7410 = vmatprep.subr.bf16.mxu1 %v11745_v51  ;;  %v1192_v50 = vld [vmem:[#allocation8 + $0xca0] sm:$0xff]  ;;  %v1189_v51 = vld [vmem:[#allocation8 + $0xc88] sm:$0xff] }
 0x1fe   :  { %v11783_v59 = vcombine.high %v1188_v0, %v1192_v50  ;;  %v11782_v42 = vcombine.low %v1188_v0, %v1192_v50  ;;  %v11784_v4 = vcombine.low %v1189_v51, %v1193_v52  ;;  %v1224_v41 = vld [vmem:[#allocation8 + $0xda0] sm:$0xff] }
 0x1ff   :  { %v1228_v0 = vld [vmem:[#allocation8 + $0xdc0] sm:$0xff] }
 0x200   :  { %7083 = vmatpush1.bf16.msra.mxu0 %v11742_v60  ;;  %7411 = vmatpush1.bf16.msra.mxu1 %v11744_v61  ;;  %v11785_v60 = vcombine.high %v1189_v51, %v1193_v52  ;;  %v1196_v61 = vld [vmem:[#allocation8 + $0xcc0] sm:$0xff]  ;;  %v1229_v51 = vld [vmem:[#allocation8 + $0xdc8] sm:$0xff] }
 0x201   :  { %7084 = vmatprep.subr.bf16.mxu0 %v11751_v62  ;;  %7412 = vmatprep.subr.bf16.mxu1 %v11753_v63  ;;  %v1200_v62 = vld [vmem:[#allocation8 + $0xce0] sm:$0xff]  ;;  %v1197_v63 = vld [vmem:[#allocation8 + $0xcc8] sm:$0xff] }
 0x202   :  { %v11791_v5 = vcombine.high %v1196_v61, %v1200_v62  ;;  %v11793_v9 = vcombine.high %v1197_v63, %v1201_v3  ;;  %v11792_v23 = vcombine.low %v1197_v63, %v1201_v3  ;;  %v1232_v50 = vld [vmem:[#allocation8 + $0xde0] sm:$0xff]  ;;  %v1233_v52 = vld [vmem:[#allocation8 + $0xde8] sm:$0xff] }
 0x203   :  { %v1237_v63 = vld [vmem:[#allocation8 + $0xe08] sm:$0xff] }
 0x204   :  { %7085 = vmatpush1.bf16.msra.mxu0 %v11750_v12  ;;  %7413 = vmatpush1.bf16.msra.mxu1 %v11752_v18  ;;  %v1208_v12 = vld [vmem:[#allocation8 + $0xd20] sm:$0xff]  ;;  %v1205_v18 = vld [vmem:[#allocation8 + $0xd08] sm:$0xff] }
 0x205   :  { %7086 = vmatprep.subr.bf16.mxu0 %v11759_v22  ;;  %7414 = vmatprep.subr.bf16.mxu1 %v11761_v2  ;;  %v1209_v22 = vld [vmem:[#allocation8 + $0xd28] sm:$0xff]  ;;  %v11790_v2 = vcombine.low %v1196_v61, %v1200_v62  ;;  %v11799_v25 = vcombine.high %v1204_v11, %v1208_v12  ;;  %v1236_v61 = vld [vmem:[#allocation8 + $0xe00] sm:$0xff] }
 0x206   :  { %v11801_v27 = vcombine.high %v1205_v18, %v1209_v22  ;;  %v1240_v62 = vld [vmem:[#allocation8 + $0xe20] sm:$0xff]  ;;  %v1241_v3 = vld [vmem:[#allocation8 + $0xe28] sm:$0xff] }
 0x208   :  { %7087 = vmatpush1.bf16.msra.mxu0 %v11758_v15  ;;  %7415 = vmatpush1.bf16.msra.mxu1 %v11760_v34  ;;  %v1217_v15 = vld [vmem:[#allocation8 + $0xd68] sm:$0xff]  ;;  %v11798_v34 = vcombine.low %v1204_v11, %v1208_v12  ;;  %v1244_v11 = vld [vmem:[#allocation8 + $0xe40] sm:$0xff] }
 0x209   :  { %7097 = vmatprep.subr.bf16.mxu0 %v11767_v1  ;;  %7425 = vmatprep.subr.bf16.mxu1 %v11769_v38  ;;  %v11800_v1 = vcombine.low %v1205_v18, %v1209_v22  ;;  %v11807_v38 = vcombine.high %v1212_v28, %v1216_v13  ;;  %v11809_v24 = vcombine.high %v1213_v29, %v1217_v15  ;;  %v1248_v12 = vld [vmem:[#allocation8 + $0xe60] sm:$0xff]  ;;  %v1245_v18 = vld [vmem:[#allocation8 + $0xe48] sm:$0xff] }
 0x20a   :  { %v1249_v22 = vld [vmem:[#allocation8 + $0xe68] sm:$0xff] }
 0x20b   :  { %7089 = vmatmul.mubr.bf16.vlgmr.msra.gmra.mrb[8].mxu0 %v14132_v45  ;;  %7417 = vmatmul.mubr.bf16.vlgmr.msra.gmra.mrb[24].mxu1 %v14132_v45 }
 0x20c   :  { %7098 = vmatpush1.bf16.msra.mxu0 %v11766_v46  ;;  %7426 = vmatpush1.bf16.msra.mxu1 %v11768_v19  ;;  %v11806_v46 = vcombine.low %v1212_v28, %v1216_v13  ;;  %v11808_v19 = vcombine.low %v1213_v29, %v1217_v15  ;;  %v1252_v28 = vld [vmem:[#allocation8 + $0xe80] sm:$0xff]  ;;  %v1253_v29 = vld [vmem:[#allocation8 + $0xe88] sm:$0xff] }
 0x20d   :  { %7099 = vmatprep.subr.bf16.mxu0 %v11775_v47  ;;  %7427 = vmatprep.subr.bf16.mxu1 %v11777_v48  ;;  %v11815_v47 = vcombine.high %v1220_v39, %v1224_v41  ;;  %v11817_v48 = vcombine.high %v1221_v43, %v1225_v44  ;;  %v1256_v13 = vld [vmem:[#allocation8 + $0xea0] sm:$0xff]  ;;  %v1257_v15 = vld [vmem:[#allocation8 + $0xea8] sm:$0xff] }
 0x20e   :  { %7129 = vmatprep.mubr.bf16.mxu0 %v14134_v53  ;;  %7457 = vmatprep.mubr.bf16.mxu1 %v14134_v53 }
 0x210   :  { %7100 = vmatpush1.bf16.msra.mxu0 %v11774_v55  ;;  %7428 = vmatpush1.bf16.msra.mxu1 %v11776_v58  ;;  %v11814_v55 = vcombine.low %v1220_v39, %v1224_v41  ;;  %v11816_v58 = vcombine.low %v1221_v43, %v1225_v44  ;;  %v1260_v39 = vld [vmem:[#allocation8 + $0xec0] sm:$0xff]  ;;  %v1261_v43 = vld [vmem:[#allocation8 + $0xec8] sm:$0xff] }
 0x211   :  { %7101 = vmatprep.subr.bf16.mxu0 %v11783_v59  ;;  %7429 = vmatprep.subr.bf16.mxu1 %v11785_v60  ;;  %v11823_v59 = vcombine.high %v1228_v0, %v1232_v50  ;;  %v11825_v60 = vcombine.high %v1229_v51, %v1233_v52  ;;  %v1264_v41 = vld [vmem:[#allocation8 + $0xee0] sm:$0xff]  ;;  %v1265_v44 = vld [vmem:[#allocation8 + $0xee8] sm:$0xff] }
 0x214   :  { %7102 = vmatpush1.bf16.msra.mxu0 %v11782_v42  ;;  %7430 = vmatpush1.bf16.msra.mxu1 %v11784_v4  ;;  %v11822_v42 = vcombine.low %v1228_v0, %v1232_v50  ;;  %v11824_v4 = vcombine.low %v1229_v51, %v1233_v52  ;;  %v1268_v0 = vld [vmem:[#allocation8 + $0xf00] sm:$0xff]  ;;  %v1269_v51 = vld [vmem:[#allocation8 + $0xf08] sm:$0xff] }
 0x215   :  { %7103 = vmatprep.subr.bf16.mxu0 %v11791_v5  ;;  %7431 = vmatprep.subr.bf16.mxu1 %v11793_v9  ;;  %v11831_v5 = vcombine.high %v1236_v61, %v1240_v62  ;;  %v11833_v9 = vcombine.high %v1237_v63, %v1241_v3  ;;  %v1272_v50 = vld [vmem:[#allocation8 + $0xf20] sm:$0xff]  ;;  %v1273_v52 = vld [vmem:[#allocation8 + $0xf28] sm:$0xff] }
 0x218   :  { %7104 = vmatpush1.bf16.msra.mxu0 %v11790_v2  ;;  %7432 = vmatpush1.bf16.msra.mxu1 %v11792_v23  ;;  %v11830_v2 = vcombine.low %v1236_v61, %v1240_v62  ;;  %v11832_v23 = vcombine.low %v1237_v63, %v1241_v3  ;;  %v1276_v61 = vld [vmem:[#allocation8 + $0xf40] sm:$0xff]  ;;  %v1277_v63 = vld [vmem:[#allocation8 + $0xf48] sm:$0xff] }
 0x219   :  { %7105 = vmatprep.subr.bf16.mxu0 %v11799_v25  ;;  %7433 = vmatprep.subr.bf16.mxu1 %v11801_v27  ;;  %v11839_v25 = vcombine.high %v1244_v11, %v1248_v12  ;;  %v11841_v27 = vcombine.high %v1245_v18, %v1249_v22  ;;  %v1280_v62 = vld [vmem:[#allocation8 + $0xf60] sm:$0xff]  ;;  %v1281_v3 = vld [vmem:[#allocation8 + $0xf68] sm:$0xff] }
 0x21c   :  { %7106 = vmatpush1.bf16.msra.mxu0 %v11798_v34  ;;  %7434 = vmatpush1.bf16.msra.mxu1 %v11800_v1  ;;  %v11838_v34 = vcombine.low %v1244_v11, %v1248_v12  ;;  %v11840_v1 = vcombine.low %v1245_v18, %v1249_v22  ;;  %v1284_v11 = vld [vmem:[#allocation8 + $0xf80] sm:$0xff]  ;;  %v1285_v18 = vld [vmem:[#allocation8 + $0xf88] sm:$0xff] }
 0x21d   :  { %7107 = vmatprep.subr.bf16.mxu0 %v11807_v38  ;;  %7435 = vmatprep.subr.bf16.mxu1 %v11809_v24  ;;  %v11847_v38 = vcombine.high %v1252_v28, %v1256_v13  ;;  %v11849_v24 = vcombine.high %v1253_v29, %v1257_v15  ;;  %v1288_v12 = vld [vmem:[#allocation8 + $0xfa0] sm:$0xff]  ;;  %v1289_v22 = vld [vmem:[#allocation8 + $0xfa8] sm:$0xff] }
 0x220   :  { %7108 = vmatpush1.bf16.msra.mxu0 %v11806_v46  ;;  %7436 = vmatpush1.bf16.msra.mxu1 %v11808_v19  ;;  %v11846_v46 = vcombine.low %v1252_v28, %v1256_v13  ;;  %v11848_v19 = vcombine.low %v1253_v29, %v1257_v15  ;;  %v11879_v28 = vcombine.high %v1284_v11, %v1288_v12  ;;  %v1292_v29 = vld [vmem:[#allocation8 + $0xfc0] sm:$0xff]  ;;  %v14141_v15 = vld [vmem:[#allocation7 + $0x8] sm:$0xff] }
 0x221   :  { %7109 = vmatprep.subr.bf16.mxu0 %v11815_v47  ;;  %7437 = vmatprep.subr.bf16.mxu1 %v11817_v48  ;;  %v11855_v47 = vcombine.high %v1260_v39, %v1264_v41  ;;  %v11857_v48 = vcombine.high %v1261_v43, %v1265_v44  ;;  %v11881_v13 = vcombine.high %v1285_v18, %v1289_v22 }
 0x224   :  { %7110 = vmatpush1.bf16.msra.mxu0 %v11814_v55  ;;  %7438 = vmatpush1.bf16.msra.mxu1 %v11816_v58  ;;  %v11854_v55 = vcombine.low %v1260_v39, %v1264_v41  ;;  %v11856_v58 = vcombine.low %v1261_v43, %v1265_v44  ;;  %v11878_v39 = vcombine.low %v1284_v11, %v1288_v12  ;;  %v1316_v11 = vld [vmem:[#allocation8 + $0x1080] sm:$0xff] }
 0x225   :  { %7111 = vmatprep.subr.bf16.mxu0 %v11823_v59  ;;  %7439 = vmatprep.subr.bf16.mxu1 %v11825_v60  ;;  %v11863_v59 = vcombine.high %v1268_v0, %v1272_v50  ;;  %v11865_v60 = vcombine.high %v1269_v51, %v1273_v52  ;;  %v11880_v41 = vcombine.low %v1285_v18, %v1289_v22  ;;  %v1320_v12 = vld [vmem:[#allocation8 + $0x10a0] sm:$0xff]  ;;  %v1317_v18 = vld [vmem:[#allocation8 + $0x1088] sm:$0xff] }
 0x226   :  { %v1321_v22 = vld [vmem:[#allocation8 + $0x10a8] sm:$0xff] }
 0x228   :  { %7112 = vmatpush1.bf16.msra.mxu0 %v11822_v42  ;;  %7440 = vmatpush1.bf16.msra.mxu1 %v11824_v4  ;;  %v11862_v42 = vcombine.low %v1268_v0, %v1272_v50  ;;  %v11864_v4 = vcombine.low %v1269_v51, %v1273_v52  ;;  %v1301_v0 = vld [vmem:[#allocation8 + $0x1008] sm:$0xff] }
 0x229   :  { %7113 = vmatprep.subr.bf16.mxu0 %v11831_v5  ;;  %7441 = vmatprep.subr.bf16.mxu1 %v11833_v9  ;;  %v11871_v5 = vcombine.high %v1276_v61, %v1280_v62  ;;  %v11873_v9 = vcombine.high %v1277_v63, %v1281_v3  ;;  %v1305_v50 = vld [vmem:[#allocation8 + $0x1028] sm:$0xff] }
 0x22c   :  { %7114 = vmatpush1.bf16.msra.mxu0 %v11830_v2  ;;  %7442 = vmatpush1.bf16.msra.mxu1 %v11832_v23  ;;  %v11870_v2 = vcombine.low %v1276_v61, %v1280_v62  ;;  %v11872_v23 = vcombine.low %v1277_v63, %v1281_v3  ;;  %v1312_v61 = vld [vmem:[#allocation8 + $0x1060] sm:$0xff]  ;;  %v1309_v62 = vld [vmem:[#allocation8 + $0x1048] sm:$0xff] }
 0x22d   :  { %7115 = vmatprep.subr.bf16.mxu0 %v11839_v25  ;;  %7443 = vmatprep.subr.bf16.mxu1 %v11841_v27  ;;  %v13584_v25 = vld [vmem:[#allocation7] sm:$0xff]  ;;  %v1313_v63 = vld [vmem:[#allocation8 + $0x1068] sm:$0xff] }
 0x22e   :  { %v211_v27 = vrot.slane %v13584_v25, %v14099_v7  ;;  %v11911_v25 = vcombine.high %v1316_v11, %v1320_v12 }
 0x230   :  { %7116 = vmatpush1.bf16.msra.mxu0 %v11838_v34  ;;  %7444 = vmatpush1.bf16.msra.mxu1 %v11840_v1  ;;  %v223_v34 = vrot.slane %v14141_v15, %v14034_v16  ;;  %v1296_v1 = vld [vmem:[#allocation8 + $0xfe0] sm:$0xff]  ;;  %v586_v43 = vadd.f32 %v14083_v10, %v211_v27  ;;  %v11913_v27 = vcombine.high %v1317_v18, %v1321_v22 }
 0x231   :  { %7117 = vmatprep.subr.bf16.mxu0 %v11847_v38  ;;  %7445 = vmatprep.subr.bf16.mxu1 %v11849_v24  ;;  %v1293_v38 = vld [vmem:[#allocation8 + $0xfc8] sm:$0xff]  ;;  %v11887_v44 = vcombine.high %v1292_v29, %v1296_v1  ;;  %v11886_v51 = vcombine.low %v1292_v29, %v1296_v1  ;;  %v11910_v1 = vcombine.low %v1316_v11, %v1320_v12  ;;  %v1356_v12 = vld [vmem:[#allocation8 + $0x11c0] sm:$0xff] }
 0x232   :  { %v1297_v24 = vld [vmem:[#allocation8 + $0xfe8] sm:$0xff] }
 0x233   :  { %v11888_v52 = vcombine.low %v1293_v38, %v1297_v24  ;;  %v1325_v29 = vld [vmem:[#allocation8 + $0x10c8] sm:$0xff] }
 0x234   :  { %7118 = vmatpush1.bf16.msra.mxu0 %v11846_v46  ;;  %7446 = vmatpush1.bf16.msra.mxu1 %v11848_v19  ;;  %v11889_v46 = vcombine.high %v1293_v38, %v1297_v24  ;;  %v1300_v19 = vld [vmem:[#allocation8 + $0x1000] sm:$0xff]  ;;  %v11912_v38 = vcombine.low %v1317_v18, %v1321_v22  ;;  %v1357_v22 = vld [vmem:[#allocation8 + $0x11c8] sm:$0xff] }
 0x235   :  { %7119 = vmatprep.subr.bf16.mxu0 %v11855_v47  ;;  %7447 = vmatprep.subr.bf16.mxu1 %v11857_v48  ;;  %v629_v47 = vadd.f32 %v14065_v6, %v223_v34  ;;  %v1304_v48 = vld [vmem:[#allocation8 + $0x1020] sm:$0xff]  ;;  %v1329_v34 = vld [vmem:[#allocation8 + $0x10e8] sm:$0xff] }
 0x236   :  { %v11894_v6 = vcombine.low %v1300_v19, %v1304_v48  ;;  %v1360_v18 = vld [vmem:[#allocation8 + $0x11e0] sm:$0xff] }
 0x237   :  { %v765_v10 = vmax.f32 %v629_v47, 0.0  ;;  %v11920_v47 = vcombine.low %v1325_v29, %v1329_v34 }
 0x238   :  { %7120 = vmatpush1.bf16.msra.mxu0 %v11854_v55  ;;  %7448 = vmatpush1.bf16.msra.mxu1 %v11856_v58  ;;  %v762_v55 = vmax.f32 %v586_v43, 0.0  ;;  %v11895_v58 = vcombine.high %v1300_v19, %v1304_v48  ;;  %v1336_v43 = vld [vmem:[#allocation8 + $0x1120] sm:$0xff] }
 0x239   :  { %7121 = vmatprep.subr.bf16.mxu0 %v11863_v59  ;;  %7449 = vmatprep.subr.bf16.mxu1 %v11865_v60  ;;  %v11897_v59 = vcombine.high %v1301_v0, %v1305_v50  ;;  %v1308_v60 = vld [vmem:[#allocation8 + $0x1040] sm:$0xff] }
 0x23a   :  { %v14147_v3 = vpack.c.bf16 %v762_v55, %v762_v55  ;;  %v1345_v55 = vld [vmem:[#allocation8 + $0x1168] sm:$0xff] }
 0x23c   :  { %7122 = vmatpush1.bf16.msra.mxu0 %v11862_v42  ;;  %7450 = vmatpush1.bf16.msra.mxu1 %v11864_v4  ;;  %v11896_v42 = vcombine.low %v1301_v0, %v1305_v50  ;;  %v14149_v4 = vpack.c.bf16 %v765_v10, %v765_v10  ;;  %v1340_v50 = vld [vmem:[#allocation8 + $0x1140] sm:$0xff] }
 0x23d   :  { %7123 = vmatprep.subr.bf16.mxu0 %v11871_v5  ;;  %7451 = vmatprep.subr.bf16.mxu1 %v11873_v9  ;;  %v11903_v5 = vcombine.high %v1308_v60, %v1312_v61  ;;  %v11905_v9 = vcombine.high %v1309_v62, %v1313_v63 }
 0x240   :  { %7124 = vmatpush1.bf16.msra.mxu0 %v11870_v2  ;;  %7452 = vmatpush1.bf16.msra.mxu1 %v11872_v23  ;;  %v11902_v2 = vcombine.low %v1308_v60, %v1312_v61  ;;  %v11904_v23 = vcombine.low %v1309_v62, %v1313_v63  ;;  %v1348_v61 = vld [vmem:[#allocation8 + $0x1180] sm:$0xff]  ;;  %v1349_v63 = vld [vmem:[#allocation8 + $0x1188] sm:$0xff] }
 0x241   :  { %7125 = vmatprep.subr.bf16.mxu0 %v11879_v28  ;;  %7453 = vmatprep.subr.bf16.mxu1 %v11881_v13  ;;  %v1324_v28 = vld [vmem:[#allocation8 + $0x10c0] sm:$0xff] }
 0x242   :  { %v1328_v13 = vld [vmem:[#allocation8 + $0x10e0] sm:$0xff] }
 0x243   :  { %v11919_v24 = vcombine.high %v1324_v28, %v1328_v13  ;;  %v11918_v19 = vcombine.low %v1324_v28, %v1328_v13  ;;  %v1352_v62 = vld [vmem:[#allocation8 + $0x11a0] sm:$0xff] }
 0x244   :  { %7126 = vmatpush1.bf16.msra.mxu0 %v11878_v39  ;;  %7454 = vmatpush1.bf16.msra.mxu1 %v11880_v41  ;;  %v11921_v39 = vcombine.high %v1325_v29, %v1329_v34  ;;  %v1332_v41 = vld [vmem:[#allocation8 + $0x1100] sm:$0xff]  ;;  %v1365_v34 = vld [vmem:[#allocation8 + $0x1208] sm:$0xff] }
 0x245   :  { %7127 = vmatprep.subr.bf16.mxu0 %v11887_v44  ;;  %7455 = vmatprep.subr.bf16.mxu1 %v11889_v46  ;;  %v1333_v44 = vld [vmem:[#allocation8 + $0x1108] sm:$0xff]  ;;  %v11927_v48 = vcombine.high %v1332_v41, %v1336_v43  ;;  %v1364_v13 = vld [vmem:[#allocation8 + $0x1200] sm:$0xff] }
 0x246   :  { %v1337_v46 = vld [vmem:[#allocation8 + $0x1128] sm:$0xff]  ;;  %v1368_v29 = vld [vmem:[#allocation8 + $0x1220] sm:$0xff] }
 0x247   :  { %v11929_v0 = vcombine.high %v1333_v44, %v1337_v46 }
 0x248   :  { %7128 = vmatpush1.bf16.msra.mxu0 %v11886_v51  ;;  %7456 = vmatpush1.bf16.msra.mxu1 %v11888_v52  ;;  %v1344_v51 = vld [vmem:[#allocation8 + $0x1160] sm:$0xff]  ;;  %v1341_v52 = vld [vmem:[#allocation8 + $0x1148] sm:$0xff] }
 0x249   :  { %7138 = vmatprep.subr.bf16.mxu0 %v11895_v58  ;;  %7466 = vmatprep.subr.bf16.mxu1 %v11897_v59  ;;  %v11926_v58 = vcombine.low %v1332_v41, %v1336_v43  ;;  %v11928_v59 = vcombine.low %v1333_v44, %v1337_v46  ;;  %v11935_v10 = vcombine.high %v1340_v50, %v1344_v51  ;;  %v1372_v43 = vld [vmem:[#allocation8 + $0x1240] sm:$0xff]  ;;  %v1373_v46 = vld [vmem:[#allocation8 + $0x1248] sm:$0xff] }
 0x24a   :  { %v11937_v60 = vcombine.high %v1341_v52, %v1345_v55  ;;  %v1376_v44 = vld [vmem:[#allocation8 + $0x1260] sm:$0xff] }
 0x24b   :  { %7130 = vmatmul.mubr.bf16.vlgmr.msra.gmra.mrb[8].mxu0 %v14147_v3  ;;  %7458 = vmatmul.mubr.bf16.vlgmr.msra.gmra.mrb[24].mxu1 %v14147_v3 }
 0x24c   :  { %7139 = vmatpush1.bf16.msra.mxu0 %v11894_v6  ;;  %7170 = vmatprep.mubr.bf16.mxu0 %v14149_v4  ;;  %v1353_v6 = vld [vmem:[#allocation8 + $0x11a8] sm:$0xff] }
 0x24d   :  { %7467 = vmatpush1.bf16.msra.mxu1 %v11896_v42  ;;  %7498 = vmatprep.mubr.bf16.mxu1 %v14149_v4  ;;  %v11934_v42 = vcombine.low %v1340_v50, %v1344_v51  ;;  %v11945_v11 = vcombine.high %v1349_v63, %v1353_v6  ;;  %v1380_v51 = vld [vmem:[#allocation8 + $0x1280] sm:$0xff] }
 0x24e   :  { %7140 = vmatprep.subr.bf16.mxu0 %v11903_v5  ;;  %7468 = vmatprep.subr.bf16.mxu1 %v11905_v9  ;;  %v11936_v5 = vcombine.low %v1341_v52, %v1345_v55  ;;  %v11943_v9 = vcombine.high %v1348_v61, %v1352_v62  ;;  %v1384_v52 = vld [vmem:[#allocation8 + $0x12a0] sm:$0xff]  ;;  %v1381_v55 = vld [vmem:[#allocation8 + $0x1288] sm:$0xff] }
 0x250   :  { %7141 = vmatpush1.bf16.msra.mxu0 %v11902_v2  ;;  %v1361_v2 = vld [vmem:[#allocation8 + $0x11e8] sm:$0xff] }
 0x251   :  { %7469 = vmatpush1.bf16.msra.mxu1 %v11904_v23  ;;  %7142 = vmatprep.subr.bf16.mxu0 %v11911_v25  ;;  %v11942_v23 = vcombine.low %v1348_v61, %v1352_v62  ;;  %v11944_v25 = vcombine.low %v1349_v63, %v1353_v6  ;;  %v11953_v28 = vcombine.high %v1357_v22, %v1361_v2  ;;  %v1388_v62 = vld [vmem:[#allocation8 + $0x12c0] sm:$0xff]  ;;  %v1389_v6 = vld [vmem:[#allocation8 + $0x12c8] sm:$0xff] }
 0x252   :  { %7470 = vmatprep.subr.bf16.mxu1 %v11913_v27  ;;  %v11951_v27 = vcombine.high %v1356_v12, %v1360_v18  ;;  %v1392_v63 = vld [vmem:[#allocation8 + $0x12e0] sm:$0xff] }
 0x254   :  { %7143 = vmatpush1.bf16.msra.mxu0 %v11910_v1  ;;  %v1369_v1 = vld [vmem:[#allocation8 + $0x1228] sm:$0xff] }
 0x255   :  { %7471 = vmatpush1.bf16.msra.mxu1 %v11912_v38  ;;  %7144 = vmatprep.subr.bf16.mxu0 %v11919_v24  ;;  %v11950_v38 = vcombine.low %v1356_v12, %v1360_v18  ;;  %v11952_v24 = vcombine.low %v1357_v22, %v1361_v2  ;;  %v11961_v41 = vcombine.high %v1365_v34, %v1369_v1  ;;  %v1396_v18 = vld [vmem:[#allocation8 + $0x1300] sm:$0xff]  ;;  %v1397_v2 = vld [vmem:[#allocation8 + $0x1308] sm:$0xff] }
 0x256   :  { %7472 = vmatprep.subr.bf16.mxu1 %v11921_v39  ;;  %v11959_v39 = vcombine.high %v1364_v13, %v1368_v29  ;;  %v1400_v22 = vld [vmem:[#allocation8 + $0x1320] sm:$0xff] }
 0x258   :  { %7145 = vmatpush1.bf16.msra.mxu0 %v11918_v19  ;;  %v1377_v19 = vld [vmem:[#allocation8 + $0x1268] sm:$0xff] }
 0x259   :  { %7473 = vmatpush1.bf16.msra.mxu1 %v11920_v47  ;;  %7146 = vmatprep.subr.bf16.mxu0 %v11927_v48  ;;  %v11958_v47 = vcombine.low %v1364_v13, %v1368_v29  ;;  %v11960_v48 = vcombine.low %v1365_v34, %v1369_v1  ;;  %v11969_v50 = vcombine.high %v1373_v46, %v1377_v19  ;;  %v1404_v29 = vld [vmem:[#allocation8 + $0x1340] sm:$0xff]  ;;  %v1405_v1 = vld [vmem:[#allocation8 + $0x1348] sm:$0xff] }
 0x25a   :  { %7474 = vmatprep.subr.bf16.mxu1 %v11929_v0  ;;  %v11967_v0 = vcombine.high %v1372_v43, %v1376_v44  ;;  %v1408_v34 = vld [vmem:[#allocation8 + $0x1360] sm:$0xff] }
 0x25c   :  { %7147 = vmatpush1.bf16.msra.mxu0 %v11926_v58  ;;  %v1385_v58 = vld [vmem:[#allocation8 + $0x12a8] sm:$0xff] }
 0x25d   :  { %7475 = vmatpush1.bf16.msra.mxu1 %v11928_v59  ;;  %7148 = vmatprep.subr.bf16.mxu0 %v11935_v10  ;;  %v11966_v59 = vcombine.low %v1372_v43, %v1376_v44  ;;  %v11968_v10 = vcombine.low %v1373_v46, %v1377_v19  ;;  %v11977_v61 = vcombine.high %v1381_v55, %v1385_v58  ;;  %v1412_v44 = vld [vmem:[#allocation8 + $0x1380] sm:$0xff]  ;;  %v1413_v19 = vld [vmem:[#allocation8 + $0x1388] sm:$0xff] }
 0x25e   :  { %7476 = vmatprep.subr.bf16.mxu1 %v11937_v60  ;;  %v11975_v60 = vcombine.high %v1380_v51, %v1384_v52  ;;  %v1416_v46 = vld [vmem:[#allocation8 + $0x13a0] sm:$0xff] }
 0x260   :  { %7149 = vmatpush1.bf16.msra.mxu0 %v11934_v42  ;;  %v1393_v42 = vld [vmem:[#allocation8 + $0x12e8] sm:$0xff] }
 0x261   :  { %7477 = vmatpush1.bf16.msra.mxu1 %v11936_v5  ;;  %7150 = vmatprep.subr.bf16.mxu0 %v11943_v9  ;;  %v11974_v5 = vcombine.low %v1380_v51, %v1384_v52  ;;  %v11976_v9 = vcombine.low %v1381_v55, %v1385_v58  ;;  %v11985_v12 = vcombine.high %v1389_v6, %v1393_v42  ;;  %v1420_v55 = vld [vmem:[#allocation8 + $0x13c0] sm:$0xff] }
 0x262   :  { %7478 = vmatprep.subr.bf16.mxu1 %v11945_v11  ;;  %v11983_v11 = vcombine.high %v1388_v62, %v1392_v63  ;;  %v12007_v51 = vcombine.high %v1412_v44, %v1416_v46  ;;  %v1424_v58 = vld [vmem:[#allocation8 + $0x13e0] sm:$0xff] }
 0x264   :  { %7151 = vmatpush1.bf16.msra.mxu0 %v11942_v23  ;;  %v1401_v23 = vld [vmem:[#allocation8 + $0x1328] sm:$0xff] }
 0x265   :  { %7479 = vmatpush1.bf16.msra.mxu1 %v11944_v25  ;;  %7152 = vmatprep.subr.bf16.mxu0 %v11951_v27  ;;  %v11982_v25 = vcombine.low %v1388_v62, %v1392_v63  ;;  %v11984_v27 = vcombine.low %v1389_v6, %v1393_v42  ;;  %v11993_v13 = vcombine.high %v1397_v2, %v1401_v23  ;;  %v1428_v6 = vld [vmem:[#allocation8 + $0x1400] sm:$0xff] }
 0x266   :  { %7480 = vmatprep.subr.bf16.mxu1 %v11953_v28  ;;  %v11991_v28 = vcombine.high %v1396_v18, %v1400_v22  ;;  %v12015_v63 = vcombine.high %v1420_v55, %v1424_v58  ;;  %v1432_v42 = vld [vmem:[#allocation8 + $0x1420] sm:$0xff] }
 0x268   :  { %7153 = vmatpush1.bf16.msra.mxu0 %v11950_v38  ;;  %v1409_v38 = vld [vmem:[#allocation8 + $0x1368] sm:$0xff] }
 0x269   :  { %7481 = vmatpush1.bf16.msra.mxu1 %v11952_v24  ;;  %7154 = vmatprep.subr.bf16.mxu0 %v11959_v39  ;;  %v11990_v24 = vcombine.low %v1396_v18, %v1400_v22  ;;  %v11992_v39 = vcombine.low %v1397_v2, %v1401_v23  ;;  %v12001_v43 = vcombine.high %v1405_v1, %v1409_v38  ;;  %v1436_v23 = vld [vmem:[#allocation8 + $0x1440] sm:$0xff] }
 0x26a   :  { %7482 = vmatprep.subr.bf16.mxu1 %v11961_v41  ;;  %v11999_v41 = vcombine.high %v1404_v29, %v1408_v34  ;;  %v12023_v22 = vcombine.high %v1428_v6, %v1432_v42 }
 0x26c   :  { %7155 = vmatpush1.bf16.msra.mxu0 %v11958_v47  ;;  %v1417_v47 = vld [vmem:[#allocation8 + $0x13a8] sm:$0xff] }
 0x26d   :  { %7483 = vmatpush1.bf16.msra.mxu1 %v11960_v48  ;;  %7156 = vmatprep.subr.bf16.mxu0 %v11967_v0  ;;  %v11998_v48 = vcombine.low %v1404_v29, %v1408_v34  ;;  %v219_v0 = vrot.slane %v14141_v15, %v14029_v14  ;;  %v12009_v52 = vcombine.high %v1413_v19, %v1417_v47 }
 0x26e   :  { %7484 = vmatprep.subr.bf16.mxu1 %v11969_v50  ;;  %v12000_v50 = vcombine.low %v1405_v1, %v1409_v38  ;;  %v12008_v62 = vcombine.low %v1413_v19, %v1417_v47  ;;  %v1444_v38 = vld [vmem:[#allocation8 + $0x1480] sm:$0xff] }
 0x270   :  { %7157 = vmatpush1.bf16.msra.mxu0 %v11966_v59  ;;  %v1421_v59 = vld [vmem:[#allocation8 + $0x13c8] sm:$0xff] }
 0x271   :  { %7485 = vmatpush1.bf16.msra.mxu1 %v11968_v10  ;;  %7158 = vmatprep.subr.bf16.mxu0 %v11975_v60  ;;  %v1425_v10 = vld [vmem:[#allocation8 + $0x13e8] sm:$0xff]  ;;  %v12006_v60 = vcombine.low %v1412_v44, %v1416_v46 }
 0x272   :  { %7486 = vmatprep.subr.bf16.mxu1 %v11977_v61  ;;  %v627_v61 = vadd.f32 %v14057_v17, %v219_v0  ;;  %v12017_v15 = vcombine.high %v1421_v59, %v1425_v10  ;;  %v12016_v18 = vcombine.low %v1421_v59, %v1425_v10  ;;  %v767_v17 = vmax.f32 %v14096_v56, 0.0  ;;  %v1456_v0 = vld [vmem:[#allocation8 + $0x14e0] sm:$0xff] }
 0x273   :  { %v1460_v10 = vld [vmem:[#allocation8 + $0x1500] sm:$0xff] }
 0x274   :  { %7159 = vmatpush1.bf16.msra.mxu0 %v11974_v5  ;;  %v1429_v5 = vld [vmem:[#allocation8 + $0x1408] sm:$0xff] }
 0x275   :  { %7487 = vmatpush1.bf16.msra.mxu1 %v11976_v9  ;;  %7160 = vmatprep.subr.bf16.mxu0 %v11983_v11  ;;  %v1433_v9 = vld [vmem:[#allocation8 + $0x1428] sm:$0xff]  ;;  %v12014_v11 = vcombine.low %v1420_v55, %v1424_v58 }
 0x276   :  { %7488 = vmatprep.subr.bf16.mxu1 %v11985_v12  ;;  %v764_v12 = vmax.f32 %v627_v61, 0.0  ;;  %v12025_v2 = vcombine.high %v1429_v5, %v1433_v9  ;;  %v12024_v34 = vcombine.low %v1429_v5, %v1433_v9  ;;  %v1461_v61 = vld [vmem:[#allocation8 + $0x1508] sm:$0xff]  ;;  %v1468_v5 = vld [vmem:[#allocation8 + $0x1540] sm:$0xff] }
 0x277   :  { %v1472_v9 = vld [vmem:[#allocation8 + $0x1560] sm:$0xff] }
 0x278   :  { %7161 = vmatpush1.bf16.msra.mxu0 %v11982_v25  ;;  %v1440_v25 = vld [vmem:[#allocation8 + $0x1460] sm:$0xff]  ;;  %v14159_v29 = vpack.c.bf16 %v764_v12, %v764_v12  ;;  %v1473_v12 = vld [vmem:[#allocation8 + $0x1568] sm:$0xff] }
 0x279   :  { %7489 = vmatpush1.bf16.msra.mxu1 %v11984_v27  ;;  %7162 = vmatprep.subr.bf16.mxu0 %v11991_v28  ;;  %v12022_v27 = vcombine.low %v1428_v6, %v1432_v42  ;;  %v1437_v28 = vld [vmem:[#allocation8 + $0x1448] sm:$0xff]  ;;  %v12031_v1 = vcombine.high %v1436_v23, %v1440_v25  ;;  %v12030_v44 = vcombine.low %v1436_v23, %v1440_v25  ;;  %v1476_v23 = vld [vmem:[#allocation8 + $0x1580] sm:$0xff] }
 0x27a   :  { %7490 = vmatprep.subr.bf16.mxu1 %v11993_v13  ;;  %v1441_v13 = vld [vmem:[#allocation8 + $0x1468] sm:$0xff]  ;;  %v1480_v25 = vld [vmem:[#allocation8 + $0x15a0] sm:$0xff] }
 0x27b   :  { %v12033_v56 = vcombine.high %v1437_v28, %v1441_v13  ;;  %v12032_v46 = vcombine.low %v1437_v28, %v1441_v13  ;;  %v1481_v28 = vld [vmem:[#allocation8 + $0x15a8] sm:$0xff]  ;;  %v12062_v13 = vcombine.low %v1468_v5, %v1472_v9 }
 0x27c   :  { %7163 = vmatpush1.bf16.msra.mxu0 %v11990_v24  ;;  %v1448_v24 = vld [vmem:[#allocation8 + $0x14a0] sm:$0xff] }
 0x27d   :  { %7491 = vmatpush1.bf16.msra.mxu1 %v11992_v39  ;;  %7164 = vmatprep.subr.bf16.mxu0 %v11999_v41  ;;  %v14161_v39 = vpack.c.bf16 %v767_v17, %v767_v17  ;;  %v1445_v41 = vld [vmem:[#allocation8 + $0x1488] sm:$0xff]  ;;  %v12039_v19 = vcombine.high %v1444_v38, %v1448_v24 }
 0x27e   :  { %7492 = vmatprep.subr.bf16.mxu1 %v12001_v43  ;;  %v1449_v43 = vld [vmem:[#allocation8 + $0x14a8] sm:$0xff] }
 0x27f   :  { %v12041_v47 = vcombine.high %v1445_v41, %v1449_v43  ;;  %v12040_v55 = vcombine.low %v1445_v41, %v1449_v43  ;;  %v1485_v41 = vld [vmem:[#allocation8 + $0x15c8] sm:$0xff] }
 0x280   :  { %7165 = vmatpush1.bf16.msra.mxu0 %v11998_v48  ;;  %v1452_v48 = vld [vmem:[#allocation8 + $0x14c0] sm:$0xff]  ;;  %v1489_v43 = vld [vmem:[#allocation8 + $0x15e8] sm:$0xff] }
 0x281   :  { %7493 = vmatpush1.bf16.msra.mxu1 %v12000_v50  ;;  %7166 = vmatprep.subr.bf16.mxu0 %v12007_v51  ;;  %v1453_v50 = vld [vmem:[#allocation8 + $0x14c8] sm:$0xff]  ;;  %v12047_v58 = vcombine.high %v1452_v48, %v1456_v0 }
 0x282   :  { %7494 = vmatprep.subr.bf16.mxu1 %v12009_v52  ;;  %v1457_v51 = vld [vmem:[#allocation8 + $0x14e8] sm:$0xff]  ;;  %v12038_v52 = vcombine.low %v1444_v38, %v1448_v24  ;;  %v1484_v24 = vld [vmem:[#allocation8 + $0x15c0] sm:$0xff] }
 0x283   :  { %v12049_v59 = vcombine.high %v1453_v50, %v1457_v51 }
 0x284   :  { %7167 = vmatpush1.bf16.msra.mxu0 %v12006_v60  ;;  %v1464_v60 = vld [vmem:[#allocation8 + $0x1520] sm:$0xff] }
 0x285   :  { %7495 = vmatpush1.bf16.msra.mxu1 %v12008_v62  ;;  %7168 = vmatprep.subr.bf16.mxu0 %v12015_v63  ;;  %v1465_v62 = vld [vmem:[#allocation8 + $0x1528] sm:$0xff]  ;;  %v12046_v63 = vcombine.low %v1452_v48, %v1456_v0  ;;  %v12055_v6 = vcombine.high %v1460_v10, %v1464_v60  ;;  %v1492_v48 = vld [vmem:[#allocation8 + $0x1600] sm:$0xff] }
 0x286   :  { %7496 = vmatprep.subr.bf16.mxu1 %v12017_v15  ;;  %v12048_v15 = vcombine.low %v1453_v50, %v1457_v51  ;;  %v12057_v42 = vcombine.high %v1461_v61, %v1465_v62  ;;  %v1496_v0 = vld [vmem:[#allocation8 + $0x1620] sm:$0xff]  ;;  %v1493_v50 = vld [vmem:[#allocation8 + $0x1608] sm:$0xff] }
 0x287   :  { %v1497_v51 = vld [vmem:[#allocation8 + $0x1628] sm:$0xff] }
 0x288   :  { %7169 = vmatpush1.bf16.msra.mxu0 %v12014_v11  ;;  %v1469_v11 = vld [vmem:[#allocation8 + $0x1548] sm:$0xff] }
 0x289   :  { %7497 = vmatpush1.bf16.msra.mxu1 %v12016_v18  ;;  %7179 = vmatprep.subr.bf16.mxu0 %v12023_v22  ;;  %v12054_v18 = vcombine.low %v1460_v10, %v1464_v60  ;;  %v12056_v22 = vcombine.low %v1461_v61, %v1465_v62  ;;  %v12065_v17 = vcombine.high %v1469_v11, %v1473_v12  ;;  %v1500_v10 = vld [vmem:[#allocation8 + $0x1640] sm:$0xff]  ;;  %v1501_v61 = vld [vmem:[#allocation8 + $0x1648] sm:$0xff] }
 0x28a   :  { %7507 = vmatprep.subr.bf16.mxu1 %v12025_v2  ;;  %v12063_v2 = vcombine.high %v1468_v5, %v1472_v9  ;;  %v1504_v60 = vld [vmem:[#allocation8 + $0x1660] sm:$0xff]  ;;  %v1505_v62 = vld [vmem:[#allocation8 + $0x1668] sm:$0xff] }
 0x28b   :  { %7171 = vmatmul.mubr.bf16.vlgmr.msra.gmra.mrb[8].mxu0 %v14159_v29  ;;  %v1508_v5 = vld [vmem:[#allocation8 + $0x1680] sm:$0xff] }
 0x28c   :  { %7499 = vmatmul.mubr.bf16.vlgmr.msra.gmra.mrb[24].mxu1 %v14159_v29  ;;  %7180 = vmatpush1.bf16.msra.mxu0 %v12022_v27  ;;  %v1477_v27 = vld [vmem:[#allocation8 + $0x1588] sm:$0xff]  ;;  %v1512_v9 = vld [vmem:[#allocation8 + $0x16a0] sm:$0xff] }
 0x28d   :  { %7211 = vmatprep.mubr.bf16.mxu0 %v14161_v39  ;;  %7508 = vmatpush1.bf16.msra.mxu1 %v12024_v34  ;;  %v12064_v34 = vcombine.low %v1469_v11, %v1473_v12  ;;  %v12073_v38 = vcombine.high %v1477_v27, %v1481_v28  ;;  %v1509_v11 = vld [vmem:[#allocation8 + $0x1688] sm:$0xff] }
 0x28e   :  { %7539 = vmatprep.mubr.bf16.mxu1 %v14161_v39  ;;  %7181 = vmatprep.subr.bf16.mxu0 %v12031_v1  ;;  %v12071_v1 = vcombine.high %v1476_v23, %v1480_v25  ;;  %v1513_v12 = vld [vmem:[#allocation8 + $0x16a8] sm:$0xff] }
 0x28f   :  { %7509 = vmatprep.subr.bf16.mxu1 %v12033_v56  ;;  %v1488_v56 = vld [vmem:[#allocation8 + $0x15e0] sm:$0xff] }
 0x290   :  { %7182 = vmatpush1.bf16.msra.mxu0 %v12030_v44  ;;  %v12070_v44 = vcombine.low %v1476_v23, %v1480_v25  ;;  %v1516_v23 = vld [vmem:[#allocation8 + $0x16c0] sm:$0xff] }
 0x291   :  { %7510 = vmatpush1.bf16.msra.mxu1 %v12032_v46  ;;  %7183 = vmatprep.subr.bf16.mxu0 %v12039_v19  ;;  %v12072_v46 = vcombine.low %v1477_v27, %v1481_v28  ;;  %v12079_v19 = vcombine.high %v1484_v24, %v1488_v56  ;;  %v1520_v25 = vld [vmem:[#allocation8 + $0x16e0] sm:$0xff]  ;;  %v1517_v27 = vld [vmem:[#allocation8 + $0x16c8] sm:$0xff] }
 0x292   :  { %7511 = vmatprep.subr.bf16.mxu1 %v12041_v47  ;;  %v12081_v47 = vcombine.high %v1485_v41, %v1489_v43  ;;  %v1521_v28 = vld [vmem:[#allocation8 + $0x16e8] sm:$0xff] }
 0x294   :  { %7184 = vmatpush1.bf16.msra.mxu0 %v12038_v52  ;;  %v12078_v52 = vcombine.low %v1484_v24, %v1488_v56  ;;  %v1524_v24 = vld [vmem:[#allocation8 + $0x1700] sm:$0xff] }
 0x295   :  { %7512 = vmatpush1.bf16.msra.mxu1 %v12040_v55  ;;  %7185 = vmatprep.subr.bf16.mxu0 %v12047_v58  ;;  %v12080_v55 = vcombine.low %v1485_v41, %v1489_v43  ;;  %v12087_v58 = vcombine.high %v1492_v48, %v1496_v0  ;;  %v1528_v56 = vld [vmem:[#allocation8 + $0x1720] sm:$0xff]  ;;  %v1525_v41 = vld [vmem:[#allocation8 + $0x1708] sm:$0xff] }
 0x296   :  { %7513 = vmatprep.subr.bf16.mxu1 %v12049_v59  ;;  %v12089_v59 = vcombine.high %v1493_v50, %v1497_v51  ;;  %v1529_v43 = vld [vmem:[#allocation8 + $0x1728] sm:$0xff] }
 0x298   :  { %7186 = vmatpush1.bf16.msra.mxu0 %v12046_v63  ;;  %v12086_v63 = vcombine.low %v1492_v48, %v1496_v0  ;;  %v1532_v48 = vld [vmem:[#allocation8 + $0x1740] sm:$0xff] }
 0x299   :  { %7514 = vmatpush1.bf16.msra.mxu1 %v12048_v15  ;;  %7187 = vmatprep.subr.bf16.mxu0 %v12055_v6  ;;  %v12088_v15 = vcombine.low %v1493_v50, %v1497_v51  ;;  %v12095_v6 = vcombine.high %v1500_v10, %v1504_v60  ;;  %v1536_v0 = vld [vmem:[#allocation8 + $0x1760] sm:$0xff]  ;;  %v1533_v50 = vld [vmem:[#allocation8 + $0x1748] sm:$0xff] }
 0x29a   :  { %7515 = vmatprep.subr.bf16.mxu1 %v12057_v42  ;;  %v12097_v42 = vcombine.high %v1501_v61, %v1505_v62  ;;  %v1537_v51 = vld [vmem:[#allocation8 + $0x1768] sm:$0xff] }
 0x29c   :  { %7188 = vmatpush1.bf16.msra.mxu0 %v12054_v18  ;;  %v12094_v18 = vcombine.low %v1500_v10, %v1504_v60  ;;  %v1540_v10 = vld [vmem:[#allocation8 + $0x1780] sm:$0xff] }
 0x29d   :  { %7516 = vmatpush1.bf16.msra.mxu1 %v12056_v22  ;;  %7189 = vmatprep.subr.bf16.mxu0 %v12063_v2  ;;  %v12096_v22 = vcombine.low %v1501_v61, %v1505_v62  ;;  %v12103_v2 = vcombine.high %v1508_v5, %v1512_v9  ;;  %v1544_v60 = vld [vmem:[#allocation8 + $0x17a0] sm:$0xff]  ;;  %v1541_v61 = vld [vmem:[#allocation8 + $0x1788] sm:$0xff] }
 0x29e   :  { %7517 = vmatprep.subr.bf16.mxu1 %v12065_v17  ;;  %v12105_v17 = vcombine.high %v1509_v11, %v1513_v12  ;;  %v1545_v62 = vld [vmem:[#allocation8 + $0x17a8] sm:$0xff] }
 0x2a0   :  { %7190 = vmatpush1.bf16.msra.mxu0 %v12062_v13  ;;  %v12102_v13 = vcombine.low %v1508_v5, %v1512_v9  ;;  %v1548_v5 = vld [vmem:[#allocation8 + $0x17c0] sm:$0xff] }
 0x2a1   :  { %7518 = vmatpush1.bf16.msra.mxu1 %v12064_v34  ;;  %7191 = vmatprep.subr.bf16.mxu0 %v12071_v1  ;;  %v12104_v34 = vcombine.low %v1509_v11, %v1513_v12  ;;  %v12111_v1 = vcombine.high %v1516_v23, %v1520_v25  ;;  %v1552_v9 = vld [vmem:[#allocation8 + $0x17e0] sm:$0xff]  ;;  %v1549_v11 = vld [vmem:[#allocation8 + $0x17c8] sm:$0xff] }
 0x2a2   :  { %7519 = vmatprep.subr.bf16.mxu1 %v12073_v38  ;;  %v12113_v38 = vcombine.high %v1517_v27, %v1521_v28  ;;  %v1553_v12 = vld [vmem:[#allocation8 + $0x17e8] sm:$0xff] }
 0x2a4   :  { %7192 = vmatpush1.bf16.msra.mxu0 %v12070_v44  ;;  %v12110_v44 = vcombine.low %v1516_v23, %v1520_v25  ;;  %v1556_v23 = vld [vmem:[#allocation8 + $0x1800] sm:$0xff] }
 0x2a5   :  { %7520 = vmatpush1.bf16.msra.mxu1 %v12072_v46  ;;  %7193 = vmatprep.subr.bf16.mxu0 %v12079_v19  ;;  %v12112_v46 = vcombine.low %v1517_v27, %v1521_v28  ;;  %v12119_v19 = vcombine.high %v1524_v24, %v1528_v56  ;;  %v1560_v25 = vld [vmem:[#allocation8 + $0x1820] sm:$0xff]  ;;  %v1557_v27 = vld [vmem:[#allocation8 + $0x1808] sm:$0xff] }
 0x2a6   :  { %7521 = vmatprep.subr.bf16.mxu1 %v12081_v47  ;;  %v12121_v47 = vcombine.high %v1525_v41, %v1529_v43  ;;  %v1561_v28 = vld [vmem:[#allocation8 + $0x1828] sm:$0xff] }
 0x2a8   :  { %7194 = vmatpush1.bf16.msra.mxu0 %v12078_v52  ;;  %v12118_v52 = vcombine.low %v1524_v24, %v1528_v56  ;;  %v12153_v24 = vcombine.high %v1557_v27, %v1561_v28  ;;  %v769_v56 = vmax.f32 %v14081_v49, 0.0 }
 0x2a9   :  { %7522 = vmatpush1.bf16.msra.mxu1 %v12080_v55  ;;  %7195 = vmatprep.subr.bf16.mxu0 %v12087_v58  ;;  %v12120_v55 = vcombine.low %v1525_v41, %v1529_v43  ;;  %v12127_v58 = vcombine.high %v1532_v48, %v1536_v0  ;;  %v1564_v41 = vld [vmem:[#allocation8 + $0x1840] sm:$0xff] }
 0x2aa   :  { %7523 = vmatprep.subr.bf16.mxu1 %v12089_v59  ;;  %v12129_v59 = vcombine.high %v1533_v50, %v1537_v51  ;;  %v1568_v43 = vld [vmem:[#allocation8 + $0x1860] sm:$0xff] }
 0x2ac   :  { %7196 = vmatpush1.bf16.msra.mxu0 %v12086_v63  ;;  %v12126_v63 = vcombine.low %v1532_v48, %v1536_v0  ;;  %v12152_v48 = vcombine.low %v1557_v27, %v1561_v28  ;;  %v1572_v0 = vld [vmem:[#allocation8 + $0x1880] sm:$0xff] }
 0x2ad   :  { %7524 = vmatpush1.bf16.msra.mxu1 %v12088_v15  ;;  %7197 = vmatprep.subr.bf16.mxu0 %v12095_v6  ;;  %v12128_v15 = vcombine.low %v1533_v50, %v1537_v51  ;;  %v12135_v6 = vcombine.high %v1540_v10, %v1544_v60  ;;  %v1576_v50 = vld [vmem:[#allocation8 + $0x18a0] sm:$0xff]  ;;  %v14171_v51 = vpack.c.bf16 %v769_v56, %v769_v56 }
 0x2ae   :  { %7525 = vmatprep.subr.bf16.mxu1 %v12097_v42  ;;  %v12137_v42 = vcombine.high %v1541_v61, %v1545_v62  ;;  %v1596_v27 = vld [vmem:[#allocation8 + $0x1940] sm:$0xff] }
 0x2af   :  { %v1600_v28 = vld [vmem:[#allocation8 + $0x1960] sm:$0xff] }
 0x2b0   :  { %7198 = vmatpush1.bf16.msra.mxu0 %v12094_v18  ;;  %v12134_v18 = vcombine.low %v1540_v10, %v1544_v60  ;;  %v12167_v10 = vcombine.high %v1572_v0, %v1576_v50 }
 0x2b1   :  { %7526 = vmatpush1.bf16.msra.mxu1 %v12096_v22  ;;  %7199 = vmatprep.subr.bf16.mxu0 %v12103_v2  ;;  %v12136_v22 = vcombine.low %v1541_v61, %v1545_v62  ;;  %v12143_v2 = vcombine.high %v1548_v5, %v1552_v9  ;;  %v1580_v61 = vld [vmem:[#allocation8 + $0x18c0] sm:$0xff] }
 0x2b2   :  { %7527 = vmatprep.subr.bf16.mxu1 %v12105_v17  ;;  %v12145_v17 = vcombine.high %v1549_v11, %v1553_v12  ;;  %v1584_v62 = vld [vmem:[#allocation8 + $0x18e0] sm:$0xff] }
 0x2b4   :  { %7200 = vmatpush1.bf16.msra.mxu0 %v12102_v13  ;;  %v12142_v13 = vcombine.low %v1548_v5, %v1552_v9  ;;  %v12175_v5 = vcombine.high %v1580_v61, %v1584_v62 }
 0x2b5   :  { %7528 = vmatpush1.bf16.msra.mxu1 %v12104_v34  ;;  %7201 = vmatprep.subr.bf16.mxu0 %v12111_v1  ;;  %v766_v34 = vmax.f32 %v14094_v54, 0.0  ;;  %v12144_v1 = vcombine.low %v1549_v11, %v1553_v12  ;;  %v12159_v54 = vcombine.high %v1564_v41, %v1568_v43  ;;  %v1588_v11 = vld [vmem:[#allocation8 + $0x1900] sm:$0xff] }
 0x2b6   :  { %7529 = vmatprep.subr.bf16.mxu1 %v12113_v38  ;;  %v12151_v38 = vcombine.high %v1556_v23, %v1560_v25  ;;  %v1592_v12 = vld [vmem:[#allocation8 + $0x1920] sm:$0xff] }
 0x2b8   :  { %7202 = vmatpush1.bf16.msra.mxu0 %v12110_v44  ;;  %v12150_v44 = vcombine.low %v1556_v23, %v1560_v25  ;;  %v12183_v23 = vcombine.high %v1588_v11, %v1592_v12 }
 0x2b9   :  { %7530 = vmatpush1.bf16.msra.mxu1 %v12112_v46  ;;  %7203 = vmatprep.subr.bf16.mxu0 %v12119_v19  ;;  %v1565_v46 = vld [vmem:[#allocation8 + $0x1848] sm:$0xff] }
 0x2ba   :  { %7531 = vmatprep.subr.bf16.mxu1 %v12121_v47  ;;  %v1569_v19 = vld [vmem:[#allocation8 + $0x1868] sm:$0xff]  ;;  %v14169_v47 = vpack.c.bf16 %v766_v34, %v766_v34 }
 0x2bb   :  { %v12161_v49 = vcombine.high %v1565_v46, %v1569_v19  ;;  %v1601_v34 = vld [vmem:[#allocation8 + $0x1968] sm:$0xff] }
 0x2bc   :  { %7204 = vmatpush1.bf16.msra.mxu0 %v12118_v52  ;;  %v1573_v52 = vld [vmem:[#allocation8 + $0x1888] sm:$0xff] }
 0x2bd   :  { %7532 = vmatpush1.bf16.msra.mxu1 %v12120_v55  ;;  %7205 = vmatprep.subr.bf16.mxu0 %v12127_v58  ;;  %v1577_v55 = vld [vmem:[#allocation8 + $0x18a8] sm:$0xff]  ;;  %v12158_v58 = vcombine.low %v1564_v41, %v1568_v43  ;;  %v1604_v41 = vld [vmem:[#allocation8 + $0x1980] sm:$0xff] }
 0x2be   :  { %7533 = vmatprep.subr.bf16.mxu1 %v12129_v59  ;;  %v12160_v59 = vcombine.low %v1565_v46, %v1569_v19  ;;  %v12169_v60 = vcombine.high %v1573_v52, %v1577_v55  ;;  %v1608_v43 = vld [vmem:[#allocation8 + $0x19a0] sm:$0xff]  ;;  %v1609_v46 = vld [vmem:[#allocation8 + $0x19a8] sm:$0xff]  ;;  %v12190_v19 = vcombine.low %v1596_v27, %v1600_v28 }
 0x2c0   :  { %7206 = vmatpush1.bf16.msra.mxu0 %v12126_v63  ;;  %v1581_v63 = vld [vmem:[#allocation8 + $0x18c8] sm:$0xff] }
 0x2c1   :  { %7534 = vmatpush1.bf16.msra.mxu1 %v12128_v15  ;;  %7207 = vmatprep.subr.bf16.mxu0 %v12135_v6  ;;  %v1585_v15 = vld [vmem:[#allocation8 + $0x18e8] sm:$0xff]  ;;  %v12166_v6 = vcombine.low %v1572_v0, %v1576_v50  ;;  %v1612_v50 = vld [vmem:[#allocation8 + $0x19c0] sm:$0xff] }
 0x2c2   :  { %7535 = vmatprep.subr.bf16.mxu1 %v12137_v42  ;;  %v12168_v42 = vcombine.low %v1573_v52, %v1577_v55  ;;  %v12177_v9 = vcombine.high %v1581_v63, %v1585_v15  ;;  %v1613_v52 = vld [vmem:[#allocation8 + $0x19c8] sm:$0xff] }
 0x2c3   :  { %v1617_v55 = vld [vmem:[#allocation8 + $0x19e8] sm:$0xff] }
 0x2c4   :  { %7208 = vmatpush1.bf16.msra.mxu0 %v12134_v18  ;;  %v1589_v18 = vld [vmem:[#allocation8 + $0x1908] sm:$0xff] }
 0x2c5   :  { %7536 = vmatpush1.bf16.msra.mxu1 %v12136_v22  ;;  %7209 = vmatprep.subr.bf16.mxu0 %v12143_v2  ;;  %v1593_v22 = vld [vmem:[#allocation8 + $0x1928] sm:$0xff]  ;;  %v12174_v2 = vcombine.low %v1580_v61, %v1584_v62  ;;  %v1620_v61 = vld [vmem:[#allocation8 + $0x1a00] sm:$0xff] }
 0x2c6   :  { %7537 = vmatprep.subr.bf16.mxu1 %v12145_v17  ;;  %v12176_v17 = vcombine.low %v1581_v63, %v1585_v15  ;;  %v12185_v25 = vcombine.high %v1589_v18, %v1593_v22  ;;  %v1624_v62 = vld [vmem:[#allocation8 + $0x1a20] sm:$0xff]  ;;  %v1621_v63 = vld [vmem:[#allocation8 + $0x1a08] sm:$0xff] }
 0x2c7   :  { %v1625_v15 = vld [vmem:[#allocation8 + $0x1a28] sm:$0xff] }
 0x2c8   :  { %7210 = vmatpush1.bf16.msra.mxu0 %v12142_v13  ;;  %v1597_v13 = vld [vmem:[#allocation8 + $0x1948] sm:$0xff] }
 0x2c9   :  { %7538 = vmatpush1.bf16.msra.mxu1 %v12144_v1  ;;  %7220 = vmatprep.subr.bf16.mxu0 %v12151_v38  ;;  %v12182_v1 = vcombine.low %v1588_v11, %v1592_v12  ;;  %v12184_v38 = vcombine.low %v1589_v18, %v1593_v22  ;;  %v12193_v56 = vcombine.high %v1597_v13, %v1601_v34  ;;  %v1628_v11 = vld [vmem:[#allocation8 + $0x1a40] sm:$0xff]  ;;  %v1629_v18 = vld [vmem:[#allocation8 + $0x1a48] sm:$0xff] }
 0x2ca   :  { %7548 = vmatprep.subr.bf16.mxu1 %v12153_v24  ;;  %v12191_v24 = vcombine.high %v1596_v27, %v1600_v28  ;;  %v1632_v12 = vld [vmem:[#allocation8 + $0x1a60] sm:$0xff]  ;;  %v1633_v22 = vld [vmem:[#allocation8 + $0x1a68] sm:$0xff] }
 0x2cb   :  { %7212 = vmatmul.mubr.bf16.vlgmr.msra.gmra.mrb[8].mxu0 %v14169_v47  ;;  %v1636_v27 = vld [vmem:[#allocation8 + $0x1a80] sm:$0xff] }
 0x2cc   :  { %7540 = vmatmul.mubr.bf16.vlgmr.msra.gmra.mrb[24].mxu1 %v14169_v47  ;;  %7221 = vmatpush1.bf16.msra.mxu0 %v12150_v44  ;;  %v1605_v44 = vld [vmem:[#allocation8 + $0x1988] sm:$0xff]  ;;  %v1640_v28 = vld [vmem:[#allocation8 + $0x1aa0] sm:$0xff] }
 0x2cd   :  { %7252 = vmatprep.mubr.bf16.mxu0 %v14171_v51  ;;  %7549 = vmatpush1.bf16.msra.mxu1 %v12152_v48  ;;  %v12192_v48 = vcombine.low %v1597_v13, %v1601_v34  ;;  %v12201_v0 = vcombine.high %v1605_v44, %v1609_v46  ;;  %v1637_v13 = vld [vmem:[#allocation8 + $0x1a88] sm:$0xff] }
 0x2ce   :  { %7580 = vmatprep.mubr.bf16.mxu1 %v14171_v51  ;;  %7222 = vmatprep.subr.bf16.mxu0 %v12159_v54  ;;  %v12199_v54 = vcombine.high %v1604_v41, %v1608_v43  ;;  %v1641_v34 = vld [vmem:[#allocation8 + $0x1aa8] sm:$0xff] }
 0x2cf   :  { %7550 = vmatprep.subr.bf16.mxu1 %v12161_v49  ;;  %v1616_v49 = vld [vmem:[#allocation8 + $0x19e0] sm:$0xff] }
 0x2d0   :  { %7223 = vmatpush1.bf16.msra.mxu0 %v12158_v58  ;;  %v12198_v58 = vcombine.low %v1604_v41, %v1608_v43  ;;  %v1644_v41 = vld [vmem:[#allocation8 + $0x1ac0] sm:$0xff] }
 0x2d1   :  { %7551 = vmatpush1.bf16.msra.mxu1 %v12160_v59  ;;  %7224 = vmatprep.subr.bf16.mxu0 %v12167_v10  ;;  %v12200_v59 = vcombine.low %v1605_v44, %v1609_v46  ;;  %v12207_v10 = vcombine.high %v1612_v50, %v1616_v49  ;;  %v1648_v43 = vld [vmem:[#allocation8 + $0x1ae0] sm:$0xff]  ;;  %v1645_v44 = vld [vmem:[#allocation8 + $0x1ac8] sm:$0xff] }
 0x2d2   :  { %7552 = vmatprep.subr.bf16.mxu1 %v12169_v60  ;;  %v12209_v60 = vcombine.high %v1613_v52, %v1617_v55  ;;  %v1649_v46 = vld [vmem:[#allocation8 + $0x1ae8] sm:$0xff] }
 0x2d4   :  { %7225 = vmatpush1.bf16.msra.mxu0 %v12166_v6  ;;  %v12206_v6 = vcombine.low %v1612_v50, %v1616_v49  ;;  %v1652_v50 = vld [vmem:[#allocation8 + $0x1b00] sm:$0xff] }
 0x2d5   :  { %7553 = vmatpush1.bf16.msra.mxu1 %v12168_v42  ;;  %7226 = vmatprep.subr.bf16.mxu0 %v12175_v5  ;;  %v12208_v42 = vcombine.low %v1613_v52, %v1617_v55  ;;  %v12215_v5 = vcombine.high %v1620_v61, %v1624_v62  ;;  %v1656_v49 = vld [vmem:[#allocation8 + $0x1b20] sm:$0xff]  ;;  %v1653_v52 = vld [vmem:[#allocation8 + $0x1b08] sm:$0xff] }
 0x2d6   :  { %7554 = vmatprep.subr.bf16.mxu1 %v12177_v9  ;;  %v12217_v9 = vcombine.high %v1621_v63, %v1625_v15  ;;  %v1657_v55 = vld [vmem:[#allocation8 + $0x1b28] sm:$0xff] }
 0x2d8   :  { %7227 = vmatpush1.bf16.msra.mxu0 %v12174_v2  ;;  %v12214_v2 = vcombine.low %v1620_v61, %v1624_v62  ;;  %v1660_v61 = vld [vmem:[#allocation8 + $0x1b40] sm:$0xff] }
 0x2d9   :  { %7555 = vmatpush1.bf16.msra.mxu1 %v12176_v17  ;;  %7228 = vmatprep.subr.bf16.mxu0 %v12183_v23  ;;  %v12216_v17 = vcombine.low %v1621_v63, %v1625_v15  ;;  %v12223_v23 = vcombine.high %v1628_v11, %v1632_v12  ;;  %v1664_v62 = vld [vmem:[#allocation8 + $0x1b60] sm:$0xff]  ;;  %v1661_v63 = vld [vmem:[#allocation8 + $0x1b48] sm:$0xff] }
 0x2da   :  { %7556 = vmatprep.subr.bf16.mxu1 %v12185_v25  ;;  %v12225_v25 = vcombine.high %v1629_v18, %v1633_v22  ;;  %v1665_v15 = vld [vmem:[#allocation8 + $0x1b68] sm:$0xff] }
 0x2dc   :  { %7229 = vmatpush1.bf16.msra.mxu0 %v12182_v1  ;;  %v12222_v1 = vcombine.low %v1628_v11, %v1632_v12  ;;  %v1668_v11 = vld [vmem:[#allocation8 + $0x1b80] sm:$0xff] }
 0x2dd   :  { %7557 = vmatpush1.bf16.msra.mxu1 %v12184_v38  ;;  %7230 = vmatprep.subr.bf16.mxu0 %v12191_v24  ;;  %v12224_v38 = vcombine.low %v1629_v18, %v1633_v22  ;;  %v12231_v24 = vcombine.high %v1636_v27, %v1640_v28  ;;  %v1672_v12 = vld [vmem:[#allocation8 + $0x1ba0] sm:$0xff]  ;;  %v1669_v18 = vld [vmem:[#allocation8 + $0x1b88] sm:$0xff] }
 0x2de   :  { %7558 = vmatprep.subr.bf16.mxu1 %v12193_v56  ;;  %v12233_v56 = vcombine.high %v1637_v13, %v1641_v34  ;;  %v1673_v22 = vld [vmem:[#allocation8 + $0x1ba8] sm:$0xff] }
 0x2e0   :  { %7231 = vmatpush1.bf16.msra.mxu0 %v12190_v19  ;;  %v12230_v19 = vcombine.low %v1636_v27, %v1640_v28  ;;  %v1676_v27 = vld [vmem:[#allocation8 + $0x1bc0] sm:$0xff] }
 0x2e1   :  { %7559 = vmatpush1.bf16.msra.mxu1 %v12192_v48  ;;  %7232 = vmatprep.subr.bf16.mxu0 %v12199_v54  ;;  %v12232_v48 = vcombine.low %v1637_v13, %v1641_v34  ;;  %v12239_v54 = vcombine.high %v1644_v41, %v1648_v43  ;;  %v1680_v28 = vld [vmem:[#allocation8 + $0x1be0] sm:$0xff]  ;;  %v1677_v13 = vld [vmem:[#allocation8 + $0x1bc8] sm:$0xff] }
 0x2e2   :  { %7560 = vmatprep.subr.bf16.mxu1 %v12201_v0  ;;  %v12241_v0 = vcombine.high %v1645_v44, %v1649_v46  ;;  %v1681_v34 = vld [vmem:[#allocation8 + $0x1be8] sm:$0xff] }
 0x2e4   :  { %7233 = vmatpush1.bf16.msra.mxu0 %v12198_v58  ;;  %v12238_v58 = vcombine.low %v1644_v41, %v1648_v43  ;;  %v1684_v41 = vld [vmem:[#allocation8 + $0x1c00] sm:$0xff] }
 0x2e5   :  { %7561 = vmatpush1.bf16.msra.mxu1 %v12200_v59  ;;  %7234 = vmatprep.subr.bf16.mxu0 %v12207_v10  ;;  %v12240_v59 = vcombine.low %v1645_v44, %v1649_v46  ;;  %v12247_v10 = vcombine.high %v1652_v50, %v1656_v49  ;;  %v1688_v43 = vld [vmem:[#allocation8 + $0x1c20] sm:$0xff]  ;;  %v1685_v44 = vld [vmem:[#allocation8 + $0x1c08] sm:$0xff] }
 0x2e6   :  { %7562 = vmatprep.subr.bf16.mxu1 %v12209_v60  ;;  %v12249_v60 = vcombine.high %v1653_v52, %v1657_v55  ;;  %v1689_v46 = vld [vmem:[#allocation8 + $0x1c28] sm:$0xff] }
 0x2e8   :  { %7235 = vmatpush1.bf16.msra.mxu0 %v12206_v6  ;;  %v12246_v6 = vcombine.low %v1652_v50, %v1656_v49  ;;  %v12281_v50 = vcombine.high %v1685_v44, %v1689_v46  ;;  %v771_v49 = vmax.f32 %v14110_v31, 0.0 }
 0x2e9   :  { %7563 = vmatpush1.bf16.msra.mxu1 %v12208_v42  ;;  %7236 = vmatprep.subr.bf16.mxu0 %v12215_v5  ;;  %v12248_v42 = vcombine.low %v1653_v52, %v1657_v55  ;;  %v12255_v5 = vcombine.high %v1660_v61, %v1664_v62  ;;  %v1692_v52 = vld [vmem:[#allocation8 + $0x1c40] sm:$0xff] }
 0x2ea   :  { %7564 = vmatprep.subr.bf16.mxu1 %v12217_v9  ;;  %v12257_v9 = vcombine.high %v1661_v63, %v1665_v15  ;;  %v1696_v55 = vld [vmem:[#allocation8 + $0x1c60] sm:$0xff] }
 0x2ec   :  { %7237 = vmatpush1.bf16.msra.mxu0 %v12214_v2  ;;  %v12254_v2 = vcombine.low %v1660_v61, %v1664_v62  ;;  %v12280_v61 = vcombine.low %v1685_v44, %v1689_v46  ;;  %v1700_v62 = vld [vmem:[#allocation8 + $0x1c80] sm:$0xff] }
 0x2ed   :  { %7565 = vmatpush1.bf16.msra.mxu1 %v12216_v17  ;;  %7238 = vmatprep.subr.bf16.mxu0 %v12223_v23  ;;  %v12256_v17 = vcombine.low %v1661_v63, %v1665_v15  ;;  %v12263_v23 = vcombine.high %v1668_v11, %v1672_v12  ;;  %v1704_v63 = vld [vmem:[#allocation8 + $0x1ca0] sm:$0xff]  ;;  %v14181_v15 = vpack.c.bf16 %v771_v49, %v771_v49 }
 0x2ee   :  { %7566 = vmatprep.subr.bf16.mxu1 %v12225_v25  ;;  %v12265_v25 = vcombine.high %v1669_v18, %v1673_v22  ;;  %v1724_v44 = vld [vmem:[#allocation8 + $0x1d40] sm:$0xff] }
 0x2ef   :  { %v1728_v46 = vld [vmem:[#allocation8 + $0x1d60] sm:$0xff] }
 0x2f0   :  { %7239 = vmatpush1.bf16.msra.mxu0 %v12222_v1  ;;  %v12262_v1 = vcombine.low %v1668_v11, %v1672_v12  ;;  %v12295_v11 = vcombine.high %v1700_v62, %v1704_v63 }
 0x2f1   :  { %7567 = vmatpush1.bf16.msra.mxu1 %v12224_v38  ;;  %7240 = vmatprep.subr.bf16.mxu0 %v12231_v24  ;;  %v12264_v38 = vcombine.low %v1669_v18, %v1673_v22  ;;  %v12271_v24 = vcombine.high %v1676_v27, %v1680_v28  ;;  %v1708_v18 = vld [vmem:[#allocation8 + $0x1cc0] sm:$0xff] }
 0x2f2   :  { %7568 = vmatprep.subr.bf16.mxu1 %v12233_v56  ;;  %v12273_v56 = vcombine.high %v1677_v13, %v1681_v34  ;;  %v1712_v22 = vld [vmem:[#allocation8 + $0x1ce0] sm:$0xff] }
 0x2f4   :  { %7241 = vmatpush1.bf16.msra.mxu0 %v12230_v19  ;;  %v12270_v19 = vcombine.low %v1676_v27, %v1680_v28  ;;  %v12303_v27 = vcombine.high %v1708_v18, %v1712_v22 }
 0x2f5   :  { %7569 = vmatpush1.bf16.msra.mxu1 %v12232_v48  ;;  %7242 = vmatprep.subr.bf16.mxu0 %v12239_v54  ;;  %v768_v48 = vmax.f32 %v14077_v36, 0.0  ;;  %v12272_v54 = vcombine.low %v1677_v13, %v1681_v34  ;;  %v12287_v36 = vcombine.high %v1692_v52, %v1696_v55  ;;  %v1716_v13 = vld [vmem:[#allocation8 + $0x1d00] sm:$0xff] }
 0x2f6   :  { %7570 = vmatprep.subr.bf16.mxu1 %v12241_v0  ;;  %v12279_v0 = vcombine.high %v1684_v41, %v1688_v43  ;;  %v1720_v34 = vld [vmem:[#allocation8 + $0x1d20] sm:$0xff] }
 0x2f8   :  { %7243 = vmatpush1.bf16.msra.mxu0 %v12238_v58  ;;  %v12278_v58 = vcombine.low %v1684_v41, %v1688_v43  ;;  %v12311_v41 = vcombine.high %v1716_v13, %v1720_v34 }
 0x2f9   :  { %7571 = vmatpush1.bf16.msra.mxu1 %v12240_v59  ;;  %7244 = vmatprep.subr.bf16.mxu0 %v12247_v10  ;;  %v1693_v59 = vld [vmem:[#allocation8 + $0x1c48] sm:$0xff] }
 0x2fa   :  { %7572 = vmatprep.subr.bf16.mxu1 %v12249_v60  ;;  %v1697_v10 = vld [vmem:[#allocation8 + $0x1c68] sm:$0xff]  ;;  %v14179_v60 = vpack.c.bf16 %v768_v48, %v768_v48 }
 0x2fb   :  { %v12289_v31 = vcombine.high %v1693_v59, %v1697_v10  ;;  %v1729_v48 = vld [vmem:[#allocation8 + $0x1d68] sm:$0xff] }
 0x2fc   :  { %7245 = vmatpush1.bf16.msra.mxu0 %v12246_v6  ;;  %v1701_v6 = vld [vmem:[#allocation8 + $0x1c88] sm:$0xff] }
 0x2fd   :  { %7573 = vmatpush1.bf16.msra.mxu1 %v12248_v42  ;;  %7246 = vmatprep.subr.bf16.mxu0 %v12255_v5  ;;  %v1705_v42 = vld [vmem:[#allocation8 + $0x1ca8] sm:$0xff]  ;;  %v12286_v5 = vcombine.low %v1692_v52, %v1696_v55  ;;  %v1732_v52 = vld [vmem:[#allocation8 + $0x1d80] sm:$0xff] }
 0x2fe   :  { %7574 = vmatprep.subr.bf16.mxu1 %v12257_v9  ;;  %v12288_v9 = vcombine.low %v1693_v59, %v1697_v10  ;;  %v12297_v12 = vcombine.high %v1701_v6, %v1705_v42  ;;  %v1736_v55 = vld [vmem:[#allocation8 + $0x1da0] sm:$0xff]  ;;  %v1737_v59 = vld [vmem:[#allocation8 + $0x1da8] sm:$0xff]  ;;  %v12318_v10 = vcombine.low %v1724_v44, %v1728_v46 }
 0x300   :  { %7247 = vmatpush1.bf16.msra.mxu0 %v12254_v2  ;;  %v1709_v2 = vld [vmem:[#allocation8 + $0x1cc8] sm:$0xff] }
 0x301   :  { %7575 = vmatpush1.bf16.msra.mxu1 %v12256_v17  ;;  %7248 = vmatprep.subr.bf16.mxu0 %v12263_v23  ;;  %v1713_v17 = vld [vmem:[#allocation8 + $0x1ce8] sm:$0xff]  ;;  %v12294_v23 = vcombine.low %v1700_v62, %v1704_v63  ;;  %v1740_v63 = vld [vmem:[#allocation8 + $0x1dc0] sm:$0xff] }
 0x302   :  { %7576 = vmatprep.subr.bf16.mxu1 %v12265_v25  ;;  %v12296_v25 = vcombine.low %v1701_v6, %v1705_v42  ;;  %v12305_v28 = vcombine.high %v1709_v2, %v1713_v17  ;;  %v1741_v6 = vld [vmem:[#allocation8 + $0x1dc8] sm:$0xff] }
 0x303   :  { %v1745_v42 = vld [vmem:[#allocation8 + $0x1de8] sm:$0xff] }
 0x304   :  { %7249 = vmatpush1.bf16.msra.mxu0 %v12262_v1  ;;  %v1717_v1 = vld [vmem:[#allocation8 + $0x1d08] sm:$0xff] }
 0x305   :  { %7577 = vmatpush1.bf16.msra.mxu1 %v12264_v38  ;;  %7250 = vmatprep.subr.bf16.mxu0 %v12271_v24  ;;  %v1721_v38 = vld [vmem:[#allocation8 + $0x1d28] sm:$0xff]  ;;  %v12302_v24 = vcombine.low %v1708_v18, %v1712_v22  ;;  %v1748_v18 = vld [vmem:[#allocation8 + $0x1e00] sm:$0xff] }
 0x306   :  { %7578 = vmatprep.subr.bf16.mxu1 %v12273_v56  ;;  %v12304_v56 = vcombine.low %v1709_v2, %v1713_v17  ;;  %v12313_v43 = vcombine.high %v1717_v1, %v1721_v38  ;;  %v1752_v22 = vld [vmem:[#allocation8 + $0x1e20] sm:$0xff]  ;;  %v1749_v2 = vld [vmem:[#allocation8 + $0x1e08] sm:$0xff] }
 0x307   :  { %v1753_v17 = vld [vmem:[#allocation8 + $0x1e28] sm:$0xff] }
 0x308   :  { %7251 = vmatpush1.bf16.msra.mxu0 %v12270_v19  ;;  %v1725_v19 = vld [vmem:[#allocation8 + $0x1d48] sm:$0xff] }
 0x309   :  { %7579 = vmatpush1.bf16.msra.mxu1 %v12272_v54  ;;  %7261 = vmatprep.subr.bf16.mxu0 %v12279_v0  ;;  %v12310_v54 = vcombine.low %v1716_v13, %v1720_v34  ;;  %v12312_v0 = vcombine.low %v1717_v1, %v1721_v38  ;;  %v12321_v49 = vcombine.high %v1725_v19, %v1729_v48  ;;  %v1756_v13 = vld [vmem:[#allocation8 + $0x1e40] sm:$0xff]  ;;  %v1757_v1 = vld [vmem:[#allocation8 + $0x1e48] sm:$0xff] }
 0x30a   :  { %7589 = vmatprep.subr.bf16.mxu1 %v12281_v50  ;;  %v12319_v50 = vcombine.high %v1724_v44, %v1728_v46  ;;  %v1760_v34 = vld [vmem:[#allocation8 + $0x1e60] sm:$0xff]  ;;  %v1761_v38 = vld [vmem:[#allocation8 + $0x1e68] sm:$0xff] }
 0x30b   :  { %7253 = vmatmul.mubr.bf16.vlgmr.msra.gmra.mrb[8].mxu0 %v14179_v60  ;;  %v1764_v44 = vld [vmem:[#allocation8 + $0x1e80] sm:$0xff] }
 0x30c   :  { %7581 = vmatmul.mubr.bf16.vlgmr.msra.gmra.mrb[24].mxu1 %v14179_v60  ;;  %7262 = vmatpush1.bf16.msra.mxu0 %v12278_v58  ;;  %v1733_v58 = vld [vmem:[#allocation8 + $0x1d88] sm:$0xff]  ;;  %v1768_v46 = vld [vmem:[#allocation8 + $0x1ea0] sm:$0xff] }
 0x30d   :  { %7293 = vmatprep.mubr.bf16.mxu0 %v14181_v15  ;;  %7590 = vmatpush1.bf16.msra.mxu1 %v12280_v61  ;;  %v12320_v61 = vcombine.low %v1725_v19, %v1729_v48  ;;  %v12329_v62 = vcombine.high %v1733_v58, %v1737_v59  ;;  %v1765_v19 = vld [vmem:[#allocation8 + $0x1e88] sm:$0xff] }
 0x30e   :  { %7621 = vmatprep.mubr.bf16.mxu1 %v14181_v15  ;;  %7263 = vmatprep.subr.bf16.mxu0 %v12287_v36  ;;  %v12327_v36 = vcombine.high %v1732_v52, %v1736_v55  ;;  %v1769_v48 = vld [vmem:[#allocation8 + $0x1ea8] sm:$0xff] }
 0x30f   :  { %7591 = vmatprep.subr.bf16.mxu1 %v12289_v31  ;;  %v1744_v31 = vld [vmem:[#allocation8 + $0x1de0] sm:$0xff] }
 0x310   :  { %7264 = vmatpush1.bf16.msra.mxu0 %v12286_v5  ;;  %v12326_v5 = vcombine.low %v1732_v52, %v1736_v55  ;;  %v1772_v52 = vld [vmem:[#allocation8 + $0x1ec0] sm:$0xff] }
 0x311   :  { %7592 = vmatpush1.bf16.msra.mxu1 %v12288_v9  ;;  %7265 = vmatprep.subr.bf16.mxu0 %v12295_v11  ;;  %v12328_v9 = vcombine.low %v1733_v58, %v1737_v59  ;;  %v12335_v11 = vcombine.high %v1740_v63, %v1744_v31  ;;  %v1776_v55 = vld [vmem:[#allocation8 + $0x1ee0] sm:$0xff]  ;;  %v1773_v58 = vld [vmem:[#allocation8 + $0x1ec8] sm:$0xff] }
 0x312   :  { %7593 = vmatprep.subr.bf16.mxu1 %v12297_v12  ;;  %v12337_v12 = vcombine.high %v1741_v6, %v1745_v42  ;;  %v1777_v59 = vld [vmem:[#allocation8 + $0x1ee8] sm:$0xff] }
 0x314   :  { %7266 = vmatpush1.bf16.msra.mxu0 %v12294_v23  ;;  %v12334_v23 = vcombine.low %v1740_v63, %v1744_v31  ;;  %v1780_v63 = vld [vmem:[#allocation8 + $0x1f00] sm:$0xff] }
 0x315   :  { %7594 = vmatpush1.bf16.msra.mxu1 %v12296_v25  ;;  %7267 = vmatprep.subr.bf16.mxu0 %v12303_v27  ;;  %v12336_v25 = vcombine.low %v1741_v6, %v1745_v42  ;;  %v12343_v27 = vcombine.high %v1748_v18, %v1752_v22  ;;  %v1784_v31 = vld [vmem:[#allocation8 + $0x1f20] sm:$0xff]  ;;  %v1781_v6 = vld [vmem:[#allocation8 + $0x1f08] sm:$0xff] }
 0x316   :  { %7595 = vmatprep.subr.bf16.mxu1 %v12305_v28  ;;  %v12345_v28 = vcombine.high %v1749_v2, %v1753_v17  ;;  %v1785_v42 = vld [vmem:[#allocation8 + $0x1f28] sm:$0xff] }
 0x318   :  { %7268 = vmatpush1.bf16.msra.mxu0 %v12302_v24  ;;  %v12342_v24 = vcombine.low %v1748_v18, %v1752_v22  ;;  %v1788_v18 = vld [vmem:[#allocation8 + $0x1f40] sm:$0xff] }
 0x319   :  { %7596 = vmatpush1.bf16.msra.mxu1 %v12304_v56  ;;  %7269 = vmatprep.subr.bf16.mxu0 %v12311_v41  ;;  %v12344_v56 = vcombine.low %v1749_v2, %v1753_v17  ;;  %v12351_v41 = vcombine.high %v1756_v13, %v1760_v34  ;;  %v1792_v22 = vld [vmem:[#allocation8 + $0x1f60] sm:$0xff]  ;;  %v1789_v2 = vld [vmem:[#allocation8 + $0x1f48] sm:$0xff] }
 0x31a   :  { %7597 = vmatprep.subr.bf16.mxu1 %v12313_v43  ;;  %v12353_v43 = vcombine.high %v1757_v1, %v1761_v38  ;;  %v1793_v17 = vld [vmem:[#allocation8 + $0x1f68] sm:$0xff] }
 0x31c   :  { %7270 = vmatpush1.bf16.msra.mxu0 %v12310_v54  ;;  %v12350_v54 = vcombine.low %v1756_v13, %v1760_v34  ;;  %v1796_v13 = vld [vmem:[#allocation8 + $0x1f80] sm:$0xff] }
 0x31d   :  { %7598 = vmatpush1.bf16.msra.mxu1 %v12312_v0  ;;  %7271 = vmatprep.subr.bf16.mxu0 %v12319_v50  ;;  %v12352_v0 = vcombine.low %v1757_v1, %v1761_v38  ;;  %v12359_v50 = vcombine.high %v1764_v44, %v1768_v46  ;;  %v1800_v34 = vld [vmem:[#allocation8 + $0x1fa0] sm:$0xff]  ;;  %v1797_v1 = vld [vmem:[#allocation8 + $0x1f88] sm:$0xff] }
 0x31e   :  { %7599 = vmatprep.subr.bf16.mxu1 %v12321_v49  ;;  %v12361_v49 = vcombine.high %v1765_v19, %v1769_v48  ;;  %v1801_v38 = vld [vmem:[#allocation8 + $0x1fa8] sm:$0xff] }
 0x320   :  { %7272 = vmatpush1.bf16.msra.mxu0 %v12318_v10  ;;  %v12358_v10 = vcombine.low %v1764_v44, %v1768_v46  ;;  %v1804_v44 = vld [vmem:[#allocation8 + $0x1fc0] sm:$0xff] }
 0x321   :  { %7600 = vmatpush1.bf16.msra.mxu1 %v12320_v61  ;;  %7273 = vmatprep.subr.bf16.mxu0 %v12327_v36  ;;  %v12360_v61 = vcombine.low %v1765_v19, %v1769_v48  ;;  %v12367_v36 = vcombine.high %v1772_v52, %v1776_v55  ;;  %v1808_v46 = vld [vmem:[#allocation8 + $0x1fe0] sm:$0xff]  ;;  %v1805_v19 = vld [vmem:[#allocation8 + $0x1fc8] sm:$0xff] }
 0x322   :  { %7601 = vmatprep.subr.bf16.mxu1 %v12329_v62  ;;  %v12369_v62 = vcombine.high %v1773_v58, %v1777_v59  ;;  %v1809_v48 = vld [vmem:[#allocation8 + $0x1fe8] sm:$0xff] }
 0x324   :  { %7274 = vmatpush1.bf16.msra.mxu0 %v12326_v5  ;;  %v12366_v5 = vcombine.low %v1772_v52, %v1776_v55  ;;  %v790_v52 = vld [vmem:[#allocation8 + $0x10] sm:$0xff] }
 0x325   :  { %7602 = vmatpush1.bf16.msra.mxu1 %v12328_v9  ;;  %7275 = vmatprep.subr.bf16.mxu0 %v12335_v11  ;;  %v12368_v9 = vcombine.low %v1773_v58, %v1777_v59  ;;  %v12375_v11 = vcombine.high %v1780_v63, %v1784_v31  ;;  %v794_v55 = vld [vmem:[#allocation8 + $0x30] sm:$0xff]  ;;  %v791_v58 = vld [vmem:[#allocation8 + $0x18] sm:$0xff] }
 0x326   :  { %7603 = vmatprep.subr.bf16.mxu1 %v12337_v12  ;;  %v12377_v12 = vcombine.high %v1781_v6, %v1785_v42  ;;  %v795_v59 = vld [vmem:[#allocation8 + $0x38] sm:$0xff] }
 0x328   :  { %7276 = vmatpush1.bf16.msra.mxu0 %v12334_v23  ;;  %v12374_v23 = vcombine.low %v1780_v63, %v1784_v31  ;;  %v11389_v63 = vcombine.high %v791_v58, %v795_v59  ;;  %v798_v31 = vld [vmem:[#allocation8 + $0x50] sm:$0xff] }
 0x329   :  { %7604 = vmatpush1.bf16.msra.mxu1 %v12336_v25  ;;  %7277 = vmatprep.subr.bf16.mxu0 %v12343_v27  ;;  %v12376_v25 = vcombine.low %v1781_v6, %v1785_v42  ;;  %v12383_v27 = vcombine.high %v1788_v18, %v1792_v22  ;;  %v802_v6 = vld [vmem:[#allocation8 + $0x70] sm:$0xff]  ;;  %v11386_v42 = vcombine.low %v790_v52, %v794_v55 }
 0x32a   :  { %7605 = vmatprep.subr.bf16.mxu1 %v12345_v28  ;;  %v12385_v28 = vcombine.high %v1789_v2, %v1793_v17 }
 0x32c   :  { %7278 = vmatpush1.bf16.msra.mxu0 %v12342_v24  ;;  %v12382_v24 = vcombine.low %v1788_v18, %v1792_v22  ;;  %v11395_v18 = vcombine.high %v798_v31, %v802_v6  ;;  %v810_v22 = vld [vmem:[#allocation8 + $0xb0] sm:$0xff] }
 0x32d   :  { %7606 = vmatpush1.bf16.msra.mxu1 %v12344_v56  ;;  %7279 = vmatprep.subr.bf16.mxu0 %v12351_v41  ;;  %v12384_v56 = vcombine.low %v1789_v2, %v1793_v17  ;;  %v12391_v41 = vcombine.high %v1796_v13, %v1800_v34  ;;  %v807_v17 = vld [vmem:[#allocation8 + $0x98] sm:$0xff] }
 0x32e   :  { %7607 = vmatprep.subr.bf16.mxu1 %v12353_v43  ;;  %v12393_v43 = vcombine.high %v1797_v1, %v1801_v38 }
 0x330   :  { %7280 = vmatpush1.bf16.msra.mxu0 %v12350_v54  ;;  %v12390_v54 = vcombine.low %v1796_v13, %v1800_v34  ;;  %v814_v34 = vld [vmem:[#allocation8 + $0xd0] sm:$0xff] }
 0x331   :  { %7608 = vmatpush1.bf16.msra.mxu1 %v12352_v0  ;;  %7281 = vmatprep.subr.bf16.mxu0 %v12359_v50  ;;  %v12392_v0 = vcombine.low %v1797_v1, %v1801_v38  ;;  %v12399_v50 = vcombine.high %v1804_v44, %v1808_v46  ;;  %v818_v1 = vld [vmem:[#allocation8 + $0xf0] sm:$0xff]  ;;  %v815_v38 = vld [vmem:[#allocation8 + $0xd8] sm:$0xff] }
 0x332   :  { %7609 = vmatprep.subr.bf16.mxu1 %v12361_v49  ;;  %v12401_v49 = vcombine.high %v1805_v19, %v1809_v48 }
 0x334   :  { %7282 = vmatpush1.bf16.msra.mxu0 %v12358_v10  ;;  %v12398_v10 = vcombine.low %v1804_v44, %v1808_v46  ;;  %v822_v46 = vld [vmem:[#allocation8 + $0x110] sm:$0xff] }
 0x335   :  { %7610 = vmatpush1.bf16.msra.mxu1 %v12360_v61  ;;  %7283 = vmatprep.subr.bf16.mxu0 %v12367_v36  ;;  %v770_v61 = vmax.f32 %v14108_v30, 0.0  ;;  %v12400_v36 = vcombine.low %v1805_v19, %v1809_v48  ;;  %v806_v30 = vld [vmem:[#allocation8 + $0x90] sm:$0xff]  ;;  %v823_v48 = vld [vmem:[#allocation8 + $0x118] sm:$0xff] }
 0x336   :  { %7611 = vmatprep.subr.bf16.mxu1 %v12369_v62  ;;  %v11387_v62 = vcombine.high %v790_v52, %v794_v55  ;;  %v826_v19 = vld [vmem:[#allocation8 + $0x130] sm:$0xff] }
 0x337   :  { %v830_v52 = vld [vmem:[#allocation8 + $0x150] sm:$0xff] }
 0x338   :  { %7284 = vmatpush1.bf16.msra.mxu0 %v12366_v5  ;;  %v799_v5 = vld [vmem:[#allocation8 + $0x58] sm:$0xff]  ;;  %v834_v55 = vld [vmem:[#allocation8 + $0x170] sm:$0xff] }
 0x339   :  { %7612 = vmatpush1.bf16.msra.mxu1 %v12368_v9  ;;  %7285 = vmatprep.subr.bf16.mxu0 %v12375_v11  ;;  %v803_v9 = vld [vmem:[#allocation8 + $0x78] sm:$0xff]  ;;  %v14188_v11 = vpack.c.bf16 %v770_v61, %v770_v61 }
 0x33a   :  { %7613 = vmatprep.subr.bf16.mxu1 %v12377_v12  ;;  %v11388_v12 = vcombine.low %v791_v58, %v795_v59  ;;  %v11397_v2 = vcombine.high %v799_v5, %v803_v9  ;;  %v831_v58 = vld [vmem:[#allocation8 + $0x158] sm:$0xff] }
 0x33b   :  { %v835_v59 = vld [vmem:[#allocation8 + $0x178] sm:$0xff] }
 0x33c   :  { %7286 = vmatpush1.bf16.msra.mxu0 %v12374_v23  ;;  %v811_v23 = vld [vmem:[#allocation8 + $0xb8] sm:$0xff] }
 0x33d   :  { %7614 = vmatpush1.bf16.msra.mxu1 %v12376_v25  ;;  %7287 = vmatprep.subr.bf16.mxu0 %v12383_v27  ;;  %v11394_v25 = vcombine.low %v798_v31, %v802_v6  ;;  %v11396_v27 = vcombine.low %v799_v5, %v803_v9  ;;  %v11405_v13 = vcombine.high %v807_v17, %v811_v23  ;;  %v842_v31 = vld [vmem:[#allocation8 + $0x1b0] sm:$0xff]  ;;  %v839_v6 = vld [vmem:[#allocation8 + $0x198] sm:$0xff] }
 0x33e   :  { %7615 = vmatprep.subr.bf16.mxu1 %v12385_v28  ;;  %v11403_v28 = vcombine.high %v806_v30, %v810_v22  ;;  %v11426_v5 = vcombine.low %v830_v52, %v834_v55  ;;  %v11428_v9 = vcombine.low %v831_v58, %v835_v59 }
 0x340   :  { %7288 = vmatpush1.bf16.msra.mxu0 %v12382_v24  ;;  %v819_v24 = vld [vmem:[#allocation8 + $0xf8] sm:$0xff] }
 0x341   :  { %7616 = vmatpush1.bf16.msra.mxu1 %v12384_v56  ;;  %7289 = vmatprep.subr.bf16.mxu0 %v12391_v41  ;;  %v11402_v56 = vcombine.low %v806_v30, %v810_v22  ;;  %v11404_v41 = vcombine.low %v807_v17, %v811_v23  ;;  %v11413_v44 = vcombine.high %v815_v38, %v819_v24  ;;  %v846_v30 = vld [vmem:[#allocation8 + $0x1d0] sm:$0xff]  ;;  %v851_v17 = vld [vmem:[#allocation8 + $0x1f8] sm:$0xff] }
 0x342   :  { %7617 = vmatprep.subr.bf16.mxu1 %v12393_v43  ;;  %v11411_v43 = vcombine.high %v814_v34, %v818_v1  ;;  %v850_v22 = vld [vmem:[#allocation8 + $0x1f0] sm:$0xff] }
 0x344   :  { %7290 = vmatpush1.bf16.msra.mxu0 %v12390_v54  ;;  %v827_v54 = vld [vmem:[#allocation8 + $0x138] sm:$0xff] }
 0x345   :  { %7618 = vmatpush1.bf16.msra.mxu1 %v12392_v0  ;;  %7291 = vmatprep.subr.bf16.mxu0 %v12399_v50  ;;  %v11412_v0 = vcombine.low %v815_v38, %v819_v24  ;;  %v11419_v50 = vcombine.high %v822_v46, %v826_v19  ;;  %v11420_v61 = vcombine.low %v823_v48, %v827_v54  ;;  %v859_v38 = vld [vmem:[#allocation8 + $0x238] sm:$0xff] }
 0x346   :  { %7619 = vmatprep.subr.bf16.mxu1 %v12401_v49  ;;  %v11421_v49 = vcombine.high %v823_v48, %v827_v54  ;;  %v11442_v24 = vcombine.low %v846_v30, %v850_v22  ;;  %v867_v48 = vld [vmem:[#allocation8 + $0x278] sm:$0xff] }
 0x348   :  { %7292 = vmatpush1.bf16.msra.mxu0 %v12398_v10  ;;  %v11418_v10 = vcombine.low %v822_v46, %v826_v19  ;;  %v866_v46 = vld [vmem:[#allocation8 + $0x270] sm:$0xff]  ;;  %v863_v19 = vld [vmem:[#allocation8 + $0x258] sm:$0xff] }
 0x349   :  { %7620 = vmatpush1.bf16.msra.mxu1 %v12400_v36  ;;  %7630 = vmatprep.subr.bf16.mxu0 %v11387_v62  ;;  %v11427_v36 = vcombine.high %v830_v52, %v834_v55  ;;  %v11429_v62 = vcombine.high %v831_v58, %v835_v59  ;;  %v874_v52 = vld [vmem:[#allocation8 + $0x2b0] sm:$0xff]  ;;  %v871_v55 = vld [vmem:[#allocation8 + $0x298] sm:$0xff] }
 0x34a   :  { %7958 = vmatprep.subr.bf16.mxu1 %v11389_v63  ;;  %v838_v63 = vld [vmem:[#allocation8 + $0x190] sm:$0xff]  ;;  %v875_v58 = vld [vmem:[#allocation8 + $0x2b8] sm:$0xff] }
 0x34b   :  { %7294 = vmatmul.mubr.bf16.vlgmr.msra.gmra.mrb[8].mxu0 %v14188_v11  ;;  %v11434_v23 = vcombine.low %v838_v63, %v842_v31 }
 0x34c   :  { %7622 = vmatmul.mubr.bf16.vlgmr.msra.gmra.mrb[24].mxu1 %v14188_v11  ;;  %7631 = vmatpush1.bf16.msra.mxu0 %v11386_v42  ;;  %v843_v42 = vld [vmem:[#allocation8 + $0x1b8] sm:$0xff] }
 0x34d   :  { %7662 = vmatprep.mubr.bf16.mxu0 %v14043_v33  ;;  %7959 = vmatpush1.bf16.msra.mxu1 %v11388_v12  ;;  %v11435_v12 = vcombine.high %v838_v63, %v842_v31  ;;  %v882_v63 = vld [vmem:[#allocation8 + $0x2f0] sm:$0xff]  ;;  %v879_v31 = vld [vmem:[#allocation8 + $0x2d8] sm:$0xff] }
 0x34e   :  { %7990 = vmatprep.mubr.bf16.mxu1 %v14043_v33  ;;  %7632 = vmatprep.subr.bf16.mxu0 %v11395_v18  ;;  %v11410_v33 = vcombine.low %v814_v34, %v818_v1  ;;  %v11437_v18 = vcombine.high %v839_v6, %v843_v42  ;;  %v858_v34 = vld [vmem:[#allocation8 + $0x230] sm:$0xff]  ;;  %v855_v1 = vld [vmem:[#allocation8 + $0x218] sm:$0xff] }
 0x34f   :  { %7960 = vmatprep.subr.bf16.mxu1 %v11397_v2  ;;  %v847_v2 = vld [vmem:[#allocation8 + $0x1d8] sm:$0xff] }
 0x350   :  { %7633 = vmatpush1.bf16.msra.mxu0 %v11394_v25  ;;  %v11436_v25 = vcombine.low %v839_v6, %v843_v42  ;;  %v883_v6 = vld [vmem:[#allocation8 + $0x2f8] sm:$0xff] }
 0x351   :  { %7961 = vmatpush1.bf16.msra.mxu1 %v11396_v27  ;;  %7634 = vmatprep.subr.bf16.mxu0 %v11403_v28  ;;  %v11443_v27 = vcombine.high %v846_v30, %v850_v22  ;;  %v11445_v28 = vcombine.high %v847_v2, %v851_v17  ;;  %v890_v30 = vld [vmem:[#allocation8 + $0x330] sm:$0xff]  ;;  %v887_v22 = vld [vmem:[#allocation8 + $0x318] sm:$0xff] }
 0x352   :  { %7962 = vmatprep.subr.bf16.mxu1 %v11405_v13  ;;  %v854_v13 = vld [vmem:[#allocation8 + $0x210] sm:$0xff] }
 0x353   :  { %v11450_v54 = vcombine.low %v854_v13, %v858_v34 }
 0x354   :  { %7635 = vmatpush1.bf16.msra.mxu0 %v11402_v56  ;;  %v11444_v56 = vcombine.low %v847_v2, %v851_v17  ;;  %v891_v2 = vld [vmem:[#allocation8 + $0x338] sm:$0xff] }
 0x355   :  { %7963 = vmatpush1.bf16.msra.mxu1 %v11404_v41  ;;  %7636 = vmatprep.subr.bf16.mxu0 %v11411_v43  ;;  %v11451_v41 = vcombine.high %v854_v13, %v858_v34  ;;  %v11453_v43 = vcombine.high %v855_v1, %v859_v38  ;;  %v898_v13 = vld [vmem:[#allocation8 + $0x370] sm:$0xff]  ;;  %v895_v34 = vld [vmem:[#allocation8 + $0x358] sm:$0xff] }
 0x356   :  { %7964 = vmatprep.subr.bf16.mxu1 %v11413_v44  ;;  %v862_v44 = vld [vmem:[#allocation8 + $0x250] sm:$0xff] }
 0x357   :  { %v11458_v59 = vcombine.low %v862_v44, %v866_v46 }
 0x358   :  { %7637 = vmatpush1.bf16.msra.mxu0 %v11410_v33  ;;  %v11452_v33 = vcombine.low %v855_v1, %v859_v38  ;;  %v899_v1 = vld [vmem:[#allocation8 + $0x378] sm:$0xff] }
 0x359   :  { %7965 = vmatpush1.bf16.msra.mxu1 %v11412_v0  ;;  %7638 = vmatprep.subr.bf16.mxu0 %v11419_v50  ;;  %v11459_v0 = vcombine.high %v862_v44, %v866_v46  ;;  %v11461_v50 = vcombine.high %v863_v19, %v867_v48  ;;  %v906_v44 = vld [vmem:[#allocation8 + $0x3b0] sm:$0xff]  ;;  %v903_v46 = vld [vmem:[#allocation8 + $0x398] sm:$0xff] }
 0x35a   :  { %7966 = vmatprep.subr.bf16.mxu1 %v11421_v49  ;;  %v870_v49 = vld [vmem:[#allocation8 + $0x290] sm:$0xff] }
 0x35b   :  { %v11466_v42 = vcombine.low %v870_v49, %v874_v52 }
 0x35c   :  { %7639 = vmatpush1.bf16.msra.mxu0 %v11418_v10  ;;  %v11460_v10 = vcombine.low %v863_v19, %v867_v48  ;;  %v907_v19 = vld [vmem:[#allocation8 + $0x3b8] sm:$0xff] }
 0x35d   :  { %7967 = vmatpush1.bf16.msra.mxu1 %v11420_v61  ;;  %7640 = vmatprep.subr.bf16.mxu0 %v11427_v36  ;;  %v11467_v61 = vcombine.high %v870_v49, %v874_v52  ;;  %v11469_v36 = vcombine.high %v871_v55, %v875_v58  ;;  %v914_v49 = vld [vmem:[#allocation8 + $0x3f0] sm:$0xff]  ;;  %v911_v52 = vld [vmem:[#allocation8 + $0x3d8] sm:$0xff] }
 0x35e   :  { %7968 = vmatprep.subr.bf16.mxu1 %v11429_v62  ;;  %v878_v62 = vld [vmem:[#allocation8 + $0x2d0] sm:$0xff] }
 0x35f   :  { %v11474_v17 = vcombine.low %v878_v62, %v882_v63 }
 0x360   :  { %7641 = vmatpush1.bf16.msra.mxu0 %v11426_v5  ;;  %v11468_v5 = vcombine.low %v871_v55, %v875_v58  ;;  %v915_v55 = vld [vmem:[#allocation8 + $0x3f8] sm:$0xff] }
 0x361   :  { %7969 = vmatpush1.bf16.msra.mxu1 %v11428_v9  ;;  %7642 = vmatprep.subr.bf16.mxu0 %v11435_v12  ;;  %v11475_v9 = vcombine.high %v878_v62, %v882_v63  ;;  %v11477_v12 = vcombine.high %v879_v31, %v883_v6  ;;  %v922_v62 = vld [vmem:[#allocation8 + $0x430] sm:$0xff]  ;;  %v919_v63 = vld [vmem:[#allocation8 + $0x418] sm:$0xff] }
 0x362   :  { %7970 = vmatprep.subr.bf16.mxu1 %v11437_v18  ;;  %v886_v18 = vld [vmem:[#allocation8 + $0x310] sm:$0xff] }
 0x363   :  { %v11482_v38 = vcombine.low %v886_v18, %v890_v30 }
 0x364   :  { %7643 = vmatpush1.bf16.msra.mxu0 %v11434_v23  ;;  %v11476_v23 = vcombine.low %v879_v31, %v883_v6  ;;  %v923_v31 = vld [vmem:[#allocation8 + $0x438] sm:$0xff] }
 0x365   :  { %7971 = vmatpush1.bf16.msra.mxu1 %v11436_v25  ;;  %7644 = vmatprep.subr.bf16.mxu0 %v11443_v27  ;;  %v11483_v25 = vcombine.high %v886_v18, %v890_v30  ;;  %v11485_v27 = vcombine.high %v887_v22, %v891_v2  ;;  %v930_v18 = vld [vmem:[#allocation8 + $0x470] sm:$0xff] }
 0x366   :  { %7972 = vmatprep.subr.bf16.mxu1 %v11445_v28  ;;  %v894_v28 = vld [vmem:[#allocation8 + $0x350] sm:$0xff] }
 0x367   :  { %v11490_v48 = vcombine.low %v894_v28, %v898_v13 }
 0x368   :  { %7645 = vmatpush1.bf16.msra.mxu0 %v11442_v24  ;;  %v11484_v24 = vcombine.low %v887_v22, %v891_v2  ;;  %v927_v22 = vld [vmem:[#allocation8 + $0x458] sm:$0xff] }
 0x369   :  { %7973 = vmatpush1.bf16.msra.mxu1 %v11444_v56  ;;  %7646 = vmatprep.subr.bf16.mxu0 %v11451_v41  ;;  %v11491_v56 = vcombine.high %v894_v28, %v898_v13  ;;  %v11493_v41 = vcombine.high %v895_v34, %v899_v1  ;;  %v931_v2 = vld [vmem:[#allocation8 + $0x478] sm:$0xff] }
 0x36a   :  { %7974 = vmatprep.subr.bf16.mxu1 %v11453_v43  ;;  %v902_v43 = vld [vmem:[#allocation8 + $0x390] sm:$0xff]  ;;  %v11525_v28 = vcombine.high %v927_v22, %v931_v2  ;;  %v935_v13 = vld [vmem:[#allocation8 + $0x498] sm:$0xff] }
 0x36b   :  { %v11498_v58 = vcombine.low %v902_v43, %v906_v44 }
 0x36c   :  { %7647 = vmatpush1.bf16.msra.mxu0 %v11450_v54  ;;  %v11492_v54 = vcombine.low %v895_v34, %v899_v1  ;;  %v939_v34 = vld [vmem:[#allocation8 + $0x4b8] sm:$0xff] }
 0x36d   :  { %7975 = vmatpush1.bf16.msra.mxu1 %v11452_v33  ;;  %7648 = vmatprep.subr.bf16.mxu0 %v11459_v0  ;;  %v11499_v33 = vcombine.high %v902_v43, %v906_v44  ;;  %v11501_v0 = vcombine.high %v903_v46, %v907_v19  ;;  %v946_v43 = vld [vmem:[#allocation8 + $0x4f0] sm:$0xff]  ;;  %v943_v44 = vld [vmem:[#allocation8 + $0x4d8] sm:$0xff] }
 0x36e   :  { %7976 = vmatprep.subr.bf16.mxu1 %v11461_v50  ;;  %v910_v50 = vld [vmem:[#allocation8 + $0x3d0] sm:$0xff] }
 0x36f   :  { %v11506_v6 = vcombine.low %v910_v50, %v914_v49 }
 0x370   :  { %7649 = vmatpush1.bf16.msra.mxu0 %v11458_v59  ;;  %v11500_v59 = vcombine.low %v903_v46, %v907_v19  ;;  %v947_v46 = vld [vmem:[#allocation8 + $0x4f8] sm:$0xff] }
 0x371   :  { %7977 = vmatpush1.bf16.msra.mxu1 %v11460_v10  ;;  %7650 = vmatprep.subr.bf16.mxu0 %v11467_v61  ;;  %v11507_v10 = vcombine.high %v910_v50, %v914_v49  ;;  %v11509_v61 = vcombine.high %v911_v52, %v915_v55  ;;  %v951_v50 = vld [vmem:[#allocation8 + $0x518] sm:$0xff] }
 0x372   :  { %7978 = vmatprep.subr.bf16.mxu1 %v11469_v36  ;;  %v918_v36 = vld [vmem:[#allocation8 + $0x410] sm:$0xff]  ;;  %v955_v49 = vld [vmem:[#allocation8 + $0x538] sm:$0xff] }
 0x373   :  { %v11514_v30 = vcombine.low %v918_v36, %v922_v62 }
 0x374   :  { %7651 = vmatpush1.bf16.msra.mxu0 %v11466_v42  ;;  %v11508_v42 = vcombine.low %v911_v52, %v915_v55  ;;  %v11540_v52 = vcombine.low %v943_v44, %v947_v46 }
 0x375   :  { %7979 = vmatpush1.bf16.msra.mxu1 %v11468_v5  ;;  %7652 = vmatprep.subr.bf16.mxu0 %v11475_v9  ;;  %v11515_v5 = vcombine.high %v918_v36, %v922_v62  ;;  %v11517_v9 = vcombine.high %v919_v63, %v923_v31  ;;  %v963_v36 = vld [vmem:[#allocation8 + $0x578] sm:$0xff] }
 0x376   :  { %7980 = vmatprep.subr.bf16.mxu1 %v11477_v12  ;;  %v926_v12 = vld [vmem:[#allocation8 + $0x450] sm:$0xff] }
 0x377   :  { %v11522_v1 = vcombine.low %v926_v12, %v930_v18 }
 0x378   :  { %7653 = vmatpush1.bf16.msra.mxu0 %v11474_v17  ;;  %v11516_v17 = vcombine.low %v919_v63, %v923_v31  ;;  %v11548_v63 = vcombine.low %v951_v50, %v955_v49 }
 0x379   :  { %7981 = vmatpush1.bf16.msra.mxu1 %v11476_v23  ;;  %7654 = vmatprep.subr.bf16.mxu0 %v11483_v25  ;;  %v11523_v23 = vcombine.high %v926_v12, %v930_v18  ;;  %v934_v25 = vld [vmem:[#allocation8 + $0x490] sm:$0xff]  ;;  %v971_v12 = vld [vmem:[#allocation8 + $0x5b8] sm:$0xff] }
 0x37a   :  { %7982 = vmatprep.subr.bf16.mxu1 %v11485_v27  ;;  %v938_v27 = vld [vmem:[#allocation8 + $0x4b0] sm:$0xff] }
 0x37b   :  { %v11530_v19 = vcombine.low %v934_v25, %v938_v27 }
 0x37c   :  { %7655 = vmatpush1.bf16.msra.mxu0 %v11482_v38  ;;  %v11524_v38 = vcombine.low %v927_v22, %v931_v2 }
 0x37d   :  { %7983 = vmatpush1.bf16.msra.mxu1 %v11484_v24  ;;  %7656 = vmatprep.subr.bf16.mxu0 %v11491_v56  ;;  %v11531_v24 = vcombine.high %v934_v25, %v938_v27  ;;  %v11533_v56 = vcombine.high %v935_v13, %v939_v34  ;;  %v975_v25 = vld [vmem:[#allocation8 + $0x5d8] sm:$0xff] }
 0x37e   :  { %7984 = vmatprep.subr.bf16.mxu1 %v11493_v41  ;;  %v942_v41 = vld [vmem:[#allocation8 + $0x4d0] sm:$0xff]  ;;  %v979_v27 = vld [vmem:[#allocation8 + $0x5f8] sm:$0xff] }
 0x380   :  { %7657 = vmatpush1.bf16.msra.mxu0 %v11490_v48  ;;  %v11539_v48 = vcombine.high %v942_v41, %v946_v43 }
 0x381   :  { %7985 = vmatpush1.bf16.msra.mxu1 %v11492_v54  ;;  %7658 = vmatprep.subr.bf16.mxu0 %v11499_v33  ;;  %v11541_v54 = vcombine.high %v943_v44, %v947_v46  ;;  %v950_v33 = vld [vmem:[#allocation8 + $0x510] sm:$0xff]  ;;  %v11572_v44 = vcombine.low %v975_v25, %v979_v27 }
 0x382   :  { %7986 = vmatprep.subr.bf16.mxu1 %v11501_v0  ;;  %v954_v0 = vld [vmem:[#allocation8 + $0x530] sm:$0xff] }
 0x383   :  { %v11547_v55 = vcombine.high %v950_v33, %v954_v0  ;;  %v11546_v62 = vcombine.low %v950_v33, %v954_v0  ;;  %v995_v33 = vld [vmem:[#allocation8 + $0x678] sm:$0xff] }
 0x384   :  { %7659 = vmatpush1.bf16.msra.mxu0 %v11498_v58  ;;  %v11549_v58 = vcombine.high %v951_v50, %v955_v49 }
 0x385   :  { %7987 = vmatpush1.bf16.msra.mxu1 %v11500_v59  ;;  %7660 = vmatprep.subr.bf16.mxu0 %v11507_v10  ;;  %v958_v59 = vld [vmem:[#allocation8 + $0x550] sm:$0xff] }
 0x386   :  { %7988 = vmatprep.subr.bf16.mxu1 %v11509_v61  ;;  %v962_v10 = vld [vmem:[#allocation8 + $0x570] sm:$0xff]  ;;  %v959_v61 = vld [vmem:[#allocation8 + $0x558] sm:$0xff] }
 0x387   :  { %v11555_v31 = vcombine.high %v958_v59, %v962_v10  ;;  %v11554_v18 = vcombine.low %v958_v59, %v962_v10  ;;  %v1003_v59 = vld [vmem:[#allocation8 + $0x6b8] sm:$0xff] }
 0x388   :  { %7661 = vmatpush1.bf16.msra.mxu0 %v11506_v6  ;;  %v11557_v6 = vcombine.high %v959_v61, %v963_v36 }
 0x389   :  { %7989 = vmatpush1.bf16.msra.mxu1 %v11508_v42  ;;  %7671 = vmatprep.subr.bf16.mxu0 %v11515_v5  ;;  %v966_v42 = vld [vmem:[#allocation8 + $0x590] sm:$0xff] }
 0x38a   :  { %7999 = vmatprep.subr.bf16.mxu1 %v11517_v9  ;;  %v970_v5 = vld [vmem:[#allocation8 + $0x5b0] sm:$0xff]  ;;  %v967_v9 = vld [vmem:[#allocation8 + $0x598] sm:$0xff] }
 0x38b   :  { %7663 = vmatmul.mubr.bf16.vlgmr.msra.gmra.mrb[12].mxu0 %v14047_v37  ;;  %v11563_v22 = vcombine.high %v966_v42, %v970_v5  ;;  %v11565_v2 = vcombine.high %v967_v9, %v971_v12 }
 0x38c   :  { %7991 = vmatmul.mubr.bf16.vlgmr.msra.gmra.mrb[28].mxu1 %v14047_v37  ;;  %7672 = vmatpush1.bf16.msra.mxu0 %v11514_v30  ;;  %v11532_v37 = vcombine.low %v935_v13, %v939_v34  ;;  %v11556_v30 = vcombine.low %v959_v61, %v963_v36  ;;  %v11564_v13 = vcombine.low %v967_v9, %v971_v12 }
 0x38d   :  { %7703 = vmatprep.mubr.bf16.mxu0 %v14055_v57  ;;  %8000 = vmatpush1.bf16.msra.mxu1 %v11516_v17  ;;  %v974_v17 = vld [vmem:[#allocation8 + $0x5d0] sm:$0xff] }
 0x38e   :  { %8031 = vmatprep.mubr.bf16.mxu1 %v14055_v57  ;;  %7673 = vmatprep.subr.bf16.mxu0 %v11523_v23  ;;  %v11538_v57 = vcombine.low %v942_v41, %v946_v43  ;;  %v978_v23 = vld [vmem:[#allocation8 + $0x5f0] sm:$0xff]  ;;  %v987_v41 = vld [vmem:[#allocation8 + $0x638] sm:$0xff] }
 0x38f   :  { %8001 = vmatprep.subr.bf16.mxu1 %v11525_v28  ;;  %v11562_v28 = vcombine.low %v966_v42, %v970_v5  ;;  %v11571_v34 = vcombine.high %v974_v17, %v978_v23  ;;  %v11570_v43 = vcombine.low %v974_v17, %v978_v23  ;;  %v1011_v42 = vld [vmem:[#allocation8 + $0x6f8] sm:$0xff] }
 0x390   :  { %7674 = vmatpush1.bf16.msra.mxu0 %v11522_v1  ;;  %v11573_v1 = vcombine.high %v975_v25, %v979_v27  ;;  %v1019_v17 = vld [vmem:[#allocation8 + $0x738] sm:$0xff] }
 0x391   :  { %8002 = vmatpush1.bf16.msra.mxu1 %v11524_v38  ;;  %7675 = vmatprep.subr.bf16.mxu0 %v11531_v24  ;;  %v982_v38 = vld [vmem:[#allocation8 + $0x610] sm:$0xff] }
 0x392   :  { %8003 = vmatprep.subr.bf16.mxu1 %v11533_v56  ;;  %v986_v24 = vld [vmem:[#allocation8 + $0x630] sm:$0xff]  ;;  %v983_v56 = vld [vmem:[#allocation8 + $0x618] sm:$0xff] }
 0x393   :  { %v11579_v46 = vcombine.high %v982_v38, %v986_v24  ;;  %v11578_v0 = vcombine.low %v982_v38, %v986_v24  ;;  %v11580_v50 = vcombine.low %v983_v56, %v987_v41  ;;  %v1027_v38 = vld [vmem:[#allocation8 + $0x778] sm:$0xff] }
 0x394   :  { %7676 = vmatpush1.bf16.msra.mxu0 %v11530_v19  ;;  %v11581_v19 = vcombine.high %v983_v56, %v987_v41 }
 0x395   :  { %8004 = vmatpush1.bf16.msra.mxu1 %v11532_v37  ;;  %7677 = vmatprep.subr.bf16.mxu0 %v11539_v48  ;;  %v990_v37 = vld [vmem:[#allocation8 + $0x650] sm:$0xff] }
 0x396   :  { %8005 = vmatprep.subr.bf16.mxu1 %v11541_v54  ;;  %v994_v48 = vld [vmem:[#allocation8 + $0x670] sm:$0xff]  ;;  %v991_v54 = vld [vmem:[#allocation8 + $0x658] sm:$0xff] }
 0x397   :  { %v11587_v49 = vcombine.high %v990_v37, %v994_v48  ;;  %v11586_v10 = vcombine.low %v990_v37, %v994_v48  ;;  %v11588_v61 = vcombine.low %v991_v54, %v995_v33  ;;  %v1035_v37 = vld [vmem:[#allocation8 + $0x7b8] sm:$0xff] }
 0x398   :  { %7678 = vmatpush1.bf16.msra.mxu0 %v11538_v57  ;;  %v11589_v57 = vcombine.high %v991_v54, %v995_v33 }
 0x399   :  { %8006 = vmatpush1.bf16.msra.mxu1 %v11540_v52  ;;  %7679 = vmatprep.subr.bf16.mxu0 %v11547_v55  ;;  %v998_v52 = vld [vmem:[#allocation8 + $0x690] sm:$0xff] }
 0x39a   :  { %8007 = vmatprep.subr.bf16.mxu1 %v11549_v58  ;;  %v1002_v55 = vld [vmem:[#allocation8 + $0x6b0] sm:$0xff]  ;;  %v999_v58 = vld [vmem:[#allocation8 + $0x698] sm:$0xff] }
 0x39b   :  { %v11595_v36 = vcombine.high %v998_v52, %v1002_v55  ;;  %v11594_v5 = vcombine.low %v998_v52, %v1002_v55  ;;  %v11596_v9 = vcombine.low %v999_v58, %v1003_v59  ;;  %v1043_v52 = vld [vmem:[#allocation8 + $0x7f8] sm:$0xff] }
 0x39c   :  { %7680 = vmatpush1.bf16.msra.mxu0 %v11546_v62  ;;  %v11597_v62 = vcombine.high %v999_v58, %v1003_v59 }
 0x39d   :  { %8008 = vmatpush1.bf16.msra.mxu1 %v11548_v63  ;;  %7681 = vmatprep.subr.bf16.mxu0 %v11555_v31  ;;  %v1006_v63 = vld [vmem:[#allocation8 + $0x6d0] sm:$0xff] }
 0x39e   :  { %8009 = vmatprep.subr.bf16.mxu1 %v11557_v6  ;;  %v1010_v31 = vld [vmem:[#allocation8 + $0x6f0] sm:$0xff]  ;;  %v1007_v6 = vld [vmem:[#allocation8 + $0x6d8] sm:$0xff] }
 0x39f   :  { %v11603_v12 = vcombine.high %v1006_v63, %v1010_v31  ;;  %v11602_v23 = vcombine.low %v1006_v63, %v1010_v31  ;;  %v11604_v25 = vcombine.low %v1007_v6, %v1011_v42  ;;  %v1051_v63 = vld [vmem:[#allocation8 + $0x838] sm:$0xff] }
 0x3a0   :  { %7682 = vmatpush1.bf16.msra.mxu0 %v11554_v18  ;;  %v11605_v18 = vcombine.high %v1007_v6, %v1011_v42 }
 0x3a1   :  { %8010 = vmatpush1.bf16.msra.mxu1 %v11556_v30  ;;  %7683 = vmatprep.subr.bf16.mxu0 %v11563_v22  ;;  %v1014_v30 = vld [vmem:[#allocation8 + $0x710] sm:$0xff] }
 0x3a2   :  { %8011 = vmatprep.subr.bf16.mxu1 %v11565_v2  ;;  %v1018_v22 = vld [vmem:[#allocation8 + $0x730] sm:$0xff]  ;;  %v1015_v2 = vld [vmem:[#allocation8 + $0x718] sm:$0xff] }
 0x3a3   :  { %v11611_v27 = vcombine.high %v1014_v30, %v1018_v22  ;;  %v11610_v24 = vcombine.low %v1014_v30, %v1018_v22  ;;  %v11612_v56 = vcombine.low %v1015_v2, %v1019_v17  ;;  %v1055_v30 = vld [vmem:[#allocation8 + $0x858] sm:$0xff] }
 0x3a4   :  { %7684 = vmatpush1.bf16.msra.mxu0 %v11562_v28  ;;  %v11613_v28 = vcombine.high %v1015_v2, %v1019_v17  ;;  %v1059_v22 = vld [vmem:[#allocation8 + $0x878] sm:$0xff] }
 0x3a5   :  { %8012 = vmatpush1.bf16.msra.mxu1 %v11564_v13  ;;  %7685 = vmatprep.subr.bf16.mxu0 %v11571_v34  ;;  %v1022_v13 = vld [vmem:[#allocation8 + $0x750] sm:$0xff] }
 0x3a6   :  { %8013 = vmatprep.subr.bf16.mxu1 %v11573_v1  ;;  %v1026_v34 = vld [vmem:[#allocation8 + $0x770] sm:$0xff]  ;;  %v1023_v1 = vld [vmem:[#allocation8 + $0x758] sm:$0xff] }
 0x3a7   :  { %v11619_v41 = vcombine.high %v1022_v13, %v1026_v34  ;;  %v11618_v48 = vcombine.low %v1022_v13, %v1026_v34  ;;  %v11620_v54 = vcombine.low %v1023_v1, %v1027_v38  ;;  %v1067_v13 = vld [vmem:[#allocation8 + $0x8b8] sm:$0xff] }
 0x3a8   :  { %7686 = vmatpush1.bf16.msra.mxu0 %v11570_v43  ;;  %v11621_v43 = vcombine.high %v1023_v1, %v1027_v38  ;;  %v11652_v1 = vcombine.low %v1055_v30, %v1059_v22 }
 0x3a9   :  { %8014 = vmatpush1.bf16.msra.mxu1 %v11572_v44  ;;  %7687 = vmatprep.subr.bf16.mxu0 %v11579_v46  ;;  %v1030_v44 = vld [vmem:[#allocation8 + $0x790] sm:$0xff] }
 0x3aa   :  { %8015 = vmatprep.subr.bf16.mxu1 %v11581_v19  ;;  %v1034_v46 = vld [vmem:[#allocation8 + $0x7b0] sm:$0xff]  ;;  %v1031_v19 = vld [vmem:[#allocation8 + $0x798] sm:$0xff] }
 0x3ab   :  { %v11627_v33 = vcombine.high %v1030_v44, %v1034_v46  ;;  %v11626_v55 = vcombine.low %v1030_v44, %v1034_v46  ;;  %v11628_v58 = vcombine.low %v1031_v19, %v1035_v37  ;;  %v1075_v44 = vld [vmem:[#allocation8 + $0x8f8] sm:$0xff] }
 0x3ac   :  { %7688 = vmatpush1.bf16.msra.mxu0 %v11578_v0  ;;  %v11629_v0 = vcombine.high %v1031_v19, %v1035_v37 }
 0x3ad   :  { %8016 = vmatpush1.bf16.msra.mxu1 %v11580_v50  ;;  %7689 = vmatprep.subr.bf16.mxu0 %v11587_v49  ;;  %v1038_v50 = vld [vmem:[#allocation8 + $0x7d0] sm:$0xff] }
 0x3ae   :  { %8017 = vmatprep.subr.bf16.mxu1 %v11589_v57  ;;  %v1042_v49 = vld [vmem:[#allocation8 + $0x7f0] sm:$0xff]  ;;  %v1039_v57 = vld [vmem:[#allocation8 + $0x7d8] sm:$0xff] }
 0x3af   :  { %v11635_v59 = vcombine.high %v1038_v50, %v1042_v49  ;;  %v11634_v31 = vcombine.low %v1038_v50, %v1042_v49  ;;  %v11636_v6 = vcombine.low %v1039_v57, %v1043_v52 }
 0x3b0   :  { %7690 = vmatpush1.bf16.msra.mxu0 %v11586_v10  ;;  %v11637_v10 = vcombine.high %v1039_v57, %v1043_v52  ;;  %v1086_v52 = vld [vmem:[#allocation8 + $0x950] sm:$0xff] }
 0x3b1   :  { %8018 = vmatpush1.bf16.msra.mxu1 %v11588_v61  ;;  %7691 = vmatprep.subr.bf16.mxu0 %v11595_v36  ;;  %v1046_v61 = vld [vmem:[#allocation8 + $0x810] sm:$0xff] }
 0x3b2   :  { %8019 = vmatprep.subr.bf16.mxu1 %v11597_v62  ;;  %v1050_v36 = vld [vmem:[#allocation8 + $0x830] sm:$0xff]  ;;  %v1047_v62 = vld [vmem:[#allocation8 + $0x818] sm:$0xff] }
 0x3b3   :  { %v11643_v42 = vcombine.high %v1046_v61, %v1050_v36  ;;  %v11644_v2 = vcombine.low %v1047_v62, %v1051_v63 }
 0x3b4   :  { %7692 = vmatpush1.bf16.msra.mxu0 %v11594_v5  ;;  %v11645_v5 = vcombine.high %v1047_v62, %v1051_v63  ;;  %v1094_v63 = vld [vmem:[#allocation8 + $0x990] sm:$0xff] }
 0x3b5   :  { %8020 = vmatpush1.bf16.msra.mxu1 %v11596_v9  ;;  %7693 = vmatprep.subr.bf16.mxu0 %v11603_v12  ;;  %v1054_v9 = vld [vmem:[#allocation8 + $0x850] sm:$0xff] }
 0x3b6   :  { %8021 = vmatprep.subr.bf16.mxu1 %v11605_v18  ;;  %v1058_v12 = vld [vmem:[#allocation8 + $0x870] sm:$0xff]  ;;  %v11642_v18 = vcombine.low %v1046_v61, %v1050_v36 }
 0x3b7   :  { %v11651_v17 = vcombine.high %v1054_v9, %v1058_v12  ;;  %v11650_v34 = vcombine.low %v1054_v9, %v1058_v12 }
 0x3b8   :  { %7694 = vmatpush1.bf16.msra.mxu0 %v11602_v23  ;;  %v1062_v23 = vld [vmem:[#allocation8 + $0x890] sm:$0xff] }
 0x3b9   :  { %8022 = vmatpush1.bf16.msra.mxu1 %v11604_v25  ;;  %7695 = vmatprep.subr.bf16.mxu0 %v11611_v27  ;;  %v1066_v25 = vld [vmem:[#allocation8 + $0x8b0] sm:$0xff]  ;;  %v11653_v27 = vcombine.high %v1055_v30, %v1059_v22 }
 0x3ba   :  { %8023 = vmatprep.subr.bf16.mxu1 %v11613_v28  ;;  %v1063_v28 = vld [vmem:[#allocation8 + $0x898] sm:$0xff]  ;;  %v11659_v38 = vcombine.high %v1062_v23, %v1066_v25  ;;  %v11658_v46 = vcombine.low %v1062_v23, %v1066_v25  ;;  %v1102_v30 = vld [vmem:[#allocation8 + $0x9d0] sm:$0xff] }
 0x3bb   :  { %v1106_v22 = vld [vmem:[#allocation8 + $0x9f0] sm:$0xff] }
 0x3bc   :  { %7696 = vmatpush1.bf16.msra.mxu0 %v11610_v24  ;;  %v11661_v24 = vcombine.high %v1063_v28, %v1067_v13 }
 0x3bd   :  { %8024 = vmatpush1.bf16.msra.mxu1 %v11612_v56  ;;  %7697 = vmatprep.subr.bf16.mxu0 %v11619_v41  ;;  %v1070_v56 = vld [vmem:[#allocation8 + $0x8d0] sm:$0xff] }
 0x3be   :  { %8025 = vmatprep.subr.bf16.mxu1 %v11621_v43  ;;  %v1074_v41 = vld [vmem:[#allocation8 + $0x8f0] sm:$0xff]  ;;  %v1071_v43 = vld [vmem:[#allocation8 + $0x8d8] sm:$0xff] }
 0x3bf   :  { %v11667_v19 = vcombine.high %v1070_v56, %v1074_v41  ;;  %v11669_v37 = vcombine.high %v1071_v43, %v1075_v44  ;;  %v11668_v50 = vcombine.low %v1071_v43, %v1075_v44  ;;  %v1118_v44 = vld [vmem:[#allocation8 + $0xa50] sm:$0xff] }
 0x3c0   :  { %7698 = vmatpush1.bf16.msra.mxu0 %v11618_v48  ;;  %v1078_v48 = vld [vmem:[#allocation8 + $0x910] sm:$0xff] }
 0x3c1   :  { %8026 = vmatpush1.bf16.msra.mxu1 %v11620_v54  ;;  %7699 = vmatprep.subr.bf16.mxu0 %v11627_v33  ;;  %v1082_v54 = vld [vmem:[#allocation8 + $0x930] sm:$0xff]  ;;  %v1079_v33 = vld [vmem:[#allocation8 + $0x918] sm:$0xff] }
 0x3c2   :  { %8027 = vmatprep.subr.bf16.mxu1 %v11629_v0  ;;  %v1083_v0 = vld [vmem:[#allocation8 + $0x938] sm:$0xff]  ;;  %v11675_v49 = vcombine.high %v1078_v48, %v1082_v54 }
 0x3c3   :  { %v11677_v57 = vcombine.high %v1079_v33, %v1083_v0  ;;  %v11676_v61 = vcombine.low %v1079_v33, %v1083_v0  ;;  %v1126_v0 = vld [vmem:[#allocation8 + $0xa90] sm:$0xff] }
 0x3c4   :  { %7700 = vmatpush1.bf16.msra.mxu0 %v11626_v55  ;;  %v1090_v55 = vld [vmem:[#allocation8 + $0x970] sm:$0xff] }
 0x3c5   :  { %8028 = vmatpush1.bf16.msra.mxu1 %v11628_v58  ;;  %7701 = vmatprep.subr.bf16.mxu0 %v11635_v59  ;;  %v1087_v58 = vld [vmem:[#allocation8 + $0x958] sm:$0xff]  ;;  %v11683_v36 = vcombine.high %v1086_v52, %v1090_v55 }
 0x3c6   :  { %8029 = vmatprep.subr.bf16.mxu1 %v11637_v10  ;;  %v1091_v59 = vld [vmem:[#allocation8 + $0x978] sm:$0xff]  ;;  %v11674_v10 = vcombine.low %v1078_v48, %v1082_v54 }
 0x3c7   :  { %v11685_v62 = vcombine.high %v1087_v58, %v1091_v59  ;;  %v11684_v9 = vcombine.low %v1087_v58, %v1091_v59  ;;  %v1134_v59 = vld [vmem:[#allocation8 + $0xad0] sm:$0xff] }
 0x3c8   :  { %7702 = vmatpush1.bf16.msra.mxu0 %v11634_v31  ;;  %v1098_v31 = vld [vmem:[#allocation8 + $0x9b0] sm:$0xff] }
 0x3c9   :  { %8030 = vmatpush1.bf16.msra.mxu1 %v11636_v6  ;;  %7712 = vmatprep.subr.bf16.mxu0 %v11643_v42  ;;  %v1095_v6 = vld [vmem:[#allocation8 + $0x998] sm:$0xff]  ;;  %v11691_v12 = vcombine.high %v1094_v63, %v1098_v31  ;;  %v11690_v23 = vcombine.low %v1094_v63, %v1098_v31 }
 0x3ca   :  { %8040 = vmatprep.subr.bf16.mxu1 %v11645_v5  ;;  %v1099_v42 = vld [vmem:[#allocation8 + $0x9b8] sm:$0xff]  ;;  %v11682_v5 = vcombine.low %v1086_v52, %v1090_v55 }
 0x3cb   :  { %7704 = vmatmul.mubr.bf16.vlgmr.msra.gmra.mrb[12].mxu0 %v14118_v20  ;;  %v11692_v25 = vcombine.low %v1095_v6, %v1099_v42 }
 0x3cc   :  { %8032 = vmatmul.mubr.bf16.vlgmr.msra.gmra.mrb[28].mxu1 %v14118_v20  ;;  %7713 = vmatpush1.bf16.msra.mxu0 %v11642_v18  ;;  %v11660_v20 = vcombine.low %v1063_v28, %v1067_v13  ;;  %v11693_v18 = vcombine.high %v1095_v6, %v1099_v42  ;;  %v1110_v13 = vld [vmem:[#allocation8 + $0xa10] sm:$0xff] }
 0x3cd   :  { %7744 = vmatprep.mubr.bf16.mxu0 %v14120_v32  ;;  %8041 = vmatpush1.bf16.msra.mxu1 %v11644_v2  ;;  %v1103_v2 = vld [vmem:[#allocation8 + $0x9d8] sm:$0xff]  ;;  %v1142_v42 = vld [vmem:[#allocation8 + $0xb10] sm:$0xff] }
 0x3ce   :  { %8072 = vmatprep.mubr.bf16.mxu1 %v14120_v32  ;;  %7714 = vmatprep.subr.bf16.mxu0 %v11651_v17  ;;  %v11666_v32 = vcombine.low %v1070_v56, %v1074_v41  ;;  %v1107_v17 = vld [vmem:[#allocation8 + $0x9f8] sm:$0xff] }
 0x3cf   :  { %8042 = vmatprep.subr.bf16.mxu1 %v11653_v27  ;;  %v11699_v27 = vcombine.high %v1102_v30, %v1106_v22  ;;  %v11701_v28 = vcombine.high %v1103_v2, %v1107_v17  ;;  %v11700_v56 = vcombine.low %v1103_v2, %v1107_v17  ;;  %v1150_v17 = vld [vmem:[#allocation8 + $0xb50] sm:$0xff] }
 0x3d0   :  { %7715 = vmatpush1.bf16.msra.mxu0 %v11650_v34  ;;  %v1114_v34 = vld [vmem:[#allocation8 + $0xa30] sm:$0xff] }
 0x3d1   :  { %8043 = vmatpush1.bf16.msra.mxu1 %v11652_v1  ;;  %7716 = vmatprep.subr.bf16.mxu0 %v11659_v38  ;;  %v1111_v1 = vld [vmem:[#allocation8 + $0xa18] sm:$0xff]  ;;  %v11707_v41 = vcombine.high %v1110_v13, %v1114_v34 }
 0x3d2   :  { %8044 = vmatprep.subr.bf16.mxu1 %v11661_v24  ;;  %v1115_v38 = vld [vmem:[#allocation8 + $0xa38] sm:$0xff]  ;;  %v11698_v24 = vcombine.low %v1102_v30, %v1106_v22 }
 0x3d3   :  { %v11709_v43 = vcombine.high %v1111_v1, %v1115_v38  ;;  %v11708_v48 = vcombine.low %v1111_v1, %v1115_v38  ;;  %v1158_v38 = vld [vmem:[#allocation8 + $0xb90] sm:$0xff] }
 0x3d4   :  { %7717 = vmatpush1.bf16.msra.mxu0 %v11658_v46  ;;  %v1122_v46 = vld [vmem:[#allocation8 + $0xa70] sm:$0xff] }
 0x3d5   :  { %8045 = vmatpush1.bf16.msra.mxu1 %v11660_v20  ;;  %7718 = vmatprep.subr.bf16.mxu0 %v11667_v19  ;;  %v1119_v20 = vld [vmem:[#allocation8 + $0xa58] sm:$0xff]  ;;  %v11715_v54 = vcombine.high %v1118_v44, %v1122_v46 }
 0x3d6   :  { %8046 = vmatprep.subr.bf16.mxu1 %v11669_v37  ;;  %v1123_v19 = vld [vmem:[#allocation8 + $0xa78] sm:$0xff]  ;;  %v11706_v37 = vcombine.low %v1110_v13, %v1114_v34 }
 0x3d7   :  { %v11717_v33 = vcombine.high %v1119_v20, %v1123_v19  ;;  %v11716_v52 = vcombine.low %v1119_v20, %v1123_v19  ;;  %v1166_v19 = vld [vmem:[#allocation8 + $0xbd0] sm:$0xff] }
 0x3d8   :  { %7719 = vmatpush1.bf16.msra.mxu0 %v11666_v32  ;;  %v1130_v32 = vld [vmem:[#allocation8 + $0xab0] sm:$0xff] }
 0x3d9   :  { %8047 = vmatpush1.bf16.msra.mxu1 %v11668_v50  ;;  %7720 = vmatprep.subr.bf16.mxu0 %v11675_v49  ;;  %v1127_v50 = vld [vmem:[#allocation8 + $0xa98] sm:$0xff]  ;;  %v11723_v55 = vcombine.high %v1126_v0, %v1130_v32 }
 0x3da   :  { %8048 = vmatprep.subr.bf16.mxu1 %v11677_v57  ;;  %v1131_v49 = vld [vmem:[#allocation8 + $0xab8] sm:$0xff]  ;;  %v11714_v57 = vcombine.low %v1118_v44, %v1122_v46 }
 0x3db   :  { %v11725_v58 = vcombine.high %v1127_v50, %v1131_v49  ;;  %v11724_v63 = vcombine.low %v1127_v50, %v1131_v49  ;;  %v1174_v49 = vld [vmem:[#allocation8 + $0xc10] sm:$0xff] }
 0x3dc   :  { %7721 = vmatpush1.bf16.msra.mxu0 %v11674_v10  ;;  %v1138_v10 = vld [vmem:[#allocation8 + $0xaf0] sm:$0xff] }
 0x3dd   :  { %8049 = vmatpush1.bf16.msra.mxu1 %v11676_v61  ;;  %7722 = vmatprep.subr.bf16.mxu0 %v11683_v36  ;;  %v1135_v61 = vld [vmem:[#allocation8 + $0xad8] sm:$0xff]  ;;  %v11731_v31 = vcombine.high %v1134_v59, %v1138_v10 }
 0x3de   :  { %8050 = vmatprep.subr.bf16.mxu1 %v11685_v62  ;;  %v1139_v36 = vld [vmem:[#allocation8 + $0xaf8] sm:$0xff]  ;;  %v11722_v62 = vcombine.low %v1126_v0, %v1130_v32 }
 0x3df   :  { %v11733_v6 = vcombine.high %v1135_v61, %v1139_v36  ;;  %v11732_v30 = vcombine.low %v1135_v61, %v1139_v36  ;;  %v1182_v36 = vld [vmem:[#allocation8 + $0xc50] sm:$0xff] }
 0x3e0   :  { %7723 = vmatpush1.bf16.msra.mxu0 %v11682_v5  ;;  %v1146_v5 = vld [vmem:[#allocation8 + $0xb30] sm:$0xff] }
 0x3e1   :  { %8051 = vmatpush1.bf16.msra.mxu1 %v11684_v9  ;;  %7724 = vmatprep.subr.bf16.mxu0 %v11691_v12  ;;  %v1143_v9 = vld [vmem:[#allocation8 + $0xb18] sm:$0xff]  ;;  %v11739_v22 = vcombine.high %v1142_v42, %v1146_v5 }
 0x3e2   :  { %8052 = vmatprep.subr.bf16.mxu1 %v11693_v18  ;;  %v1147_v12 = vld [vmem:[#allocation8 + $0xb38] sm:$0xff]  ;;  %v11730_v18 = vcombine.low %v1134_v59, %v1138_v10 }
 0x3e3   :  { %v11741_v2 = vcombine.high %v1143_v9, %v1147_v12  ;;  %v11740_v13 = vcombine.low %v1143_v9, %v1147_v12  ;;  %v1190_v9 = vld [vmem:[#allocation8 + $0xc90] sm:$0xff] }
 0x3e4   :  { %7725 = vmatpush1.bf16.msra.mxu0 %v11690_v23  ;;  %v1154_v23 = vld [vmem:[#allocation8 + $0xb70] sm:$0xff] }
 0x3e5   :  { %8053 = vmatpush1.bf16.msra.mxu1 %v11692_v25  ;;  %7726 = vmatprep.subr.bf16.mxu0 %v11699_v27  ;;  %v1151_v25 = vld [vmem:[#allocation8 + $0xb58] sm:$0xff]  ;;  %v11747_v34 = vcombine.high %v1150_v17, %v1154_v23  ;;  %v1194_v12 = vld [vmem:[#allocation8 + $0xcb0] sm:$0xff] }
 0x3e6   :  { %8054 = vmatprep.subr.bf16.mxu1 %v11701_v28  ;;  %v1155_v27 = vld [vmem:[#allocation8 + $0xb78] sm:$0xff]  ;;  %v11738_v28 = vcombine.low %v1142_v42, %v1146_v5 }
 0x3e7   :  { %v11749_v1 = vcombine.high %v1151_v25, %v1155_v27  ;;  %v11748_v44 = vcombine.low %v1151_v25, %v1155_v27  ;;  %v1198_v27 = vld [vmem:[#allocation8 + $0xcd0] sm:$0xff] }
 0x3e8   :  { %7727 = vmatpush1.bf16.msra.mxu0 %v11698_v24  ;;  %v1162_v24 = vld [vmem:[#allocation8 + $0xbb0] sm:$0xff] }
 0x3e9   :  { %8055 = vmatpush1.bf16.msra.mxu1 %v11700_v56  ;;  %7728 = vmatprep.subr.bf16.mxu0 %v11707_v41  ;;  %v1159_v56 = vld [vmem:[#allocation8 + $0xb98] sm:$0xff]  ;;  %v11755_v46 = vcombine.high %v1158_v38, %v1162_v24 }
 0x3ea   :  { %8056 = vmatprep.subr.bf16.mxu1 %v11709_v43  ;;  %v1163_v41 = vld [vmem:[#allocation8 + $0xbb8] sm:$0xff]  ;;  %v11746_v43 = vcombine.low %v1150_v17, %v1154_v23  ;;  %v11787_v23 = vcombine.high %v1190_v9, %v1194_v12 }
 0x3eb   :  { %v11757_v20 = vcombine.high %v1159_v56, %v1163_v41  ;;  %v11756_v0 = vcombine.low %v1159_v56, %v1163_v41  ;;  %v1206_v56 = vld [vmem:[#allocation8 + $0xd10] sm:$0xff] }
 0x3ec   :  { %7729 = vmatpush1.bf16.msra.mxu0 %v11706_v37  ;;  %v1170_v37 = vld [vmem:[#allocation8 + $0xbf0] sm:$0xff] }
 0x3ed   :  { %8057 = vmatpush1.bf16.msra.mxu1 %v11708_v48  ;;  %7730 = vmatprep.subr.bf16.mxu0 %v11715_v54  ;;  %v1167_v48 = vld [vmem:[#allocation8 + $0xbd8] sm:$0xff]  ;;  %v11763_v32 = vcombine.high %v1166_v19, %v1170_v37  ;;  %v1210_v41 = vld [vmem:[#allocation8 + $0xd30] sm:$0xff] }
 0x3ee   :  { %8058 = vmatprep.subr.bf16.mxu1 %v11717_v33  ;;  %v1171_v54 = vld [vmem:[#allocation8 + $0xbf8] sm:$0xff]  ;;  %v11754_v33 = vcombine.low %v1158_v38, %v1162_v24 }
 0x3ef   :  { %v11765_v50 = vcombine.high %v1167_v48, %v1171_v54  ;;  %v11764_v59 = vcombine.low %v1167_v48, %v1171_v54  ;;  %v1218_v48 = vld [vmem:[#allocation8 + $0xd70] sm:$0xff]  ;;  %v1215_v54 = vld [vmem:[#allocation8 + $0xd58] sm:$0xff] }
 0x3f0   :  { %7731 = vmatpush1.bf16.msra.mxu0 %v11714_v57  ;;  %v1178_v57 = vld [vmem:[#allocation8 + $0xc30] sm:$0xff] }
 0x3f1   :  { %8059 = vmatpush1.bf16.msra.mxu1 %v11716_v52  ;;  %7732 = vmatprep.subr.bf16.mxu0 %v11723_v55  ;;  %v1175_v52 = vld [vmem:[#allocation8 + $0xc18] sm:$0xff]  ;;  %v11771_v10 = vcombine.high %v1174_v49, %v1178_v57 }
 0x3f2   :  { %8060 = vmatprep.subr.bf16.mxu1 %v11725_v58  ;;  %v1179_v55 = vld [vmem:[#allocation8 + $0xc38] sm:$0xff]  ;;  %v11762_v58 = vcombine.low %v1166_v19, %v1170_v37  ;;  %v1214_v37 = vld [vmem:[#allocation8 + $0xd50] sm:$0xff] }
 0x3f3   :  { %v11773_v61 = vcombine.high %v1175_v52, %v1179_v55  ;;  %v11772_v42 = vcombine.low %v1175_v52, %v1179_v55  ;;  %v1226_v52 = vld [vmem:[#allocation8 + $0xdb0] sm:$0xff]  ;;  %v1223_v55 = vld [vmem:[#allocation8 + $0xd98] sm:$0xff] }
 0x3f4   :  { %7733 = vmatpush1.bf16.msra.mxu0 %v11722_v62  ;;  %v1186_v62 = vld [vmem:[#allocation8 + $0xc70] sm:$0xff] }
 0x3f5   :  { %8061 = vmatpush1.bf16.msra.mxu1 %v11724_v63  ;;  %7734 = vmatprep.subr.bf16.mxu0 %v11731_v31  ;;  %v11770_v63 = vcombine.low %v1174_v49, %v1178_v57  ;;  %v1183_v31 = vld [vmem:[#allocation8 + $0xc58] sm:$0xff]  ;;  %v11779_v5 = vcombine.high %v1182_v36, %v1186_v62  ;;  %v1222_v57 = vld [vmem:[#allocation8 + $0xd90] sm:$0xff] }
 0x3f6   :  { %8062 = vmatprep.subr.bf16.mxu1 %v11733_v6  ;;  %v1187_v6 = vld [vmem:[#allocation8 + $0xc78] sm:$0xff] }
 0x3f7   :  { %v11780_v17 = vcombine.low %v1183_v31, %v1187_v6 }
 0x3f8   :  { %7735 = vmatpush1.bf16.msra.mxu0 %v11730_v18  ;;  %v11781_v18 = vcombine.high %v1183_v31, %v1187_v6  ;;  %v1234_v31 = vld [vmem:[#allocation8 + $0xdf0] sm:$0xff] }
 0x3f9   :  { %8063 = vmatpush1.bf16.msra.mxu1 %v11732_v30  ;;  %7736 = vmatprep.subr.bf16.mxu0 %v11739_v22  ;;  %v1191_v30 = vld [vmem:[#allocation8 + $0xc98] sm:$0xff] }
 0x3fa   :  { %8064 = vmatprep.subr.bf16.mxu1 %v11741_v2  ;;  %v1195_v22 = vld [vmem:[#allocation8 + $0xcb8] sm:$0xff]  ;;  %v11778_v2 = vcombine.low %v1182_v36, %v1186_v62 }
 0x3fb   :  { %v11789_v25 = vcombine.high %v1191_v30, %v1195_v22 }
 0x3fc   :  { %7737 = vmatpush1.bf16.msra.mxu0 %v11738_v28  ;;  %v1202_v28 = vld [vmem:[#allocation8 + $0xcf0] sm:$0xff] }
 0x3fd   :  { %8065 = vmatpush1.bf16.msra.mxu1 %v11740_v13  ;;  %7738 = vmatprep.subr.bf16.mxu0 %v11747_v34  ;;  %v1199_v13 = vld [vmem:[#allocation8 + $0xcd8] sm:$0xff]  ;;  %v11795_v38 = vcombine.high %v1198_v27, %v1202_v28 }
 0x3fe   :  { %8066 = vmatprep.subr.bf16.mxu1 %v11749_v1  ;;  %v1203_v34 = vld [vmem:[#allocation8 + $0xcf8] sm:$0xff]  ;;  %v11786_v1 = vcombine.low %v1190_v9, %v1194_v12 }
 0x3ff   :  { %v11797_v24 = vcombine.high %v1199_v13, %v1203_v34  ;;  %v1235_v9 = vld [vmem:[#allocation8 + $0xdf8] sm:$0xff] }
 0x400   :  { %7739 = vmatpush1.bf16.msra.mxu0 %v11746_v43  ;;  %v1207_v43 = vld [vmem:[#allocation8 + $0xd18] sm:$0xff] }
 0x401   :  { %8067 = vmatpush1.bf16.msra.mxu1 %v11748_v44  ;;  %7740 = vmatprep.subr.bf16.mxu0 %v11755_v46  ;;  %v1211_v44 = vld [vmem:[#allocation8 + $0xd38] sm:$0xff]  ;;  %v11796_v46 = vcombine.low %v1199_v13, %v1203_v34  ;;  %v1242_v13 = vld [vmem:[#allocation8 + $0xe30] sm:$0xff] }
 0x402   :  { %8068 = vmatprep.subr.bf16.mxu1 %v11757_v20  ;;  %v11803_v20 = vcombine.high %v1206_v56, %v1210_v41  ;;  %v11805_v19 = vcombine.high %v1207_v43, %v1211_v44  ;;  %v1239_v34 = vld [vmem:[#allocation8 + $0xe18] sm:$0xff] }
 0x404   :  { %7741 = vmatpush1.bf16.msra.mxu0 %v11754_v33  ;;  %v1219_v33 = vld [vmem:[#allocation8 + $0xd78] sm:$0xff] }
 0x405   :  { %8069 = vmatpush1.bf16.msra.mxu1 %v11756_v0  ;;  %7742 = vmatprep.subr.bf16.mxu0 %v11763_v32  ;;  %v11802_v0 = vcombine.low %v1206_v56, %v1210_v41  ;;  %v11804_v32 = vcombine.low %v1207_v43, %v1211_v44  ;;  %v11813_v49 = vcombine.high %v1215_v54, %v1219_v33  ;;  %v1246_v41 = vld [vmem:[#allocation8 + $0xe50] sm:$0xff]  ;;  %v1247_v44 = vld [vmem:[#allocation8 + $0xe58] sm:$0xff] }
 0x406   :  { %8070 = vmatprep.subr.bf16.mxu1 %v11765_v50  ;;  %v11811_v50 = vcombine.high %v1214_v37, %v1218_v48  ;;  %v1250_v43 = vld [vmem:[#allocation8 + $0xe70] sm:$0xff] }
 0x408   :  { %7743 = vmatpush1.bf16.msra.mxu0 %v11762_v58  ;;  %v1227_v58 = vld [vmem:[#allocation8 + $0xdb8] sm:$0xff] }
 0x409   :  { %8071 = vmatpush1.bf16.msra.mxu1 %v11764_v59  ;;  %7753 = vmatprep.subr.bf16.mxu0 %v11771_v10  ;;  %v11810_v59 = vcombine.low %v1214_v37, %v1218_v48  ;;  %v11812_v10 = vcombine.low %v1215_v54, %v1219_v33  ;;  %v11821_v62 = vcombine.high %v1223_v55, %v1227_v58  ;;  %v1254_v48 = vld [vmem:[#allocation8 + $0xe90] sm:$0xff]  ;;  %v1255_v33 = vld [vmem:[#allocation8 + $0xe98] sm:$0xff] }
 0x40a   :  { %8081 = vmatprep.subr.bf16.mxu1 %v11773_v61  ;;  %v11819_v61 = vcombine.high %v1222_v57, %v1226_v52  ;;  %v1258_v54 = vld [vmem:[#allocation8 + $0xeb0] sm:$0xff] }
 0x40b   :  { %7745 = vmatmul.mubr.bf16.vlgmr.msra.gmra.mrb[12].mxu0 %v14132_v45 }
 0x40c   :  { %8073 = vmatmul.mubr.bf16.vlgmr.msra.gmra.mrb[28].mxu1 %v14132_v45  ;;  %7754 = vmatpush1.bf16.msra.mxu0 %v11770_v63  ;;  %v11788_v45 = vcombine.low %v1191_v30, %v1195_v22  ;;  %v1230_v63 = vld [vmem:[#allocation8 + $0xdd0] sm:$0xff]  ;;  %v11818_v30 = vcombine.low %v1222_v57, %v1226_v52 }
 0x40d   :  { %7785 = vmatprep.mubr.bf16.mxu0 %v14134_v53  ;;  %8082 = vmatpush1.bf16.msra.mxu1 %v11772_v42  ;;  %v1262_v52 = vld [vmem:[#allocation8 + $0xed0] sm:$0xff] }
 0x40e   :  { %8113 = vmatprep.mubr.bf16.mxu1 %v14134_v53  ;;  %7755 = vmatprep.subr.bf16.mxu0 %v11779_v5  ;;  %v11794_v53 = vcombine.low %v1198_v27, %v1202_v28  ;;  %v1231_v5 = vld [vmem:[#allocation8 + $0xdd8] sm:$0xff]  ;;  %v1238_v28 = vld [vmem:[#allocation8 + $0xe10] sm:$0xff] }
 0x40f   :  { %8083 = vmatprep.subr.bf16.mxu1 %v11781_v18  ;;  %v11829_v27 = vcombine.high %v1231_v5, %v1235_v9 }
 0x410   :  { %7756 = vmatpush1.bf16.msra.mxu0 %v11778_v2 }
 0x411   :  { %8084 = vmatpush1.bf16.msra.mxu1 %v11780_v17  ;;  %7757 = vmatprep.subr.bf16.mxu0 %v11787_v23  ;;  %v11820_v17 = vcombine.low %v1223_v55, %v1227_v58  ;;  %v11827_v23 = vcombine.high %v1230_v63, %v1234_v31  ;;  %v1266_v55 = vld [vmem:[#allocation8 + $0xef0] sm:$0xff]  ;;  %v1263_v58 = vld [vmem:[#allocation8 + $0xed8] sm:$0xff] }
 0x412   :  { %8085 = vmatprep.subr.bf16.mxu1 %v11789_v25 }
 0x414   :  { %7758 = vmatpush1.bf16.msra.mxu0 %v11786_v1  ;;  %v1243_v1 = vld [vmem:[#allocation8 + $0xe38] sm:$0xff] }
 0x415   :  { %8086 = vmatpush1.bf16.msra.mxu1 %v11788_v45  ;;  %7759 = vmatprep.subr.bf16.mxu0 %v11795_v38  ;;  %v11826_v45 = vcombine.low %v1230_v63, %v1234_v31  ;;  %v11828_v38 = vcombine.low %v1231_v5, %v1235_v9  ;;  %v11837_v56 = vcombine.high %v1239_v34, %v1243_v1  ;;  %v1270_v31 = vld [vmem:[#allocation8 + $0xf10] sm:$0xff]  ;;  %v1271_v9 = vld [vmem:[#allocation8 + $0xf18] sm:$0xff] }
 0x416   :  { %8087 = vmatprep.subr.bf16.mxu1 %v11797_v24  ;;  %v11835_v24 = vcombine.high %v1238_v28, %v1242_v13  ;;  %v1274_v5 = vld [vmem:[#allocation8 + $0xf30] sm:$0xff] }
 0x418   :  { %7760 = vmatpush1.bf16.msra.mxu0 %v11794_v53  ;;  %v1251_v53 = vld [vmem:[#allocation8 + $0xe78] sm:$0xff] }
 0x419   :  { %8088 = vmatpush1.bf16.msra.mxu1 %v11796_v46  ;;  %7761 = vmatprep.subr.bf16.mxu0 %v11803_v20  ;;  %v11834_v46 = vcombine.low %v1238_v28, %v1242_v13  ;;  %v11836_v20 = vcombine.low %v1239_v34, %v1243_v1  ;;  %v11845_v37 = vcombine.high %v1247_v44, %v1251_v53  ;;  %v1283_v28 = vld [vmem:[#allocation8 + $0xf78] sm:$0xff] }
 0x41a   :  { %8089 = vmatprep.subr.bf16.mxu1 %v11805_v19  ;;  %v11843_v19 = vcombine.high %v1246_v41, %v1250_v43  ;;  %v11866_v13 = vcombine.low %v1270_v31, %v1274_v5 }
 0x41c   :  { %7762 = vmatpush1.bf16.msra.mxu0 %v11802_v0  ;;  %v1259_v0 = vld [vmem:[#allocation8 + $0xeb8] sm:$0xff] }
 0x41d   :  { %8090 = vmatpush1.bf16.msra.mxu1 %v11804_v32  ;;  %7763 = vmatprep.subr.bf16.mxu0 %v11811_v50  ;;  %v11842_v32 = vcombine.low %v1246_v41, %v1250_v43  ;;  %v11844_v50 = vcombine.low %v1247_v44, %v1251_v53  ;;  %v11853_v57 = vcombine.high %v1255_v33, %v1259_v0  ;;  %v1291_v41 = vld [vmem:[#allocation8 + $0xfb8] sm:$0xff] }
 0x41e   :  { %v14206_v36 = vpop.f32.mrb[8].mxu0  ;;  %8091 = vmatprep.subr.bf16.mxu1 %v11813_v49  ;;  %v11851_v49 = vcombine.high %v1254_v48, %v1258_v54 }
 0x41f   :  { %v14208_v6 = vpop.f32.mrb[24].mxu1  ;;  %v14210_v42 = vpop.f32.mrb[9].mxu0 }
 0x420   :  { %v14212_v12 = vpop.f32.mrb[25].mxu1  ;;  %v7299_v18 = vpop.f32.mrb[10].mxu0  ;;  %7764 = vmatpush1.bf16.msra.mxu0 %v11810_v59  ;;  %v1267_v59 = vld [vmem:[#allocation8 + $0xef8] sm:$0xff] }
 0x421   :  { %v7627_v22 = vpop.f32.mrb[26].mxu1  ;;  %8092 = vmatpush1.bf16.msra.mxu1 %v11812_v10  ;;  %v7300_v2 = vpop.f32.mrb[11].mxu0  ;;  %7765 = vmatprep.subr.bf16.mxu0 %v11819_v61  ;;  %v11850_v10 = vcombine.low %v1254_v48, %v1258_v54  ;;  %v11852_v61 = vcombine.low %v1255_v33, %v1259_v0  ;;  %v11861_v63 = vcombine.high %v1263_v58, %v1267_v59  ;;  %v1275_v18 = vld [vmem:[#allocation8 + $0xf38] sm:$0xff] }
 0x422   :  { %v7628_v25 = vpop.f32.mrb[27].mxu1  ;;  %8093 = vmatprep.subr.bf16.mxu1 %v11821_v62  ;;  %v11859_v62 = vcombine.high %v1262_v52, %v1266_v55  ;;  %v11860_v22 = vcombine.low %v1263_v58, %v1267_v59  ;;  %v11867_v2 = vcombine.high %v1270_v31, %v1274_v5  ;;  %v11868_v34 = vcombine.low %v1271_v9, %v1275_v18  ;;  %v1299_v48 = vld [vmem:[#allocation8 + $0xff8] sm:$0xff] }
 0x423   :  { %v1282_v25 = vld [vmem:[#allocation8 + $0xf70] sm:$0xff]  ;;  %v1311_v31 = vld [vmem:[#allocation8 + $0x1058] sm:$0xff] }
 0x424   :  { %7766 = vmatpush1.bf16.msra.mxu0 %v11818_v30  ;;  %v11858_v30 = vcombine.low %v1262_v52, %v1266_v55  ;;  %v1307_v52 = vld [vmem:[#allocation8 + $0x1038] sm:$0xff] }
 0x425   :  { %8094 = vmatpush1.bf16.msra.mxu1 %v11820_v17  ;;  %7767 = vmatprep.subr.bf16.mxu0 %v11827_v23  ;;  %v11869_v17 = vcombine.high %v1271_v9, %v1275_v18  ;;  %v1278_v23 = vld [vmem:[#allocation8 + $0xf50] sm:$0xff]  ;;  %v1315_v5 = vld [vmem:[#allocation8 + $0x1078] sm:$0xff] }
 0x426   :  { %8095 = vmatprep.subr.bf16.mxu1 %v11829_v27  ;;  %v1279_v27 = vld [vmem:[#allocation8 + $0xf58] sm:$0xff]  ;;  %v11875_v1 = vcombine.high %v1278_v23, %v1282_v25  ;;  %v11874_v43 = vcombine.low %v1278_v23, %v1282_v25 }
 0x427   :  { %v11876_v44 = vcombine.low %v1279_v27, %v1283_v28  ;;  %v1323_v23 = vld [vmem:[#allocation8 + $0x10b8] sm:$0xff] }
 0x428   :  { %7768 = vmatpush1.bf16.msra.mxu0 %v11826_v45  ;;  %v11877_v45 = vcombine.high %v1279_v27, %v1283_v28  ;;  %v11908_v27 = vcombine.low %v1311_v31, %v1315_v5 }
 0x429   :  { %8096 = vmatpush1.bf16.msra.mxu1 %v11828_v38  ;;  %7769 = vmatprep.subr.bf16.mxu0 %v11835_v24  ;;  %v1286_v38 = vld [vmem:[#allocation8 + $0xf90] sm:$0xff] }
 0x42a   :  { %8097 = vmatprep.subr.bf16.mxu1 %v11837_v56  ;;  %v1290_v24 = vld [vmem:[#allocation8 + $0xfb0] sm:$0xff]  ;;  %v1287_v56 = vld [vmem:[#allocation8 + $0xf98] sm:$0xff] }
 0x42b   :  { %v11883_v53 = vcombine.high %v1286_v38, %v1290_v24  ;;  %v11882_v54 = vcombine.low %v1286_v38, %v1290_v24  ;;  %v11884_v33 = vcombine.low %v1287_v56, %v1291_v41  ;;  %v1331_v38 = vld [vmem:[#allocation8 + $0x10f8] sm:$0xff] }
 0x42c   :  { %7770 = vmatpush1.bf16.msra.mxu0 %v11834_v46  ;;  %v11885_v46 = vcombine.high %v1287_v56, %v1291_v41 }
 0x42d   :  { %8098 = vmatpush1.bf16.msra.mxu1 %v11836_v20  ;;  %7771 = vmatprep.subr.bf16.mxu0 %v11843_v19  ;;  %v1294_v20 = vld [vmem:[#allocation8 + $0xfd0] sm:$0xff] }
 0x42e   :  { %8099 = vmatprep.subr.bf16.mxu1 %v11845_v37  ;;  %v1298_v19 = vld [vmem:[#allocation8 + $0xff0] sm:$0xff]  ;;  %v1295_v37 = vld [vmem:[#allocation8 + $0xfd8] sm:$0xff] }
 0x42f   :  { %v11891_v0 = vcombine.high %v1294_v20, %v1298_v19  ;;  %v11890_v55 = vcombine.low %v1294_v20, %v1298_v19  ;;  %v11892_v58 = vcombine.low %v1295_v37, %v1299_v48 }
 0x430   :  { %7772 = vmatpush1.bf16.msra.mxu0 %v11842_v32  ;;  %v11893_v32 = vcombine.high %v1295_v37, %v1299_v48  ;;  %v1342_v48 = vld [vmem:[#allocation8 + $0x1150] sm:$0xff] }
 0x431   :  { %8100 = vmatpush1.bf16.msra.mxu1 %v11844_v50  ;;  %7773 = vmatprep.subr.bf16.mxu0 %v11851_v49  ;;  %v1302_v50 = vld [vmem:[#allocation8 + $0x1010] sm:$0xff] }
 0x432   :  { %8101 = vmatprep.subr.bf16.mxu1 %v11853_v57  ;;  %v1306_v49 = vld [vmem:[#allocation8 + $0x1030] sm:$0xff]  ;;  %v1303_v57 = vld [vmem:[#allocation8 + $0x1018] sm:$0xff] }
 0x433   :  { %v11899_v59 = vcombine.high %v1302_v50, %v1306_v49  ;;  %v11900_v9 = vcombine.low %v1303_v57, %v1307_v52 }
 0x434   :  { %7774 = vmatpush1.bf16.msra.mxu0 %v11850_v10  ;;  %v11901_v10 = vcombine.high %v1303_v57, %v1307_v52  ;;  %v1350_v52 = vld [vmem:[#allocation8 + $0x1190] sm:$0xff] }
 0x435   :  { %8102 = vmatpush1.bf16.msra.mxu1 %v11852_v61  ;;  %7775 = vmatprep.subr.bf16.mxu0 %v11859_v62  ;;  %v1310_v61 = vld [vmem:[#allocation8 + $0x1050] sm:$0xff] }
 0x436   :  { %8103 = vmatprep.subr.bf16.mxu1 %v11861_v63  ;;  %v1314_v62 = vld [vmem:[#allocation8 + $0x1070] sm:$0xff]  ;;  %v11898_v63 = vcombine.low %v1302_v50, %v1306_v49 }
 0x437   :  { %v11907_v18 = vcombine.high %v1310_v61, %v1314_v62  ;;  %v11906_v25 = vcombine.low %v1310_v61, %v1314_v62 }
 0x438   :  { %7776 = vmatpush1.bf16.msra.mxu0 %v11858_v30  ;;  %v1318_v30 = vld [vmem:[#allocation8 + $0x1090] sm:$0xff] }
 0x439   :  { %8104 = vmatpush1.bf16.msra.mxu1 %v11860_v22  ;;  %7777 = vmatprep.subr.bf16.mxu0 %v11867_v2  ;;  %v1322_v22 = vld [vmem:[#allocation8 + $0x10b0] sm:$0xff]  ;;  %v11909_v2 = vcombine.high %v1311_v31, %v1315_v5 }
 0x43a   :  { %8105 = vmatprep.subr.bf16.mxu1 %v11869_v17  ;;  %v1319_v17 = vld [vmem:[#allocation8 + $0x1098] sm:$0xff]  ;;  %v11915_v28 = vcombine.high %v1318_v30, %v1322_v22  ;;  %v11914_v24 = vcombine.low %v1318_v30, %v1322_v22  ;;  %v1358_v31 = vld [vmem:[#allocation8 + $0x11d0] sm:$0xff] }
 0x43b   :  { %v1362_v5 = vld [vmem:[#allocation8 + $0x11f0] sm:$0xff] }
 0x43c   :  { %7778 = vmatpush1.bf16.msra.mxu0 %v11866_v13  ;;  %v11917_v13 = vcombine.high %v1319_v17, %v1323_v23 }
 0x43d   :  { %8106 = vmatpush1.bf16.msra.mxu1 %v11868_v34  ;;  %7779 = vmatprep.subr.bf16.mxu0 %v11875_v1  ;;  %v1326_v34 = vld [vmem:[#allocation8 + $0x10d0] sm:$0xff] }
 0x43e   :  { %8107 = vmatprep.subr.bf16.mxu1 %v11877_v45  ;;  %v1330_v1 = vld [vmem:[#allocation8 + $0x10f0] sm:$0xff]  ;;  %v1327_v45 = vld [vmem:[#allocation8 + $0x10d8] sm:$0xff] }
 0x43f   :  { %v11923_v56 = vcombine.high %v1326_v34, %v1330_v1  ;;  %v11925_v41 = vcombine.high %v1327_v45, %v1331_v38  ;;  %v11924_v20 = vcombine.low %v1327_v45, %v1331_v38  ;;  %v1374_v38 = vld [vmem:[#allocation8 + $0x1250] sm:$0xff] }
 0x440   :  { %7780 = vmatpush1.bf16.msra.mxu0 %v11874_v43  ;;  %v1334_v43 = vld [vmem:[#allocation8 + $0x1110] sm:$0xff] }
 0x441   :  { %8108 = vmatpush1.bf16.msra.mxu1 %v11876_v44  ;;  %7781 = vmatprep.subr.bf16.mxu0 %v11883_v53  ;;  %v1338_v44 = vld [vmem:[#allocation8 + $0x1130] sm:$0xff]  ;;  %v1335_v53 = vld [vmem:[#allocation8 + $0x1118] sm:$0xff] }
 0x442   :  { %8109 = vmatprep.subr.bf16.mxu1 %v11885_v46  ;;  %v1339_v46 = vld [vmem:[#allocation8 + $0x1138] sm:$0xff]  ;;  %v11931_v19 = vcombine.high %v1334_v43, %v1338_v44 }
 0x443   :  { %v11933_v37 = vcombine.high %v1335_v53, %v1339_v46  ;;  %v11932_v50 = vcombine.low %v1335_v53, %v1339_v46  ;;  %v1382_v46 = vld [vmem:[#allocation8 + $0x1290] sm:$0xff] }
 0x444   :  { %7782 = vmatpush1.bf16.msra.mxu0 %v11882_v54  ;;  %v1346_v54 = vld [vmem:[#allocation8 + $0x1170] sm:$0xff] }
 0x445   :  { %8110 = vmatpush1.bf16.msra.mxu1 %v11884_v33  ;;  %7783 = vmatprep.subr.bf16.mxu0 %v11891_v0  ;;  %v1343_v33 = vld [vmem:[#allocation8 + $0x1158] sm:$0xff]  ;;  %v11939_v49 = vcombine.high %v1342_v48, %v1346_v54 }
 0x446   :  { %8111 = vmatprep.subr.bf16.mxu1 %v11893_v32  ;;  %v1347_v0 = vld [vmem:[#allocation8 + $0x1178] sm:$0xff]  ;;  %v11930_v32 = vcombine.low %v1334_v43, %v1338_v44 }
 0x447   :  { %v11941_v57 = vcombine.high %v1343_v33, %v1347_v0  ;;  %v11940_v61 = vcombine.low %v1343_v33, %v1347_v0  ;;  %v1390_v0 = vld [vmem:[#allocation8 + $0x12d0] sm:$0xff] }
 0x448   :  { %7784 = vmatpush1.bf16.msra.mxu0 %v11890_v55  ;;  %v1354_v55 = vld [vmem:[#allocation8 + $0x11b0] sm:$0xff] }
 0x449   :  { %8112 = vmatpush1.bf16.msra.mxu1 %v11892_v58  ;;  %7794 = vmatprep.subr.bf16.mxu0 %v11899_v59  ;;  %v1351_v58 = vld [vmem:[#allocation8 + $0x1198] sm:$0xff]  ;;  %v11947_v62 = vcombine.high %v1350_v52, %v1354_v55  ;;  %v11946_v30 = vcombine.low %v1350_v52, %v1354_v55 }
 0x44a   :  { %8122 = vmatprep.subr.bf16.mxu1 %v11901_v10  ;;  %v1355_v59 = vld [vmem:[#allocation8 + $0x11b8] sm:$0xff]  ;;  %v11938_v10 = vcombine.low %v1342_v48, %v1346_v54 }
 0x44b   :  { %7786 = vmatmul.mubr.bf16.vlgmr.msra.gmra.mrb[12].mxu0 %v14147_v3  ;;  %v11948_v22 = vcombine.low %v1351_v58, %v1355_v59 }
 0x44c   :  { %8114 = vmatmul.mubr.bf16.vlgmr.msra.gmra.mrb[28].mxu1 %v14147_v3  ;;  %7795 = vmatpush1.bf16.msra.mxu0 %v11898_v63  ;;  %v11916_v3 = vcombine.low %v1319_v17, %v1323_v23  ;;  %v11949_v63 = vcombine.high %v1351_v58, %v1355_v59  ;;  %v1366_v23 = vld [vmem:[#allocation8 + $0x1210] sm:$0xff] }
 0x44d   :  { %7826 = vmatprep.mubr.bf16.mxu0 %v14149_v4  ;;  %8123 = vmatpush1.bf16.msra.mxu1 %v11900_v9  ;;  %v1359_v9 = vld [vmem:[#allocation8 + $0x11d8] sm:$0xff]  ;;  %v1398_v59 = vld [vmem:[#allocation8 + $0x1310] sm:$0xff] }
 0x44e   :  { %8154 = vmatprep.mubr.bf16.mxu1 %v14149_v4  ;;  %7796 = vmatprep.subr.bf16.mxu0 %v11907_v18  ;;  %v11922_v4 = vcombine.low %v1326_v34, %v1330_v1  ;;  %v1363_v18 = vld [vmem:[#allocation8 + $0x11f8] sm:$0xff] }
 0x44f   :  { %8124 = vmatprep.subr.bf16.mxu1 %v11909_v2  ;;  %v11955_v2 = vcombine.high %v1358_v31, %v1362_v5  ;;  %v11957_v17 = vcombine.high %v1359_v9, %v1363_v18  ;;  %v11956_v34 = vcombine.low %v1359_v9, %v1363_v18  ;;  %v1406_v18 = vld [vmem:[#allocation8 + $0x1350] sm:$0xff] }
 0x450   :  { %7797 = vmatpush1.bf16.msra.mxu0 %v11906_v25  ;;  %v1370_v25 = vld [vmem:[#allocation8 + $0x1230] sm:$0xff] }
 0x451   :  { %8125 = vmatpush1.bf16.msra.mxu1 %v11908_v27  ;;  %7798 = vmatprep.subr.bf16.mxu0 %v11915_v28  ;;  %v1367_v27 = vld [vmem:[#allocation8 + $0x1218] sm:$0xff]  ;;  %v11963_v1 = vcombine.high %v1366_v23, %v1370_v25 }
 0x452   :  { %8126 = vmatprep.subr.bf16.mxu1 %v11917_v13  ;;  %v1371_v28 = vld [vmem:[#allocation8 + $0x1238] sm:$0xff]  ;;  %v11954_v13 = vcombine.low %v1358_v31, %v1362_v5 }
 0x453   :  { %v11965_v45 = vcombine.high %v1367_v27, %v1371_v28  ;;  %v11964_v43 = vcombine.low %v1367_v27, %v1371_v28  ;;  %v1414_v28 = vld [vmem:[#allocation8 + $0x1390] sm:$0xff] }
 0x454   :  { %7799 = vmatpush1.bf16.msra.mxu0 %v11914_v24  ;;  %v1378_v24 = vld [vmem:[#allocation8 + $0x1270] sm:$0xff] }
 0x455   :  { %8127 = vmatpush1.bf16.msra.mxu1 %v11916_v3  ;;  %7800 = vmatprep.subr.bf16.mxu0 %v11923_v56  ;;  %v1375_v3 = vld [vmem:[#allocation8 + $0x1258] sm:$0xff]  ;;  %v11971_v44 = vcombine.high %v1374_v38, %v1378_v24 }
 0x456   :  { %8128 = vmatprep.subr.bf16.mxu1 %v11925_v41  ;;  %v1379_v56 = vld [vmem:[#allocation8 + $0x1278] sm:$0xff]  ;;  %v11962_v41 = vcombine.low %v1366_v23, %v1370_v25 }
 0x457   :  { %v11973_v53 = vcombine.high %v1375_v3, %v1379_v56  ;;  %v11972_v48 = vcombine.low %v1375_v3, %v1379_v56  ;;  %v1422_v56 = vld [vmem:[#allocation8 + $0x13d0] sm:$0xff] }
 0x458   :  { %7801 = vmatpush1.bf16.msra.mxu0 %v11922_v4  ;;  %v1386_v4 = vld [vmem:[#allocation8 + $0x12b0] sm:$0xff] }
 0x459   :  { %8129 = vmatpush1.bf16.msra.mxu1 %v11924_v20  ;;  %7802 = vmatprep.subr.bf16.mxu0 %v11931_v19  ;;  %v1383_v20 = vld [vmem:[#allocation8 + $0x1298] sm:$0xff]  ;;  %v11979_v54 = vcombine.high %v1382_v46, %v1386_v4 }
 0x45a   :  { %8130 = vmatprep.subr.bf16.mxu1 %v11933_v37  ;;  %v1387_v19 = vld [vmem:[#allocation8 + $0x12b8] sm:$0xff]  ;;  %v11970_v37 = vcombine.low %v1374_v38, %v1378_v24 }
 0x45b   :  { %v11981_v33 = vcombine.high %v1383_v20, %v1387_v19  ;;  %v11980_v52 = vcombine.low %v1383_v20, %v1387_v19  ;;  %v1430_v19 = vld [vmem:[#allocation8 + $0x1410] sm:$0xff] }
 0x45c   :  { %7803 = vmatpush1.bf16.msra.mxu0 %v11930_v32  ;;  %v1394_v32 = vld [vmem:[#allocation8 + $0x12f0] sm:$0xff] }
 0x45d   :  { %8131 = vmatpush1.bf16.msra.mxu1 %v11932_v50  ;;  %7804 = vmatprep.subr.bf16.mxu0 %v11939_v49  ;;  %v1391_v50 = vld [vmem:[#allocation8 + $0x12d8] sm:$0xff]  ;;  %v11987_v55 = vcombine.high %v1390_v0, %v1394_v32 }
 0x45e   :  { %8132 = vmatprep.subr.bf16.mxu1 %v11941_v57  ;;  %v1395_v49 = vld [vmem:[#allocation8 + $0x12f8] sm:$0xff]  ;;  %v11978_v57 = vcombine.low %v1382_v46, %v1386_v4 }
 0x45f   :  { %v11989_v58 = vcombine.high %v1391_v50, %v1395_v49  ;;  %v11988_v31 = vcombine.low %v1391_v50, %v1395_v49  ;;  %v1438_v49 = vld [vmem:[#allocation8 + $0x1450] sm:$0xff] }
 0x460   :  { %7805 = vmatpush1.bf16.msra.mxu0 %v11938_v10  ;;  %v1402_v10 = vld [vmem:[#allocation8 + $0x1330] sm:$0xff] }
 0x461   :  { %8133 = vmatpush1.bf16.msra.mxu1 %v11940_v61  ;;  %7806 = vmatprep.subr.bf16.mxu0 %v11947_v62  ;;  %v1399_v61 = vld [vmem:[#allocation8 + $0x1318] sm:$0xff]  ;;  %v11995_v5 = vcombine.high %v1398_v59, %v1402_v10 }
 0x462   :  { %8134 = vmatprep.subr.bf16.mxu1 %v11949_v63  ;;  %v1403_v62 = vld [vmem:[#allocation8 + $0x1338] sm:$0xff]  ;;  %v11986_v63 = vcombine.low %v1390_v0, %v1394_v32 }
 0x463   :  { %v11997_v9 = vcombine.high %v1399_v61, %v1403_v62  ;;  %v11996_v23 = vcombine.low %v1399_v61, %v1403_v62  ;;  %v1446_v61 = vld [vmem:[#allocation8 + $0x1490] sm:$0xff] }
 0x464   :  { %7807 = vmatpush1.bf16.msra.mxu0 %v11946_v30  ;;  %v1410_v30 = vld [vmem:[#allocation8 + $0x1370] sm:$0xff] }
 0x465   :  { %8135 = vmatpush1.bf16.msra.mxu1 %v11948_v22  ;;  %7808 = vmatprep.subr.bf16.mxu0 %v11955_v2  ;;  %v1407_v22 = vld [vmem:[#allocation8 + $0x1358] sm:$0xff]  ;;  %v12003_v25 = vcombine.high %v1406_v18, %v1410_v30  ;;  %v1450_v62 = vld [vmem:[#allocation8 + $0x14b0] sm:$0xff] }
 0x466   :  { %8136 = vmatprep.subr.bf16.mxu1 %v11957_v17  ;;  %v1411_v2 = vld [vmem:[#allocation8 + $0x1378] sm:$0xff]  ;;  %v11994_v17 = vcombine.low %v1398_v59, %v1402_v10 }
 0x467   :  { %v12005_v27 = vcombine.high %v1407_v22, %v1411_v2  ;;  %v12004_v38 = vcombine.low %v1407_v22, %v1411_v2  ;;  %v1454_v2 = vld [vmem:[#allocation8 + $0x14d0] sm:$0xff] }
 0x468   :  { %7809 = vmatpush1.bf16.msra.mxu0 %v11954_v13  ;;  %v1418_v13 = vld [vmem:[#allocation8 + $0x13b0] sm:$0xff] }
 0x469   :  { %8137 = vmatpush1.bf16.msra.mxu1 %v11956_v34  ;;  %7810 = vmatprep.subr.bf16.mxu0 %v11963_v1  ;;  %v1415_v34 = vld [vmem:[#allocation8 + $0x1398] sm:$0xff]  ;;  %v12011_v24 = vcombine.high %v1414_v28, %v1418_v13 }
 0x46a   :  { %8138 = vmatprep.subr.bf16.mxu1 %v11965_v45  ;;  %v1419_v1 = vld [vmem:[#allocation8 + $0x13b8] sm:$0xff]  ;;  %v12002_v45 = vcombine.low %v1406_v18, %v1410_v30  ;;  %v12043_v30 = vcombine.high %v1446_v61, %v1450_v62 }
 0x46b   :  { %v12013_v3 = vcombine.high %v1415_v34, %v1419_v1  ;;  %v12012_v46 = vcombine.low %v1415_v34, %v1419_v1  ;;  %v1462_v34 = vld [vmem:[#allocation8 + $0x1510] sm:$0xff] }
 0x46c   :  { %7811 = vmatpush1.bf16.msra.mxu0 %v11962_v41  ;;  %v1426_v41 = vld [vmem:[#allocation8 + $0x13f0] sm:$0xff] }
 0x46d   :  { %8139 = vmatpush1.bf16.msra.mxu1 %v11964_v43  ;;  %7812 = vmatprep.subr.bf16.mxu0 %v11971_v44  ;;  %v1423_v43 = vld [vmem:[#allocation8 + $0x13d8] sm:$0xff]  ;;  %v12019_v4 = vcombine.high %v1422_v56, %v1426_v41  ;;  %v1466_v1 = vld [vmem:[#allocation8 + $0x1530] sm:$0xff] }
 0x46e   :  { %8140 = vmatprep.subr.bf16.mxu1 %v11973_v53  ;;  %v1427_v44 = vld [vmem:[#allocation8 + $0x13f8] sm:$0xff]  ;;  %v12010_v53 = vcombine.low %v1414_v28, %v1418_v13 }
 0x46f   :  { %v12021_v20 = vcombine.high %v1423_v43, %v1427_v44  ;;  %v12020_v0 = vcombine.low %v1423_v43, %v1427_v44  ;;  %v1474_v43 = vld [vmem:[#allocation8 + $0x1570] sm:$0xff]  ;;  %v1471_v44 = vld [vmem:[#allocation8 + $0x1558] sm:$0xff] }
 0x470   :  { %7813 = vmatpush1.bf16.msra.mxu0 %v11970_v37  ;;  %v1434_v37 = vld [vmem:[#allocation8 + $0x1430] sm:$0xff] }
 0x471   :  { %8141 = vmatpush1.bf16.msra.mxu1 %v11972_v48  ;;  %7814 = vmatprep.subr.bf16.mxu0 %v11979_v54  ;;  %v1431_v48 = vld [vmem:[#allocation8 + $0x1418] sm:$0xff]  ;;  %v12027_v32 = vcombine.high %v1430_v19, %v1434_v37 }
 0x472   :  { %8142 = vmatprep.subr.bf16.mxu1 %v11981_v33  ;;  %v1435_v54 = vld [vmem:[#allocation8 + $0x1438] sm:$0xff]  ;;  %v12018_v33 = vcombine.low %v1422_v56, %v1426_v41  ;;  %v1470_v41 = vld [vmem:[#allocation8 + $0x1550] sm:$0xff] }
 0x473   :  { %v12029_v50 = vcombine.high %v1431_v48, %v1435_v54  ;;  %v12028_v59 = vcombine.low %v1431_v48, %v1435_v54  ;;  %v1482_v48 = vld [vmem:[#allocation8 + $0x15b0] sm:$0xff]  ;;  %v1479_v54 = vld [vmem:[#allocation8 + $0x1598] sm:$0xff] }
 0x474   :  { %7815 = vmatpush1.bf16.msra.mxu0 %v11978_v57  ;;  %v1442_v57 = vld [vmem:[#allocation8 + $0x1470] sm:$0xff] }
 0x475   :  { %8143 = vmatpush1.bf16.msra.mxu1 %v11980_v52  ;;  %7816 = vmatprep.subr.bf16.mxu0 %v11987_v55  ;;  %v12026_v52 = vcombine.low %v1430_v19, %v1434_v37  ;;  %v1439_v55 = vld [vmem:[#allocation8 + $0x1458] sm:$0xff]  ;;  %v12035_v10 = vcombine.high %v1438_v49, %v1442_v57  ;;  %v1478_v37 = vld [vmem:[#allocation8 + $0x1590] sm:$0xff] }
 0x476   :  { %8144 = vmatprep.subr.bf16.mxu1 %v11989_v58  ;;  %v1443_v58 = vld [vmem:[#allocation8 + $0x1478] sm:$0xff] }
 0x477   :  { %v12036_v18 = vcombine.low %v1439_v55, %v1443_v58 }
 0x478   :  { %7817 = vmatpush1.bf16.msra.mxu0 %v11986_v63  ;;  %v12037_v63 = vcombine.high %v1439_v55, %v1443_v58  ;;  %v1487_v55 = vld [vmem:[#allocation8 + $0x15d8] sm:$0xff] }
 0x479   :  { %8145 = vmatpush1.bf16.msra.mxu1 %v11988_v31  ;;  %7818 = vmatprep.subr.bf16.mxu0 %v11995_v5  ;;  %v1447_v31 = vld [vmem:[#allocation8 + $0x1498] sm:$0xff] }
 0x47a   :  { %8146 = vmatprep.subr.bf16.mxu1 %v11997_v9  ;;  %v1451_v5 = vld [vmem:[#allocation8 + $0x14b8] sm:$0xff]  ;;  %v12034_v9 = vcombine.low %v1438_v49, %v1442_v57  ;;  %v1486_v57 = vld [vmem:[#allocation8 + $0x15d0] sm:$0xff] }
 0x47b   :  { %v12045_v22 = vcombine.high %v1447_v31, %v1451_v5  ;;  %v1491_v58 = vld [vmem:[#allocation8 + $0x15f8] sm:$0xff] }
 0x47c   :  { %7819 = vmatpush1.bf16.msra.mxu0 %v11994_v17  ;;  %v1458_v17 = vld [vmem:[#allocation8 + $0x14f0] sm:$0xff] }
 0x47d   :  { %8147 = vmatpush1.bf16.msra.mxu1 %v11996_v23  ;;  %7820 = vmatprep.subr.bf16.mxu0 %v12003_v25  ;;  %v1455_v23 = vld [vmem:[#allocation8 + $0x14d8] sm:$0xff]  ;;  %v12051_v28 = vcombine.high %v1454_v2, %v1458_v17 }
 0x47e   :  { %8148 = vmatprep.subr.bf16.mxu1 %v12005_v27  ;;  %v1459_v25 = vld [vmem:[#allocation8 + $0x14f8] sm:$0xff]  ;;  %v12042_v27 = vcombine.low %v1446_v61, %v1450_v62  ;;  %v12085_v62 = vcombine.high %v1487_v55, %v1491_v58 }
 0x47f   :  { %v12053_v13 = vcombine.high %v1455_v23, %v1459_v25 }
 0x480   :  { %7821 = vmatpush1.bf16.msra.mxu0 %v12002_v45  ;;  %v1463_v45 = vld [vmem:[#allocation8 + $0x1518] sm:$0xff] }
 0x481   :  { %8149 = vmatpush1.bf16.msra.mxu1 %v12004_v38  ;;  %7822 = vmatprep.subr.bf16.mxu0 %v12011_v24  ;;  %v1467_v38 = vld [vmem:[#allocation8 + $0x1538] sm:$0xff]  ;;  %v12052_v24 = vcombine.low %v1455_v23, %v1459_v25  ;;  %v1506_v23 = vld [vmem:[#allocation8 + $0x1670] sm:$0xff] }
 0x482   :  { %8150 = vmatprep.subr.bf16.mxu1 %v12013_v3  ;;  %v12059_v3 = vcombine.high %v1462_v34, %v1466_v1  ;;  %v12061_v56 = vcombine.high %v1463_v45, %v1467_v38  ;;  %v1503_v25 = vld [vmem:[#allocation8 + $0x1658] sm:$0xff] }
 0x484   :  { %7823 = vmatpush1.bf16.msra.mxu0 %v12010_v53  ;;  %v1475_v53 = vld [vmem:[#allocation8 + $0x1578] sm:$0xff] }
 0x485   :  { %8151 = vmatpush1.bf16.msra.mxu1 %v12012_v46  ;;  %7824 = vmatprep.subr.bf16.mxu0 %v12019_v4  ;;  %v12058_v46 = vcombine.low %v1462_v34, %v1466_v1  ;;  %v12060_v4 = vcombine.low %v1463_v45, %v1467_v38  ;;  %v12069_v19 = vcombine.high %v1471_v44, %v1475_v53  ;;  %v1510_v1 = vld [vmem:[#allocation8 + $0x1690] sm:$0xff]  ;;  %v1511_v38 = vld [vmem:[#allocation8 + $0x1698] sm:$0xff] }
 0x486   :  { %8152 = vmatprep.subr.bf16.mxu1 %v12021_v20  ;;  %v12067_v20 = vcombine.high %v1470_v41, %v1474_v43  ;;  %v1514_v45 = vld [vmem:[#allocation8 + $0x16b0] sm:$0xff] }
 0x488   :  { %7825 = vmatpush1.bf16.msra.mxu0 %v12018_v33  ;;  %v1483_v33 = vld [vmem:[#allocation8 + $0x15b8] sm:$0xff] }
 0x489   :  { %8153 = vmatpush1.bf16.msra.mxu1 %v12020_v0  ;;  %7835 = vmatprep.subr.bf16.mxu0 %v12027_v32  ;;  %v12066_v0 = vcombine.low %v1470_v41, %v1474_v43  ;;  %v12068_v32 = vcombine.low %v1471_v44, %v1475_v53  ;;  %v12077_v49 = vcombine.high %v1479_v54, %v1483_v33  ;;  %v1518_v43 = vld [vmem:[#allocation8 + $0x16d0] sm:$0xff]  ;;  %v1519_v53 = vld [vmem:[#allocation8 + $0x16d8] sm:$0xff] }
 0x48a   :  { %8163 = vmatprep.subr.bf16.mxu1 %v12029_v50  ;;  %v12075_v50 = vcombine.high %v1478_v37, %v1482_v48  ;;  %v1522_v44 = vld [vmem:[#allocation8 + $0x16f0] sm:$0xff] }
 0x48b   :  { %7827 = vmatmul.mubr.bf16.vlgmr.msra.gmra.mrb[12].mxu0 %v14159_v29 }
 0x48c   :  { %8155 = vmatmul.mubr.bf16.vlgmr.msra.gmra.mrb[28].mxu1 %v14159_v29  ;;  %7836 = vmatpush1.bf16.msra.mxu0 %v12026_v52  ;;  %v12044_v29 = vcombine.low %v1447_v31, %v1451_v5  ;;  %v1490_v52 = vld [vmem:[#allocation8 + $0x15f0] sm:$0xff]  ;;  %v1495_v5 = vld [vmem:[#allocation8 + $0x1618] sm:$0xff] }
 0x48d   :  { %7867 = vmatprep.mubr.bf16.mxu0 %v14161_v39  ;;  %8164 = vmatpush1.bf16.msra.mxu1 %v12028_v59  ;;  %v12074_v59 = vcombine.low %v1478_v37, %v1482_v48  ;;  %v12083_v61 = vcombine.high %v1486_v57, %v1490_v52  ;;  %v1498_v31 = vld [vmem:[#allocation8 + $0x1630] sm:$0xff] }
 0x48e   :  { %8195 = vmatprep.mubr.bf16.mxu1 %v14161_v39  ;;  %7837 = vmatprep.subr.bf16.mxu0 %v12035_v10  ;;  %v12050_v39 = vcombine.low %v1454_v2, %v1458_v17  ;;  %v12076_v10 = vcombine.low %v1479_v54, %v1483_v33  ;;  %v1502_v17 = vld [vmem:[#allocation8 + $0x1650] sm:$0xff]  ;;  %v1527_v33 = vld [vmem:[#allocation8 + $0x1718] sm:$0xff] }
 0x48f   :  { %8165 = vmatprep.subr.bf16.mxu1 %v12037_v63  ;;  %v1494_v63 = vld [vmem:[#allocation8 + $0x1610] sm:$0xff] }
 0x490   :  { %7838 = vmatpush1.bf16.msra.mxu0 %v12034_v9  ;;  %v1499_v9 = vld [vmem:[#allocation8 + $0x1638] sm:$0xff]  ;;  %v1526_v48 = vld [vmem:[#allocation8 + $0x1710] sm:$0xff] }
 0x491   :  { %8166 = vmatpush1.bf16.msra.mxu1 %v12036_v18  ;;  %7839 = vmatprep.subr.bf16.mxu0 %v12043_v30  ;;  %v12082_v18 = vcombine.low %v1486_v57, %v1490_v52  ;;  %v12084_v30 = vcombine.low %v1487_v55, %v1491_v58  ;;  %v12093_v2 = vcombine.high %v1495_v5, %v1499_v9  ;;  %v1530_v54 = vld [vmem:[#allocation8 + $0x1730] sm:$0xff]  ;;  %v1535_v58 = vld [vmem:[#allocation8 + $0x1758] sm:$0xff] }
 0x492   :  { %8167 = vmatprep.subr.bf16.mxu1 %v12045_v22  ;;  %v12091_v22 = vcombine.high %v1494_v63, %v1498_v31  ;;  %v1534_v52 = vld [vmem:[#allocation8 + $0x1750] sm:$0xff] }
 0x493   :  { %v1538_v55 = vld [vmem:[#allocation8 + $0x1770] sm:$0xff] }
 0x494   :  { %7840 = vmatpush1.bf16.msra.mxu0 %v12042_v27  ;;  %v1507_v27 = vld [vmem:[#allocation8 + $0x1678] sm:$0xff] }
 0x495   :  { %8168 = vmatpush1.bf16.msra.mxu1 %v12044_v29  ;;  %7841 = vmatprep.subr.bf16.mxu0 %v12051_v28  ;;  %v12090_v29 = vcombine.low %v1494_v63, %v1498_v31  ;;  %v12092_v28 = vcombine.low %v1495_v5, %v1499_v9  ;;  %v12101_v34 = vcombine.high %v1503_v25, %v1507_v27  ;;  %v1542_v31 = vld [vmem:[#allocation8 + $0x1790] sm:$0xff]  ;;  %v1543_v9 = vld [vmem:[#allocation8 + $0x1798] sm:$0xff] }
 0x496   :  { %8169 = vmatprep.subr.bf16.mxu1 %v12053_v13  ;;  %v12099_v13 = vcombine.high %v1502_v17, %v1506_v23  ;;  %v1546_v5 = vld [vmem:[#allocation8 + $0x17b0] sm:$0xff] }
 0x498   :  { %7842 = vmatpush1.bf16.msra.mxu0 %v12050_v39  ;;  %v1515_v39 = vld [vmem:[#allocation8 + $0x16b8] sm:$0xff] }
 0x499   :  { %8170 = vmatpush1.bf16.msra.mxu1 %v12052_v24  ;;  %7843 = vmatprep.subr.bf16.mxu0 %v12059_v3  ;;  %v12098_v24 = vcombine.low %v1502_v17, %v1506_v23  ;;  %v12100_v3 = vcombine.low %v1503_v25, %v1507_v27  ;;  %v12109_v41 = vcombine.high %v1511_v38, %v1515_v39  ;;  %v1550_v23 = vld [vmem:[#allocation8 + $0x17d0] sm:$0xff]  ;;  %v1551_v27 = vld [vmem:[#allocation8 + $0x17d8] sm:$0xff] }
 0x49a   :  { %8171 = vmatprep.subr.bf16.mxu1 %v12061_v56  ;;  %v12107_v56 = vcombine.high %v1510_v1, %v1514_v45  ;;  %v1554_v25 = vld [vmem:[#allocation8 + $0x17f0] sm:$0xff] }
 0x49c   :  { %7844 = vmatpush1.bf16.msra.mxu0 %v12058_v46  ;;  %v1523_v46 = vld [vmem:[#allocation8 + $0x16f8] sm:$0xff] }
 0x49d   :  { %8172 = vmatpush1.bf16.msra.mxu1 %v12060_v4  ;;  %7845 = vmatprep.subr.bf16.mxu0 %v12067_v20  ;;  %v12106_v4 = vcombine.low %v1510_v1, %v1514_v45  ;;  %v12108_v20 = vcombine.low %v1511_v38, %v1515_v39  ;;  %v12117_v37 = vcombine.high %v1519_v53, %v1523_v46  ;;  %v1558_v45 = vld [vmem:[#allocation8 + $0x1810] sm:$0xff]  ;;  %v1559_v39 = vld [vmem:[#allocation8 + $0x1818] sm:$0xff] }
 0x49e   :  { %8173 = vmatprep.subr.bf16.mxu1 %v12069_v19  ;;  %v12115_v19 = vcombine.high %v1518_v43, %v1522_v44  ;;  %v1562_v38 = vld [vmem:[#allocation8 + $0x1830] sm:$0xff] }
 0x4a0   :  { %7846 = vmatpush1.bf16.msra.mxu0 %v12066_v0  ;;  %v1531_v0 = vld [vmem:[#allocation8 + $0x1738] sm:$0xff] }
 0x4a1   :  { %8174 = vmatpush1.bf16.msra.mxu1 %v12068_v32  ;;  %7847 = vmatprep.subr.bf16.mxu0 %v12075_v50  ;;  %v12114_v32 = vcombine.low %v1518_v43, %v1522_v44  ;;  %v12116_v50 = vcombine.low %v1519_v53, %v1523_v46  ;;  %v12125_v57 = vcombine.high %v1527_v33, %v1531_v0  ;;  %v1566_v44 = vld [vmem:[#allocation8 + $0x1850] sm:$0xff] }
 0x4a2   :  { %8175 = vmatprep.subr.bf16.mxu1 %v12077_v49  ;;  %v12123_v49 = vcombine.high %v1526_v48, %v1530_v54  ;;  %v1570_v53 = vld [vmem:[#allocation8 + $0x1870] sm:$0xff]  ;;  %v12154_v46 = vcombine.low %v1558_v45, %v1562_v38 }
 0x4a4   :  { %7848 = vmatpush1.bf16.msra.mxu0 %v12074_v59  ;;  %v1539_v59 = vld [vmem:[#allocation8 + $0x1778] sm:$0xff] }
 0x4a5   :  { %8176 = vmatpush1.bf16.msra.mxu1 %v12076_v10  ;;  %7849 = vmatprep.subr.bf16.mxu0 %v12083_v61  ;;  %v12122_v10 = vcombine.low %v1526_v48, %v1530_v54  ;;  %v12124_v61 = vcombine.low %v1527_v33, %v1531_v0  ;;  %v12133_v63 = vcombine.high %v1535_v58, %v1539_v59  ;;  %v1574_v48 = vld [vmem:[#allocation8 + $0x1890] sm:$0xff]  ;;  %v1575_v0 = vld [vmem:[#allocation8 + $0x1898] sm:$0xff] }
 0x4a6   :  { %8177 = vmatprep.subr.bf16.mxu1 %v12085_v62  ;;  %v12131_v62 = vcombine.high %v1534_v52, %v1538_v55  ;;  %v1578_v54 = vld [vmem:[#allocation8 + $0x18b0] sm:$0xff] }
 0x4a8   :  { %7850 = vmatpush1.bf16.msra.mxu0 %v12082_v18  ;;  %v1547_v18 = vld [vmem:[#allocation8 + $0x17b8] sm:$0xff] }
 0x4a9   :  { %8178 = vmatpush1.bf16.msra.mxu1 %v12084_v30  ;;  %7851 = vmatprep.subr.bf16.mxu0 %v12091_v22  ;;  %v12130_v30 = vcombine.low %v1534_v52, %v1538_v55  ;;  %v12132_v22 = vcombine.low %v1535_v58, %v1539_v59  ;;  %v12141_v17 = vcombine.high %v1543_v9, %v1547_v18  ;;  %v1582_v55 = vld [vmem:[#allocation8 + $0x18d0] sm:$0xff]  ;;  %v1583_v59 = vld [vmem:[#allocation8 + $0x18d8] sm:$0xff] }
 0x4aa   :  { %8179 = vmatprep.subr.bf16.mxu1 %v12093_v2  ;;  %v12139_v2 = vcombine.high %v1542_v31, %v1546_v5  ;;  %v1586_v58 = vld [vmem:[#allocation8 + $0x18f0] sm:$0xff] }
 0x4ac   :  { %7852 = vmatpush1.bf16.msra.mxu0 %v12090_v29  ;;  %v1555_v29 = vld [vmem:[#allocation8 + $0x17f8] sm:$0xff] }
 0x4ad   :  { %8180 = vmatpush1.bf16.msra.mxu1 %v12092_v28  ;;  %7853 = vmatprep.subr.bf16.mxu0 %v12099_v13  ;;  %v12138_v28 = vcombine.low %v1542_v31, %v1546_v5  ;;  %v12140_v13 = vcombine.low %v1543_v9, %v1547_v18  ;;  %v12149_v1 = vcombine.high %v1551_v27, %v1555_v29  ;;  %v1590_v31 = vld [vmem:[#allocation8 + $0x1910] sm:$0xff]  ;;  %v1591_v9 = vld [vmem:[#allocation8 + $0x1918] sm:$0xff] }
 0x4ae   :  { %8181 = vmatprep.subr.bf16.mxu1 %v12101_v34  ;;  %v12147_v34 = vcombine.high %v1550_v23, %v1554_v25  ;;  %v1594_v5 = vld [vmem:[#allocation8 + $0x1930] sm:$0xff]  ;;  %v1595_v18 = vld [vmem:[#allocation8 + $0x1938] sm:$0xff] }
 0x4b0   :  { %7854 = vmatpush1.bf16.msra.mxu0 %v12098_v24  ;;  %v1563_v24 = vld [vmem:[#allocation8 + $0x1838] sm:$0xff] }
 0x4b1   :  { %8182 = vmatpush1.bf16.msra.mxu1 %v12100_v3  ;;  %7855 = vmatprep.subr.bf16.mxu0 %v12107_v56  ;;  %v12146_v3 = vcombine.low %v1550_v23, %v1554_v25  ;;  %v12148_v56 = vcombine.low %v1551_v27, %v1555_v29  ;;  %v12157_v43 = vcombine.high %v1559_v39, %v1563_v24  ;;  %v1602_v23 = vld [vmem:[#allocation8 + $0x1970] sm:$0xff]  ;;  %v1599_v25 = vld [vmem:[#allocation8 + $0x1958] sm:$0xff] }
 0x4b2   :  { %8183 = vmatprep.subr.bf16.mxu1 %v12109_v41  ;;  %v12155_v41 = vcombine.high %v1558_v45, %v1562_v38  ;;  %v1603_v27 = vld [vmem:[#allocation8 + $0x1978] sm:$0xff]  ;;  %v12186_v29 = vcombine.low %v1590_v31, %v1594_v5  ;;  %v1610_v45 = vld [vmem:[#allocation8 + $0x19b0] sm:$0xff] }
 0x4b3   :  { %v1607_v38 = vld [vmem:[#allocation8 + $0x1998] sm:$0xff] }
 0x4b4   :  { %7856 = vmatpush1.bf16.msra.mxu0 %v12106_v4  ;;  %v1567_v4 = vld [vmem:[#allocation8 + $0x1858] sm:$0xff] }
 0x4b5   :  { %8184 = vmatpush1.bf16.msra.mxu1 %v12108_v20  ;;  %7857 = vmatprep.subr.bf16.mxu0 %v12115_v19  ;;  %v1571_v20 = vld [vmem:[#allocation8 + $0x1878] sm:$0xff]  ;;  %v12156_v19 = vcombine.low %v1559_v39, %v1563_v24 }
 0x4b6   :  { %8185 = vmatprep.subr.bf16.mxu1 %v12117_v37  ;;  %v12163_v37 = vcombine.high %v1566_v44, %v1570_v53  ;;  %v12165_v33 = vcombine.high %v1567_v4, %v1571_v20  ;;  %v1611_v39 = vld [vmem:[#allocation8 + $0x19b8] sm:$0xff] }
 0x4b8   :  { %7858 = vmatpush1.bf16.msra.mxu0 %v12114_v32  ;;  %v1579_v32 = vld [vmem:[#allocation8 + $0x18b8] sm:$0xff] }
 0x4b9   :  { %8186 = vmatpush1.bf16.msra.mxu1 %v12116_v50  ;;  %7859 = vmatprep.subr.bf16.mxu0 %v12123_v49  ;;  %v12162_v50 = vcombine.low %v1566_v44, %v1570_v53  ;;  %v12164_v49 = vcombine.low %v1567_v4, %v1571_v20  ;;  %v12173_v52 = vcombine.high %v1575_v0, %v1579_v32  ;;  %v1618_v44 = vld [vmem:[#allocation8 + $0x19f0] sm:$0xff]  ;;  %v1615_v53 = vld [vmem:[#allocation8 + $0x19d8] sm:$0xff] }
 0x4ba   :  { %8187 = vmatprep.subr.bf16.mxu1 %v12125_v57  ;;  %v12171_v57 = vcombine.high %v1574_v48, %v1578_v54  ;;  %v12204_v20 = vcombine.low %v1607_v38, %v1611_v39 }
 0x4bc   :  { %7860 = vmatpush1.bf16.msra.mxu0 %v12122_v10  ;;  %v1587_v10 = vld [vmem:[#allocation8 + $0x18f8] sm:$0xff] }
 0x4bd   :  { %8188 = vmatpush1.bf16.msra.mxu1 %v12124_v61  ;;  %7861 = vmatprep.subr.bf16.mxu0 %v12131_v62  ;;  %v12170_v61 = vcombine.low %v1574_v48, %v1578_v54  ;;  %v12179_v62 = vcombine.high %v1582_v55, %v1586_v58  ;;  %v1622_v48 = vld [vmem:[#allocation8 + $0x1a10] sm:$0xff] }
 0x4be   :  { %8189 = vmatprep.subr.bf16.mxu1 %v12133_v63  ;;  %v12181_v63 = vcombine.high %v1583_v59, %v1587_v10  ;;  %v1626_v54 = vld [vmem:[#allocation8 + $0x1a30] sm:$0xff] }
 0x4c0   :  { %7862 = vmatpush1.bf16.msra.mxu0 %v12130_v30  ;;  %v12180_v30 = vcombine.low %v1583_v59, %v1587_v10  ;;  %v1635_v59 = vld [vmem:[#allocation8 + $0x1a78] sm:$0xff]  ;;  %v12218_v10 = vcombine.low %v1622_v48, %v1626_v54 }
 0x4c1   :  { %8190 = vmatpush1.bf16.msra.mxu1 %v12132_v22  ;;  %7863 = vmatprep.subr.bf16.mxu0 %v12139_v2  ;;  %v12187_v22 = vcombine.high %v1590_v31, %v1594_v5  ;;  %v12189_v2 = vcombine.high %v1591_v9, %v1595_v18  ;;  %v1642_v31 = vld [vmem:[#allocation8 + $0x1ab0] sm:$0xff]  ;;  %v1639_v5 = vld [vmem:[#allocation8 + $0x1a98] sm:$0xff] }
 0x4c2   :  { %8191 = vmatprep.subr.bf16.mxu1 %v12141_v17  ;;  %v1598_v17 = vld [vmem:[#allocation8 + $0x1950] sm:$0xff] }
 0x4c3   :  { %v12194_v24 = vcombine.low %v1598_v17, %v1602_v23 }
 0x4c4   :  { %7864 = vmatpush1.bf16.msra.mxu0 %v12138_v28  ;;  %v12188_v28 = vcombine.low %v1591_v9, %v1595_v18  ;;  %v1643_v9 = vld [vmem:[#allocation8 + $0x1ab8] sm:$0xff] }
 0x4c5   :  { %8192 = vmatpush1.bf16.msra.mxu1 %v12140_v13  ;;  %7865 = vmatprep.subr.bf16.mxu0 %v12147_v34  ;;  %v12195_v13 = vcombine.high %v1598_v17, %v1602_v23  ;;  %v12197_v34 = vcombine.high %v1599_v25, %v1603_v27  ;;  %v1650_v17 = vld [vmem:[#allocation8 + $0x1af0] sm:$0xff]  ;;  %v1647_v23 = vld [vmem:[#allocation8 + $0x1ad8] sm:$0xff] }
 0x4c6   :  { %8193 = vmatprep.subr.bf16.mxu1 %v12149_v1  ;;  %v1606_v1 = vld [vmem:[#allocation8 + $0x1990] sm:$0xff] }
 0x4c7   :  { %v12202_v4 = vcombine.low %v1606_v1, %v1610_v45 }
 0x4c8   :  { %7866 = vmatpush1.bf16.msra.mxu0 %v12146_v3  ;;  %v12196_v3 = vcombine.low %v1599_v25, %v1603_v27  ;;  %v1651_v25 = vld [vmem:[#allocation8 + $0x1af8] sm:$0xff] }
 0x4c9   :  { %8194 = vmatpush1.bf16.msra.mxu1 %v12148_v56  ;;  %7876 = vmatprep.subr.bf16.mxu0 %v12155_v41  ;;  %v12203_v56 = vcombine.high %v1606_v1, %v1610_v45  ;;  %v12205_v41 = vcombine.high %v1607_v38, %v1611_v39  ;;  %v1658_v1 = vld [vmem:[#allocation8 + $0x1b30] sm:$0xff]  ;;  %v1655_v45 = vld [vmem:[#allocation8 + $0x1b18] sm:$0xff] }
 0x4ca   :  { %8204 = vmatprep.subr.bf16.mxu1 %v12157_v43  ;;  %v1614_v43 = vld [vmem:[#allocation8 + $0x19d0] sm:$0xff]  ;;  %v1659_v38 = vld [vmem:[#allocation8 + $0x1b38] sm:$0xff] }
 0x4cb   :  { %7868 = vmatmul.mubr.bf16.vlgmr.msra.gmra.mrb[12].mxu0 %v14169_v47 }
 0x4cc   :  { %8196 = vmatmul.mubr.bf16.vlgmr.msra.gmra.mrb[28].mxu1 %v14169_v47  ;;  %7877 = vmatpush1.bf16.msra.mxu0 %v12154_v46  ;;  %v12172_v47 = vcombine.low %v1575_v0, %v1579_v32  ;;  %v1619_v46 = vld [vmem:[#allocation8 + $0x19f8] sm:$0xff]  ;;  %v12210_v32 = vcombine.low %v1614_v43, %v1618_v44 }
 0x4cd   :  { %7908 = vmatprep.mubr.bf16.mxu0 %v14171_v51  ;;  %8205 = vmatpush1.bf16.msra.mxu1 %v12156_v19  ;;  %v12211_v19 = vcombine.high %v1614_v43, %v1618_v44  ;;  %v1627_v0 = vld [vmem:[#allocation8 + $0x1a38] sm:$0xff]  ;;  %v1666_v43 = vld [vmem:[#allocation8 + $0x1b70] sm:$0xff] }
 0x4ce   :  { %8236 = vmatprep.mubr.bf16.mxu1 %v14171_v51  ;;  %7878 = vmatprep.subr.bf16.mxu0 %v12163_v37  ;;  %v12178_v51 = vcombine.low %v1582_v55, %v1586_v58  ;;  %v12213_v37 = vcombine.high %v1615_v53, %v1619_v46  ;;  %v1634_v55 = vld [vmem:[#allocation8 + $0x1a70] sm:$0xff]  ;;  %v1631_v58 = vld [vmem:[#allocation8 + $0x1a58] sm:$0xff] }
 0x4cf   :  { %8206 = vmatprep.subr.bf16.mxu1 %v12165_v33  ;;  %v1623_v33 = vld [vmem:[#allocation8 + $0x1a18] sm:$0xff] }
 0x4d0   :  { %7879 = vmatpush1.bf16.msra.mxu0 %v12162_v50  ;;  %v12212_v50 = vcombine.low %v1615_v53, %v1619_v46  ;;  %v1663_v44 = vld [vmem:[#allocation8 + $0x1b58] sm:$0xff] }
 0x4d1   :  { %8207 = vmatpush1.bf16.msra.mxu1 %v12164_v49  ;;  %7880 = vmatprep.subr.bf16.mxu0 %v12171_v57  ;;  %v12219_v49 = vcombine.high %v1622_v48, %v1626_v54  ;;  %v12221_v57 = vcombine.high %v1623_v33, %v1627_v0  ;;  %v1667_v53 = vld [vmem:[#allocation8 + $0x1b78] sm:$0xff]  ;;  %v1674_v48 = vld [vmem:[#allocation8 + $0x1bb0] sm:$0xff] }
 0x4d2   :  { %8208 = vmatprep.subr.bf16.mxu1 %v12173_v52  ;;  %v1630_v52 = vld [vmem:[#allocation8 + $0x1a50] sm:$0xff]  ;;  %v1671_v54 = vld [vmem:[#allocation8 + $0x1b98] sm:$0xff] }
 0x4d3   :  { %v12226_v18 = vcombine.low %v1630_v52, %v1634_v55 }
 0x4d4   :  { %7881 = vmatpush1.bf16.msra.mxu0 %v12170_v61  ;;  %v12220_v61 = vcombine.low %v1623_v33, %v1627_v0  ;;  %v1675_v33 = vld [vmem:[#allocation8 + $0x1bb8] sm:$0xff] }
 0x4d5   :  { %8209 = vmatpush1.bf16.msra.mxu1 %v12172_v47  ;;  %7882 = vmatprep.subr.bf16.mxu0 %v12179_v62  ;;  %v12227_v47 = vcombine.high %v1630_v52, %v1634_v55  ;;  %v12229_v62 = vcombine.high %v1631_v58, %v1635_v59  ;;  %v1682_v52 = vld [vmem:[#allocation8 + $0x1bf0] sm:$0xff]  ;;  %v1679_v55 = vld [vmem:[#allocation8 + $0x1bd8] sm:$0xff] }
 0x4d6   :  { %8210 = vmatprep.subr.bf16.mxu1 %v12181_v63  ;;  %v1638_v63 = vld [vmem:[#allocation8 + $0x1a90] sm:$0xff] }
 0x4d7   :  { %v12234_v27 = vcombine.low %v1638_v63, %v1642_v31 }
 0x4d8   :  { %7883 = vmatpush1.bf16.msra.mxu0 %v12178_v51  ;;  %v12228_v51 = vcombine.low %v1631_v58, %v1635_v59  ;;  %v1683_v58 = vld [vmem:[#allocation8 + $0x1bf8] sm:$0xff] }
 0x4d9   :  { %8211 = vmatpush1.bf16.msra.mxu1 %v12180_v30  ;;  %7884 = vmatprep.subr.bf16.mxu0 %v12187_v22  ;;  %v12235_v30 = vcombine.high %v1638_v63, %v1642_v31  ;;  %v12237_v22 = vcombine.high %v1639_v5, %v1643_v9  ;;  %v1690_v63 = vld [vmem:[#allocation8 + $0x1c30] sm:$0xff]  ;;  %v1687_v31 = vld [vmem:[#allocation8 + $0x1c18] sm:$0xff] }
 0x4da   :  { %8212 = vmatprep.subr.bf16.mxu1 %v12189_v2  ;;  %v1646_v2 = vld [vmem:[#allocation8 + $0x1ad0] sm:$0xff] }
 0x4db   :  { %v12242_v39 = vcombine.low %v1646_v2, %v1650_v17 }
 0x4dc   :  { %7885 = vmatpush1.bf16.msra.mxu0 %v12186_v29  ;;  %v12236_v29 = vcombine.low %v1639_v5, %v1643_v9  ;;  %v1691_v5 = vld [vmem:[#allocation8 + $0x1c38] sm:$0xff] }
 0x4dd   :  { %8213 = vmatpush1.bf16.msra.mxu1 %v12188_v28  ;;  %7886 = vmatprep.subr.bf16.mxu0 %v12195_v13  ;;  %v12243_v28 = vcombine.high %v1646_v2, %v1650_v17  ;;  %v12245_v13 = vcombine.high %v1647_v23, %v1651_v25  ;;  %v1698_v2 = vld [vmem:[#allocation8 + $0x1c70] sm:$0xff] }
 0x4de   :  { %8214 = vmatprep.subr.bf16.mxu1 %v12197_v34  ;;  %v1654_v34 = vld [vmem:[#allocation8 + $0x1b10] sm:$0xff] }
 0x4df   :  { %v12250_v46 = vcombine.low %v1654_v34, %v1658_v1 }
 0x4e0   :  { %7887 = vmatpush1.bf16.msra.mxu0 %v12194_v24  ;;  %v12244_v24 = vcombine.low %v1647_v23, %v1651_v25  ;;  %v1695_v23 = vld [vmem:[#allocation8 + $0x1c58] sm:$0xff] }
 0x4e1   :  { %8215 = vmatpush1.bf16.msra.mxu1 %v12196_v3  ;;  %7888 = vmatprep.subr.bf16.mxu0 %v12203_v56  ;;  %v12251_v3 = vcombine.high %v1654_v34, %v1658_v1  ;;  %v12253_v56 = vcombine.high %v1655_v45, %v1659_v38  ;;  %v1699_v25 = vld [vmem:[#allocation8 + $0x1c78] sm:$0xff] }
 0x4e2   :  { %8216 = vmatprep.subr.bf16.mxu1 %v12205_v41  ;;  %v1662_v41 = vld [vmem:[#allocation8 + $0x1b50] sm:$0xff]  ;;  %v12293_v34 = vcombine.high %v1695_v23, %v1699_v25  ;;  %v1703_v1 = vld [vmem:[#allocation8 + $0x1c98] sm:$0xff] }
 0x4e3   :  { %v12258_v0 = vcombine.low %v1662_v41, %v1666_v43 }
 0x4e4   :  { %7889 = vmatpush1.bf16.msra.mxu0 %v12202_v4  ;;  %v12252_v4 = vcombine.low %v1655_v45, %v1659_v38  ;;  %v1707_v45 = vld [vmem:[#allocation8 + $0x1cb8] sm:$0xff] }
 0x4e5   :  { %8217 = vmatpush1.bf16.msra.mxu1 %v12204_v20  ;;  %7890 = vmatprep.subr.bf16.mxu0 %v12211_v19  ;;  %v12259_v20 = vcombine.high %v1662_v41, %v1666_v43  ;;  %v12261_v19 = vcombine.high %v1663_v44, %v1667_v53  ;;  %v1714_v41 = vld [vmem:[#allocation8 + $0x1cf0] sm:$0xff]  ;;  %v1711_v43 = vld [vmem:[#allocation8 + $0x1cd8] sm:$0xff] }
 0x4e6   :  { %8218 = vmatprep.subr.bf16.mxu1 %v12213_v37  ;;  %v1670_v37 = vld [vmem:[#allocation8 + $0x1b90] sm:$0xff] }
 0x4e7   :  { %v12266_v59 = vcombine.low %v1670_v37, %v1674_v48 }
 0x4e8   :  { %7891 = vmatpush1.bf16.msra.mxu0 %v12210_v32  ;;  %v12260_v32 = vcombine.low %v1663_v44, %v1667_v53  ;;  %v1715_v44 = vld [vmem:[#allocation8 + $0x1cf8] sm:$0xff] }
 0x4e9   :  { %8219 = vmatpush1.bf16.msra.mxu1 %v12212_v50  ;;  %7892 = vmatprep.subr.bf16.mxu0 %v12219_v49  ;;  %v12267_v50 = vcombine.high %v1670_v37, %v1674_v48  ;;  %v12269_v49 = vcombine.high %v1671_v54, %v1675_v33  ;;  %v1719_v37 = vld [vmem:[#allocation8 + $0x1d18] sm:$0xff] }
 0x4ea   :  { %8220 = vmatprep.subr.bf16.mxu1 %v12221_v57  ;;  %v1678_v57 = vld [vmem:[#allocation8 + $0x1bd0] sm:$0xff]  ;;  %v1723_v48 = vld [vmem:[#allocation8 + $0x1d38] sm:$0xff] }
 0x4eb   :  { %v12274_v9 = vcombine.low %v1678_v57, %v1682_v52 }
 0x4ec   :  { %7893 = vmatpush1.bf16.msra.mxu0 %v12218_v10  ;;  %v12268_v10 = vcombine.low %v1671_v54, %v1675_v33  ;;  %v12308_v54 = vcombine.low %v1711_v43, %v1715_v44 }
 0x4ed   :  { %8221 = vmatpush1.bf16.msra.mxu1 %v12220_v61  ;;  %7894 = vmatprep.subr.bf16.mxu0 %v12227_v47  ;;  %v12275_v61 = vcombine.high %v1678_v57, %v1682_v52  ;;  %v12277_v47 = vcombine.high %v1679_v55, %v1683_v58  ;;  %v1731_v57 = vld [vmem:[#allocation8 + $0x1d78] sm:$0xff] }
 0x4ee   :  { %8222 = vmatprep.subr.bf16.mxu1 %v12229_v62  ;;  %v1686_v62 = vld [vmem:[#allocation8 + $0x1c10] sm:$0xff] }
 0x4ef   :  { %v12282_v17 = vcombine.low %v1686_v62, %v1690_v63 }
 0x4f0   :  { %7895 = vmatpush1.bf16.msra.mxu0 %v12226_v18  ;;  %v12276_v18 = vcombine.low %v1679_v55, %v1683_v58  ;;  %v12316_v55 = vcombine.low %v1719_v37, %v1723_v48 }
 0x4f1   :  { %8223 = vmatpush1.bf16.msra.mxu1 %v12228_v51  ;;  %7896 = vmatprep.subr.bf16.mxu0 %v12235_v30  ;;  %v12283_v51 = vcombine.high %v1686_v62, %v1690_v63  ;;  %v12285_v30 = vcombine.high %v1687_v31, %v1691_v5  ;;  %v1739_v62 = vld [vmem:[#allocation8 + $0x1db8] sm:$0xff] }
 0x4f2   :  { %8224 = vmatprep.subr.bf16.mxu1 %v12237_v22  ;;  %v1694_v22 = vld [vmem:[#allocation8 + $0x1c50] sm:$0xff] }
 0x4f3   :  { %v12290_v38 = vcombine.low %v1694_v22, %v1698_v2 }
 0x4f4   :  { %7897 = vmatpush1.bf16.msra.mxu0 %v12234_v27  ;;  %v12284_v27 = vcombine.low %v1687_v31, %v1691_v5 }
 0x4f5   :  { %8225 = vmatpush1.bf16.msra.mxu1 %v12236_v29  ;;  %7898 = vmatprep.subr.bf16.mxu0 %v12243_v28  ;;  %v12291_v29 = vcombine.high %v1694_v22, %v1698_v2  ;;  %v1702_v28 = vld [vmem:[#allocation8 + $0x1c90] sm:$0xff]  ;;  %v1747_v22 = vld [vmem:[#allocation8 + $0x1df8] sm:$0xff] }
 0x4f6   :  { %8226 = vmatprep.subr.bf16.mxu1 %v12245_v13  ;;  %v1706_v13 = vld [vmem:[#allocation8 + $0x1cb0] sm:$0xff] }
 0x4f7   :  { %v12298_v53 = vcombine.low %v1702_v28, %v1706_v13 }
 0x4f8   :  { %7899 = vmatpush1.bf16.msra.mxu0 %v12242_v39  ;;  %v12292_v39 = vcombine.low %v1695_v23, %v1699_v25 }
 0x4f9   :  { %8227 = vmatpush1.bf16.msra.mxu1 %v12244_v24  ;;  %7900 = vmatprep.subr.bf16.mxu0 %v12251_v3  ;;  %v12299_v24 = vcombine.high %v1702_v28, %v1706_v13  ;;  %v12301_v3 = vcombine.high %v1703_v1, %v1707_v45  ;;  %v1751_v28 = vld [vmem:[#allocation8 + $0x1e18] sm:$0xff] }
 0x4fa   :  { %8228 = vmatprep.subr.bf16.mxu1 %v12253_v56  ;;  %v1710_v56 = vld [vmem:[#allocation8 + $0x1cd0] sm:$0xff]  ;;  %v1755_v13 = vld [vmem:[#allocation8 + $0x1e38] sm:$0xff] }
 0x4fc   :  { %7901 = vmatpush1.bf16.msra.mxu0 %v12250_v46  ;;  %v12307_v46 = vcombine.high %v1710_v56, %v1714_v41 }
 0x4fd   :  { %8229 = vmatpush1.bf16.msra.mxu1 %v12252_v4  ;;  %7902 = vmatprep.subr.bf16.mxu0 %v12259_v20  ;;  %v12309_v4 = vcombine.high %v1711_v43, %v1715_v44  ;;  %v1718_v20 = vld [vmem:[#allocation8 + $0x1d10] sm:$0xff]  ;;  %v12348_v43 = vcombine.low %v1751_v28, %v1755_v13 }
 0x4fe   :  { %8230 = vmatprep.subr.bf16.mxu1 %v12261_v19  ;;  %v1722_v19 = vld [vmem:[#allocation8 + $0x1d30] sm:$0xff] }
 0x4ff   :  { %v12315_v33 = vcombine.high %v1718_v20, %v1722_v19  ;;  %v12314_v52 = vcombine.low %v1718_v20, %v1722_v19  ;;  %v1771_v20 = vld [vmem:[#allocation8 + $0x1eb8] sm:$0xff] }
 0x500   :  { %7903 = vmatpush1.bf16.msra.mxu0 %v12258_v0  ;;  %v12317_v0 = vcombine.high %v1719_v37, %v1723_v48 }
 0x501   :  { %8231 = vmatpush1.bf16.msra.mxu1 %v12260_v32  ;;  %7904 = vmatprep.subr.bf16.mxu0 %v12267_v50  ;;  %v1726_v32 = vld [vmem:[#allocation8 + $0x1d50] sm:$0xff] }
 0x502   :  { %8232 = vmatprep.subr.bf16.mxu1 %v12269_v49  ;;  %v1730_v50 = vld [vmem:[#allocation8 + $0x1d70] sm:$0xff]  ;;  %v1727_v49 = vld [vmem:[#allocation8 + $0x1d58] sm:$0xff] }
 0x503   :  { %v12323_v58 = vcombine.high %v1726_v32, %v1730_v50  ;;  %v12322_v63 = vcombine.low %v1726_v32, %v1730_v50  ;;  %v12324_v31 = vcombine.low %v1727_v49, %v1731_v57  ;;  %v1779_v32 = vld [vmem:[#allocation8 + $0x1ef8] sm:$0xff] }
 0x504   :  { %7905 = vmatpush1.bf16.msra.mxu0 %v12266_v59  ;;  %v12325_v59 = vcombine.high %v1727_v49, %v1731_v57 }
 0x505   :  { %8233 = vmatpush1.bf16.msra.mxu1 %v12268_v10  ;;  %7906 = vmatprep.subr.bf16.mxu0 %v12275_v61  ;;  %v1734_v10 = vld [vmem:[#allocation8 + $0x1d90] sm:$0xff] }
 0x506   :  { %8234 = vmatprep.subr.bf16.mxu1 %v12277_v47  ;;  %v1738_v61 = vld [vmem:[#allocation8 + $0x1db0] sm:$0xff]  ;;  %v1735_v47 = vld [vmem:[#allocation8 + $0x1d98] sm:$0xff] }
 0x507   :  { %v12331_v5 = vcombine.high %v1734_v10, %v1738_v61  ;;  %v12330_v2 = vcombine.low %v1734_v10, %v1738_v61  ;;  %v1787_v10 = vld [vmem:[#allocation8 + $0x1f38] sm:$0xff] }
 0x508   :  { %7907 = vmatpush1.bf16.msra.mxu0 %v12274_v9  ;;  %v12333_v9 = vcombine.high %v1735_v47, %v1739_v62 }
 0x509   :  { %8235 = vmatpush1.bf16.msra.mxu1 %v12276_v18  ;;  %7917 = vmatprep.subr.bf16.mxu0 %v12283_v51  ;;  %v1742_v18 = vld [vmem:[#allocation8 + $0x1dd0] sm:$0xff] }
 0x50a   :  { %8245 = vmatprep.subr.bf16.mxu1 %v12285_v30  ;;  %v1746_v51 = vld [vmem:[#allocation8 + $0x1df0] sm:$0xff]  ;;  %v1743_v30 = vld [vmem:[#allocation8 + $0x1dd8] sm:$0xff] }
 0x50b   :  { %7909 = vmatmul.mubr.bf16.vlgmr.msra.gmra.mrb[12].mxu0 %v14179_v60  ;;  %v12339_v23 = vcombine.high %v1742_v18, %v1746_v51  ;;  %v12341_v25 = vcombine.high %v1743_v30, %v1747_v22 }
 0x50c   :  { %8237 = vmatmul.mubr.bf16.vlgmr.msra.gmra.mrb[28].mxu1 %v14179_v60  ;;  %7918 = vmatpush1.bf16.msra.mxu0 %v12282_v17  ;;  %v12300_v60 = vcombine.low %v1703_v1, %v1707_v45  ;;  %v12332_v17 = vcombine.low %v1735_v47, %v1739_v62  ;;  %v12340_v1 = vcombine.low %v1743_v30, %v1747_v22 }
 0x50d   :  { %7949 = vmatprep.mubr.bf16.mxu0 %v14181_v15  ;;  %8246 = vmatpush1.bf16.msra.mxu1 %v12284_v27  ;;  %v1750_v27 = vld [vmem:[#allocation8 + $0x1e10] sm:$0xff] }
 0x50e   :  { %8277 = vmatprep.mubr.bf16.mxu1 %v14181_v15  ;;  %7919 = vmatprep.subr.bf16.mxu0 %v12291_v29  ;;  %v12306_v15 = vcombine.low %v1710_v56, %v1714_v41  ;;  %v1754_v29 = vld [vmem:[#allocation8 + $0x1e30] sm:$0xff]  ;;  %v1763_v56 = vld [vmem:[#allocation8 + $0x1e78] sm:$0xff] }
 0x50f   :  { %8247 = vmatprep.subr.bf16.mxu1 %v12293_v34  ;;  %v12338_v34 = vcombine.low %v1742_v18, %v1746_v51  ;;  %v12347_v45 = vcombine.high %v1750_v27, %v1754_v29  ;;  %v12346_v41 = vcombine.low %v1750_v27, %v1754_v29  ;;  %v1795_v18 = vld [vmem:[#allocation8 + $0x1f78] sm:$0xff]  ;;  %v14230_v29 = vld [vmem:[#allocation10] sm:$0xff] }
 0x510   :  { %7920 = vmatpush1.bf16.msra.mxu0 %v12290_v38  ;;  %v12349_v38 = vcombine.high %v1751_v28, %v1755_v13  ;;  %v1803_v27 = vld [vmem:[#allocation8 + $0x1fb8] sm:$0xff] }
 0x511   :  { %8248 = vmatpush1.bf16.msra.mxu1 %v12292_v39  ;;  %7921 = vmatprep.subr.bf16.mxu0 %v12299_v24  ;;  %v1758_v39 = vld [vmem:[#allocation8 + $0x1e50] sm:$0xff] }
 0x512   :  { %8249 = vmatprep.subr.bf16.mxu1 %v12301_v3  ;;  %v1762_v24 = vld [vmem:[#allocation8 + $0x1e70] sm:$0xff]  ;;  %v1759_v3 = vld [vmem:[#allocation8 + $0x1e58] sm:$0xff] }
 0x513   :  { %v12355_v44 = vcombine.high %v1758_v39, %v1762_v24  ;;  %v12354_v19 = vcombine.low %v1758_v39, %v1762_v24  ;;  %v12356_v37 = vcombine.low %v1759_v3, %v1763_v56  ;;  %v1821_v39 = vrot.slane %v14230_v29, %v14034_v16  ;;  %v1807_v24 = vld [vmem:[#allocation8 + $0x1fd8] sm:$0xff] }
 0x514   :  { %7922 = vmatpush1.bf16.msra.mxu0 %v12298_v53  ;;  %v12357_v53 = vcombine.high %v1759_v3, %v1763_v56  ;;  %v1811_v3 = vld [vmem:[#allocation8 + $0x1ff8] sm:$0xff] }
 0x515   :  { %8250 = vmatpush1.bf16.msra.mxu1 %v12300_v60  ;;  %7923 = vmatprep.subr.bf16.mxu0 %v12307_v46  ;;  %v1766_v60 = vld [vmem:[#allocation8 + $0x1e90] sm:$0xff] }
 0x516   :  { %8251 = vmatprep.subr.bf16.mxu1 %v12309_v4  ;;  %v1770_v46 = vld [vmem:[#allocation8 + $0x1eb0] sm:$0xff]  ;;  %v1767_v4 = vld [vmem:[#allocation8 + $0x1e98] sm:$0xff] }
 0x517   :  { %v12363_v48 = vcombine.high %v1766_v60, %v1770_v46  ;;  %v12362_v50 = vcombine.low %v1766_v60, %v1770_v46  ;;  %v12364_v49 = vcombine.low %v1767_v4, %v1771_v20  ;;  %v12404_v46 = vcombine.low %v1807_v24, %v1811_v3 }
 0x518   :  { %7924 = vmatpush1.bf16.msra.mxu0 %v12306_v15  ;;  %v12365_v15 = vcombine.high %v1767_v4, %v1771_v20  ;;  %v13098_v4 = vld [vmem:[#allocation11 + $0x4] ss:$20 sps:$4 sm:$0xff]   ;;  %v13101_v20 = vld [vmem:[#allocation11 + $0xc] ss:$20 sps:$4 sm:$0xff]  }
 0x519   :  { %8252 = vmatpush1.bf16.msra.mxu1 %v12308_v54  ;;  %7925 = vmatprep.subr.bf16.mxu0 %v12315_v33  ;;  %v1774_v54 = vld [vmem:[#allocation8 + $0x1ed0] sm:$0xff] }
 0x51a   :  { %8253 = vmatprep.subr.bf16.mxu1 %v12317_v0  ;;  %v1778_v33 = vld [vmem:[#allocation8 + $0x1ef0] sm:$0xff]  ;;  %v1775_v0 = vld [vmem:[#allocation8 + $0x1ed8] sm:$0xff] }
 0x51b   :  { %v12371_v57 = vcombine.high %v1774_v54, %v1778_v33  ;;  %v12370_v61 = vcombine.low %v1774_v54, %v1778_v33  ;;  %v12372_v47 = vcombine.low %v1775_v0, %v1779_v32  ;;  %v13102_v33 = vld [vmem:[#allocation11 + $0x28] ss:$20 sps:$4 sm:$0xff]  }
 0x51c   :  { %7926 = vmatpush1.bf16.msra.mxu0 %v12314_v52  ;;  %v12373_v52 = vcombine.high %v1775_v0, %v1779_v32  ;;  %v13105_v0 = vld [vmem:[#allocation11 + $0x30] ss:$20 sps:$4 sm:$0xff]   ;;  %v13110_v32 = vld [vmem:[#allocation11 + $0x54] ss:$20 sps:$4 sm:$0xff]  }
 0x51d   :  { %8254 = vmatpush1.bf16.msra.mxu1 %v12316_v55  ;;  %7927 = vmatprep.subr.bf16.mxu0 %v12323_v58  ;;  %v1782_v55 = vld [vmem:[#allocation8 + $0x1f10] sm:$0xff] }
 0x51e   :  { %8255 = vmatprep.subr.bf16.mxu1 %v12325_v59  ;;  %v1786_v58 = vld [vmem:[#allocation8 + $0x1f30] sm:$0xff]  ;;  %v1783_v59 = vld [vmem:[#allocation8 + $0x1f18] sm:$0xff] }
 0x51f   :  { %v12379_v62 = vcombine.high %v1782_v55, %v1786_v58  ;;  %v12378_v51 = vcombine.low %v1782_v55, %v1786_v58  ;;  %v12380_v30 = vcombine.low %v1783_v59, %v1787_v10  ;;  %v13114_v55 = vld [vmem:[#allocation11 + $0x78] ss:$20 sps:$4 sm:$0xff]   ;;  %v13117_v58 = vld [vmem:[#allocation11 + $0x80] ss:$20 sps:$4 sm:$0xff]  }
 0x520   :  { %7928 = vmatpush1.bf16.msra.mxu0 %v12322_v63  ;;  %v12381_v63 = vcombine.high %v1783_v59, %v1787_v10  ;;  %v13122_v59 = vld [vmem:[#allocation11 + $0xa4] ss:$20 sps:$4 sm:$0xff]   ;;  %v13125_v10 = vld [vmem:[#allocation11 + $0xac] ss:$20 sps:$4 sm:$0xff]  }
 0x521   :  { %8256 = vmatpush1.bf16.msra.mxu1 %v12324_v31  ;;  %7929 = vmatprep.subr.bf16.mxu0 %v12331_v5  ;;  %v1790_v31 = vld [vmem:[#allocation8 + $0x1f50] sm:$0xff] }
 0x522   :  { %8257 = vmatprep.subr.bf16.mxu1 %v12333_v9  ;;  %v1794_v5 = vld [vmem:[#allocation8 + $0x1f70] sm:$0xff]  ;;  %v1791_v9 = vld [vmem:[#allocation8 + $0x1f58] sm:$0xff] }
 0x523   :  { %v12387_v22 = vcombine.high %v1790_v31, %v1794_v5  ;;  %v12386_v28 = vcombine.low %v1790_v31, %v1794_v5  ;;  %v12388_v13 = vcombine.low %v1791_v9, %v1795_v18  ;;  %v13126_v31 = vld [vmem:[#allocation11 + $0xc8] ss:$20 sps:$4 sm:$0xff]   ;;  %v13129_v5 = vld [vmem:[#allocation11 + $0xd0] ss:$20 sps:$4 sm:$0xff]  }
 0x524   :  { %7930 = vmatpush1.bf16.msra.mxu0 %v12330_v2  ;;  %v12389_v2 = vcombine.high %v1791_v9, %v1795_v18  ;;  %v13134_v9 = vld [vmem:[#allocation11 + $0xf4] ss:$20 sps:$4 sm:$0xff]   ;;  %v13137_v18 = vld [vmem:[#allocation11 + $0xfc] ss:$20 sps:$4 sm:$0xff]  }
 0x525   :  { %8258 = vmatpush1.bf16.msra.mxu1 %v12332_v17  ;;  %7931 = vmatprep.subr.bf16.mxu0 %v12339_v23  ;;  %v1798_v17 = vld [vmem:[#allocation8 + $0x1f90] sm:$0xff] }
 0x526   :  { %8259 = vmatprep.subr.bf16.mxu1 %v12341_v25  ;;  %v1802_v23 = vld [vmem:[#allocation8 + $0x1fb0] sm:$0xff]  ;;  %v1799_v25 = vld [vmem:[#allocation8 + $0x1f98] sm:$0xff] }
 0x527   :  { %v12394_v56 = vcombine.low %v1798_v17, %v1802_v23 }
 0x528   :  { %7932 = vmatpush1.bf16.msra.mxu0 %v12338_v34  ;;  %v12395_v34 = vcombine.high %v1798_v17, %v1802_v23  ;;  %v13138_v17 = vld [vmem:[#allocation11 + $0x118] ss:$20 sps:$4 sm:$0xff]   ;;  %v13141_v23 = vld [vmem:[#allocation11 + $0x120] ss:$20 sps:$4 sm:$0xff]  }
 0x529   :  { %8260 = vmatpush1.bf16.msra.mxu1 %v12340_v1  ;;  %7933 = vmatprep.subr.bf16.mxu0 %v12347_v45  ;;  %v12397_v1 = vcombine.high %v1799_v25, %v1803_v27  ;;  %v1806_v45 = vld [vmem:[#allocation8 + $0x1fd0] sm:$0xff] }
 0x52a   :  { %8261 = vmatprep.subr.bf16.mxu1 %v12349_v38  ;;  %v1810_v38 = vld [vmem:[#allocation8 + $0x1ff0] sm:$0xff] }
 0x52b   :  { %v12402_v60 = vcombine.low %v1806_v45, %v1810_v38 }
 0x52c   :  { %7934 = vmatpush1.bf16.msra.mxu0 %v12346_v41  ;;  %v12396_v41 = vcombine.low %v1799_v25, %v1803_v27  ;;  %v13146_v25 = vld [vmem:[#allocation11 + $0x144] ss:$20 sps:$4 sm:$0xff]   ;;  %v13149_v27 = vld [vmem:[#allocation11 + $0x14c] ss:$20 sps:$4 sm:$0xff]  }
 0x52d   :  { %8262 = vmatpush1.bf16.msra.mxu1 %v12348_v43  ;;  %7935 = vmatprep.subr.bf16.mxu0 %v12355_v44  ;;  %v12403_v43 = vcombine.high %v1806_v45, %v1810_v38  ;;  %v12405_v44 = vcombine.high %v1807_v24, %v1811_v3  ;;  %v13150_v45 = vld [vmem:[#allocation11 + $0x168] ss:$20 sps:$4 sm:$0xff]   ;;  %v13153_v38 = vld [vmem:[#allocation11 + $0x170] ss:$20 sps:$4 sm:$0xff]  }
 0x52e   :  { %8263 = vmatprep.subr.bf16.mxu1 %v12357_v53  ;;  %v12929_v53 = vadd.f32 %v14210_v42, %v1821_v39  ;;  %v13107_v42 = vld [vmem:[#allocation11 + $0x34] ss:$20 sps:$4 sm:$0xff]   ;;  %v13161_v24 = vld [vmem:[#allocation11 + $0x19c] ss:$20 sps:$4 sm:$0xff]  }
 0x52f   :  { %v13158_v39 = vld [vmem:[#allocation11 + $0x194] ss:$20 sps:$4 sm:$0xff]   ;;  %v13156_v3 = vld [vmem:[#allocation11 + $0x190] ss:$20 sps:$4 sm:$0xff]  }
 0x530   :  { %7936 = vmatpush1.bf16.msra.mxu0 %v12354_v19  ;;  %v8287_v19 = vmax.f32 %v12929_v53, 0.0  ;;  %v13165_v53 = vld [vmem:[#allocation11 + $0x1c0] ss:$20 sps:$4 sm:$0xff]  }
 0x531   :  { %8264 = vmatpush1.bf16.msra.mxu1 %v12356_v37  ;;  %7937 = vmatprep.subr.bf16.mxu0 %v12363_v48  ;;  %v13096_v37 = vld [vmem:[#allocation11] ss:$20 sps:$4 sm:$0xff]   ;;  %v13099_v48 = vld [vmem:[#allocation11 + $0x8] ss:$20 sps:$4 sm:$0xff]  }
 0x532   :  { %8265 = vmatprep.subr.bf16.mxu1 %v12365_v15  ;;  %v13104_v15 = vld [vmem:[#allocation11 + $0x2c] ss:$20 sps:$4 sm:$0xff]   ;;  %v14235_v54 = vpack.c.bf16 %v8287_v19, %v8287_v19 }
 0x533   :  { %v13176_v19 = vld [vmem:[#allocation11 + $0x20c] ss:$20 sps:$4 sm:$0xff]  }
 0x534   :  { %7938 = vmatpush1.bf16.msra.mxu0 %v12362_v50  ;;  %v13113_v50 = vld [vmem:[#allocation11 + $0x5c] ss:$20 sps:$4 sm:$0xff]  }
 0x535   :  { %8266 = vmatpush1.bf16.msra.mxu1 %v12364_v49  ;;  %7939 = vmatprep.subr.bf16.mxu0 %v12371_v57  ;;  %v13108_v49 = vld [vmem:[#allocation11 + $0x50] ss:$20 sps:$4 sm:$0xff]   ;;  %v13111_v57 = vld [vmem:[#allocation11 + $0x58] ss:$20 sps:$4 sm:$0xff]  }
 0x536   :  { %8267 = vmatprep.subr.bf16.mxu1 %v12373_v52  ;;  %v13116_v52 = vld [vmem:[#allocation11 + $0x7c] ss:$20 sps:$4 sm:$0xff]  }
 0x538   :  { %7940 = vmatpush1.bf16.msra.mxu0 %v12370_v61  ;;  %v13120_v61 = vld [vmem:[#allocation11 + $0xa0] ss:$20 sps:$4 sm:$0xff]  }
 0x539   :  { %8268 = vmatpush1.bf16.msra.mxu1 %v12372_v47  ;;  %7941 = vmatprep.subr.bf16.mxu0 %v12379_v62  ;;  %v13123_v47 = vld [vmem:[#allocation11 + $0xa8] ss:$20 sps:$4 sm:$0xff]   ;;  %v13128_v62 = vld [vmem:[#allocation11 + $0xcc] ss:$20 sps:$4 sm:$0xff]  }
 0x53a   :  { %8269 = vmatprep.subr.bf16.mxu1 %v12381_v63  ;;  %v13131_v63 = vld [vmem:[#allocation11 + $0xd4] ss:$20 sps:$4 sm:$0xff]  }
 0x53c   :  { %7942 = vmatpush1.bf16.msra.mxu0 %v12378_v51  ;;  %v13132_v51 = vld [vmem:[#allocation11 + $0xf0] ss:$20 sps:$4 sm:$0xff]  }
 0x53d   :  { %8270 = vmatpush1.bf16.msra.mxu1 %v12380_v30  ;;  %7943 = vmatprep.subr.bf16.mxu0 %v12387_v22  ;;  %v13135_v30 = vld [vmem:[#allocation11 + $0xf8] ss:$20 sps:$4 sm:$0xff]   ;;  %v13140_v22 = vld [vmem:[#allocation11 + $0x11c] ss:$20 sps:$4 sm:$0xff]  }
 0x53e   :  { %8271 = vmatprep.subr.bf16.mxu1 %v12389_v2  ;;  %v13143_v2 = vld [vmem:[#allocation11 + $0x124] ss:$20 sps:$4 sm:$0xff]  }
 0x540   :  { %7944 = vmatpush1.bf16.msra.mxu0 %v12386_v28  ;;  %v13144_v28 = vld [vmem:[#allocation11 + $0x140] ss:$20 sps:$4 sm:$0xff]  }
 0x541   :  { %8272 = vmatpush1.bf16.msra.mxu1 %v12388_v13  ;;  %7945 = vmatprep.subr.bf16.mxu0 %v12395_v34  ;;  %v13147_v13 = vld [vmem:[#allocation11 + $0x148] ss:$20 sps:$4 sm:$0xff]   ;;  %v13152_v34 = vld [vmem:[#allocation11 + $0x16c] ss:$20 sps:$4 sm:$0xff]  }
 0x542   :  { %8273 = vmatprep.subr.bf16.mxu1 %v12397_v1  ;;  %v13155_v1 = vld [vmem:[#allocation11 + $0x174] ss:$20 sps:$4 sm:$0xff]  }
 0x544   :  { %7946 = vmatpush1.bf16.msra.mxu0 %v12394_v56  ;;  %v13159_v56 = vld [vmem:[#allocation11 + $0x198] ss:$20 sps:$4 sm:$0xff]  }
 0x545   :  { %8274 = vmatpush1.bf16.msra.mxu1 %v12396_v41  ;;  %7947 = vmatprep.subr.bf16.mxu0 %v12403_v43  ;;  %v13164_v41 = vld [vmem:[#allocation11 + $0x1bc] ss:$20 sps:$4 sm:$0xff]   ;;  %v13167_v43 = vld [vmem:[#allocation11 + $0x1c4] ss:$20 sps:$4 sm:$0xff]  }
 0x546   :  { %8275 = vmatprep.subr.bf16.mxu1 %v12405_v44  ;;  %v13162_v44 = vld [vmem:[#allocation11 + $0x1b8] ss:$20 sps:$4 sm:$0xff]  }
 0x548   :  { %7948 = vmatpush1.bf16.msra.mxu0 %v12402_v60  ;;  %v13170_v60 = vld [vmem:[#allocation11 + $0x1e4] ss:$20 sps:$4 sm:$0xff]  }
 0x549   :  { %8276 = vmatpush1.bf16.msra.mxu1 %v12404_v46  ;;  %10377 = vmatprep.subr.bf16.mxu0 %v13098_v4  ;;  %v13173_v46 = vld [vmem:[#allocation11 + $0x1ec] ss:$20 sps:$4 sm:$0xff]  }
 0x54a   :  { %10541 = vmatprep.subr.bf16.mxu1 %v13101_v20  ;;  %v13168_v4 = vld [vmem:[#allocation11 + $0x1e0] ss:$20 sps:$4 sm:$0xff]   ;;  %v13171_v20 = vld [vmem:[#allocation11 + $0x1e8] ss:$20 sps:$4 sm:$0xff]  }
 0x54b   :  { %7950 = vmatmul.mubr.bf16.vlgmr.msra.gmra.mrb[12].mxu0 %v14188_v11 }
 0x54c   :  { %8278 = vmatmul.mubr.bf16.vlgmr.msra.gmra.mrb[28].mxu1 %v14188_v11  ;;  %10378 = vmatpush1.bf16.msra.mxu0 %v13096_v37  ;;  %v13119_v11 = vld [vmem:[#allocation11 + $0x84] ss:$20 sps:$4 sm:$0xff]   ;;  %v13179_v37 = vld [vmem:[#allocation11 + $0x214] ss:$20 sps:$4 sm:$0xff]  }
 0x54d   :  { %10409 = vmatprep.mubr.bf16.mxu0 %v14235_v54  ;;  %10542 = vmatpush1.bf16.msra.mxu1 %v13099_v48  ;;  %v13174_v48 = vld [vmem:[#allocation11 + $0x208] ss:$20 sps:$4 sm:$0xff]  }
 0x54e   :  { %10573 = vmatprep.mubr.bf16.mxu1 %v14235_v54  ;;  %10379 = vmatprep.subr.bf16.mxu0 %v13104_v15  ;;  %v1817_v15 = vrot.slane %v14230_v29, %v14029_v14 }
 0x54f   :  { %10543 = vmatprep.subr.bf16.mxu1 %v13107_v42  ;;  %v13177_v42 = vld [vmem:[#allocation11 + $0x210] ss:$20 sps:$4 sm:$0xff]  }
 0x550   :  { %10380 = vmatpush1.bf16.msra.mxu0 %v13102_v33  ;;  %v13182_v33 = vld [vmem:[#allocation11 + $0x234] ss:$20 sps:$4 sm:$0xff]  }
 0x551   :  { %10544 = vmatpush1.bf16.msra.mxu1 %v13105_v0  ;;  %10381 = vmatprep.subr.bf16.mxu0 %v13110_v32  ;;  %v13185_v0 = vld [vmem:[#allocation11 + $0x23c] ss:$20 sps:$4 sm:$0xff]   ;;  %v1829_v32 = vrot.slane %v14230_v29, %v14041_v26 }
 0x552   :  { %10545 = vmatprep.subr.bf16.mxu1 %v13113_v50  ;;  %v13180_v50 = vld [vmem:[#allocation11 + $0x230] ss:$20 sps:$4 sm:$0xff]  }
 0x554   :  { %10382 = vmatpush1.bf16.msra.mxu0 %v13108_v49  ;;  %v12928_v49 = vadd.f32 %v14206_v36, %v1817_v15  ;;  %v13192_v36 = vld [vmem:[#allocation11 + $0x280] ss:$20 sps:$4 sm:$0xff]  }
 0x555   :  { %10546 = vmatpush1.bf16.msra.mxu1 %v13111_v57  ;;  %10383 = vmatprep.subr.bf16.mxu0 %v13116_v52  ;;  %v13183_v57 = vld [vmem:[#allocation11 + $0x238] ss:$20 sps:$4 sm:$0xff]   ;;  %v13188_v52 = vld [vmem:[#allocation11 + $0x25c] ss:$20 sps:$4 sm:$0xff]  }
 0x556   :  { %10547 = vmatprep.subr.bf16.mxu1 %v13119_v11  ;;  %v13191_v11 = vld [vmem:[#allocation11 + $0x264] ss:$20 sps:$4 sm:$0xff]   ;;  %v13248_v15 = vld [vmem:[#allocation11 + $0x3ec] ss:$20 sps:$4 sm:$0xff]  }
 0x558   :  { %10384 = vmatpush1.bf16.msra.mxu0 %v13114_v55  ;;  %v12931_v55 = vadd.f32 %v14212_v12, %v1829_v32  ;;  %v13254_v32 = vld [vmem:[#allocation11 + $0x414] ss:$20 sps:$4 sm:$0xff]  }
 0x559   :  { %10548 = vmatpush1.bf16.msra.mxu1 %v13117_v58  ;;  %10385 = vmatprep.subr.bf16.mxu0 %v13122_v59  ;;  %v13186_v58 = vld [vmem:[#allocation11 + $0x258] ss:$20 sps:$4 sm:$0xff]   ;;  %v8286_v59 = vmax.f32 %v12928_v49, 0.0  ;;  %v13252_v49 = vld [vmem:[#allocation11 + $0x410] ss:$20 sps:$4 sm:$0xff]  }
 0x55a   :  { %10549 = vmatprep.subr.bf16.mxu1 %v13125_v10  ;;  %v13189_v10 = vld [vmem:[#allocation11 + $0x260] ss:$20 sps:$4 sm:$0xff]  }
 0x55c   :  { %10386 = vmatpush1.bf16.msra.mxu0 %v13120_v61  ;;  %v13194_v61 = vld [vmem:[#allocation11 + $0x284] ss:$20 sps:$4 sm:$0xff]  }
 0x55d   :  { %10550 = vmatpush1.bf16.msra.mxu1 %v13123_v47  ;;  %10387 = vmatprep.subr.bf16.mxu0 %v13128_v62  ;;  %v13197_v47 = vld [vmem:[#allocation11 + $0x28c] ss:$20 sps:$4 sm:$0xff]   ;;  %v8289_v62 = vmax.f32 %v12931_v55, 0.0 }
 0x55e   :  { %10551 = vmatprep.subr.bf16.mxu1 %v13131_v63  ;;  %v14247_v63 = vpack.c.bf16 %v8286_v59, %v8286_v59  ;;  %v13258_v55 = vld [vmem:[#allocation11 + $0x438] ss:$20 sps:$4 sm:$0xff]  }
 0x55f   :  { %v14249_v12 = vpack.c.bf16 %v8289_v62, %v8289_v62  ;;  %v13266_v59 = vld [vmem:[#allocation11 + $0x464] ss:$20 sps:$4 sm:$0xff]   ;;  %v13272_v62 = vld [vmem:[#allocation11 + $0x48c] ss:$20 sps:$4 sm:$0xff]  }
 0x560   :  { %10388 = vmatpush1.bf16.msra.mxu0 %v13126_v31  ;;  %v13195_v31 = vld [vmem:[#allocation11 + $0x288] ss:$20 sps:$4 sm:$0xff]  }
 0x561   :  { %10552 = vmatpush1.bf16.msra.mxu1 %v13129_v5  ;;  %10389 = vmatprep.subr.bf16.mxu0 %v13134_v9  ;;  %v13200_v5 = vld [vmem:[#allocation11 + $0x2ac] ss:$20 sps:$4 sm:$0xff]   ;;  %v13203_v9 = vld [vmem:[#allocation11 + $0x2b4] ss:$20 sps:$4 sm:$0xff]  }
 0x562   :  { %10553 = vmatprep.subr.bf16.mxu1 %v13137_v18  ;;  %v13198_v18 = vld [vmem:[#allocation11 + $0x2a8] ss:$20 sps:$4 sm:$0xff]  }
 0x564   :  { %10390 = vmatpush1.bf16.msra.mxu0 %v13132_v51  ;;  %v13201_v51 = vld [vmem:[#allocation11 + $0x2b0] ss:$20 sps:$4 sm:$0xff]  }
 0x565   :  { %10554 = vmatpush1.bf16.msra.mxu1 %v13135_v30  ;;  %10391 = vmatprep.subr.bf16.mxu0 %v13140_v22  ;;  %v13206_v30 = vld [vmem:[#allocation11 + $0x2d4] ss:$20 sps:$4 sm:$0xff]   ;;  %v13209_v22 = vld [vmem:[#allocation11 + $0x2dc] ss:$20 sps:$4 sm:$0xff]  }
 0x566   :  { %10555 = vmatprep.subr.bf16.mxu1 %v13143_v2  ;;  %v13204_v2 = vld [vmem:[#allocation11 + $0x2d0] ss:$20 sps:$4 sm:$0xff]  }
 0x568   :  { %10392 = vmatpush1.bf16.msra.mxu0 %v13138_v17  ;;  %v13207_v17 = vld [vmem:[#allocation11 + $0x2d8] ss:$20 sps:$4 sm:$0xff]  }
 0x569   :  { %10556 = vmatpush1.bf16.msra.mxu1 %v13141_v23  ;;  %10393 = vmatprep.subr.bf16.mxu0 %v13146_v25  ;;  %v13212_v23 = vld [vmem:[#allocation11 + $0x2fc] ss:$20 sps:$4 sm:$0xff]   ;;  %v13215_v25 = vld [vmem:[#allocation11 + $0x304] ss:$20 sps:$4 sm:$0xff]  }
 0x56a   :  { %10557 = vmatprep.subr.bf16.mxu1 %v13149_v27  ;;  %v13210_v27 = vld [vmem:[#allocation11 + $0x2f8] ss:$20 sps:$4 sm:$0xff]  }
 0x56c   :  { %10394 = vmatpush1.bf16.msra.mxu0 %v13144_v28  ;;  %v13213_v28 = vld [vmem:[#allocation11 + $0x300] ss:$20 sps:$4 sm:$0xff]  }
 0x56d   :  { %10558 = vmatpush1.bf16.msra.mxu1 %v13147_v13  ;;  %10395 = vmatprep.subr.bf16.mxu0 %v13152_v34  ;;  %v13218_v13 = vld [vmem:[#allocation11 + $0x324] ss:$20 sps:$4 sm:$0xff]   ;;  %v13221_v34 = vld [vmem:[#allocation11 + $0x32c] ss:$20 sps:$4 sm:$0xff]  }
 0x56e   :  { %10559 = vmatprep.subr.bf16.mxu1 %v13155_v1  ;;  %v13216_v1 = vld [vmem:[#allocation11 + $0x320] ss:$20 sps:$4 sm:$0xff]  }
 0x570   :  { %10396 = vmatpush1.bf16.msra.mxu0 %v13150_v45  ;;  %v13219_v45 = vld [vmem:[#allocation11 + $0x328] ss:$20 sps:$4 sm:$0xff]  }
 0x571   :  { %10560 = vmatpush1.bf16.msra.mxu1 %v13153_v38  ;;  %10397 = vmatprep.subr.bf16.mxu0 %v13158_v39  ;;  %v13224_v38 = vld [vmem:[#allocation11 + $0x34c] ss:$20 sps:$4 sm:$0xff]   ;;  %v13227_v39 = vld [vmem:[#allocation11 + $0x354] ss:$20 sps:$4 sm:$0xff]  }
 0x572   :  { %10561 = vmatprep.subr.bf16.mxu1 %v13161_v24  ;;  %v13222_v24 = vld [vmem:[#allocation11 + $0x348] ss:$20 sps:$4 sm:$0xff]  }
 0x574   :  { %10398 = vmatpush1.bf16.msra.mxu0 %v13156_v3  ;;  %v13225_v3 = vld [vmem:[#allocation11 + $0x350] ss:$20 sps:$4 sm:$0xff]  }
 0x575   :  { %10562 = vmatpush1.bf16.msra.mxu1 %v13159_v56  ;;  %10399 = vmatprep.subr.bf16.mxu0 %v13164_v41  ;;  %v13230_v56 = vld [vmem:[#allocation11 + $0x374] ss:$20 sps:$4 sm:$0xff]   ;;  %v13233_v41 = vld [vmem:[#allocation11 + $0x37c] ss:$20 sps:$4 sm:$0xff]  }
 0x576   :  { %10563 = vmatprep.subr.bf16.mxu1 %v13167_v43  ;;  %v13228_v43 = vld [vmem:[#allocation11 + $0x370] ss:$20 sps:$4 sm:$0xff]  }
 0x578   :  { %10400 = vmatpush1.bf16.msra.mxu0 %v13162_v44  ;;  %v13231_v44 = vld [vmem:[#allocation11 + $0x378] ss:$20 sps:$4 sm:$0xff]  }
 0x579   :  { %10564 = vmatpush1.bf16.msra.mxu1 %v13165_v53  ;;  %10401 = vmatprep.subr.bf16.mxu0 %v13170_v60  ;;  %v13236_v53 = vld [vmem:[#allocation11 + $0x39c] ss:$20 sps:$4 sm:$0xff]   ;;  %v13239_v60 = vld [vmem:[#allocation11 + $0x3a4] ss:$20 sps:$4 sm:$0xff]  }
 0x57a   :  { %10565 = vmatprep.subr.bf16.mxu1 %v13173_v46  ;;  %v13234_v46 = vld [vmem:[#allocation11 + $0x398] ss:$20 sps:$4 sm:$0xff]  }
 0x57c   :  { %10402 = vmatpush1.bf16.msra.mxu0 %v13168_v4  ;;  %v13237_v4 = vld [vmem:[#allocation11 + $0x3a0] ss:$20 sps:$4 sm:$0xff]  }
 0x57d   :  { %10566 = vmatpush1.bf16.msra.mxu1 %v13171_v20  ;;  %10403 = vmatprep.subr.bf16.mxu0 %v13176_v19  ;;  %v13242_v20 = vld [vmem:[#allocation11 + $0x3c4] ss:$20 sps:$4 sm:$0xff]   ;;  %v13245_v19 = vld [vmem:[#allocation11 + $0x3cc] ss:$20 sps:$4 sm:$0xff]  }
 0x57e   :  { %10567 = vmatprep.subr.bf16.mxu1 %v13179_v37  ;;  %v13240_v37 = vld [vmem:[#allocation11 + $0x3c0] ss:$20 sps:$4 sm:$0xff]  }
 0x580   :  { %10404 = vmatpush1.bf16.msra.mxu0 %v13174_v48  ;;  %v13243_v48 = vld [vmem:[#allocation11 + $0x3c8] ss:$20 sps:$4 sm:$0xff]  }
 0x581   :  { %10568 = vmatpush1.bf16.msra.mxu1 %v13177_v42  ;;  %10405 = vmatprep.subr.bf16.mxu0 %v13182_v33  ;;  %v13251_v42 = vld [vmem:[#allocation11 + $0x3f4] ss:$20 sps:$4 sm:$0xff]  }
 0x582   :  { %10569 = vmatprep.subr.bf16.mxu1 %v13185_v0  ;;  %v13246_v33 = vld [vmem:[#allocation11 + $0x3e8] ss:$20 sps:$4 sm:$0xff]   ;;  %v13249_v0 = vld [vmem:[#allocation11 + $0x3f0] ss:$20 sps:$4 sm:$0xff]  }
 0x584   :  { %10406 = vmatpush1.bf16.msra.mxu0 %v13180_v50  ;;  %v13257_v50 = vld [vmem:[#allocation11 + $0x41c] ss:$20 sps:$4 sm:$0xff]  }
 0x585   :  { %10570 = vmatpush1.bf16.msra.mxu1 %v13183_v57  ;;  %10407 = vmatprep.subr.bf16.mxu0 %v13188_v52  ;;  %v13255_v57 = vld [vmem:[#allocation11 + $0x418] ss:$20 sps:$4 sm:$0xff]   ;;  %v13260_v52 = vld [vmem:[#allocation11 + $0x43c] ss:$20 sps:$4 sm:$0xff]  }
 0x586   :  { %10571 = vmatprep.subr.bf16.mxu1 %v13191_v11  ;;  %v13263_v11 = vld [vmem:[#allocation11 + $0x444] ss:$20 sps:$4 sm:$0xff]  }
 0x588   :  { %10408 = vmatpush1.bf16.msra.mxu0 %v13186_v58  ;;  %v13261_v58 = vld [vmem:[#allocation11 + $0x440] ss:$20 sps:$4 sm:$0xff]  }
 0x589   :  { %10572 = vmatpush1.bf16.msra.mxu1 %v13189_v10  ;;  %10418 = vmatprep.subr.bf16.mxu0 %v13194_v61  ;;  %v13269_v10 = vld [vmem:[#allocation11 + $0x46c] ss:$20 sps:$4 sm:$0xff]  }
 0x58a   :  { %10582 = vmatprep.subr.bf16.mxu1 %v13197_v47  ;;  %v13264_v61 = vld [vmem:[#allocation11 + $0x460] ss:$20 sps:$4 sm:$0xff]   ;;  %v13267_v47 = vld [vmem:[#allocation11 + $0x468] ss:$20 sps:$4 sm:$0xff]  }
 0x58b   :  { %10410 = vmatmul.mubr.bf16.vlgmr.msra.gmra.mrb[16].mxu0 %v14247_v63 }
 0x58c   :  { %10574 = vmatmul.mubr.bf16.vlgmr.msra.gmra.mrb[32].mxu1 %v14247_v63  ;;  %10419 = vmatpush1.bf16.msra.mxu0 %v13192_v36  ;;  %v13275_v36 = vld [vmem:[#allocation11 + $0x494] ss:$20 sps:$4 sm:$0xff]  }
 0x58d   :  { %10450 = vmatprep.mubr.bf16.mxu0 %v14249_v12  ;;  %10583 = vmatpush1.bf16.msra.mxu1 %v13195_v31  ;;  %v13270_v31 = vld [vmem:[#allocation11 + $0x488] ss:$20 sps:$4 sm:$0xff]  }
 0x58e   :  { %10614 = vmatprep.mubr.bf16.mxu1 %v14249_v12  ;;  %10420 = vmatprep.subr.bf16.mxu0 %v13200_v5  ;;  %v1825_v5 = vrot.slane %v14230_v29, %v14088_v40 }
 0x58f   :  { %10584 = vmatprep.subr.bf16.mxu1 %v13203_v9  ;;  %v13273_v9 = vld [vmem:[#allocation11 + $0x490] ss:$20 sps:$4 sm:$0xff]  }
 0x590   :  { %10421 = vmatpush1.bf16.msra.mxu0 %v13198_v18  ;;  %v13278_v18 = vld [vmem:[#allocation11 + $0x4b4] ss:$20 sps:$4 sm:$0xff]  }
 0x591   :  { %10585 = vmatpush1.bf16.msra.mxu1 %v13201_v51  ;;  %10422 = vmatprep.subr.bf16.mxu0 %v13206_v30  ;;  %v13281_v51 = vld [vmem:[#allocation11 + $0x4bc] ss:$20 sps:$4 sm:$0xff]  }
 0x592   :  { %10586 = vmatprep.subr.bf16.mxu1 %v13209_v22  ;;  %v13276_v30 = vld [vmem:[#allocation11 + $0x4b0] ss:$20 sps:$4 sm:$0xff]   ;;  %v12930_v22 = vadd.f32 %v14208_v6, %v1825_v5  ;;  %v13291_v6 = vld [vmem:[#allocation11 + $0x508] ss:$20 sps:$4 sm:$0xff]  }
 0x593   :  { %v13345_v5 = vld [vmem:[#allocation11 + $0x670] ss:$20 sps:$4 sm:$0xff]  }
 0x594   :  { %10423 = vmatpush1.bf16.msra.mxu0 %v13204_v2  ;;  %v13279_v2 = vld [vmem:[#allocation11 + $0x4b8] ss:$20 sps:$4 sm:$0xff]  }
 0x595   :  { %10587 = vmatpush1.bf16.msra.mxu1 %v13207_v17  ;;  %10424 = vmatprep.subr.bf16.mxu0 %v13212_v23  ;;  %v13284_v17 = vld [vmem:[#allocation11 + $0x4dc] ss:$20 sps:$4 sm:$0xff]   ;;  %v13287_v23 = vld [vmem:[#allocation11 + $0x4e4] ss:$20 sps:$4 sm:$0xff]  }
 0x596   :  { %10588 = vmatprep.subr.bf16.mxu1 %v13215_v25  ;;  %v13282_v25 = vld [vmem:[#allocation11 + $0x4d8] ss:$20 sps:$4 sm:$0xff]  }
 0x598   :  { %10425 = vmatpush1.bf16.msra.mxu0 %v13210_v27  ;;  %v8288_v27 = vmax.f32 %v12930_v22, 0.0  ;;  %v13356_v22 = vld [vmem:[#allocation11 + $0x6bc] ss:$20 sps:$4 sm:$0xff]  }
 0x599   :  { %10589 = vmatpush1.bf16.msra.mxu1 %v13213_v28  ;;  %10426 = vmatprep.subr.bf16.mxu0 %v13218_v13  ;;  %v13285_v28 = vld [vmem:[#allocation11 + $0x4e0] ss:$20 sps:$4 sm:$0xff]   ;;  %v13290_v13 = vld [vmem:[#allocation11 + $0x504] ss:$20 sps:$4 sm:$0xff]  }
 0x59a   :  { %10590 = vmatprep.subr.bf16.mxu1 %v13221_v34  ;;  %v13293_v34 = vld [vmem:[#allocation11 + $0x50c] ss:$20 sps:$4 sm:$0xff]  }
 0x59c   :  { %10427 = vmatpush1.bf16.msra.mxu0 %v13216_v1  ;;  %v13288_v1 = vld [vmem:[#allocation11 + $0x500] ss:$20 sps:$4 sm:$0xff]  }
 0x59d   :  { %10591 = vmatpush1.bf16.msra.mxu1 %v13219_v45  ;;  %10428 = vmatprep.subr.bf16.mxu0 %v13224_v38  ;;  %v14258_v45 = vpack.c.bf16 %v8288_v27, %v8288_v27  ;;  %v13296_v38 = vld [vmem:[#allocation11 + $0x52c] ss:$20 sps:$4 sm:$0xff]  }
 0x59e   :  { %10592 = vmatprep.subr.bf16.mxu1 %v13227_v39  ;;  %v13299_v39 = vld [vmem:[#allocation11 + $0x534] ss:$20 sps:$4 sm:$0xff]   ;;  %v13365_v27 = vld [vmem:[#allocation11 + $0x6ec] ss:$20 sps:$4 sm:$0xff]  }
 0x5a0   :  { %10429 = vmatpush1.bf16.msra.mxu0 %v13222_v24  ;;  %v13294_v24 = vld [vmem:[#allocation11 + $0x528] ss:$20 sps:$4 sm:$0xff]  }
 0x5a1   :  { %10593 = vmatpush1.bf16.msra.mxu1 %v13225_v3  ;;  %10430 = vmatprep.subr.bf16.mxu0 %v13230_v56  ;;  %v13297_v3 = vld [vmem:[#allocation11 + $0x530] ss:$20 sps:$4 sm:$0xff]   ;;  %v13302_v56 = vld [vmem:[#allocation11 + $0x554] ss:$20 sps:$4 sm:$0xff]  }
 0x5a2   :  { %10594 = vmatprep.subr.bf16.mxu1 %v13233_v41  ;;  %v13305_v41 = vld [vmem:[#allocation11 + $0x55c] ss:$20 sps:$4 sm:$0xff]  }
 0x5a4   :  { %10431 = vmatpush1.bf16.msra.mxu0 %v13228_v43  ;;  %v13300_v43 = vld [vmem:[#allocation11 + $0x550] ss:$20 sps:$4 sm:$0xff]  }
 0x5a5   :  { %10595 = vmatpush1.bf16.msra.mxu1 %v13231_v44  ;;  %10432 = vmatprep.subr.bf16.mxu0 %v13236_v53  ;;  %v13303_v44 = vld [vmem:[#allocation11 + $0x558] ss:$20 sps:$4 sm:$0xff]   ;;  %v13308_v53 = vld [vmem:[#allocation11 + $0x57c] ss:$20 sps:$4 sm:$0xff]  }
 0x5a6   :  { %10596 = vmatprep.subr.bf16.mxu1 %v13239_v60  ;;  %v13311_v60 = vld [vmem:[#allocation11 + $0x584] ss:$20 sps:$4 sm:$0xff]  }
 0x5a8   :  { %10433 = vmatpush1.bf16.msra.mxu0 %v13234_v46  ;;  %v13306_v46 = vld [vmem:[#allocation11 + $0x578] ss:$20 sps:$4 sm:$0xff]  }
 0x5a9   :  { %10597 = vmatpush1.bf16.msra.mxu1 %v13237_v4  ;;  %10434 = vmatprep.subr.bf16.mxu0 %v13242_v20  ;;  %v13309_v4 = vld [vmem:[#allocation11 + $0x580] ss:$20 sps:$4 sm:$0xff]   ;;  %v13314_v20 = vld [vmem:[#allocation11 + $0x5a4] ss:$20 sps:$4 sm:$0xff]  }
 0x5aa   :  { %10598 = vmatprep.subr.bf16.mxu1 %v13245_v19  ;;  %v13317_v19 = vld [vmem:[#allocation11 + $0x5ac] ss:$20 sps:$4 sm:$0xff]  }
 0x5ac   :  { %10435 = vmatpush1.bf16.msra.mxu0 %v13240_v37  ;;  %v13312_v37 = vld [vmem:[#allocation11 + $0x5a0] ss:$20 sps:$4 sm:$0xff]  }
 0x5ad   :  { %10599 = vmatpush1.bf16.msra.mxu1 %v13243_v48  ;;  %10436 = vmatprep.subr.bf16.mxu0 %v13248_v15  ;;  %v13315_v48 = vld [vmem:[#allocation11 + $0x5a8] ss:$20 sps:$4 sm:$0xff]   ;;  %v13320_v15 = vld [vmem:[#allocation11 + $0x5cc] ss:$20 sps:$4 sm:$0xff]  }
 0x5ae   :  { %10600 = vmatprep.subr.bf16.mxu1 %v13251_v42  ;;  %v13323_v42 = vld [vmem:[#allocation11 + $0x5d4] ss:$20 sps:$4 sm:$0xff]  }
 0x5b0   :  { %10437 = vmatpush1.bf16.msra.mxu0 %v13246_v33  ;;  %v13318_v33 = vld [vmem:[#allocation11 + $0x5c8] ss:$20 sps:$4 sm:$0xff]  }
 0x5b1   :  { %10601 = vmatpush1.bf16.msra.mxu1 %v13249_v0  ;;  %10438 = vmatprep.subr.bf16.mxu0 %v13254_v32  ;;  %v13321_v0 = vld [vmem:[#allocation11 + $0x5d0] ss:$20 sps:$4 sm:$0xff]   ;;  %v13326_v32 = vld [vmem:[#allocation11 + $0x5f4] ss:$20 sps:$4 sm:$0xff]  }
 0x5b2   :  { %10602 = vmatprep.subr.bf16.mxu1 %v13257_v50  ;;  %v13329_v50 = vld [vmem:[#allocation11 + $0x5fc] ss:$20 sps:$4 sm:$0xff]  }
 0x5b4   :  { %10439 = vmatpush1.bf16.msra.mxu0 %v13252_v49  ;;  %v13324_v49 = vld [vmem:[#allocation11 + $0x5f0] ss:$20 sps:$4 sm:$0xff]  }
 0x5b5   :  { %10603 = vmatpush1.bf16.msra.mxu1 %v13255_v57  ;;  %10440 = vmatprep.subr.bf16.mxu0 %v13260_v52  ;;  %v13327_v57 = vld [vmem:[#allocation11 + $0x5f8] ss:$20 sps:$4 sm:$0xff]   ;;  %v13332_v52 = vld [vmem:[#allocation11 + $0x61c] ss:$20 sps:$4 sm:$0xff]  }
 0x5b6   :  { %10604 = vmatprep.subr.bf16.mxu1 %v13263_v11  ;;  %v13335_v11 = vld [vmem:[#allocation11 + $0x624] ss:$20 sps:$4 sm:$0xff]  }
 0x5b8   :  { %10441 = vmatpush1.bf16.msra.mxu0 %v13258_v55  ;;  %v13330_v55 = vld [vmem:[#allocation11 + $0x618] ss:$20 sps:$4 sm:$0xff]  }
 0x5b9   :  { %10605 = vmatpush1.bf16.msra.mxu1 %v13261_v58  ;;  %10442 = vmatprep.subr.bf16.mxu0 %v13266_v59  ;;  %v13333_v58 = vld [vmem:[#allocation11 + $0x620] ss:$20 sps:$4 sm:$0xff]   ;;  %v13338_v59 = vld [vmem:[#allocation11 + $0x644] ss:$20 sps:$4 sm:$0xff]  }
 0x5ba   :  { %10606 = vmatprep.subr.bf16.mxu1 %v13269_v10  ;;  %v13341_v10 = vld [vmem:[#allocation11 + $0x64c] ss:$20 sps:$4 sm:$0xff]  }
 0x5bc   :  { %10443 = vmatpush1.bf16.msra.mxu0 %v13264_v61  ;;  %v13336_v61 = vld [vmem:[#allocation11 + $0x640] ss:$20 sps:$4 sm:$0xff]  }
 0x5bd   :  { %10607 = vmatpush1.bf16.msra.mxu1 %v13267_v47  ;;  %10444 = vmatprep.subr.bf16.mxu0 %v13272_v62  ;;  %v13339_v47 = vld [vmem:[#allocation11 + $0x648] ss:$20 sps:$4 sm:$0xff]   ;;  %v13344_v62 = vld [vmem:[#allocation11 + $0x66c] ss:$20 sps:$4 sm:$0xff]  }
 0x5be   :  { %10608 = vmatprep.subr.bf16.mxu1 %v13275_v36  ;;  %v13347_v36 = vld [vmem:[#allocation11 + $0x674] ss:$20 sps:$4 sm:$0xff]  }
 0x5c0   :  { %10445 = vmatpush1.bf16.msra.mxu0 %v13270_v31  ;;  %v13342_v31 = vld [vmem:[#allocation11 + $0x668] ss:$20 sps:$4 sm:$0xff]  }
 0x5c1   :  { %10609 = vmatpush1.bf16.msra.mxu1 %v13273_v9  ;;  %10446 = vmatprep.subr.bf16.mxu0 %v13278_v18  ;;  %v13350_v9 = vld [vmem:[#allocation11 + $0x694] ss:$20 sps:$4 sm:$0xff]   ;;  %v13353_v18 = vld [vmem:[#allocation11 + $0x69c] ss:$20 sps:$4 sm:$0xff]  }
 0x5c2   :  { %10610 = vmatprep.subr.bf16.mxu1 %v13281_v51  ;;  %v13348_v51 = vld [vmem:[#allocation11 + $0x690] ss:$20 sps:$4 sm:$0xff]  }
 0x5c4   :  { %10447 = vmatpush1.bf16.msra.mxu0 %v13276_v30  ;;  %v13351_v30 = vld [vmem:[#allocation11 + $0x698] ss:$20 sps:$4 sm:$0xff]  }
 0x5c5   :  { %10611 = vmatpush1.bf16.msra.mxu1 %v13279_v2  ;;  %10448 = vmatprep.subr.bf16.mxu0 %v13284_v17  ;;  %v13359_v2 = vld [vmem:[#allocation11 + $0x6c4] ss:$20 sps:$4 sm:$0xff]  }
 0x5c6   :  { %10612 = vmatprep.subr.bf16.mxu1 %v13287_v23  ;;  %v13354_v17 = vld [vmem:[#allocation11 + $0x6b8] ss:$20 sps:$4 sm:$0xff]   ;;  %v13357_v23 = vld [vmem:[#allocation11 + $0x6c0] ss:$20 sps:$4 sm:$0xff]  }
 0x5c8   :  { %10449 = vmatpush1.bf16.msra.mxu0 %v13282_v25  ;;  %v13362_v25 = vld [vmem:[#allocation11 + $0x6e4] ss:$20 sps:$4 sm:$0xff]  }
 0x5c9   :  { %10613 = vmatpush1.bf16.msra.mxu1 %v13285_v28  ;;  %10459 = vmatprep.subr.bf16.mxu0 %v13290_v13  ;;  %v13360_v28 = vld [vmem:[#allocation11 + $0x6e0] ss:$20 sps:$4 sm:$0xff]   ;;  %v13363_v13 = vld [vmem:[#allocation11 + $0x6e8] ss:$20 sps:$4 sm:$0xff]  }
 0x5ca   :  { %10623 = vmatprep.subr.bf16.mxu1 %v13293_v34  ;;  %v13368_v34 = vld [vmem:[#allocation11 + $0x70c] ss:$20 sps:$4 sm:$0xff]  }
 0x5cb   :  { %10451 = vmatmul.mubr.bf16.vlgmr.msra.gmra.mrb[16].mxu0 %v14258_v45 }
 0x5cc   :  { %10615 = vmatmul.mubr.bf16.vlgmr.msra.gmra.mrb[32].mxu1 %v14258_v45  ;;  %10460 = vmatpush1.bf16.msra.mxu0 %v13288_v1  ;;  %v13371_v1 = vld [vmem:[#allocation11 + $0x714] ss:$20 sps:$4 sm:$0xff]  }
 0x5cd   :  { %10624 = vmatpush1.bf16.msra.mxu1 %v13291_v6  ;;  %10461 = vmatprep.subr.bf16.mxu0 %v13296_v38  ;;  %v13366_v6 = vld [vmem:[#allocation11 + $0x708] ss:$20 sps:$4 sm:$0xff]   ;;  %v13369_v38 = vld [vmem:[#allocation11 + $0x710] ss:$20 sps:$4 sm:$0xff]  }
 0x5ce   :  { %10625 = vmatprep.subr.bf16.mxu1 %v13299_v39  ;;  %v13374_v39 = vld [vmem:[#allocation11 + $0x734] ss:$20 sps:$4 sm:$0xff]  }
 0x5d0   :  { %10462 = vmatpush1.bf16.msra.mxu0 %v13294_v24  ;;  %v13377_v24 = vld [vmem:[#allocation11 + $0x73c] ss:$20 sps:$4 sm:$0xff]  }
 0x5d1   :  { %10626 = vmatpush1.bf16.msra.mxu1 %v13297_v3  ;;  %10463 = vmatprep.subr.bf16.mxu0 %v13302_v56  ;;  %v13372_v3 = vld [vmem:[#allocation11 + $0x730] ss:$20 sps:$4 sm:$0xff]   ;;  %v13375_v56 = vld [vmem:[#allocation11 + $0x738] ss:$20 sps:$4 sm:$0xff]  }
 0x5d2   :  { %10627 = vmatprep.subr.bf16.mxu1 %v13305_v41  ;;  %v13380_v41 = vld [vmem:[#allocation11 + $0x75c] ss:$20 sps:$4 sm:$0xff]  }
 0x5d4   :  { %10464 = vmatpush1.bf16.msra.mxu0 %v13300_v43  ;;  %v13383_v43 = vld [vmem:[#allocation11 + $0x764] ss:$20 sps:$4 sm:$0xff]  }
 0x5d5   :  { %10628 = vmatpush1.bf16.msra.mxu1 %v13303_v44  ;;  %10465 = vmatprep.subr.bf16.mxu0 %v13308_v53  ;;  %v13378_v44 = vld [vmem:[#allocation11 + $0x758] ss:$20 sps:$4 sm:$0xff]   ;;  %v13381_v53 = vld [vmem:[#allocation11 + $0x760] ss:$20 sps:$4 sm:$0xff]  }
 0x5d6   :  { %10629 = vmatprep.subr.bf16.mxu1 %v13311_v60  ;;  %v13386_v60 = vld [vmem:[#allocation11 + $0x784] ss:$20 sps:$4 sm:$0xff]  }
 0x5d8   :  { %10466 = vmatpush1.bf16.msra.mxu0 %v13306_v46  ;;  %v13389_v46 = vld [vmem:[#allocation11 + $0x78c] ss:$20 sps:$4 sm:$0xff]  }
 0x5d9   :  { %10630 = vmatpush1.bf16.msra.mxu1 %v13309_v4  ;;  %10467 = vmatprep.subr.bf16.mxu0 %v13314_v20  ;;  %v1833_v4 = vrot.slane %v14230_v29, %v14068_v21  ;;  %v1837_v20 = vrot.slane %v14230_v29, %v14075_v35  ;;  %v13384_v35 = vld [vmem:[#allocation11 + $0x780] ss:$20 sps:$4 sm:$0xff]  }
 0x5da   :  { %10631 = vmatprep.subr.bf16.mxu1 %v13317_v19  ;;  %v1845_v19 = vrot.slane %v14230_v29, %v14102_v8  ;;  %v13392_v29 = vld [vmem:[#allocation11 + $0x7ac] ss:$20 sps:$4 sm:$0xff]  }
 0x5dc   :  { %10468 = vmatpush1.bf16.msra.mxu0 %v13312_v37 }
 0x5dd   :  { %10632 = vmatpush1.bf16.msra.mxu1 %v13315_v48  ;;  %10469 = vmatprep.subr.bf16.mxu0 %v13320_v15 }
 0x5de   :  { %10633 = vmatprep.subr.bf16.mxu1 %v13323_v42 }
 0x5e0   :  { %10470 = vmatpush1.bf16.msra.mxu0 %v13318_v33 }
 0x5e1   :  { %10634 = vmatpush1.bf16.msra.mxu1 %v13321_v0  ;;  %10471 = vmatprep.subr.bf16.mxu0 %v13326_v32 }
 0x5e2   :  { %10635 = vmatprep.subr.bf16.mxu1 %v13329_v50 }
 0x5e4   :  { %10472 = vmatpush1.bf16.msra.mxu0 %v13324_v49 }
 0x5e5   :  { %10636 = vmatpush1.bf16.msra.mxu1 %v13327_v57  ;;  %10473 = vmatprep.subr.bf16.mxu0 %v13332_v52 }
 0x5e6   :  { %10637 = vmatprep.subr.bf16.mxu1 %v13335_v11 }
 0x5e8   :  { %10474 = vmatpush1.bf16.msra.mxu0 %v13330_v55 }
 0x5e9   :  { %10638 = vmatpush1.bf16.msra.mxu1 %v13333_v58  ;;  %10475 = vmatprep.subr.bf16.mxu0 %v13338_v59 }
 0x5ea   :  { %10639 = vmatprep.subr.bf16.mxu1 %v13341_v10  ;;  %v13387_v10 = vld [vmem:[#allocation11 + $0x788] ss:$20 sps:$4 sm:$0xff]  }
 0x5ec   :  { %10476 = vmatpush1.bf16.msra.mxu0 %v13336_v61  ;;  %v13395_v61 = vld [vmem:[#allocation11 + $0x7b4] ss:$20 sps:$4 sm:$0xff]  }
 0x5ed   :  { %10640 = vmatpush1.bf16.msra.mxu1 %v13339_v47  ;;  %10477 = vmatprep.subr.bf16.mxu0 %v13344_v62  ;;  %v13390_v62 = vld [vmem:[#allocation11 + $0x7a8] ss:$20 sps:$4 sm:$0xff]  }
 0x5ee   :  { %10641 = vmatprep.subr.bf16.mxu1 %v13347_v36  ;;  %v13393_v36 = vld [vmem:[#allocation11 + $0x7b0] ss:$20 sps:$4 sm:$0xff]  }
 0x5f0   :  { %10478 = vmatpush1.bf16.msra.mxu0 %v13342_v31  ;;  %v13398_v31 = vld [vmem:[#allocation11 + $0x7d4] ss:$20 sps:$4 sm:$0xff]  }
 0x5f1   :  { %10642 = vmatpush1.bf16.msra.mxu1 %v13345_v5  ;;  %10479 = vmatprep.subr.bf16.mxu0 %v13350_v9  ;;  %v13401_v5 = vld [vmem:[#allocation11 + $0x7dc] ss:$20 sps:$4 sm:$0xff]  }
 0x5f2   :  { %10643 = vmatprep.subr.bf16.mxu1 %v13353_v18  ;;  %v13396_v9 = vld [vmem:[#allocation11 + $0x7d0] ss:$20 sps:$4 sm:$0xff]   ;;  %v13399_v18 = vld [vmem:[#allocation11 + $0x7d8] ss:$20 sps:$4 sm:$0xff]  }
 0x5f4   :  { %10480 = vmatpush1.bf16.msra.mxu0 %v13348_v51  ;;  %v13404_v51 = vld [vmem:[#allocation11 + $0x7fc] ss:$20 sps:$4 sm:$0xff]  }
 0x5f5   :  { %10644 = vmatpush1.bf16.msra.mxu1 %v13351_v30  ;;  %10481 = vmatprep.subr.bf16.mxu0 %v13356_v22  ;;  %v13407_v30 = vld [vmem:[#allocation11 + $0x804] ss:$20 sps:$4 sm:$0xff]  }
 0x5f6   :  { %10645 = vmatprep.subr.bf16.mxu1 %v13359_v2  ;;  %v13402_v22 = vld [vmem:[#allocation11 + $0x7f8] ss:$20 sps:$4 sm:$0xff]   ;;  %v13405_v2 = vld [vmem:[#allocation11 + $0x800] ss:$20 sps:$4 sm:$0xff]  }
 0x5f8   :  { %10482 = vmatpush1.bf16.msra.mxu0 %v13354_v17  ;;  %v13410_v17 = vld [vmem:[#allocation11 + $0x824] ss:$20 sps:$4 sm:$0xff]  }
 0x5f9   :  { %10646 = vmatpush1.bf16.msra.mxu1 %v13357_v23  ;;  %10483 = vmatprep.subr.bf16.mxu0 %v13362_v25  ;;  %v13413_v23 = vld [vmem:[#allocation11 + $0x82c] ss:$20 sps:$4 sm:$0xff]  }
 0x5fa   :  { %10647 = vmatprep.subr.bf16.mxu1 %v13365_v27  ;;  %v13408_v25 = vld [vmem:[#allocation11 + $0x820] ss:$20 sps:$4 sm:$0xff]   ;;  %v13411_v27 = vld [vmem:[#allocation11 + $0x828] ss:$20 sps:$4 sm:$0xff]  }
 0x5fc   :  { %10484 = vmatpush1.bf16.msra.mxu0 %v13360_v28  ;;  %v13416_v28 = vld [vmem:[#allocation11 + $0x84c] ss:$20 sps:$4 sm:$0xff]  }
 0x5fd   :  { %10648 = vmatpush1.bf16.msra.mxu1 %v13363_v13  ;;  %10485 = vmatprep.subr.bf16.mxu0 %v13368_v34  ;;  %v13419_v13 = vld [vmem:[#allocation11 + $0x854] ss:$20 sps:$4 sm:$0xff]  }
 0x5fe   :  { %10649 = vmatprep.subr.bf16.mxu1 %v13371_v1  ;;  %v13414_v34 = vld [vmem:[#allocation11 + $0x848] ss:$20 sps:$4 sm:$0xff]   ;;  %v13417_v1 = vld [vmem:[#allocation11 + $0x850] ss:$20 sps:$4 sm:$0xff]  }
 0x600   :  { %10486 = vmatpush1.bf16.msra.mxu0 %v13366_v6  ;;  %v13422_v6 = vld [vmem:[#allocation11 + $0x874] ss:$20 sps:$4 sm:$0xff]  }
 0x601   :  { %10650 = vmatpush1.bf16.msra.mxu1 %v13369_v38  ;;  %10487 = vmatprep.subr.bf16.mxu0 %v13374_v39  ;;  %v13425_v38 = vld [vmem:[#allocation11 + $0x87c] ss:$20 sps:$4 sm:$0xff]  }
 0x602   :  { %10651 = vmatprep.subr.bf16.mxu1 %v13377_v24  ;;  %v13420_v39 = vld [vmem:[#allocation11 + $0x870] ss:$20 sps:$4 sm:$0xff]   ;;  %v13423_v24 = vld [vmem:[#allocation11 + $0x878] ss:$20 sps:$4 sm:$0xff]  }
 0x604   :  { %10488 = vmatpush1.bf16.msra.mxu0 %v13372_v3  ;;  %v13428_v3 = vld [vmem:[#allocation11 + $0x89c] ss:$20 sps:$4 sm:$0xff]  }
 0x605   :  { %10652 = vmatpush1.bf16.msra.mxu1 %v13375_v56  ;;  %10489 = vmatprep.subr.bf16.mxu0 %v13380_v41  ;;  %v13431_v56 = vld [vmem:[#allocation11 + $0x8a4] ss:$20 sps:$4 sm:$0xff]  }
 0x606   :  { %10653 = vmatprep.subr.bf16.mxu1 %v13383_v43  ;;  %v13426_v41 = vld [vmem:[#allocation11 + $0x898] ss:$20 sps:$4 sm:$0xff]   ;;  %v13429_v43 = vld [vmem:[#allocation11 + $0x8a0] ss:$20 sps:$4 sm:$0xff]  }
 0x608   :  { %10490 = vmatpush1.bf16.msra.mxu0 %v13378_v44  ;;  %v13434_v44 = vld [vmem:[#allocation11 + $0x8c4] ss:$20 sps:$4 sm:$0xff]  }
 0x609   :  { %10654 = vmatpush1.bf16.msra.mxu1 %v13381_v53  ;;  %10500 = vmatprep.subr.bf16.mxu0 %v13386_v60  ;;  %v13437_v53 = vld [vmem:[#allocation11 + $0x8cc] ss:$20 sps:$4 sm:$0xff]  }
 0x60a   :  { %10664 = vmatprep.subr.bf16.mxu1 %v13389_v46  ;;  %v13432_v60 = vld [vmem:[#allocation11 + $0x8c0] ss:$20 sps:$4 sm:$0xff]   ;;  %v13435_v46 = vld [vmem:[#allocation11 + $0x8c8] ss:$20 sps:$4 sm:$0xff]  }
 0x61e   :  { %v7951_v37 = vpop.f32.mrb[12].mxu0 }
 0x61f   :  { %v12932_v48 = vadd.f32 %v7951_v37, %v1833_v4  ;;  %v14268_v15 = vpop.f32.mrb[28].mxu1  ;;  %v7953_v42 = vpop.f32.mrb[13].mxu0  ;;  %v13440_v4 = vld [vmem:[#allocation11 + $0x8ec] ss:$20 sps:$4 sm:$0xff]   ;;  %v13441_v37 = vld [vmem:[#allocation11 + $0x8f0] ss:$20 sps:$4 sm:$0xff]  }
 0x620   :  { %v12933_v33 = vadd.f32 %v7953_v42, %v1837_v20  ;;  %v8281_v0 = vpop.f32.mrb[29].mxu1  ;;  %v7955_v32 = vpop.f32.mrb[14].mxu0  ;;  %v13443_v20 = vld [vmem:[#allocation11 + $0x8f4] ss:$20 sps:$4 sm:$0xff]   ;;  %v13449_v42 = vld [vmem:[#allocation11 + $0x91c] ss:$20 sps:$4 sm:$0xff]  }
 0x621   :  { %v8290_v50 = vmax.f32 %v12932_v48, 0.0  ;;  %v12935_v49 = vadd.f32 %v8281_v0, %v1845_v19  ;;  %v8283_v57 = vpop.f32.mrb[30].mxu1  ;;  %v7956_v52 = vpop.f32.mrb[15].mxu0  ;;  %v13438_v19 = vld [vmem:[#allocation11 + $0x8e8] ss:$20 sps:$4 sm:$0xff]  }
 0x622   :  { %v8291_v11 = vmax.f32 %v12933_v33, 0.0  ;;  %v8284_v55 = vpop.f32.mrb[31].mxu1  ;;  %v13446_v48 = vld [vmem:[#allocation11 + $0x914] ss:$20 sps:$4 sm:$0xff]   ;;  %v13444_v33 = vld [vmem:[#allocation11 + $0x910] ss:$20 sps:$4 sm:$0xff]  }
 0x623   :  { %v8293_v58 = vmax.f32 %v12935_v49, 0.0  ;;  %v14272_v8 = vpack.c.bf16 %v8290_v50, %v8290_v50  ;;  %v13447_v0 = vld [vmem:[#allocation11 + $0x918] ss:$20 sps:$4 sm:$0xff]   ;;  %v13452_v32 = vld [vmem:[#allocation11 + $0x93c] ss:$20 sps:$4 sm:$0xff]  }
 0x624   :  { %v14270_v59 = vpack.c.bf16 %v8291_v11, %v8291_v11  ;;  %v13455_v50 = vld [vmem:[#allocation11 + $0x944] ss:$20 sps:$4 sm:$0xff]   ;;  %v13453_v57 = vld [vmem:[#allocation11 + $0x940] ss:$20 sps:$4 sm:$0xff]  }
 0x625   :  { %v14276_v47 = vpack.c.bf16 %v8293_v58, %v8293_v58  ;;  %v13450_v49 = vld [vmem:[#allocation11 + $0x938] ss:$20 sps:$4 sm:$0xff]   ;;  %v13456_v55 = vld [vmem:[#allocation11 + $0x960] ss:$20 sps:$4 sm:$0xff]   ;;  %v13459_v58 = vld [vmem:[#allocation11 + $0x968] ss:$20 sps:$4 sm:$0xff]  }
 0x626   :  { %10491 = vmatprep.mubr.bf16.mxu0 %v14270_v59  ;;  %10655 = vmatprep.mubr.bf16.mxu1 %v14270_v59  ;;  %v13458_v52 = vld [vmem:[#allocation11 + $0x964] ss:$20 sps:$4 sm:$0xff]   ;;  %v13461_v11 = vld [vmem:[#allocation11 + $0x96c] ss:$20 sps:$4 sm:$0xff]  }
 0x627   :  { %10492 = vmatmul.mubr.bf16.vlgmr.msra.gmra.mrb[16].mxu0 %v14272_v8  ;;  %10656 = vmatmul.mubr.bf16.vlgmr.msra.gmra.mrb[32].mxu1 %v14272_v8 }
 0x628   :  { %10501 = vmatpush1.bf16.msra.mxu0 %v13384_v35  ;;  %10665 = vmatpush1.bf16.msra.mxu1 %v13387_v10  ;;  %v13464_v35 = vld [vmem:[#allocation11 + $0x98c] ss:$20 sps:$4 sm:$0xff]   ;;  %v13467_v10 = vld [vmem:[#allocation11 + $0x994] ss:$20 sps:$4 sm:$0xff]  }
 0x629   :  { %10532 = vmatprep.mubr.bf16.mxu0 %v14276_v47  ;;  %10696 = vmatprep.mubr.bf16.mxu1 %v14276_v47 }
 0x62a   :  { %10502 = vmatprep.subr.bf16.mxu0 %v13392_v29  ;;  %10666 = vmatprep.subr.bf16.mxu1 %v13395_v61  ;;  %v13462_v29 = vld [vmem:[#allocation11 + $0x988] ss:$20 sps:$4 sm:$0xff]   ;;  %v13465_v61 = vld [vmem:[#allocation11 + $0x990] ss:$20 sps:$4 sm:$0xff]  }
 0x62c   :  { %10503 = vmatpush1.bf16.msra.mxu0 %v13390_v62  ;;  %10667 = vmatpush1.bf16.msra.mxu1 %v13393_v36  ;;  %v13586_v62 = vld [vmem:[#allocation10] sm:$0xff] }
 0x62d   :  { %10504 = vmatprep.subr.bf16.mxu0 %v13398_v31  ;;  %10668 = vmatprep.subr.bf16.mxu1 %v13401_v5  ;;  %v1841_v36 = vrot.slane %v13586_v62, %v14099_v7  ;;  %v13470_v31 = vld [vmem:[#allocation11 + $0x9b4] ss:$20 sps:$4 sm:$0xff]   ;;  %v13473_v5 = vld [vmem:[#allocation11 + $0x9bc] ss:$20 sps:$4 sm:$0xff]  }
 0x62e   :  { %v13480_v7 = vld [vmem:[#allocation11 + $0x150] ss:$20 sps:$4 sm:$0xff]   ;;  %v13521_v62 = vld [vmem:[#allocation11 + $0x920] ss:$20 sps:$4 sm:$0xff]  }
 0x630   :  { %10505 = vmatpush1.bf16.msra.mxu0 %v13396_v9  ;;  %10669 = vmatpush1.bf16.msra.mxu1 %v13399_v18  ;;  %v13468_v9 = vld [vmem:[#allocation11 + $0x9b0] ss:$20 sps:$4 sm:$0xff]   ;;  %v13471_v18 = vld [vmem:[#allocation11 + $0x9b8] ss:$20 sps:$4 sm:$0xff]  }
 0x631   :  { %10506 = vmatprep.subr.bf16.mxu0 %v13404_v51  ;;  %10670 = vmatprep.subr.bf16.mxu1 %v13407_v30  ;;  %v12934_v51 = vadd.f32 %v14268_v15, %v1841_v36  ;;  %v13476_v30 = vld [vmem:[#allocation11 + $0x9dc] ss:$20 sps:$4 sm:$0xff]   ;;  %v13522_v36 = vld [vmem:[#allocation11 + $0x560] ss:$20 sps:$4 sm:$0xff]  }
 0x632   :  { %v13483_v15 = vld [vmem:[#allocation11 + $0x290] ss:$20 sps:$4 sm:$0xff]  }
 0x634   :  { %10507 = vmatpush1.bf16.msra.mxu0 %v13402_v22  ;;  %10671 = vmatpush1.bf16.msra.mxu1 %v13405_v2  ;;  %v13479_v22 = vld [vmem:[#allocation11 + $0x9e4] ss:$20 sps:$4 sm:$0xff]  }
 0x635   :  { %10508 = vmatprep.subr.bf16.mxu0 %v13410_v17  ;;  %10672 = vmatprep.subr.bf16.mxu1 %v13413_v23  ;;  %v13474_v2 = vld [vmem:[#allocation11 + $0x9d8] ss:$20 sps:$4 sm:$0xff]   ;;  %v13477_v17 = vld [vmem:[#allocation11 + $0x9e0] ss:$20 sps:$4 sm:$0xff]   ;;  %v8292_v23 = vmax.f32 %v12934_v51, 0.0 }
 0x636   :  { %v13531_v51 = vld [vmem:[#allocation11 + $0x830] ss:$20 sps:$4 sm:$0xff]  }
 0x638   :  { %10509 = vmatpush1.bf16.msra.mxu0 %v13408_v25  ;;  %10673 = vmatpush1.bf16.msra.mxu1 %v13411_v27  ;;  %v13481_v25 = vld [vmem:[#allocation11 + $0x3d0] ss:$20 sps:$4 sm:$0xff]  }
 0x639   :  { %10510 = vmatprep.subr.bf16.mxu0 %v13416_v28  ;;  %10674 = vmatprep.subr.bf16.mxu1 %v13419_v13  ;;  %v13482_v27 = vld [vmem:[#allocation11 + $0x10] ss:$20 sps:$4 sm:$0xff]   ;;  %v14284_v28 = vpack.c.bf16 %v8292_v23, %v8292_v23  ;;  %v13484_v13 = vld [vmem:[#allocation11 + $0x178] ss:$20 sps:$4 sm:$0xff]   ;;  %v13536_v23 = vld [vmem:[#allocation11 + $0x740] ss:$20 sps:$4 sm:$0xff]  }
 0x63c   :  { %10511 = vmatpush1.bf16.msra.mxu0 %v13414_v34  ;;  %10675 = vmatpush1.bf16.msra.mxu1 %v13417_v1  ;;  %v13485_v34 = vld [vmem:[#allocation11 + $0x3f8] ss:$20 sps:$4 sm:$0xff]  }
 0x63d   :  { %10512 = vmatprep.subr.bf16.mxu0 %v13422_v6  ;;  %10676 = vmatprep.subr.bf16.mxu1 %v13425_v38  ;;  %v13486_v1 = vld [vmem:[#allocation11 + $0x38] ss:$20 sps:$4 sm:$0xff]   ;;  %v13488_v38 = vld [vmem:[#allocation11 + $0x1a0] ss:$20 sps:$4 sm:$0xff]  }
 0x63e   :  { %v13487_v6 = vld [vmem:[#allocation11 + $0x2b8] ss:$20 sps:$4 sm:$0xff]  }
 0x640   :  { %10513 = vmatpush1.bf16.msra.mxu0 %v13420_v39  ;;  %10677 = vmatpush1.bf16.msra.mxu1 %v13423_v24  ;;  %v13489_v39 = vld [vmem:[#allocation11 + $0x420] ss:$20 sps:$4 sm:$0xff]  }
 0x641   :  { %10514 = vmatprep.subr.bf16.mxu0 %v13428_v3  ;;  %10678 = vmatprep.subr.bf16.mxu1 %v13431_v56  ;;  %v13490_v24 = vld [vmem:[#allocation11 + $0x60] ss:$20 sps:$4 sm:$0xff]   ;;  %v13492_v56 = vld [vmem:[#allocation11 + $0x1c8] ss:$20 sps:$4 sm:$0xff]  }
 0x642   :  { %v13491_v3 = vld [vmem:[#allocation11 + $0x2e0] ss:$20 sps:$4 sm:$0xff]  }
 0x644   :  { %10515 = vmatpush1.bf16.msra.mxu0 %v13426_v41  ;;  %10679 = vmatpush1.bf16.msra.mxu1 %v13429_v43  ;;  %v13493_v41 = vld [vmem:[#allocation11 + $0x448] ss:$20 sps:$4 sm:$0xff]  }
 0x645   :  { %10516 = vmatprep.subr.bf16.mxu0 %v13434_v44  ;;  %10680 = vmatprep.subr.bf16.mxu1 %v13437_v53  ;;  %v13494_v43 = vld [vmem:[#allocation11 + $0x88] ss:$20 sps:$4 sm:$0xff]   ;;  %v13496_v44 = vld [vmem:[#allocation11 + $0x1f0] ss:$20 sps:$4 sm:$0xff]  }
 0x646   :  { %v13498_v53 = vld [vmem:[#allocation11 + $0xb0] ss:$20 sps:$4 sm:$0xff]  }
 0x648   :  { %10517 = vmatpush1.bf16.msra.mxu0 %v13432_v60  ;;  %10681 = vmatpush1.bf16.msra.mxu1 %v13435_v46  ;;  %v13499_v60 = vld [vmem:[#allocation11 + $0x330] ss:$20 sps:$4 sm:$0xff]   ;;  %v13500_v46 = vld [vmem:[#allocation11 + $0x218] ss:$20 sps:$4 sm:$0xff]  }
 0x649   :  { %10518 = vmatprep.subr.bf16.mxu0 %v13440_v4  ;;  %10682 = vmatprep.subr.bf16.mxu1 %v13443_v20  ;;  %v13501_v4 = vld [vmem:[#allocation11 + $0x498] ss:$20 sps:$4 sm:$0xff]  }
 0x64a   :  { %v13502_v20 = vld [vmem:[#allocation11 + $0xd8] ss:$20 sps:$4 sm:$0xff]  }
 0x64c   :  { %10519 = vmatpush1.bf16.msra.mxu0 %v13438_v19  ;;  %10683 = vmatpush1.bf16.msra.mxu1 %v13441_v37  ;;  %v13503_v19 = vld [vmem:[#allocation11 + $0x358] ss:$20 sps:$4 sm:$0xff]   ;;  %v13504_v37 = vld [vmem:[#allocation11 + $0x240] ss:$20 sps:$4 sm:$0xff]  }
 0x64d   :  { %10520 = vmatprep.subr.bf16.mxu0 %v13446_v48  ;;  %10684 = vmatprep.subr.bf16.mxu1 %v13449_v42  ;;  %v13505_v48 = vld [vmem:[#allocation11 + $0x4c0] ss:$20 sps:$4 sm:$0xff]  }
 0x64e   :  { %v13506_v42 = vld [vmem:[#allocation11 + $0x100] ss:$20 sps:$4 sm:$0xff]  }
 0x650   :  { %10521 = vmatpush1.bf16.msra.mxu0 %v13444_v33  ;;  %10685 = vmatpush1.bf16.msra.mxu1 %v13447_v0  ;;  %v13507_v33 = vld [vmem:[#allocation11 + $0x380] ss:$20 sps:$4 sm:$0xff]   ;;  %v13508_v0 = vld [vmem:[#allocation11 + $0x268] ss:$20 sps:$4 sm:$0xff]  }
 0x651   :  { %10522 = vmatprep.subr.bf16.mxu0 %v13452_v32  ;;  %10686 = vmatprep.subr.bf16.mxu1 %v13455_v50  ;;  %v13509_v32 = vld [vmem:[#allocation11 + $0x4e8] ss:$20 sps:$4 sm:$0xff]  }
 0x652   :  { %v13510_v50 = vld [vmem:[#allocation11 + $0x128] ss:$20 sps:$4 sm:$0xff]  }
 0x654   :  { %10523 = vmatpush1.bf16.msra.mxu0 %v13450_v49  ;;  %10687 = vmatpush1.bf16.msra.mxu1 %v13453_v57  ;;  %v13511_v49 = vld [vmem:[#allocation11 + $0x3a8] ss:$20 sps:$4 sm:$0xff]   ;;  %v13512_v57 = vld [vmem:[#allocation11 + $0x650] ss:$20 sps:$4 sm:$0xff]  }
 0x655   :  { %10524 = vmatprep.subr.bf16.mxu0 %v13458_v52  ;;  %10688 = vmatprep.subr.bf16.mxu1 %v13461_v11  ;;  %v13513_v52 = vld [vmem:[#allocation11 + $0x8d0] ss:$20 sps:$4 sm:$0xff]  }
 0x656   :  { %v13514_v11 = vld [vmem:[#allocation11 + $0x510] ss:$20 sps:$4 sm:$0xff]  }
 0x658   :  { %10525 = vmatpush1.bf16.msra.mxu0 %v13456_v55  ;;  %10689 = vmatpush1.bf16.msra.mxu1 %v13459_v58  ;;  %v13515_v55 = vld [vmem:[#allocation11 + $0x790] ss:$20 sps:$4 sm:$0xff]   ;;  %v13516_v58 = vld [vmem:[#allocation11 + $0x678] ss:$20 sps:$4 sm:$0xff]  }
 0x659   :  { %10526 = vmatprep.subr.bf16.mxu0 %v13464_v35  ;;  %10690 = vmatprep.subr.bf16.mxu1 %v13467_v10  ;;  %v13517_v35 = vld [vmem:[#allocation11 + $0x8f8] ss:$20 sps:$4 sm:$0xff]  }
 0x65a   :  { %v13518_v10 = vld [vmem:[#allocation11 + $0x538] ss:$20 sps:$4 sm:$0xff]  }
 0x65c   :  { %10527 = vmatpush1.bf16.msra.mxu0 %v13462_v29  ;;  %10691 = vmatpush1.bf16.msra.mxu1 %v13465_v61  ;;  %v13519_v29 = vld [vmem:[#allocation11 + $0x7b8] ss:$20 sps:$4 sm:$0xff]   ;;  %v13520_v61 = vld [vmem:[#allocation11 + $0x6a0] ss:$20 sps:$4 sm:$0xff]  }
 0x65d   :  { %10528 = vmatprep.subr.bf16.mxu0 %v13470_v31  ;;  %10692 = vmatprep.subr.bf16.mxu1 %v13473_v5  ;;  %v13524_v31 = vld [vmem:[#allocation11 + $0x6c8] ss:$20 sps:$4 sm:$0xff]  }
 0x65e   :  { %v13526_v5 = vld [vmem:[#allocation11 + $0x588] ss:$20 sps:$4 sm:$0xff]  }
 0x660   :  { %10529 = vmatpush1.bf16.msra.mxu0 %v13468_v9  ;;  %10693 = vmatpush1.bf16.msra.mxu1 %v13471_v18  ;;  %v13528_v9 = vld [vmem:[#allocation11 + $0x6f0] ss:$20 sps:$4 sm:$0xff]  }
 0x661   :  { %10530 = vmatprep.subr.bf16.mxu0 %v13476_v30  ;;  %10694 = vmatprep.subr.bf16.mxu1 %v13479_v22  ;;  %v13529_v18 = vld [vmem:[#allocation11 + $0x970] ss:$20 sps:$4 sm:$0xff]   ;;  %v13532_v30 = vld [vmem:[#allocation11 + $0x718] ss:$20 sps:$4 sm:$0xff]  }
 0x662   :  { %v13533_v22 = vld [vmem:[#allocation11 + $0x998] ss:$20 sps:$4 sm:$0xff]  }
 0x664   :  { %10531 = vmatpush1.bf16.msra.mxu0 %v13474_v2  ;;  %10695 = vmatpush1.bf16.msra.mxu1 %v13477_v17  ;;  %v13534_v2 = vld [vmem:[#allocation11 + $0x5d8] ss:$20 sps:$4 sm:$0xff]  }
 0x665   :  { %12767 = vmatprep.subr.bf16.mxu0 %v13480_v7  ;;  %12789 = vmatprep.subr.bf16.mxu1 %v13481_v25  ;;  %v13535_v17 = vld [vmem:[#allocation11 + $0x858] ss:$20 sps:$4 sm:$0xff]   ;;  %v13537_v7 = vld [vmem:[#allocation11 + $0x9c0] ss:$20 sps:$4 sm:$0xff]  }
 0x666   :  { %v13538_v25 = vld [vmem:[#allocation11 + $0x600] ss:$20 sps:$4 sm:$0xff]  }
 0x667   :  { %10533 = vmatmul.mubr.bf16.vlgmr.msra.gmra.mrb[16].mxu0 %v14284_v28  ;;  %10697 = vmatmul.mubr.bf16.vlgmr.msra.gmra.mrb[32].mxu1 %v14284_v28 }
 0x668   :  { %12768 = vmatpush3.bf16.msra.mxu0 %v13482_v27  ;;  %10737 = vmatprep.mubr.bf16.mxu0 %v14235_v54  ;;  %v13495_v54 = vld [vmem:[#allocation11 + $0x308] ss:$20 sps:$4 sm:$0xff]   ;;  %v13539_v27 = vld [vmem:[#allocation11 + $0x880] ss:$20 sps:$4 sm:$0xff]  }
 0x669   :  { %12790 = vmatpush3.bf16.msra.mxu1 %v13483_v15  ;;  %10777 = vmatprep.mubr.bf16.mxu1 %v14249_v12  ;;  %v13497_v12 = vld [vmem:[#allocation11 + $0x470] ss:$20 sps:$4 sm:$0xff]   ;;  %v13540_v15 = vld [vmem:[#allocation11 + $0x768] ss:$20 sps:$4 sm:$0xff]  }
 0x66a   :  { %12769 = vmatprep.subr.bf16.mxu0 %v13484_v13  ;;  %12791 = vmatprep.subr.bf16.mxu1 %v13485_v34  ;;  %v13541_v13 = vld [vmem:[#allocation11 + $0x9e8] ss:$20 sps:$4 sm:$0xff]  }
 0x66b   :  { %v13542_v34 = vld [vmem:[#allocation11 + $0x628] ss:$20 sps:$4 sm:$0xff]  }
 0x66c   :  { %12770 = vmatpush3.bf16.msra.mxu0 %v13486_v1  ;;  %v13543_v1 = vld [vmem:[#allocation11 + $0x8a8] ss:$20 sps:$4 sm:$0xff]  }
 0x66d   :  { %12792 = vmatpush3.bf16.msra.mxu1 %v13487_v6  ;;  %12771 = vmatprep.subr.bf16.mxu0 %v13488_v38  ;;  %v13544_v6 = vld [vmem:[#allocation14 + $0x40] sm:$0xff]  }
 0x66e   :  { %12793 = vmatprep.subr.bf16.mxu1 %v13489_v39  ;;  %v13545_v38 = vld [vmem:[#allocation14 + $0xc0] sm:$0xff]  }
 0x66f   :  { %v13546_v39 = vld [vmem:[#allocation14] sm:$0xff]  }
 0x670   :  { %12772 = vmatpush3.bf16.msra.mxu0 %v13490_v24  ;;  %v13547_v24 = vld [vmem:[#allocation14 + $0x80] sm:$0xff]  }
 0x671   :  { %12794 = vmatpush3.bf16.msra.mxu1 %v13491_v3  ;;  %12773 = vmatprep.subr.bf16.mxu0 %v13492_v56  ;;  %v13548_v3 = vld [vmem:[#allocation14 + $0x48] sm:$0xff]  }
 0x672   :  { %12795 = vmatprep.subr.bf16.mxu1 %v13493_v41  ;;  %v13549_v56 = vld [vmem:[#allocation14 + $0xc8] sm:$0xff]  }
 0x673   :  { %v13550_v41 = vld [vmem:[#allocation14 + $0x8] sm:$0xff]  }
 0x674   :  { %12774 = vmatpush3.bf16.msra.mxu0 %v13494_v43  ;;  %v13551_v43 = vld [vmem:[#allocation14 + $0x88] sm:$0xff]  }
 0x675   :  { %12796 = vmatpush3.bf16.msra.mxu1 %v13495_v54  ;;  %12775 = vmatprep.subr.bf16.mxu0 %v13496_v44  ;;  %v13552_v54 = vld [vmem:[#allocation14 + $0x50] sm:$0xff]  }
 0x676   :  { %12797 = vmatprep.subr.bf16.mxu1 %v13497_v12  ;;  %v13553_v44 = vld [vmem:[#allocation14 + $0xd0] sm:$0xff]  }
 0x677   :  { %v13554_v12 = vld [vmem:[#allocation14 + $0x10] sm:$0xff]  }
 0x678   :  { %12776 = vmatpush3.bf16.msra.mxu0 %v13498_v53  ;;  %v13555_v53 = vld [vmem:[#allocation14 + $0x90] sm:$0xff]  }
 0x679   :  { %12798 = vmatpush3.bf16.msra.mxu1 %v13499_v60  ;;  %12777 = vmatprep.subr.bf16.mxu0 %v13500_v46  ;;  %v13556_v60 = vld [vmem:[#allocation14 + $0x58] sm:$0xff]  }
 0x67a   :  { %12799 = vmatprep.subr.bf16.mxu1 %v13501_v4  ;;  %v13557_v46 = vld [vmem:[#allocation14 + $0xd8] sm:$0xff]   ;;  %v13560_v4 = vld [vmem:[#allocation14 + $0x60] sm:$0xff]  }
 0x67c   :  { %12778 = vmatpush3.bf16.msra.mxu0 %v13502_v20  ;;  %v13561_v20 = vld [vmem:[#allocation14 + $0xe0] sm:$0xff]  }
 0x67d   :  { %12800 = vmatpush3.bf16.msra.mxu1 %v13503_v19  ;;  %12779 = vmatprep.subr.bf16.mxu0 %v13504_v37  ;;  %v13562_v19 = vld [vmem:[#allocation14 + $0x20] sm:$0xff]  }
 0x67e   :  { %12801 = vmatprep.subr.bf16.mxu1 %v13505_v48  ;;  %v13563_v37 = vld [vmem:[#allocation14 + $0xa0] sm:$0xff]   ;;  %v13564_v48 = vld [vmem:[#allocation14 + $0x68] sm:$0xff]  }
 0x680   :  { %12780 = vmatpush3.bf16.msra.mxu0 %v13506_v42  ;;  %v13565_v42 = vld [vmem:[#allocation14 + $0xe8] sm:$0xff]  }
 0x681   :  { %12802 = vmatpush3.bf16.msra.mxu1 %v13507_v33  ;;  %12781 = vmatprep.subr.bf16.mxu0 %v13508_v0  ;;  %v13566_v33 = vld [vmem:[#allocation14 + $0x28] sm:$0xff]  }
 0x682   :  { %12803 = vmatprep.subr.bf16.mxu1 %v13509_v32  ;;  %v13567_v0 = vld [vmem:[#allocation14 + $0xa8] sm:$0xff]   ;;  %v13568_v32 = vld [vmem:[#allocation14 + $0x70] sm:$0xff]  }
 0x684   :  { %12782 = vmatpush3.bf16.msra.mxu0 %v13510_v50  ;;  %v13569_v50 = vld [vmem:[#allocation14 + $0xf0] sm:$0xff]  }
 0x685   :  { %12804 = vmatpush3.bf16.msra.mxu1 %v13511_v49  ;;  %12811 = vmatprep.subr.bf16.mxu0 %v13512_v57  ;;  %v13570_v49 = vld [vmem:[#allocation14 + $0x30] sm:$0xff]  }
 0x686   :  { %12833 = vmatprep.subr.bf16.mxu1 %v13513_v52  ;;  %v13571_v57 = vld [vmem:[#allocation14 + $0xb0] sm:$0xff]   ;;  %v13572_v52 = vld [vmem:[#allocation14 + $0x78] sm:$0xff]  }
 0x687   :  { %10738 = vmatmul.mubr.bf16.vlgmr.msra.gmra.mrb[20].mxu0 %v14247_v63  ;;  %v13523_v63 = vld [vmem:[#allocation11 + $0x7e0] ss:$20 sps:$4 sm:$0xff]  }
 0x688   :  { %10778 = vmatmul.mubr.bf16.vlgmr.msra.gmra.mrb[36].mxu1 %v14258_v45  ;;  %12812 = vmatpush3.bf16.msra.mxu0 %v13514_v11  ;;  %v13525_v45 = vld [vmem:[#allocation11 + $0x948] ss:$20 sps:$4 sm:$0xff]  }
 0x689   :  { %10817 = vmatprep.mubr.bf16.mxu0 %v14270_v59  ;;  %12834 = vmatpush3.bf16.msra.mxu1 %v13515_v55  ;;  %v13527_v59 = vld [vmem:[#allocation11 + $0x808] ss:$20 sps:$4 sm:$0xff]  }
 0x68a   :  { %10857 = vmatprep.mubr.bf16.mxu1 %v14276_v47  ;;  %12813 = vmatprep.subr.bf16.mxu0 %v13516_v58  ;;  %v13530_v47 = vld [vmem:[#allocation11 + $0x5b0] ss:$20 sps:$4 sm:$0xff]  }
 0x68b   :  { %12835 = vmatprep.subr.bf16.mxu1 %v13517_v35  ;;  %v13573_v11 = vld [vmem:[#allocation14 + $0xf8] sm:$0xff]   ;;  %v13836_v35 = vmov 0.0  }
 0x68c   :  { %12814 = vmatpush3.bf16.msra.mxu0 %v13518_v10  ;;  %v13574_v55 = vld [vmem:[#allocation14 + $0x38] sm:$0xff]  }
 0x68d   :  { %12836 = vmatpush3.bf16.msra.mxu1 %v13519_v29  ;;  %12815 = vmatprep.subr.bf16.mxu0 %v13520_v61  ;;  %v13575_v58 = vld [vmem:[#allocation14 + $0xb8] sm:$0xff]  }
 0x68e   :  { %12837 = vmatprep.subr.bf16.mxu1 %v13521_v62  ;;  %v14297_v10 = vld [vmem:[#allocation13] sm:$0x1f] }
 0x68f   :  { %v8691_v29 = vrot.slane %v14297_v10, %v14029_v14  ;;  %v8699_v61 = vrot.slane %v14297_v10, %v14088_v40  ;;  %v8695_v62 = vrot.slane %v14297_v10, %v14034_v16 }
 0x690   :  { %12816 = vmatpush3.bf16.msra.mxu0 %v13522_v36  ;;  %v8703_v36 = vrot.slane %v14297_v10, %v14041_v26 }
 0x691   :  { %12838 = vmatpush3.bf16.msra.mxu1 %v13523_v63  ;;  %12817 = vmatprep.subr.bf16.mxu0 %v13524_v31 }
 0x692   :  { %12839 = vmatprep.subr.bf16.mxu1 %v13525_v45 }
 0x694   :  { %12818 = vmatpush3.bf16.msra.mxu0 %v13526_v5 }
 0x695   :  { %12840 = vmatpush3.bf16.msra.mxu1 %v13527_v59  ;;  %12819 = vmatprep.subr.bf16.mxu0 %v13528_v9 }
 0x696   :  { %12841 = vmatprep.subr.bf16.mxu1 %v13529_v18 }
 0x698   :  { %12820 = vmatpush3.bf16.msra.mxu0 %v13530_v47 }
 0x699   :  { %12842 = vmatpush3.bf16.msra.mxu1 %v13531_v51  ;;  %12821 = vmatprep.subr.bf16.mxu0 %v13532_v30 }
 0x69a   :  { %12843 = vmatprep.subr.bf16.mxu1 %v13533_v22 }
 0x69c   :  { %12822 = vmatpush3.bf16.msra.mxu0 %v13534_v2 }
 0x69d   :  { %12844 = vmatpush3.bf16.msra.mxu1 %v13535_v17  ;;  %12823 = vmatprep.subr.bf16.mxu0 %v13536_v23 }
 0x69e   :  { %12845 = vmatprep.subr.bf16.mxu1 %v13537_v7 }
 0x6a0   :  { %12824 = vmatpush3.bf16.msra.mxu0 %v13538_v25  ;;  %v13576_v25 = vld [vmem:[#allocation14 + $0x100] sm:$0xff]  }
 0x6a1   :  { %12846 = vmatpush3.bf16.msra.mxu1 %v13539_v27  ;;  %12825 = vmatprep.subr.bf16.mxu0 %v13540_v15  ;;  %v13577_v15 = vld [vmem:[#allocation14 + $0x108] sm:$0xff]  }
 0x6a2   :  { %12847 = vmatprep.subr.bf16.mxu1 %v13541_v13  ;;  %v13578_v13 = vld [vmem:[#allocation14 + $0x110] sm:$0xff]  }
 0x6a4   :  { %12826 = vmatpush3.bf16.msra.mxu0 %v13542_v34  ;;  %v13579_v34 = vld [vmem:[#allocation14 + $0x118] sm:$0xff]  }
 0x6a5   :  { %12848 = vmatpush3.bf16.msra.mxu1 %v13543_v1  ;;  %12855 = vmatprep.subr.bf16.mxu0 %v13544_v6  ;;  %v13580_v1 = vld [vmem:[#allocation14 + $0x120] sm:$0xff]   ;;  %v13581_v6 = vld [vmem:[#allocation14 + $0x128] sm:$0xff]  }
 0x6a6   :  { %12877 = vmatprep.subr.bf16.mxu1 %v13545_v38  ;;  %v13582_v38 = vld [vmem:[#allocation14 + $0x130] sm:$0xff]  }
 0x6a7   :  { %10818 = vmatmul.mubr.bf16.vlgmr.msra.gmra.mrb[24].mxu0 %v14272_v8  ;;  %v13558_v8 = vld [vmem:[#allocation14 + $0x18] sm:$0xff]  }
 0x6a8   :  { %10858 = vmatmul.mubr.bf16.vlgmr.msra.gmra.mrb[40].mxu1 %v14284_v28  ;;  %12856 = vmatpush3.bf16.msra.mxu0 %v13546_v39  ;;  %v13559_v28 = vld [vmem:[#allocation14 + $0x98] sm:$0xff]  }
 0x6a9   :  { %12878 = vmatpush3.bf16.msra.mxu1 %v13547_v24  ;;  %12857 = vmatprep.subr.bf16.mxu0 %v13548_v3  ;;  %v8707_v24 = vrot.slane %v14297_v10, %v14068_v21 }
 0x6aa   :  { %12879 = vmatprep.subr.bf16.mxu1 %v13549_v56 }
 0x6ac   :  { %12858 = vmatpush3.bf16.msra.mxu0 %v13550_v41 }
 0x6ad   :  { %12880 = vmatpush3.bf16.msra.mxu1 %v13551_v43  ;;  %12859 = vmatprep.subr.bf16.mxu0 %v13552_v54 }
 0x6ae   :  { %12881 = vmatprep.subr.bf16.mxu1 %v13553_v44  ;;  %v13583_v44 = vld [vmem:[#allocation14 + $0x138] sm:$0xff]  }
 0x6b0   :  { %12860 = vmatpush3.bf16.msra.mxu0 %v13554_v12 }
 0x6b1   :  { %12882 = vmatpush3.bf16.msra.mxu1 %v13555_v53  ;;  %12861 = vmatprep.subr.bf16.mxu0 %v13556_v60 }
 0x6b2   :  { %12883 = vmatprep.subr.bf16.mxu1 %v13557_v46 }
 0x6b4   :  { %12862 = vmatpush3.bf16.msra.mxu0 %v13558_v8 }
 0x6b5   :  { %12884 = vmatpush3.bf16.msra.mxu1 %v13559_v28  ;;  %12863 = vmatprep.subr.bf16.mxu0 %v13560_v4 }
 0x6b6   :  { %12885 = vmatprep.subr.bf16.mxu1 %v13561_v20 }
 0x6b8   :  { %12864 = vmatpush3.bf16.msra.mxu0 %v13562_v19 }
 0x6b9   :  { %12886 = vmatpush3.bf16.msra.mxu1 %v13563_v37  ;;  %12865 = vmatprep.subr.bf16.mxu0 %v13564_v48 }
 0x6ba   :  { %12887 = vmatprep.subr.bf16.mxu1 %v13565_v42 }
 0x6bc   :  { %12866 = vmatpush3.bf16.msra.mxu0 %v13566_v33 }
 0x6bd   :  { %12888 = vmatpush3.bf16.msra.mxu1 %v13567_v0  ;;  %12867 = vmatprep.subr.bf16.mxu0 %v13568_v32 }
 0x6be   :  { %12889 = vmatprep.subr.bf16.mxu1 %v13569_v50 }
 0x6c0   :  { %12868 = vmatpush3.bf16.msra.mxu0 %v13570_v49 }
 0x6c1   :  { %12890 = vmatpush3.bf16.msra.mxu1 %v13571_v57  ;;  %12869 = vmatprep.subr.bf16.mxu0 %v13572_v52 }
 0x6c2   :  { %12891 = vmatprep.subr.bf16.mxu1 %v13573_v11 }
 0x6c4   :  { %12870 = vmatpush3.bf16.msra.mxu0 %v13574_v55 }
 0x6c5   :  { %12892 = vmatpush3.bf16.msra.mxu1 %v13575_v58  ;;  %12908 = vmatprep.subr.bf16.mxu0 %v13836_v35  ;;  %v12726_v58 = vld [vmem:[#allocation16] ss:$0 sm:$0xff] }
 0x73a   :  { %v10534_v63 = vpop.f32.mrb[16].mxu0  ;;  %v10698_v31 = vpop.f32.mrb[32].mxu1 }
 0x73b   :  { %v12936_v45 = vadd.f32 %v10534_v63, %v8691_v29  ;;  %v12938_v5 = vadd.f32 %v10698_v31, %v8699_v61  ;;  %v10536_v59 = vpop.f32.mrb[17].mxu0  ;;  %v10700_v9 = vpop.f32.mrb[33].mxu1 }
 0x73c   :  { %v12937_v18 = vadd.f32 %v10536_v59, %v8695_v62  ;;  %v12939_v47 = vadd.f32 %v10700_v9, %v8703_v36  ;;  %v10538_v51 = vpop.f32.mrb[18].mxu0  ;;  %v10702_v30 = vpop.f32.mrb[34].mxu1 }
 0x73d   :  { %v10865_v14 = vmax.f32 %v12936_v45, 0.0  ;;  %v10867_v22 = vmax.f32 %v12938_v5, 0.0  ;;  %v10539_v2 = vpop.f32.mrb[19].mxu0  ;;  %v10703_v40 = vpop.f32.mrb[35].mxu1 }
 0x73e   :  { %v10866_v17 = vmax.f32 %v12937_v18, 0.0  ;;  %v10868_v23 = vmax.f32 %v12939_v47, 0.0 }
 0x73f   :  { %v10870_v26 = vpack.c.bf16 %v10865_v14, %v10865_v14  ;;  %v10872_v27 = vpack.c.bf16 %v10867_v22, %v10867_v22 }
 0x740   :  { %v10871_v16 = vpack.c.bf16 %v10866_v17, %v10866_v17  ;;  %v10873_v7 = vpack.c.bf16 %v10868_v23, %v10868_v23 }
 0x742   :  { %11234 = vmatprep.mubr.bf16.mxu0 %v10871_v16  ;;  %11274 = vmatprep.mubr.bf16.mxu1 %v10873_v7 }
 0x743   :  { %11235 = vmatmul.mubr.bf16.vlgmr.msra.gmra.mrb[28].mxu0 %v10870_v26  ;;  %11275 = vmatmul.mubr.bf16.vlgmr.msra.gmra.mrb[44].mxu1 %v10872_v27 }
 0x744   :  { %12909 = vmatpush3.bf16.msra.mxu0 %v13576_v25  ;;  %12924 = vmatprep.mubr.msk.bf16.mxu0 %vm13837_vm1, %v13836_v35 }
 0x745   :  { %12910 = vmatprep.subr.bf16.mxu0 %v13836_v35 }
 0x748   :  { %12911 = vmatpush3.bf16.msra.mxu0 %v13577_v15 }
 0x749   :  { %12912 = vmatprep.subr.bf16.mxu0 %v13836_v35 }
 0x74c   :  { %12913 = vmatpush3.bf16.msra.mxu0 %v13578_v13 }
 0x74d   :  { %12914 = vmatprep.subr.bf16.mxu0 %v13836_v35 }
 0x750   :  { %12915 = vmatpush3.bf16.msra.mxu0 %v13579_v34 }
 0x751   :  { %12916 = vmatprep.subr.bf16.mxu0 %v13836_v35 }
 0x754   :  { %12917 = vmatpush3.bf16.msra.mxu0 %v13580_v1 }
 0x755   :  { %12918 = vmatprep.subr.bf16.mxu0 %v13836_v35 }
 0x758   :  { %12919 = vmatpush3.bf16.msra.mxu0 %v13581_v6 }
 0x759   :  { %12920 = vmatprep.subr.bf16.mxu0 %v13836_v35 }
 0x75a   :  { %v12783_v39 = vpop.f32.mrb[20].mxu0 }
 0x75b   :  { %v12805_v3 = vpop.f32.mrb[36].mxu1  ;;  %v12784_v56 = vpop.f32.mrb[21].mxu0 }
 0x75c   :  { %v12785_v41 = vadd.f32 %v12784_v56, %v12783_v39  ;;  %v12806_v43 = vpop.f32.mrb[37].mxu1  ;;  %v12786_v54 = vpop.f32.mrb[22].mxu0  ;;  %12921 = vmatpush3.bf16.msra.mxu0 %v13582_v38 }
 0x75d   :  { %v12807_v12 = vadd.f32 %v12806_v43, %v12805_v3  ;;  %v12808_v53 = vpop.f32.mrb[38].mxu1  ;;  %v12787_v60 = vpop.f32.mrb[23].mxu0  ;;  %12922 = vmatprep.subr.bf16.mxu0 %v13836_v35 }
 0x75e   :  { %v10740_v46 = vadd.f32 %v12785_v41, %v8707_v24  ;;  %v12809_v8 = vpop.f32.mrb[39].mxu1 }
 0x760   :  { %v10780_v28 = vadd.f32 %v12807_v12, %v10740_v46  ;;  %12923 = vmatpush3.bf16.msra.mxu0 %v13583_v44 }
 0x77a   :  { %v12827_v4 = vpop.f32.mrb[24].mxu0 }
 0x77b   :  { %v12849_v20 = vpop.f32.mrb[40].mxu1  ;;  %v12828_v19 = vpop.f32.mrb[25].mxu0 }
 0x77c   :  { %v12829_v21 = vadd.f32 %v12828_v19, %v12827_v4  ;;  %v12850_v37 = vpop.f32.mrb[41].mxu1  ;;  %v12830_v48 = vpop.f32.mrb[26].mxu0 }
 0x77d   :  { %v12851_v42 = vadd.f32 %v12850_v37, %v12849_v20  ;;  %v12852_v33 = vpop.f32.mrb[42].mxu1  ;;  %v12831_v0 = vpop.f32.mrb[27].mxu0 }
 0x77e   :  { %v10820_v32 = vadd.f32 %v12829_v21, %v10780_v28  ;;  %v12853_v50 = vpop.f32.mrb[43].mxu1 }
 0x780   :  { %v10860_v49 = vadd.f32 %v12851_v42, %v10820_v32 }
 0x782   :  { %v10869_v57 = vmax.f32 %v10860_v49, 0.0 }
 0x784   :  { %v10874_v52 = vpack.c.bf16 %v10869_v57, %v10869_v57 }
 0x786   :  { %12925 = vmatmul.mubr.bf16.vlgmr.msra.gmra.mrb[32].mxu0 %v10874_v52 }
 0x816   :  { %v12871_v11 = vpop.f32.mrb[28].mxu0  ;;  %v12893_v55 = vpop.f32.mrb[44].mxu1 }
 0x817   :  { %v12872_v35 = vpop.f32.mrb[29].mxu0  ;;  %v12894_v10 = vpop.f32.mrb[45].mxu1 }
 0x818   :  { %v12873_v29 = vadd.f32 %v12872_v35, %v12871_v11  ;;  %v12895_v61 = vadd.f32 %v12894_v10, %v12893_v55  ;;  %v12874_v62 = vpop.f32.mrb[30].mxu0  ;;  %v12896_v36 = vpop.f32.mrb[46].mxu1 }
 0x819   :  { %v12875_v63 = vpop.f32.mrb[31].mxu0  ;;  %v12897_v31 = vpop.f32.mrb[47].mxu1 }
 0x81a   :  { %v11237_v45 = vadd.f32 %v12873_v29, %v12726_v58 }
 0x81c   :  { %v11277_v5 = vadd.f32 %v12895_v61, %v11237_v45 }
 0x859   :  { %v11316_v59 = vpop.f32.mrb[32].mxu0 }
 0x85a   :  { %v11317_v9 = vadd.f32 %v11316_v59, %v11277_v5  ;;  %v12926_v18 = vpop.f32.mrb[33].mxu0 }
 0x85b   :  { %v11319_v47 = vpop.f32.mrb[34].mxu0 }
 0x85c   :  { %11322 = vst [vmem:[#allocation17] sm:$0xff] %v11317_v9  ;;  %v12927_v51 = vpop.f32.mrb[35].mxu0 }
 0x85d   :  { %13796 = shalt.err (!%p13793_p6)
}
 0x85e   :  { %s13797_s29 = scalar_lea.hbm %s14338_s9, 128 }
 0x85f   :  { %p13798_p7 = scmp.ne.s32.totalorder %s14338_s9, %s13797_s29  ;;  %p13801_p8 = scmp.lt.u32.totalorder %s13797_s29, %s14338_s9 }
 0x861   :  { %p13803_p9 = pnand %p13801_p8, %p13798_p7 }
 0x863   :  { %13806 = shalt.err (!%p13803_p9)
}
 0x864   :  { %11332 = dma.vmem_to_hbm [thread:$0]  %s11330_s27, 128, %s14338_s9, [#allocation4]  }
 0x865   :  { %13817 = dma.done.wait [#allocation4], 128  }
 0x866   :  { %13818 = vsyncadd [#allocation4], 4294967168 }
 0x867   :  { %11336 = vsyncpa [#allocation3], 1 }
 0x868   :  { %11337 = vsyncpa [#allocation6], 1 }
 0x869   :  { %11338 = vsyncpa [#allocation9], 1 }
 0x86a   :  { %11339 = vsyncpa [#allocation12], 1 }
 0x86b   :  { %11340 = vsyncpa [#allocation15], 1 }
 0x86c   :  { %11341 = vsyncpa [#allocation4], 1 }

</bundles_post_ra>
